<compile_context>
chip_gen: v6e
topology: v6e:2x2x1
jax: 0.10.0
libtpu: 0.0.40
codegen_flags: <defaults>
</compile_context>

<pallas_src>
import functools

import jax
import jax.numpy as jnp
from jax import lax
from jax.experimental import pallas as pl
from jax.experimental.pallas import tpu as pltpu

_EPS = 1e-5


# ----------------------------- kernel body --------------------------------- #
def weight_network_kernel(
    ctx_ref, conf_ref,                     # [TB, ctx_dim], [TB, conf_dim]
    vecs_ref,                              # [1, P] packed f32 LN affine / biases
    ctx_w_ref, conf_w_ref,                 # [ctx_dim, 512] bf16, [conf_dim, 128] f32
    w1c_ref, w1f_ref, w2_ref, w3_ref,      # mlp weights (bf16)
    out_ref,                               # [TB, vocab]
    *, conf_dim, segs,
):
    f32, bf16 = jnp.float32, jnp.bfloat16

    def vec(name):                         # static slice of the packed buffer
        off, width = segs[name]
        return vecs_ref[0:1, off:off + width]

    # --- ctx branch: LayerNorm -> Linear(ctx_dim, 512) -> ReLU --------------
    x = ctx_ref[...].astype(f32)
    mu = jnp.mean(x, axis=-1, keepdims=True)
    xc = x - mu
    var = jnp.mean(xc * xc, axis=-1, keepdims=True)
    xn = xc * lax.rsqrt(var + _EPS) * vec("ctx_g") + vec("ctx_b")
    ctx_emb = jnp.maximum(
        jnp.dot(xn.astype(bf16), ctx_w_ref[...], preferred_element_type=f32)
        + vec("ctx_lb"),
        0.0,
    ).astype(bf16)

    # --- conf branch: LayerNorm -> Linear(conf_dim, 128) -> ReLU ------------
    # conf_dim is tiny (5): the projection is conf_dim VPU broadcast-FMAs
    # against the rows of conf_w (a K=5 MXU matmul would be wasted).
    c = conf_ref[...].astype(f32)
    cmu = jnp.mean(c, axis=-1, keepdims=True)
    cc = c - cmu
    cvar = jnp.mean(cc * cc, axis=-1, keepdims=True)
    cn = cc * lax.rsqrt(cvar + _EPS) * vec("conf_g") + vec("conf_b")
    conf_w = conf_w_ref[...]                                 # (conf_dim, 128) f32
    acc = vec("conf_lb") + cn[:, 0:1] * conf_w[0:1, :]
    for k in range(1, conf_dim):                             # unrolled, static
        acc = acc + cn[:, k:k + 1] * conf_w[k:k + 1, :]
    conf_emb = jnp.maximum(acc, 0.0).astype(bf16)

    # --- concat-free MLP: [ctx_emb|conf_emb] @ w1 = ctx@w1c + conf@w1f ------
    h = jnp.dot(ctx_emb, w1c_ref[...], preferred_element_type=f32)
    h = h + jnp.dot(conf_emb, w1f_ref[...], preferred_element_type=f32)
    h = jnp.maximum(h + vec("b1"), 0.0).astype(bf16)
    h = jnp.maximum(
        jnp.dot(h, w2_ref[...], preferred_element_type=f32) + vec("b2"),
        0.0,
    ).astype(bf16)
    logits = jnp.dot(h, w3_ref[...], preferred_element_type=f32) + vec("b3")
    out_ref[...] = jax.nn.sigmoid(logits).astype(out_ref.dtype)


# ------------------------- kernel-side param prep --------------------------- #
def prepare_kernel_params(params):
    """One-time prep (amortized across calls): pack the small (1,N) vectors
    into one 128-aligned flat buffer, split w1 at the ctx projection width,
    cast matmul weights to bf16 (conf_w stays f32 for the VPU path)."""
    bf16 = jnp.bfloat16
    ctx_out = params["ctx_w"].shape[1]          # 512 per module definition

    def pad128(n):
        return ((n + 127) // 128) * 128

    vec_items = [
        ("ctx_g", params["ctx_g"]), ("ctx_b", params["ctx_b"]),
        ("conf_g", params["conf_g"]), ("conf_b", params["conf_b"]),
        ("ctx_lb", params["ctx_lb"]), ("conf_lb", params["conf_lb"]),
        ("b1", params["b1"]), ("b2", params["b2"]), ("b3", params["b3"]),
    ]
    segs, parts, off = {}, [], 0
    for name, v in vec_items:
        w = v.shape[-1]
        segs[name] = (off, w)
        parts.append(v.reshape(1, w).astype(jnp.float32))
        if pad128(w) != w:
            parts.append(jnp.zeros((1, pad128(w) - w), jnp.float32))
        off += pad128(w)
    vecs = jnp.concatenate(parts, axis=-1)

    return {
        "vecs": vecs, "segs": segs,
        "ctx_w": params["ctx_w"].astype(bf16),
        "conf_w": params["conf_w"].astype(jnp.float32),     # VPU FMAs, keep f32
        "w1_ctx": params["w1"][:ctx_out].astype(bf16),
        "w1_conf": params["w1"][ctx_out:].astype(bf16),
        "w2": params["w2"].astype(bf16),
        "w3": params["w3"].astype(bf16),
        "conf_dim": params["conf_w"].shape[0],
    }


# ------------------------------ wrapper ------------------------------------ #
def weight_network_forward(ctx_hidden, conf_feat, kp, *, batch_tile=None,
                           out_dtype=jnp.float32):
    B, ctx_dim = ctx_hidden.shape
    _, conf_dim = conf_feat.shape
    assert conf_dim == kp["conf_dim"]
    ctx_out, h1 = kp["w1_ctx"].shape
    conf_out = kp["w1_conf"].shape[0]
    h2, vocab = kp["w3"].shape

    if batch_tile is None:
        # Single grid step is best on 1-TC v5e/v6e (grid = serial loop); cap
        # rows so f32 ctx/out tiles + bf16 activations stay well inside v7x's
        # 64 MiB VMEM.  On v7x with large B, pass batch_tile = B // (2*k) so
        # both TensorCores get k >= 2 pipelined steps each.
        batch_tile = min(B, 1024)
    assert B % batch_tile == 0 and batch_tile % 8 == 0

    def row_spec(feat):
        return pl.BlockSpec((batch_tile, feat), lambda i: (i, 0))

    def const_spec(shape):
        return pl.BlockSpec(shape, lambda i: (0,) * len(shape))

    weights = [kp["ctx_w"], kp["conf_w"], kp["w1_ctx"], kp["w1_conf"],
               kp["w2"], kp["w3"]]
    in_specs = ([row_spec(ctx_dim), row_spec(conf_dim),
                 const_spec(kp["vecs"].shape)]
                + [const_spec(w.shape) for w in weights])

    flops = 2 * B * (ctx_dim * ctx_out + conf_dim * conf_out
                     + (ctx_out + conf_out) * h1 + h1 * h2 + h2 * vocab)
    bytes_accessed = (
        ctx_hidden.size * ctx_hidden.dtype.itemsize
        + conf_feat.size * conf_feat.dtype.itemsize
        + B * vocab * jnp.dtype(out_dtype).itemsize
        + sum(w.size * w.dtype.itemsize for w in weights)
        + kp["vecs"].size * 4)
    cost = pl.CostEstimate(flops=flops,
                           transcendentals=B * (vocab + 2),
                           bytes_accessed=bytes_accessed)

    kernel = functools.partial(weight_network_kernel,
                               conf_dim=conf_dim, segs=kp["segs"])

    return pl.pallas_call(
        kernel,
        out_shape=jax.ShapeDtypeStruct((B, vocab), out_dtype),
        grid=(B // batch_tile,),
        in_specs=in_specs,
        out_specs=pl.BlockSpec((batch_tile, vocab), lambda i: (i, 0)),
        compiler_params=pltpu.CompilerParams(
            dimension_semantics=("parallel",)),
        cost_estimate=cost,
    )(ctx_hidden, conf_feat, kp["vecs"], *weights)


# ------------------------- deterministic init ------------------------------ #
def init_params(key, vocab_size, hidden_dims, ctx_dim, conf_dim):
    ks = jax.random.split(key, 10)

    def torch_linear(kw, kb, fan_in, fan_out):
        # PyTorch nn.Linear default: U(-1/sqrt(fan_in), 1/sqrt(fan_in))
        bound = 1.0 / jnp.sqrt(fan_in)
        w = jax.random.uniform(kw, (fan_in, fan_out), jnp.float32, -bound, bound)
        b = jax.random.uniform(kb, (1, fan_out), jnp.float32, -bound, bound)
        return w, b

    def kaiming_linear(kw, fan_in, fan_out):
        # kaiming_normal_(fan_in, relu): std = sqrt(2 / fan_in); bias = 0.1
        std = jnp.sqrt(2.0 / fan_in)
        w = jax.random.normal(kw, (fan_in, fan_out), jnp.float32) * std
        b = jnp.full((1, fan_out), 0.1, jnp.float32)
        return w, b

    ctx_w, ctx_lb = torch_linear(ks[0], ks[1], ctx_dim, 512)
    conf_w, conf_lb = torch_linear(ks[2], ks[3], conf_dim, 128)
    w1, b1 = kaiming_linear(ks[4], 512 + 128, hidden_dims[0])
    w2, b2 = kaiming_linear(ks[5], hidden_dims[0], hidden_dims[1])
    w3, b3 = kaiming_linear(ks[6], hidden_dims[1], vocab_size)

    return {
        "ctx_g": jnp.ones((1, ctx_dim), jnp.float32),
        "ctx_b": jnp.zeros((1, ctx_dim), jnp.float32),
        "ctx_w": ctx_w, "ctx_lb": ctx_lb,
        "conf_g": jnp.ones((1, conf_dim), jnp.float32),
        "conf_b": jnp.zeros((1, conf_dim), jnp.float32),
        "conf_w": conf_w, "conf_lb": conf_lb,
        "w1": w1, "b1": b1, "w2": w2, "b2": b2, "w3": w3, "b3": b3,
    }


# --------------------------- pure-JAX reference ----------------------------- #
def reference_forward(ctx_hidden, conf_feat, p):
    def ln(x, g, b):
        mu = jnp.mean(x, -1, keepdims=True)
        var = jnp.mean((x - mu) ** 2, -1, keepdims=True)
        return (x - mu) / jnp.sqrt(var + _EPS) * g + b

    ctx_emb = jax.nn.relu(ln(ctx_hidden, p["ctx_g"], p["ctx_b"]) @ p["ctx_w"] + p["ctx_lb"])
    conf_emb = jax.nn.relu(ln(conf_feat, p["conf_g"], p["conf_b"]) @ p["conf_w"] + p["conf_lb"])
    h = jnp.concatenate([ctx_emb, conf_emb], axis=-1)
    h = jax.nn.relu(h @ p["w1"] + p["b1"])
    h = jax.nn.relu(h @ p["w2"] + p["b2"])
    return jax.nn.sigmoid(h @ p["w3"] + p["b3"])


# --------------------------------- main ------------------------------------ #
if __name__ == "__main__":
    # conf_proj->128 and ctx_proj->512 are fixed by the module; the free shapes
    # are chosen lane-dense (multiples of 128).  B=256 runs as a single grid
    # step (best for 1-TC chips); pass batch_tile=128 on v7x to shard 2 TCs.
    B, CTX_DIM, CONF_DIM = 256, 256, 5
    HIDDEN_DIMS, VOCAB = [128, 128], 128

    key = jax.random.PRNGKey(0)
    k_ctx, k_conf, k_params = jax.random.split(key, 3)

    ctx_hidden = jax.random.normal(k_ctx, (B, CTX_DIM), jnp.float32)
    conf_feat = jax.random.normal(k_conf, (B, CONF_DIM), jnp.float32)
    params = init_params(k_params, VOCAB, HIDDEN_DIMS, CTX_DIM, CONF_DIM)
    kparams = prepare_kernel_params(params)

    out = weight_network_forward(ctx_hidden, conf_feat, kparams)
    out = jax.block_until_ready(out)

    ref = reference_forward(ctx_hidden, conf_feat, params)
    assert out.shape == (B, VOCAB)
    # bf16 MXU operands / bf16-resident activations with f32 accumulation,
    # vs. a pure-f32 reference, on a sigmoid output.
    assert jnp.allclose(out, ref, atol=2e-2, rtol=0.0), "mismatch vs JAX reference"

    print("KERNEL_OK")
</pallas_src>

<mosaic_0001>
module attributes {stable_mosaic.version = 11 : i64} {
  func.func @weight_network_kernel(%arg0: i32, %arg1: memref<256x256xf32, #tpu.memory_space<vmem>>, %arg2: memref<256x5xf32, #tpu.memory_space<vmem>>, %arg3: memref<1x1792xf32, #tpu.memory_space<vmem>>, %arg4: memref<256x512xbf16, #tpu.memory_space<vmem>>, %arg5: memref<5x128xf32, #tpu.memory_space<vmem>>, %arg6: memref<512x128xbf16, #tpu.memory_space<vmem>>, %arg7: memref<128x128xbf16, #tpu.memory_space<vmem>>, %arg8: memref<128x128xbf16, #tpu.memory_space<vmem>>, %arg9: memref<128x128xbf16, #tpu.memory_space<vmem>>, %arg10: memref<256x128xf32, #tpu.memory_space<vmem>>) attributes {dimension_semantics = [#tpu.dimension_semantics<parallel>], iteration_bounds = array<i64: 1>, scalar_prefetch = 0 : i64, scratch_operands = 0 : i64, tpu.core_type = #tpu.core_type<tc>, window_params = [{transform_indices = @transform_0, window_bounds = array<i64: 256, 256>}, {transform_indices = @transform_1, window_bounds = array<i64: 256, 5>}, {pipeline_mode = #tpu.pipeline_mode<synchronous>, transform_indices = @transform_2, window_bounds = array<i64: 1, 1792>}, {pipeline_mode = #tpu.pipeline_mode<synchronous>, transform_indices = @transform_3, window_bounds = array<i64: 256, 512>}, {pipeline_mode = #tpu.pipeline_mode<synchronous>, transform_indices = @transform_4, window_bounds = array<i64: 5, 128>}, {pipeline_mode = #tpu.pipeline_mode<synchronous>, transform_indices = @transform_5, window_bounds = array<i64: 512, 128>}, {pipeline_mode = #tpu.pipeline_mode<synchronous>, transform_indices = @transform_6, window_bounds = array<i64: 128, 128>}, {pipeline_mode = #tpu.pipeline_mode<synchronous>, transform_indices = @transform_7, window_bounds = array<i64: 128, 128>}, {pipeline_mode = #tpu.pipeline_mode<synchronous>, transform_indices = @transform_8, window_bounds = array<i64: 128, 128>}, {transform_indices = @transform_9, window_bounds = array<i64: 256, 128>}]} {
    %c0 = arith.constant 0 : index
    %c0_0 = arith.constant 0 : index
    %0 = vector.load %arg1[%c0, %c0_0] : memref<256x256xf32, #tpu.memory_space<vmem>>, vector<256x256xf32>
    %cst = arith.constant dense<0.000000e+00> : vector<256xf32>
    %1 = vector.multi_reduction <add>, %0, %cst [1] : vector<256x256xf32> to vector<256xf32>
    %2 = vector.shape_cast %1 : vector<256xf32> to vector<256x1xf32>
    %cst_1 = arith.constant 2.560000e+02 : f32
    %3 = vector.broadcast %cst_1 : f32 to vector<256x1xf32>
    %4 = arith.divf %2, %3 : vector<256x1xf32>
    %5 = vector.broadcast %4 : vector<256x1xf32> to vector<256x256xf32>
    %6 = arith.subf %0, %5 : vector<256x256xf32>
    %7 = arith.mulf %6, %6 : vector<256x256xf32>
    %cst_2 = arith.constant dense<0.000000e+00> : vector<256xf32>
    %8 = vector.multi_reduction <add>, %7, %cst_2 [1] : vector<256x256xf32> to vector<256xf32>
    %9 = vector.shape_cast %8 : vector<256xf32> to vector<256x1xf32>
    %cst_3 = arith.constant 2.560000e+02 : f32
    %10 = vector.broadcast %cst_3 : f32 to vector<256x1xf32>
    %11 = arith.divf %9, %10 : vector<256x1xf32>
    %cst_4 = arith.constant 9.99999974E-6 : f32
    %12 = vector.broadcast %cst_4 : f32 to vector<256x1xf32>
    %13 = arith.addf %11, %12 : vector<256x1xf32>
    %14 = math.rsqrt %13 : vector<256x1xf32>
    %15 = vector.broadcast %14 : vector<256x1xf32> to vector<256x256xf32>
    %16 = arith.mulf %6, %15 : vector<256x256xf32>
    %c0_5 = arith.constant 0 : index
    %c0_6 = arith.constant 0 : index
    %17 = vector.load %arg3[%c0_5, %c0_6] : memref<1x1792xf32, #tpu.memory_space<vmem>>, vector<1x256xf32>
    %18 = vector.broadcast %17 : vector<1x256xf32> to vector<256x256xf32>
    %19 = arith.mulf %16, %18 : vector<256x256xf32>
    %c0_7 = arith.constant 0 : index
    %c256 = arith.constant 256 : index
    %20 = vector.load %arg3[%c0_7, %c256] : memref<1x1792xf32, #tpu.memory_space<vmem>>, vector<1x256xf32>
    %21 = vector.broadcast %20 : vector<1x256xf32> to vector<256x256xf32>
    %22 = arith.addf %19, %21 : vector<256x256xf32>
    %23 = arith.truncf %22 : vector<256x256xf32> to vector<256x256xbf16>
    %c0_8 = arith.constant 0 : index
    %c0_9 = arith.constant 0 : index
    %24 = vector.load %arg4[%c0_8, %c0_9] : memref<256x512xbf16, #tpu.memory_space<vmem>>, vector<256x512xbf16>
    %cst_10 = arith.constant dense<0.000000e+00> : vector<256x512xf32>
    %25 = tpu.matmul %23, %24, %cst_10 {dimension_numbers = #tpu.dot_dimension_numbers<[1], [0], [0], [1], [0, 0, 1, 1], [], []>} : vector<256x256xbf16>, vector<256x512xbf16>, vector<256x512xf32> -> vector<256x512xf32>
    %c0_11 = arith.constant 0 : index
    %c768 = arith.constant 768 : index
    %26 = vector.load %arg3[%c0_11, %c768] : memref<1x1792xf32, #tpu.memory_space<vmem>>, vector<1x512xf32>
    %27 = vector.broadcast %26 : vector<1x512xf32> to vector<256x512xf32>
    %28 = arith.addf %25, %27 : vector<256x512xf32>
    %cst_12 = arith.constant 0.000000e+00 : f32
    %29 = vector.broadcast %cst_12 : f32 to vector<256x512xf32>
    %30 = arith.maximumf %28, %29 : vector<256x512xf32>
    %31 = arith.truncf %30 : vector<256x512xf32> to vector<256x512xbf16>
    %c0_13 = arith.constant 0 : index
    %c0_14 = arith.constant 0 : index
    %32 = vector.load %arg2[%c0_13, %c0_14] : memref<256x5xf32, #tpu.memory_space<vmem>>, vector<256x5xf32>
    %cst_15 = arith.constant dense<0.000000e+00> : vector<256xf32>
    %33 = vector.multi_reduction <add>, %32, %cst_15 [1] : vector<256x5xf32> to vector<256xf32>
    %34 = vector.shape_cast %33 : vector<256xf32> to vector<256x1xf32>
    %cst_16 = arith.constant 5.000000e+00 : f32
    %35 = vector.broadcast %cst_16 : f32 to vector<256x1xf32>
    %36 = arith.divf %34, %35 : vector<256x1xf32>
    %37 = vector.broadcast %36 : vector<256x1xf32> to vector<256x5xf32>
    %38 = arith.subf %32, %37 : vector<256x5xf32>
    %39 = arith.mulf %38, %38 : vector<256x5xf32>
    %cst_17 = arith.constant dense<0.000000e+00> : vector<256xf32>
    %40 = vector.multi_reduction <add>, %39, %cst_17 [1] : vector<256x5xf32> to vector<256xf32>
    %41 = vector.shape_cast %40 : vector<256xf32> to vector<256x1xf32>
    %cst_18 = arith.constant 5.000000e+00 : f32
    %42 = vector.broadcast %cst_18 : f32 to vector<256x1xf32>
    %43 = arith.divf %41, %42 : vector<256x1xf32>
    %cst_19 = arith.constant 9.99999974E-6 : f32
    %44 = vector.broadcast %cst_19 : f32 to vector<256x1xf32>
    %45 = arith.addf %43, %44 : vector<256x1xf32>
    %46 = math.rsqrt %45 : vector<256x1xf32>
    %47 = vector.broadcast %46 : vector<256x1xf32> to vector<256x5xf32>
    %48 = arith.mulf %38, %47 : vector<256x5xf32>
    %c0_20 = arith.constant 0 : index
    %c512 = arith.constant 512 : index
    %49 = vector.load %arg3[%c0_20, %c512] : memref<1x1792xf32, #tpu.memory_space<vmem>>, vector<1x5xf32>
    %50 = vector.broadcast %49 : vector<1x5xf32> to vector<256x5xf32>
    %51 = arith.mulf %48, %50 : vector<256x5xf32>
    %c0_21 = arith.constant 0 : index
    %c640 = arith.constant 640 : index
    %52 = vector.load %arg3[%c0_21, %c640] : memref<1x1792xf32, #tpu.memory_space<vmem>>, vector<1x5xf32>
    %53 = vector.broadcast %52 : vector<1x5xf32> to vector<256x5xf32>
    %54 = arith.addf %51, %53 : vector<256x5xf32>
    %c0_22 = arith.constant 0 : index
    %c0_23 = arith.constant 0 : index
    %55 = vector.load %arg5[%c0_22, %c0_23] : memref<5x128xf32, #tpu.memory_space<vmem>>, vector<5x128xf32>
    %c0_24 = arith.constant 0 : index
    %c1280 = arith.constant 1280 : index
    %56 = vector.load %arg3[%c0_24, %c1280] : memref<1x1792xf32, #tpu.memory_space<vmem>>, vector<1x128xf32>
    %57 = vector.extract_strided_slice %54 {offsets = [0, 0], sizes = [256, 1], strides = [1, 1]} : vector<256x5xf32> to vector<256x1xf32>
    %58 = vector.extract_strided_slice %55 {offsets = [0, 0], sizes = [1, 128], strides = [1, 1]} : vector<5x128xf32> to vector<1x128xf32>
    %59 = vector.broadcast %57 : vector<256x1xf32> to vector<256x128xf32>
    %60 = vector.broadcast %58 : vector<1x128xf32> to vector<256x128xf32>
    %61 = arith.mulf %59, %60 : vector<256x128xf32>
    %62 = vector.broadcast %56 : vector<1x128xf32> to vector<256x128xf32>
    %63 = arith.addf %62, %61 : vector<256x128xf32>
    %64 = vector.extract_strided_slice %54 {offsets = [0, 1], sizes = [256, 1], strides = [1, 1]} : vector<256x5xf32> to vector<256x1xf32>
    %65 = vector.extract_strided_slice %55 {offsets = [1, 0], sizes = [1, 128], strides = [1, 1]} : vector<5x128xf32> to vector<1x128xf32>
    %66 = vector.broadcast %64 : vector<256x1xf32> to vector<256x128xf32>
    %67 = vector.broadcast %65 : vector<1x128xf32> to vector<256x128xf32>
    %68 = arith.mulf %66, %67 : vector<256x128xf32>
    %69 = arith.addf %63, %68 : vector<256x128xf32>
    %70 = vector.extract_strided_slice %54 {offsets = [0, 2], sizes = [256, 1], strides = [1, 1]} : vector<256x5xf32> to vector<256x1xf32>
    %71 = vector.extract_strided_slice %55 {offsets = [2, 0], sizes = [1, 128], strides = [1, 1]} : vector<5x128xf32> to vector<1x128xf32>
    %72 = vector.broadcast %70 : vector<256x1xf32> to vector<256x128xf32>
    %73 = vector.broadcast %71 : vector<1x128xf32> to vector<256x128xf32>
    %74 = arith.mulf %72, %73 : vector<256x128xf32>
    %75 = arith.addf %69, %74 : vector<256x128xf32>
    %76 = vector.extract_strided_slice %54 {offsets = [0, 3], sizes = [256, 1], strides = [1, 1]} : vector<256x5xf32> to vector<256x1xf32>
    %77 = vector.extract_strided_slice %55 {offsets = [3, 0], sizes = [1, 128], strides = [1, 1]} : vector<5x128xf32> to vector<1x128xf32>
    %78 = vector.broadcast %76 : vector<256x1xf32> to vector<256x128xf32>
    %79 = vector.broadcast %77 : vector<1x128xf32> to vector<256x128xf32>
    %80 = arith.mulf %78, %79 : vector<256x128xf32>
    %81 = arith.addf %75, %80 : vector<256x128xf32>
    %82 = vector.extract_strided_slice %54 {offsets = [0, 4], sizes = [256, 1], strides = [1, 1]} : vector<256x5xf32> to vector<256x1xf32>
    %83 = vector.extract_strided_slice %55 {offsets = [4, 0], sizes = [1, 128], strides = [1, 1]} : vector<5x128xf32> to vector<1x128xf32>
    %84 = vector.broadcast %82 : vector<256x1xf32> to vector<256x128xf32>
    %85 = vector.broadcast %83 : vector<1x128xf32> to vector<256x128xf32>
    %86 = arith.mulf %84, %85 : vector<256x128xf32>
    %87 = arith.addf %81, %86 : vector<256x128xf32>
    %cst_25 = arith.constant 0.000000e+00 : f32
    %88 = vector.broadcast %cst_25 : f32 to vector<256x128xf32>
    %89 = arith.maximumf %87, %88 : vector<256x128xf32>
    %90 = arith.truncf %89 : vector<256x128xf32> to vector<256x128xbf16>
    %c0_26 = arith.constant 0 : index
    %c0_27 = arith.constant 0 : index
    %91 = vector.load %arg6[%c0_26, %c0_27] : memref<512x128xbf16, #tpu.memory_space<vmem>>, vector<512x128xbf16>
    %cst_28 = arith.constant dense<0.000000e+00> : vector<256x128xf32>
    %92 = tpu.matmul %31, %91, %cst_28 {dimension_numbers = #tpu.dot_dimension_numbers<[1], [0], [0], [1], [0, 0, 1, 1], [], []>} : vector<256x512xbf16>, vector<512x128xbf16>, vector<256x128xf32> -> vector<256x128xf32>
    %c0_29 = arith.constant 0 : index
    %c0_30 = arith.constant 0 : index
    %93 = vector.load %arg7[%c0_29, %c0_30] : memref<128x128xbf16, #tpu.memory_space<vmem>>, vector<128x128xbf16>
    %cst_31 = arith.constant dense<0.000000e+00> : vector<256x128xf32>
    %94 = tpu.matmul %90, %93, %cst_31 {dimension_numbers = #tpu.dot_dimension_numbers<[1], [0], [0], [1], [0, 0, 1, 1], [], []>} : vector<256x128xbf16>, vector<128x128xbf16>, vector<256x128xf32> -> vector<256x128xf32>
    %95 = arith.addf %92, %94 : vector<256x128xf32>
    %c0_32 = arith.constant 0 : index
    %c1408 = arith.constant 1408 : index
    %96 = vector.load %arg3[%c0_32, %c1408] : memref<1x1792xf32, #tpu.memory_space<vmem>>, vector<1x128xf32>
    %97 = vector.broadcast %96 : vector<1x128xf32> to vector<256x128xf32>
    %98 = arith.addf %95, %97 : vector<256x128xf32>
    %cst_33 = arith.constant 0.000000e+00 : f32
    %99 = vector.broadcast %cst_33 : f32 to vector<256x128xf32>
    %100 = arith.maximumf %98, %99 : vector<256x128xf32>
    %101 = arith.truncf %100 : vector<256x128xf32> to vector<256x128xbf16>
    %c0_34 = arith.constant 0 : index
    %c0_35 = arith.constant 0 : index
    %102 = vector.load %arg8[%c0_34, %c0_35] : memref<128x128xbf16, #tpu.memory_space<vmem>>, vector<128x128xbf16>
    %cst_36 = arith.constant dense<0.000000e+00> : vector<256x128xf32>
    %103 = tpu.matmul %101, %102, %cst_36 {dimension_numbers = #tpu.dot_dimension_numbers<[1], [0], [0], [1], [0, 0, 1, 1], [], []>} : vector<256x128xbf16>, vector<128x128xbf16>, vector<256x128xf32> -> vector<256x128xf32>
    %c0_37 = arith.constant 0 : index
    %c1536 = arith.constant 1536 : index
    %104 = vector.load %arg3[%c0_37, %c1536] : memref<1x1792xf32, #tpu.memory_space<vmem>>, vector<1x128xf32>
    %105 = vector.broadcast %104 : vector<1x128xf32> to vector<256x128xf32>
    %106 = arith.addf %103, %105 : vector<256x128xf32>
    %cst_38 = arith.constant 0.000000e+00 : f32
    %107 = vector.broadcast %cst_38 : f32 to vector<256x128xf32>
    %108 = arith.maximumf %106, %107 : vector<256x128xf32>
    %109 = arith.truncf %108 : vector<256x128xf32> to vector<256x128xbf16>
    %c0_39 = arith.constant 0 : index
    %c0_40 = arith.constant 0 : index
    %110 = vector.load %arg9[%c0_39, %c0_40] : memref<128x128xbf16, #tpu.memory_space<vmem>>, vector<128x128xbf16>
    %cst_41 = arith.constant dense<0.000000e+00> : vector<256x128xf32>
    %111 = tpu.matmul %109, %110, %cst_41 {dimension_numbers = #tpu.dot_dimension_numbers<[1], [0], [0], [1], [0, 0, 1, 1], [], []>} : vector<256x128xbf16>, vector<128x128xbf16>, vector<256x128xf32> -> vector<256x128xf32>
    %c0_42 = arith.constant 0 : index
    %c1664 = arith.constant 1664 : index
    %112 = vector.load %arg3[%c0_42, %c1664] : memref<1x1792xf32, #tpu.memory_space<vmem>>, vector<1x128xf32>
    %113 = vector.broadcast %112 : vector<1x128xf32> to vector<256x128xf32>
    %114 = arith.addf %111, %113 : vector<256x128xf32>
    %115 = arith.negf %114 : vector<256x128xf32>
    %116 = math.exp %115 : vector<256x128xf32>
    %cst_43 = arith.constant 1.000000e+00 : f32
    %117 = vector.broadcast %cst_43 : f32 to vector<256x128xf32>
    %118 = arith.addf %117, %116 : vector<256x128xf32>
    %119 = arith.divf %117, %118 : vector<256x128xf32>
    %c0_44 = arith.constant 0 : index
    %c0_45 = arith.constant 0 : index
    %120 = vector.load %arg10[%c0_44, %c0_45] : memref<256x128xf32, #tpu.memory_space<vmem>>, vector<256x128xf32>
    tpu.vector_store %arg10[%c0_44, %c0_45], %119 {strides = array<i32>} : memref<256x128xf32, #tpu.memory_space<vmem>>, vector<256x128xf32>,
    return
  }
  func.func @transform_0(%arg0: i32) -> (i32, i32) {
    %c0_i32 = arith.constant 0 : i32
    %c0_i32_0 = arith.constant 0 : i32
    return %arg0, %c0_i32 : i32, i32
  }
  func.func @transform_1(%arg0: i32) -> (i32, i32) {
    %c0_i32 = arith.constant 0 : i32
    %c0_i32_0 = arith.constant 0 : i32
    return %arg0, %c0_i32 : i32, i32
  }
  func.func @transform_2(%arg0: i32) -> (i32, i32) {
    %c0_i32 = arith.constant 0 : i32
    %c0_i32_0 = arith.constant 0 : i32
    %c0_i32_1 = arith.constant 0 : i32
    return %c0_i32, %c0_i32_0 : i32, i32
  }
  func.func @transform_3(%arg0: i32) -> (i32, i32) {
    %c0_i32 = arith.constant 0 : i32
    %c0_i32_0 = arith.constant 0 : i32
    %c0_i32_1 = arith.constant 0 : i32
    return %c0_i32, %c0_i32_0 : i32, i32
  }
  func.func @transform_4(%arg0: i32) -> (i32, i32) {
    %c0_i32 = arith.constant 0 : i32
    %c0_i32_0 = arith.constant 0 : i32
    %c0_i32_1 = arith.constant 0 : i32
    return %c0_i32, %c0_i32_0 : i32, i32
  }
  func.func @transform_5(%arg0: i32) -> (i32, i32) {
    %c0_i32 = arith.constant 0 : i32
    %c0_i32_0 = arith.constant 0 : i32
    %c0_i32_1 = arith.constant 0 : i32
    return %c0_i32, %c0_i32_0 : i32, i32
  }
  func.func @transform_6(%arg0: i32) -> (i32, i32) {
    %c0_i32 = arith.constant 0 : i32
    %c0_i32_0 = arith.constant 0 : i32
    %c0_i32_1 = arith.constant 0 : i32
    return %c0_i32, %c0_i32_0 : i32, i32
  }
  func.func @transform_7(%arg0: i32) -> (i32, i32) {
    %c0_i32 = arith.constant 0 : i32
    %c0_i32_0 = arith.constant 0 : i32
    %c0_i32_1 = arith.constant 0 : i32
    return %c0_i32, %c0_i32_0 : i32, i32
  }
  func.func @transform_8(%arg0: i32) -> (i32, i32) {
    %c0_i32 = arith.constant 0 : i32
    %c0_i32_0 = arith.constant 0 : i32
    %c0_i32_1 = arith.constant 0 : i32
    return %c0_i32, %c0_i32_0 : i32, i32
  }
  func.func @transform_9(%arg0: i32) -> (i32, i32) {
    %c0_i32 = arith.constant 0 : i32
    %c0_i32_0 = arith.constant 0 : i32
    return %arg0, %c0_i32 : i32, i32
  }
}

</mosaic_0001>

<bundles_post_ra>
// kernel: tpu_custom_call.1
= control target key start
LH: loop header
LB: loop body
LE: loop exit
PB: predicated region body
PF: predicated region fallthrough
CT: control target
= control target key end

     0   :  { %14 = vsyncpa [#allocation3], 0  ;;  %s9328_s0 = inlined_call_operand.hbm [shape: f32[256,256], index: 0, kind: input, shape index: {}]   ;;  %s9329_s1 = inlined_call_operand.vmem [shape: f32[256,5], index: 1, kind: input, shape index: {}]   ;;  %s9330_s2 = inlined_call_operand.vmem [shape: f32[1,1792], index: 2, kind: input, shape index: {}]   ;;  %s9331_s3 = inlined_call_operand.hbm [shape: bf16[256,512], index: 3, kind: input, shape index: {}]   ;;  %s9332_s4 = inlined_call_operand.vmem [shape: f32[5,128], index: 4, kind: input, shape index: {}]   ;;  %s9333_s5 = inlined_call_operand.vmem [shape: bf16[512,128], index: 5, kind: input, shape index: {}]   ;;  %s9334_s6 = inlined_call_operand.hbm [shape: bf16[128,128], index: 6, kind: input, shape index: {}]   ;;  %s9335_s7 = inlined_call_operand.hbm [shape: bf16[128,128], index: 7, kind: input, shape index: {}]   ;;  %s9336_s8 = inlined_call_operand.hbm [shape: bf16[128,128], index: 8, kind: input, shape index: {}]   ;;  %s9337_s9 = inlined_call_operand.hbm [shape: f32[256,128], index: 9, kind: output, shape index: {}]  }
   0x1   :  { %15 = vsyncpa [#allocation6], 0 }
   0x2   :  { %16 = vsyncpa [#allocation9], 0 }
   0x3   :  { %17 = vsyncpa [#allocation4], 0  ;;  %s6409_s30 = smov [#allocation5]  }
   0x4   :  { %s39_s10 = sshll.u32 %s6409_s30, 4  ;;  %s40_s10 = int_to_ptr.vmem [resolvable:$true] %s39_s10 }
   0x5   :  { %s6289_s11 = scalar_lea.vmem %s40_s10, 8192  ;;  %p6294_p1 = scmp.lt.s32.totalorder %s40_s10, %s40_s10 }
   0x6   :  { %p6290_p0 = scmp.ne.s32.totalorder %s40_s10, %s6289_s11  ;;  %p6295_p2 = scmp.lt.s32.totalorder %s6289_s11, %s6289_s11 }
   0x8   :  { %p6296_p3 = por %p6295_p2, %p6294_p1 }
   0xa   :  { %p6297_p4 = pnand %p6296_p3, %p6290_p0 }
   0xc   :  { %6300 = shalt.err (!%p6297_p4)
}
   0xd   :  { %s6410_s12 = smov 256   ;;  %s6411_s13 = smov 16  }
   0xe   :  { %45 = dma.hbm_to_vmem [thread:$0]  %s9331_s3, 8192, %s40_s10, [#allocation6], %s6410_s12, %s6410_s12, %s6411_s13  }
   0xf   :  { %s6412_s16 = smov [#allocation8]   ;;  %s6413_s18 = smov [#allocation2]  }
  0x10   :  { %s67_s17 = sshll.u32 %s6412_s16, 4  ;;  %s23_s19 = sshll.u32 %s6413_s18, 4  ;;  %s68_s17 = int_to_ptr.vmem [resolvable:$true] %s67_s17  ;;  %s24_s19 = int_to_ptr.vmem [resolvable:$true] %s23_s19 }
  0x11   :  { %s6309_s20 = scalar_lea.vmem %s68_s17, 1024  ;;  %p6314_p6 = scmp.lt.s32.totalorder %s68_s17, %s68_s17 }
  0x12   :  { %p6310_p5 = scmp.ne.s32.totalorder %s68_s17, %s6309_s20  ;;  %p6315_p7 = scmp.lt.s32.totalorder %s6309_s20, %s6309_s20 }
  0x14   :  { %p6316_p8 = por %p6315_p7, %p6314_p6 }
  0x16   :  { %p6317_p9 = pnand %p6316_p8, %p6310_p5 }
  0x18   :  { %6320 = shalt.err (!%p6317_p9)
}
  0x19   :  { %s6414_s21 = smov 64   ;;  %s6415_s22 = smov 4  }
  0x1a   :  { %73 = dma.hbm_to_vmem [thread:$0]  %s9335_s7, 1024, %s68_s17, [#allocation9], %s6414_s21, %s6414_s21, %s6415_s22  }
  0x1b   :  { %s6329_s3 = scalar_lea.vmem %s24_s19, 8192  ;;  %p6334_p11 = scmp.lt.s32.totalorder %s24_s19, %s24_s19 }
  0x1c   :  { %p6330_p10 = scmp.ne.s32.totalorder %s24_s19, %s6329_s3  ;;  %p6335_p12 = scmp.lt.s32.totalorder %s6329_s3, %s6329_s3 }
  0x1e   :  { %p6336_p13 = por %p6335_p12, %p6334_p11 }
  0x20   :  { %p6337_p0 = pnand %p6336_p13, %p6330_p10 }
  0x22   :  { %6340 = shalt.err (!%p6337_p0)
}
  0x23   :  { %29 = dma.hbm_to_vmem [thread:$0]  %s9328_s0, 8192, %s24_s19, [#allocation3], %s6410_s12, %s6410_s12, %s6411_s13  }
  0x24   :  { %s6416_s27 = smov [#allocation7]   ;;  %s6417_s29 = smov [#allocation10]  }
  0x25   :  { %s55_s28 = sshll.u32 %s6416_s27, 4  ;;  %s79_s30 = sshll.u32 %s6417_s29, 4  ;;  %s56_s28 = int_to_ptr.vmem [resolvable:$true] %s55_s28  ;;  %s80_s30 = int_to_ptr.vmem [resolvable:$true] %s79_s30 }
  0x26   :  { %s6349_s10 = scalar_lea.vmem %s56_s28, 1024  ;;  %p6354_p2 = scmp.lt.s32.totalorder %s56_s28, %s56_s28 }
  0x27   :  { %p6350_p1 = scmp.ne.s32.totalorder %s56_s28, %s6349_s10  ;;  %p6355_p3 = scmp.lt.s32.totalorder %s6349_s10, %s6349_s10 }
  0x29   :  { %p6356_p4 = por %p6355_p3, %p6354_p2 }
  0x2b   :  { %p6357_p5 = pnand %p6356_p4, %p6350_p1 }
  0x2d   :  { %6360 = shalt.err (!%p6357_p5)
}
  0x2e   :  { %61 = dma.hbm_to_vmem [thread:$0]  %s9334_s6, 1024, %s56_s28, [#allocation6], %s6414_s21, %s6414_s21, %s6415_s22  }
  0x2f   :  { %s6369_s0 = scalar_lea.vmem %s80_s30, 1024  ;;  %p6374_p7 = scmp.lt.s32.totalorder %s80_s30, %s80_s30 }
  0x30   :  { %p6370_p6 = scmp.ne.s32.totalorder %s80_s30, %s6369_s0  ;;  %p6375_p8 = scmp.lt.s32.totalorder %s6369_s0, %s6369_s0 }
  0x32   :  { %p6376_p9 = por %p6375_p8, %p6374_p7 }
  0x34   :  { %p6377_p10 = pnand %p6376_p9, %p6370_p6 }
  0x36   :  { %6380 = shalt.err (!%p6377_p10)
}
  0x37   :  { %85 = dma.hbm_to_vmem [thread:$0]  %s9336_s8, 1024, %s80_s30, [#allocation9], %s6414_s21, %s6414_s21, %s6415_s22  }
  0x38   :  { %6401 = dma.done.wait [#allocation3], 8192  }
  0x39   :  { %6402 = vsyncadd [#allocation3], 4294959104 }
  0x3a   :  { %6403 = dma.done.wait [#allocation6], 9216  }
  0x3b   :  { %6404 = vsyncadd [#allocation6], 4294958080 }
  0x3c   :  { %6405 = dma.done.wait [#allocation9], 2048  }
  0x3d   :  { %6406 = vsyncadd [#allocation9], 4294965248  ;;  %v6500_v0 = vld [vmem:[#allocation2] sm:$0xff]  ;;  %v6502_v1 = vld [vmem:[#allocation2 + $0x8] sm:$0xff]  ;;  %vm1879_vm0 = vcmask 39936  }
  0x3e   :  { %v6504_v2 = vld [vmem:[#allocation2 + $0x20] sm:$0xff]  ;;  %v166_v3 = vadd.f32 %v6502_v1, %v6500_v0  ;;  %v6508_v4 = vld [vmem:[#allocation2 + $0x28] sm:$0xff]  ;;  %v6510_v5 = vld [vmem:[#allocation2 + $0x10] sm:$0xff] }
  0x3f   :  { %v6512_v6 = vld [vmem:[#allocation2 + $0x18] sm:$0xff]  ;;  %v172_v7 = vadd.f32 %v6508_v4, %v6504_v2  ;;  %v6516_v8 = vld [vmem:[#allocation2 + $0x30] sm:$0xff]  ;;  %v6524_v12 = vld [vmem:[#allocation2 + $0x40] sm:$0xff] }
  0x40   :  { %v6518_v9 = vld [vmem:[#allocation2 + $0x38] sm:$0xff]  ;;  %167 = vadd.xlane.f32.xlu0 %v166_v3  ;;  %v169_v10 = vadd.f32 %v6512_v6, %v6510_v5  ;;  %v6526_v13 = vld [vmem:[#allocation2 + $0x48] sm:$0xff]  ;;  %v6528_v14 = vld [vmem:[#allocation2 + $0x50] sm:$0xff] }
  0x41   :  { %173 = vadd.xlane.f32.xlu1 %v172_v7  ;;  %v175_v11 = vadd.f32 %v6518_v9, %v6516_v8  ;;  %v6530_v15 = vld [vmem:[#allocation2 + $0x58] sm:$0xff]  ;;  %v178_v16 = vadd.f32 %v6526_v13, %v6524_v12  ;;  %v6536_v18 = vld [vmem:[#allocation2 + $0x60] sm:$0xff]  ;;  %v6538_v19 = vld [vmem:[#allocation2 + $0x68] sm:$0xff] }
  0x42   :  { %v181_v17 = vadd.f32 %v6530_v15, %v6528_v14  ;;  %v6540_v20 = vld [vmem:[#allocation2 + $0x70] sm:$0xff]  ;;  %v6542_v21 = vld [vmem:[#allocation2 + $0x78] sm:$0xff]  ;;  %v184_v22 = vadd.f32 %v6538_v19, %v6536_v18  ;;  %v6548_v24 = vld [vmem:[#allocation2 + $0x80] sm:$0xff] }
  0x43   :  { %v187_v23 = vadd.f32 %v6542_v21, %v6540_v20  ;;  %v6550_v25 = vld [vmem:[#allocation2 + $0x88] sm:$0xff]  ;;  %v6552_v26 = vld [vmem:[#allocation2 + $0x90] sm:$0xff]  ;;  %v6554_v27 = vld [vmem:[#allocation2 + $0x98] sm:$0xff] }
  0x44   :  { %170 = vadd.xlane.f32.xlu0 %v169_v10  ;;  %v190_v28 = vadd.f32 %v6550_v25, %v6548_v24  ;;  %v193_v29 = vadd.f32 %v6554_v27, %v6552_v26  ;;  %v122_v30 = vld [vmem:[#allocation2 + $0xa0] sm:$0xff]  ;;  %v123_v31 = vld [vmem:[#allocation2 + $0xa8] sm:$0xff]  ;;  %v124_v32 = vld [vmem:[#allocation2 + $0xb0] sm:$0xff] }
  0x45   :  { %176 = vadd.xlane.f32.xlu1 %v175_v11  ;;  %v125_v33 = vld [vmem:[#allocation2 + $0xb8] sm:$0xff]  ;;  %v196_v34 = vadd.f32 %v123_v31, %v122_v30  ;;  %v126_v36 = vld [vmem:[#allocation2 + $0xc0] sm:$0xff]  ;;  %v127_v37 = vld [vmem:[#allocation2 + $0xc8] sm:$0xff] }
  0x46   :  { %v199_v35 = vadd.f32 %v125_v33, %v124_v32  ;;  %v128_v38 = vld [vmem:[#allocation2 + $0xd0] sm:$0xff]  ;;  %v129_v39 = vld [vmem:[#allocation2 + $0xd8] sm:$0xff]  ;;  %v202_v40 = vadd.f32 %v127_v37, %v126_v36  ;;  %v130_v42 = vld [vmem:[#allocation2 + $0xe0] sm:$0xff] }
  0x47   :  { %v205_v41 = vadd.f32 %v129_v39, %v128_v38  ;;  %v131_v43 = vld [vmem:[#allocation2 + $0xe8] sm:$0xff]  ;;  %v132_v44 = vld [vmem:[#allocation2 + $0xf0] sm:$0xff]  ;;  %v133_v45 = vld [vmem:[#allocation2 + $0xf8] sm:$0xff] }
  0x48   :  { %179 = vadd.xlane.f32.xlu0 %v178_v16  ;;  %v208_v46 = vadd.f32 %v131_v43, %v130_v42  ;;  %v211_v47 = vadd.f32 %v133_v45, %v132_v44  ;;  %v134_v48 = vld [vmem:[#allocation2 + $0x100] sm:$0xff]  ;;  %v135_v49 = vld [vmem:[#allocation2 + $0x108] sm:$0xff]  ;;  %v136_v50 = vld [vmem:[#allocation2 + $0x110] sm:$0xff] }
  0x49   :  { %182 = vadd.xlane.f32.xlu1 %v181_v17  ;;  %v137_v51 = vld [vmem:[#allocation2 + $0x118] sm:$0xff]  ;;  %v138_v52 = vld [vmem:[#allocation2 + $0x120] sm:$0xff]  ;;  %v214_v53 = vadd.f32 %v135_v49, %v134_v48  ;;  %v139_v54 = vld [vmem:[#allocation2 + $0x128] sm:$0xff] }
  0x4a   :  { %v140_v55 = vld [vmem:[#allocation2 + $0x130] sm:$0xff]  ;;  %v141_v56 = vld [vmem:[#allocation2 + $0x138] sm:$0xff]  ;;  %v217_v57 = vadd.f32 %v137_v51, %v136_v50  ;;  %v142_v58 = vld [vmem:[#allocation2 + $0x140] sm:$0xff]  ;;  %v220_v60 = vadd.f32 %v139_v54, %v138_v52 }
  0x4b   :  { %v143_v59 = vld [vmem:[#allocation2 + $0x148] sm:$0xff]  ;;  %v144_v61 = vld [vmem:[#allocation2 + $0x150] sm:$0xff]  ;;  %v145_v62 = vld [vmem:[#allocation2 + $0x158] sm:$0xff]  ;;  %v223_v63 = vadd.f32 %v141_v56, %v140_v55 }
  0x4c   :  { %185 = vadd.xlane.f32.xlu0 %v184_v22  ;;  %v146_v3 = vld [vmem:[#allocation2 + $0x160] sm:$0xff]  ;;  %v147_v7 = vld [vmem:[#allocation2 + $0x168] sm:$0xff]  ;;  %v226_v10 = vadd.f32 %v143_v59, %v142_v58  ;;  %v148_v11 = vld [vmem:[#allocation2 + $0x170] sm:$0xff]  ;;  %v229_v17 = vadd.f32 %v145_v62, %v144_v61 }
  0x4d   :  { %188 = vadd.xlane.f32.xlu1 %v187_v23  ;;  %v149_v16 = vld [vmem:[#allocation2 + $0x178] sm:$0xff]  ;;  %v150_v22 = vld [vmem:[#allocation2 + $0x180] sm:$0xff]  ;;  %v151_v23 = vld [vmem:[#allocation2 + $0x188] sm:$0xff] }
  0x4e   :  { %v153_v30 = vld [vmem:[#allocation2 + $0x198] sm:$0xff]  ;;  %v1863_v31 = vld [vmem:[%s9329_s1 + $0x80] sm:$0xff]  ;;  %v1864_v32 = vld [vmem:[%s9329_s1 + $0x88] sm:$0xff]  ;;  %v238_v44 = vadd.f32 %v151_v23, %v150_v22 }
  0x4f   :  { %v1865_v33 = vld [vmem:[%s9329_s1 + $0x90] sm:$0xff]  ;;  %v1847_v36 = vld [vmem:[%s9329_s1] sm:$0xff]  ;;  %v1848_v37 = vld [vmem:[%s9329_s1 + $0x8] sm:$0xff]  ;;  %v1928_v49 = vsel %vm1879_vm0, %v1863_v31, 0.0  ;;  %v1931_v50 = vsel %vm1879_vm0, %v1864_v32, 0.0 }
  0x50   :  { %191 = vadd.xlane.f32.xlu0 %v190_v28  ;;  %v232_v28 = vadd.f32 %v147_v7, %v146_v3  ;;  %v1849_v38 = vld [vmem:[%s9329_s1 + $0x10] sm:$0xff]  ;;  %v1850_v39 = vld [vmem:[%s9329_s1 + $0x18] sm:$0xff]  ;;  %v1851_v45 = vld [vmem:[%s9329_s1 + $0x20] sm:$0xff]  ;;  %v1934_v51 = vsel %vm1879_vm0, %v1865_v33, 0.0  ;;  %v1880_v54 = vsel %vm1879_vm0, %v1847_v36, 0.0  ;;  %v1883_v55 = vsel %vm1879_vm0, %v1848_v37, 0.0 }
  0x51   :  { %194 = vadd.xlane.f32.xlu1 %v193_v29  ;;  %v152_v29 = vld [vmem:[#allocation2 + $0x190] sm:$0xff]  ;;  %v1870_v43 = vld [vmem:[%s9329_s1 + $0xb8] sm:$0xff]  ;;  %v1886_v56 = vsel %vm1879_vm0, %v1849_v38, 0.0  ;;  %v1892_v62 = vsel %vm1879_vm0, %v1851_v45, 0.0  ;;  %v1871_v33 = vld [vmem:[%s9329_s1 + $0xc0] sm:$0xff] }
  0x52   :  { %v1869_v42 = vld [vmem:[%s9329_s1 + $0xb0] sm:$0xff]  ;;  %v241_v48 = vadd.f32 %v153_v30, %v152_v29  ;;  %v1854_v52 = vld [vmem:[%s9329_s1 + $0x38] sm:$0xff]  ;;  %v1949_v61 = vsel %vm1879_vm0, %v1870_v43, 0.0  ;;  %v159_v29 = vld [vmem:[#allocation2 + $0x1c8] sm:$0xff]  ;;  %v1952_v36 = vsel %vm1879_vm0, %v1871_v33, 0.0 }
  0x53   :  { %v1901_v7 = vsel %vm1879_vm0, %v1854_v52, 0.0  ;;  %v160_v30 = vld [vmem:[#allocation2 + $0x1d0] sm:$0xff]  ;;  %v161_v31 = vld [vmem:[#allocation2 + $0x1d8] sm:$0xff]  ;;  %v1856_v43 = vld [vmem:[%s9329_s1 + $0x48] sm:$0xff] }
  0x54   :  { %197 = vadd.xlane.f32.xlu0 %v196_v34  ;;  %v235_v34 = vadd.f32 %v149_v16, %v148_v11  ;;  %v155_v11 = vld [vmem:[#allocation2 + $0x1a8] sm:$0xff]  ;;  %v156_v16 = vld [vmem:[#allocation2 + $0x1b0] sm:$0xff]  ;;  %v1907_v45 = vsel %vm1879_vm0, %v1856_v43, 0.0 }
  0x55   :  { %200 = vadd.xlane.f32.xlu1 %v199_v35  ;;  %v1866_v35 = vld [vmem:[%s9329_s1 + $0x98] sm:$0xff]  ;;  %v1873_v38 = vld [vmem:[%s9329_s1 + $0xd0] sm:$0xff] }
  0x56   :  { %v164_v52 = vld [vmem:[#allocation2 + $0x1f0] sm:$0xff]  ;;  %v5802_v33 = vld [vmem:[#allocation5 + $0xcc] ss:$16 sps:$4 sm:$0xff]   ;;  %v5817_v43 = vld [vmem:[#allocation5 + $0x88] ss:$16 sps:$4 sm:$0xff]  }
  0x58   :  { %203 = vadd.xlane.f32.xlu0 %v202_v40  ;;  %v1867_v40 = vld [vmem:[%s9329_s1 + $0xa0] sm:$0xff] }
  0x59   :  { %206 = vadd.xlane.f32.xlu1 %v205_v41  ;;  %v1868_v41 = vld [vmem:[%s9329_s1 + $0xa8] sm:$0xff]  ;;  %v1940_v58 = vsel %vm1879_vm0, %v1867_v40, 0.0  ;;  %v1958_v40 = vsel %vm1879_vm0, %v1873_v38, 0.0  ;;  %v5810_v38 = vld [vmem:[#allocation5 + $0xa0] ss:$16 sps:$4 sm:$0xff]  }
  0x5a   :  { %v1943_v59 = vsel %vm1879_vm0, %v1868_v41, 0.0 }
  0x5c   :  { %209 = vadd.xlane.f32.xlu0 %v208_v46  ;;  %v1852_v46 = vld [vmem:[%s9329_s1 + $0x28] sm:$0xff] }
  0x5d   :  { %212 = vadd.xlane.f32.xlu1 %v211_v47  ;;  %v1853_v47 = vld [vmem:[%s9329_s1 + $0x30] sm:$0xff] }
  0x5e   :  { %v1898_v3 = vsel %vm1879_vm0, %v1853_v47, 0.0  ;;  %v1858_v47 = vld [vmem:[%s9329_s1 + $0x58] sm:$0xff] }
  0x60   :  { %215 = vadd.xlane.f32.xlu0 %v214_v53  ;;  %v1937_v53 = vsel %vm1879_vm0, %v1866_v35, 0.0  ;;  %v1872_v35 = vld [vmem:[%s9329_s1 + $0xc8] sm:$0xff] }
  0x61   :  { %218 = vadd.xlane.f32.xlu1 %v217_v57  ;;  %v1889_v57 = vsel %vm1879_vm0, %v1850_v39, 0.0  ;;  %v1955_v37 = vsel %vm1879_vm0, %v1872_v35, 0.0  ;;  %v1874_v39 = vld [vmem:[%s9329_s1 + $0xd8] sm:$0xff] }
  0x62   :  { %v1961_v41 = vsel %vm1879_vm0, %v1874_v39, 0.0  ;;  %v5805_v35 = vld [vmem:[#allocation5 + $0xc8] ss:$16 sps:$4 sm:$0xff]  }
  0x63   :  { %v5811_v39 = vld [vmem:[#allocation5 + $0xa8] ss:$16 sps:$4 sm:$0xff]  }
  0x64   :  { %221 = vadd.xlane.f32.xlu0 %v220_v60  ;;  %v1946_v60 = vsel %vm1879_vm0, %v1869_v42, 0.0  ;;  %v1855_v42 = vld [vmem:[%s9329_s1 + $0x40] sm:$0xff] }
  0x65   :  { %224 = vadd.xlane.f32.xlu1 %v223_v63  ;;  %v1895_v63 = vsel %vm1879_vm0, %v1852_v46, 0.0  ;;  %v1857_v46 = vld [vmem:[%s9329_s1 + $0x50] sm:$0xff] }
  0x68   :  { %227 = vadd.xlane.f32.xlu0 %v226_v10  ;;  %v154_v10 = vld [vmem:[#allocation2 + $0x1a0] sm:$0xff] }
  0x69   :  { %230 = vadd.xlane.f32.xlu1 %v229_v17  ;;  %v157_v17 = vld [vmem:[#allocation2 + $0x1b8] sm:$0xff]  ;;  %v244_v22 = vadd.f32 %v155_v11, %v154_v10 }
  0x6a   :  { %v247_v23 = vadd.f32 %v157_v17, %v156_v16  ;;  %v1861_v16 = vld [vmem:[%s9329_s1 + $0x70] sm:$0xff]  ;;  %v1862_v17 = vld [vmem:[%s9329_s1 + $0x78] sm:$0xff] }
  0x6c   :  { %233 = vadd.xlane.f32.xlu0 %v232_v28  ;;  %v158_v28 = vld [vmem:[#allocation2 + $0x1c0] sm:$0xff] }
  0x6d   :  { %236 = vadd.xlane.f32.xlu1 %v235_v34  ;;  %v250_v32 = vadd.f32 %v159_v29, %v158_v28  ;;  %v253_v34 = vadd.f32 %v161_v31, %v160_v30  ;;  %v5796_v28 = vld [vmem:[#allocation5 + $0xec] ss:$16 sps:$4 sm:$0xff]   ;;  %v1925_v29 = vsel %vm1879_vm0, %v1862_v17, 0.0  ;;  %v5798_v30 = vld [vmem:[#allocation5 + $0xe0] ss:$16 sps:$4 sm:$0xff]  }
  0x6e   :  { %v5799_v31 = vld [vmem:[#allocation5 + $0xe8] ss:$16 sps:$4 sm:$0xff]   ;;  %1462 = vmatprep.subr.bf16.mxu1 %v5796_v28 }
  0x6f   :  { %1463 = vmatpush1.bf16.msra.mxu1 %v5799_v31  ;;  %v5834_v31 = vld [vmem:[#allocation5 + $0x20] ss:$16 sps:$4 sm:$0xff]  }
  0x70   :  { %239 = vadd.xlane.f32.xlu0 %v238_v44  ;;  %v1904_v44 = vsel %vm1879_vm0, %v1855_v42, 0.0  ;;  %1464 = vmatprep.subr.bf16.mxu1 %v5802_v33  ;;  %v5816_v42 = vld [vmem:[#allocation5 + $0x80] ss:$16 sps:$4 sm:$0xff]  }
  0x71   :  { %242 = vadd.xlane.f32.xlu1 %v241_v48  ;;  %v1910_v48 = vsel %vm1879_vm0, %v1857_v46, 0.0  ;;  %v5820_v46 = vld [vmem:[#allocation5 + $0x6c] ss:$16 sps:$4 sm:$0xff]  }
  0x73   :  { %1465 = vmatpush1.bf16.msra.mxu1 %v5805_v35  ;;  %v5838_v35 = vld [vmem:[#allocation5 + $0xc] ss:$16 sps:$4 sm:$0xff]  }
  0x74   :  { %1929 = vadd.xlane.f32.xlu0 %v1928_v49  ;;  %v162_v49 = vld [vmem:[#allocation2 + $0x1e0] sm:$0xff] }
  0x75   :  { %1932 = vadd.xlane.f32.xlu1 %v1931_v50  ;;  %v163_v50 = vld [vmem:[#allocation2 + $0x1e8] sm:$0xff] }
  0x78   :  { %1935 = vadd.xlane.f32.xlu0 %v1934_v51  ;;  %v1913_v51 = vsel %vm1879_vm0, %v1858_v47, 0.0 }
  0x79   :  { %1938 = vadd.xlane.f32.xlu1 %v1937_v53  ;;  %v165_v53 = vld [vmem:[#allocation2 + $0x1f8] sm:$0xff] }
  0x7c   :  { %1881 = vadd.xlane.f32.xlu0 %v1880_v54  ;;  %v256_v54 = vadd.f32 %v163_v50, %v162_v49  ;;  %v5822_v49 = vld [vmem:[#allocation5 + $0x60] ss:$16 sps:$4 sm:$0xff]   ;;  %v5823_v50 = vld [vmem:[#allocation5 + $0x68] ss:$16 sps:$4 sm:$0xff]  }
  0x7d   :  { %1884 = vadd.xlane.f32.xlu1 %v1883_v55  ;;  %v259_v55 = vadd.f32 %v165_v53, %v164_v52 }
  0x80   :  { %1887 = vadd.xlane.f32.xlu0 %v1886_v56  ;;  %v1875_v56 = vld [vmem:[%s9329_s1 + $0xe0] sm:$0xff] }
  0x81   :  { %1890 = vadd.xlane.f32.xlu1 %v1889_v57  ;;  %v1876_v57 = vld [vmem:[%s9329_s1 + $0xe8] sm:$0xff] }
  0x84   :  { %245 = vadd.xlane.f32.xlu0 %v244_v22  ;;  %v1922_v22 = vsel %vm1879_vm0, %v1861_v16, 0.0 }
  0x85   :  { %248 = vadd.xlane.f32.xlu1 %v247_v23  ;;  %v5794_v23 = vld [vmem:[#allocation5 + $0xe4] ss:$16 sps:$4 sm:$0xff]  }
  0x86   :  { %1269 = vmatprep.subr.bf16.mxu0 %v5794_v23  ;;  %v5832_v23 = vld [vmem:[#allocation5 + $0x2c] ss:$16 sps:$4 sm:$0xff]  }
  0x87   :  { %1270 = vmatpush1.bf16.msra.mxu0 %v5798_v30 }
  0x88   :  { %1941 = vadd.xlane.f32.xlu0 %v1940_v58  ;;  %v1964_v58 = vsel %vm1879_vm0, %v1875_v56, 0.0 }
  0x89   :  { %1944 = vadd.xlane.f32.xlu1 %v1943_v59  ;;  %v1967_v59 = vsel %vm1879_vm0, %v1876_v57, 0.0  ;;  %v5824_v57 = vld [vmem:[#allocation5 + $0x44] ss:$16 sps:$4 sm:$0xff]  }
  0x8c   :  { %1947 = vadd.xlane.f32.xlu0 %v1946_v60  ;;  %v1877_v60 = vld [vmem:[%s9329_s1 + $0xf0] sm:$0xff] }
  0x8d   :  { %1950 = vadd.xlane.f32.xlu1 %v1949_v61  ;;  %v1878_v61 = vld [vmem:[%s9329_s1 + $0xf8] sm:$0xff] }
  0x90   :  { %1893 = vadd.xlane.f32.xlu0 %v1892_v62  ;;  %v1970_v62 = vsel %vm1879_vm0, %v1877_v60, 0.0 }
  0x91   :  { %1896 = vadd.xlane.f32.xlu1 %v1895_v63  ;;  %v1973_v63 = vsel %vm1879_vm0, %v1878_v61, 0.0  ;;  %v5828_v61 = vld [vmem:[#allocation5 + $0x40] ss:$16 sps:$4 sm:$0xff]  }
  0x94   :  { %1899 = vadd.xlane.f32.xlu0 %v1898_v3  ;;  %v1859_v3 = vld [vmem:[%s9329_s1 + $0x60] sm:$0xff] }
  0x95   :  { %1902 = vadd.xlane.f32.xlu1 %v1901_v7  ;;  %v1860_v7 = vld [vmem:[%s9329_s1 + $0x68] sm:$0xff]  ;;  %v1916_v10 = vsel %vm1879_vm0, %v1859_v3, 0.0 }
  0x96   :  { %v1919_v11 = vsel %vm1879_vm0, %v1860_v7, 0.0 }
  0x98   :  { %251 = vadd.xlane.f32.xlu0 %v250_v32  ;;  %v5800_v32 = vld [vmem:[#allocation5 + $0xc4] ss:$16 sps:$4 sm:$0xff]  }
  0x99   :  { %254 = vadd.xlane.f32.xlu1 %v253_v34  ;;  %v5804_v34 = vld [vmem:[#allocation5 + $0xc0] ss:$16 sps:$4 sm:$0xff]   ;;  %1271 = vmatprep.subr.bf16.mxu0 %v5800_v32 }
  0x9a   :  { %1272 = vmatpush1.bf16.msra.mxu0 %v5804_v34  ;;  %v5836_v34 = vld [vmem:[#allocation5 + $0x4] ss:$16 sps:$4 sm:$0xff]  }
  0x9c   :  { %1953 = vadd.xlane.f32.xlu0 %v1952_v36  ;;  %v5806_v36 = vld [vmem:[#allocation5 + $0xa4] ss:$16 sps:$4 sm:$0xff]  }
  0x9d   :  { %1956 = vadd.xlane.f32.xlu1 %v1955_v37  ;;  %v5808_v37 = vld [vmem:[#allocation5 + $0xac] ss:$16 sps:$4 sm:$0xff]   ;;  %1273 = vmatprep.subr.bf16.mxu0 %v5806_v36 }
  0x9e   :  { %1466 = vmatprep.subr.bf16.mxu1 %v5808_v37  ;;  %1274 = vmatpush1.bf16.msra.mxu0 %v5810_v38 }
  0x9f   :  { %1467 = vmatpush1.bf16.msra.mxu1 %v5811_v39  ;;  %v5840_v39 = vld [vmem:[#allocation5] ss:$16 sps:$4 sm:$0xff]  }
  0xa0   :  { %1959 = vadd.xlane.f32.xlu0 %v1958_v40  ;;  %v5812_v40 = vld [vmem:[#allocation5 + $0x84] ss:$16 sps:$4 sm:$0xff]  }
  0xa1   :  { %1962 = vadd.xlane.f32.xlu1 %v1961_v41  ;;  %v5814_v41 = vld [vmem:[#allocation5 + $0x8c] ss:$16 sps:$4 sm:$0xff]   ;;  %1275 = vmatprep.subr.bf16.mxu0 %v5812_v40 }
  0xa2   :  { %1468 = vmatprep.subr.bf16.mxu1 %v5814_v41  ;;  %1276 = vmatpush1.bf16.msra.mxu0 %v5816_v42 }
  0xa3   :  { %1469 = vmatpush1.bf16.msra.mxu1 %v5817_v43  ;;  %v5841_v43 = vld [vmem:[#allocation5 + $0x8] ss:$16 sps:$4 sm:$0xff]  }
  0xa4   :  { %1905 = vadd.xlane.f32.xlu0 %v1904_v44  ;;  %1470 = vmatprep.subr.bf16.mxu1 %v5820_v46 }
  0xa5   :  { %1908 = vadd.xlane.f32.xlu1 %v1907_v45  ;;  %v5818_v45 = vld [vmem:[#allocation5 + $0x64] ss:$16 sps:$4 sm:$0xff]  }
  0xa6   :  { %1277 = vmatprep.subr.bf16.mxu0 %v5818_v45 }
  0xa7   :  { %1278 = vmatpush1.bf16.msra.mxu0 %v5822_v49  ;;  %1471 = vmatpush1.bf16.msra.mxu1 %v5823_v50  ;;  %v5844_v49 = vld [vmem:[#allocation5 + $0x1ec] ss:$16 sps:$4 sm:$0xff]  }
  0xa8   :  { %1911 = vadd.xlane.f32.xlu0 %v1910_v48  ;;  %1279 = vmatprep.subr.bf16.mxu0 %v5824_v57 }
  0xa9   :  { %1914 = vadd.xlane.f32.xlu1 %v1913_v51 }
  0xab   :  { %1280 = vmatpush1.bf16.msra.mxu0 %v5828_v61  ;;  %v5846_v61 = vld [vmem:[#allocation5 + $0x1e0] ss:$16 sps:$4 sm:$0xff]  }
  0xac   :  { %257 = vadd.xlane.f32.xlu0 %v256_v54 }
  0xad   :  { %260 = vadd.xlane.f32.xlu1 %v259_v55 }
  0xb0   :  { %1965 = vadd.xlane.f32.xlu0 %v1964_v58  ;;  %v5826_v58 = vld [vmem:[#allocation5 + $0x4c] ss:$16 sps:$4 sm:$0xff]  }
  0xb1   :  { %1968 = vadd.xlane.f32.xlu1 %v1967_v59  ;;  %1472 = vmatprep.subr.bf16.mxu1 %v5826_v58 }
  0xb4   :  { %1971 = vadd.xlane.f32.xlu0 %v1970_v62  ;;  %v5829_v62 = vld [vmem:[#allocation5 + $0x48] ss:$16 sps:$4 sm:$0xff]  }
  0xb5   :  { %1974 = vadd.xlane.f32.xlu1 %v1973_v63  ;;  %1473 = vmatpush1.bf16.msra.mxu1 %v5829_v62 }
  0xb6   :  { %1474 = vmatprep.subr.bf16.mxu1 %v5832_v23 }
  0xb8   :  { %1917 = vadd.xlane.f32.xlu0 %v1916_v10 }
  0xb9   :  { %1920 = vadd.xlane.f32.xlu1 %v1919_v11 }
  0xbc   :  { %1923 = vadd.xlane.f32.xlu0 %v1922_v22  ;;  %v5830_v22 = vld [vmem:[#allocation5 + $0x24] ss:$16 sps:$4 sm:$0xff]  }
  0xbd   :  { %1926 = vadd.xlane.f32.xlu1 %v1925_v29  ;;  %1281 = vmatprep.subr.bf16.mxu0 %v5830_v22 }
  0xbe   :  { %1282 = vmatpush1.bf16.msra.mxu0 %v5834_v31 }
  0xbf   :  { %1283 = vmatprep.subr.bf16.mxu0 %v5836_v34  ;;  %v6203_v34 = vld [vmem:[#allocation2 + $0xa8] sm:$0xff] }
  0xc2   :  { %1284 = vmatpush1.bf16.msra.mxu0 %v5840_v39  ;;  %v6204_v39 = vld [vmem:[#allocation2 + $0xb0] sm:$0xff] }
  0xc9   :  { %v168_v44 = vpop.xlane.xlu0 %167 }
  0xca   :  { %v263_v47 = vmul.f32 0.00390625, %v168_v44  ;;  %v174_v48 = vpop.xlane.xlu1 %173  ;;  %v5842_v44 = vld [vmem:[#allocation5 + $0x1e4] ss:$16 sps:$4 sm:$0xff]  }
  0xcb   :  { %v265_v51 = vmul.f32 0.00390625, %v174_v48  ;;  %1285 = vmatprep.subr.bf16.mxu0 %v5842_v44 }
  0xcc   :  { %v6689_v52 = vsub.f32 %v6500_v0, %v263_v47  ;;  %v6692_v53 = vsub.f32 %v6502_v1, %v263_v47  ;;  %1286 = vmatpush2.bf16.msra.mxu0 %v5846_v61 }
  0xcd   :  { %v6695_v54 = vsub.f32 %v6504_v2, %v265_v51  ;;  %v6698_v55 = vsub.f32 %v6508_v4, %v265_v51  ;;  %v171_v56 = vpop.xlane.xlu0 %170 }
  0xce   :  { %v264_v59 = vmul.f32 0.00390625, %v171_v56  ;;  %v177_v60 = vpop.xlane.xlu1 %176  ;;  %v359_v0 = vmul.f32 %v6689_v52, %v6689_v52  ;;  %v360_v1 = vmul.f32 %v6692_v53, %v6692_v53 }
  0xcf   :  { %v266_v63 = vmul.f32 0.00390625, %v177_v60  ;;  %v363_v2 = vmul.f32 %v6695_v54, %v6695_v54  ;;  %v364_v4 = vmul.f32 %v6698_v55, %v6698_v55 }
  0xd0   :  { %v6709_v3 = vsub.f32 %v6510_v5, %v264_v59  ;;  %v6712_v7 = vsub.f32 %v6512_v6, %v264_v59  ;;  %v423_v10 = vadd.f32 %v360_v1, %v359_v0 }
  0xd1   :  { %v6715_v11 = vsub.f32 %v6516_v8, %v266_v63  ;;  %v6718_v16 = vsub.f32 %v6518_v9, %v266_v63  ;;  %v180_v17 = vpop.xlane.xlu0 %179  ;;  %v429_v5 = vadd.f32 %v364_v4, %v363_v2  ;;  %v5835_v8 = vld [vmem:[#allocation5 + $0x28] ss:$16 sps:$4 sm:$0xff]  }
  0xd2   :  { %v267_v28 = vmul.f32 0.00390625, %v180_v17  ;;  %424 = vadd.xlane.f32.xlu0 %v423_v10  ;;  %v183_v29 = vpop.xlane.xlu1 %182  ;;  %v361_v6 = vmul.f32 %v6709_v3, %v6709_v3  ;;  %v362_v30 = vmul.f32 %v6712_v7, %v6712_v7  ;;  %1475 = vmatpush1.bf16.msra.mxu1 %v5835_v8  ;;  %v5852_v8 = vld [vmem:[#allocation5 + $0x1c0] ss:$16 sps:$4 sm:$0xff]  }
  0xd3   :  { %v268_v32 = vmul.f32 0.00390625, %v183_v29  ;;  %v365_v9 = vmul.f32 %v6715_v11, %v6715_v11  ;;  %v366_v33 = vmul.f32 %v6718_v16, %v6718_v16  ;;  %1476 = vmatprep.subr.bf16.mxu1 %v5838_v35  ;;  %v5850_v29 = vld [vmem:[#allocation5 + $0x1cc] ss:$16 sps:$4 sm:$0xff]  }
  0xd4   :  { %v6729_v36 = vsub.f32 %v6524_v12, %v267_v28  ;;  %v6732_v37 = vsub.f32 %v6526_v13, %v267_v28  ;;  %v426_v38 = vadd.f32 %v362_v30, %v361_v6  ;;  %v5848_v28 = vld [vmem:[#allocation5 + $0x1c4] ss:$16 sps:$4 sm:$0xff]  }
  0xd5   :  { %v6735_v40 = vsub.f32 %v6528_v14, %v268_v32  ;;  %v6738_v41 = vsub.f32 %v6530_v15, %v268_v32  ;;  %v186_v42 = vpop.xlane.xlu0 %185  ;;  %v432_v13 = vadd.f32 %v366_v33, %v365_v9  ;;  %1287 = vmatprep.subr.bf16.mxu0 %v5848_v28  ;;  %v5853_v32 = vld [vmem:[#allocation5 + $0x1c8] ss:$16 sps:$4 sm:$0xff]   ;;  %v6202_v9 = vld [vmem:[#allocation2 + $0xa0] sm:$0xff] }
  0xd6   :  { %v269_v45 = vmul.f32 0.00390625, %v186_v42  ;;  %430 = vadd.xlane.f32.xlu0 %v429_v5  ;;  %427 = vadd.xlane.f32.xlu1 %v426_v38  ;;  %v189_v12 = vpop.xlane.xlu1 %188  ;;  %v367_v46 = vmul.f32 %v6729_v36, %v6729_v36  ;;  %v368_v14 = vmul.f32 %v6732_v37, %v6732_v37 }
  0xd7   :  { %v270_v47 = vmul.f32 0.00390625, %v189_v12  ;;  %v369_v15 = vmul.f32 %v6735_v40, %v6735_v40  ;;  %v370_v48 = vmul.f32 %v6738_v41, %v6738_v41  ;;  %1477 = vmatpush1.bf16.msra.mxu1 %v5841_v43  ;;  %v6205_v43 = vld [vmem:[#allocation2 + $0xb8] sm:$0xff]  ;;  %1288 = vmatpush2.bf16.msra.mxu0 %v5852_v8  ;;  %v5864_v8 = vld [vmem:[#allocation5 + $0x180] ss:$16 sps:$4 sm:$0xff]  }
  0xd8   :  { %v6749_v50 = vsub.f32 %v6536_v18, %v269_v45  ;;  %v6752_v51 = vsub.f32 %v6538_v19, %v269_v45  ;;  %v435_v56 = vadd.f32 %v368_v14, %v367_v46  ;;  %1478 = vmatprep.subr.bf16.mxu1 %v5844_v49 }
  0xd9   :  { %v6755_v57 = vsub.f32 %v6540_v20, %v270_v47  ;;  %v6758_v58 = vsub.f32 %v6542_v21, %v270_v47  ;;  %v192_v59 = vpop.xlane.xlu0 %191  ;;  %v438_v18 = vadd.f32 %v370_v48, %v369_v15  ;;  %v5847_v20 = vld [vmem:[#allocation5 + $0x1e8] ss:$16 sps:$4 sm:$0xff]   ;;  %v5854_v15 = vld [vmem:[#allocation5 + $0x1a4] ss:$16 sps:$4 sm:$0xff]   ;;  %v5856_v48 = vld [vmem:[#allocation5 + $0x1ac] ss:$16 sps:$4 sm:$0xff]  }
  0xda   :  { %v271_v60 = vmul.f32 0.00390625, %v192_v59  ;;  %433 = vadd.xlane.f32.xlu1 %v432_v13  ;;  %436 = vadd.xlane.f32.xlu0 %v435_v56  ;;  %v195_v0 = vpop.xlane.xlu1 %194  ;;  %v371_v19 = vmul.f32 %v6749_v50, %v6749_v50  ;;  %v372_v1 = vmul.f32 %v6752_v51, %v6752_v51 }
  0xdb   :  { %v272_v62 = vmul.f32 0.00390625, %v195_v0  ;;  %v373_v21 = vmul.f32 %v6755_v57, %v6755_v57  ;;  %v374_v63 = vmul.f32 %v6758_v58, %v6758_v58  ;;  %1479 = vmatpush2.bf16.msra.mxu1 %v5847_v20  ;;  %v5859_v0 = vld [vmem:[#allocation5 + $0x1a8] ss:$16 sps:$4 sm:$0xff]   ;;  %1289 = vmatprep.subr.bf16.mxu0 %v5854_v15 }
  0xdc   :  { %v6769_v2 = vsub.f32 %v6548_v24, %v271_v60  ;;  %v6772_v4 = vsub.f32 %v6550_v25, %v271_v60  ;;  %v441_v10 = vadd.f32 %v372_v1, %v371_v19  ;;  %1480 = vmatprep.subr.bf16.mxu1 %v5850_v29  ;;  %v5858_v60 = vld [vmem:[#allocation5 + $0x1a0] ss:$16 sps:$4 sm:$0xff]   ;;  %v6207_v1 = vld [vmem:[#allocation2 + $0xc8] sm:$0xff] }
  0xdd   :  { %v6775_v17 = vsub.f32 %v6552_v26, %v272_v62  ;;  %v6778_v22 = vsub.f32 %v6554_v27, %v272_v62  ;;  %v198_v23 = vpop.xlane.xlu0 %197  ;;  %v444_v6 = vadd.f32 %v374_v63, %v373_v21  ;;  %v6208_v62 = vld [vmem:[#allocation2 + $0xd0] sm:$0xff]  ;;  %v6209_v63 = vld [vmem:[#allocation2 + $0xd8] sm:$0xff]  ;;  %1290 = vmatpush2.bf16.msra.mxu0 %v5858_v60 }
  0xde   :  { %v273_v5 = vmul.f32 0.00390625, %v198_v23  ;;  %439 = vadd.xlane.f32.xlu1 %v438_v18  ;;  %442 = vadd.xlane.f32.xlu0 %v441_v10  ;;  %v201_v24 = vpop.xlane.xlu1 %200  ;;  %v375_v25 = vmul.f32 %v6769_v2, %v6769_v2  ;;  %v376_v30 = vmul.f32 %v6772_v4, %v6772_v4  ;;  %v6206_v18 = vld [vmem:[#allocation2 + $0xc0] sm:$0xff]  ;;  %v5868_v60 = vld [vmem:[#allocation5 + $0x16c] ss:$16 sps:$4 sm:$0xff]  }
  0xdf   :  { %v274_v26 = vmul.f32 0.00390625, %v201_v24  ;;  %v377_v27 = vmul.f32 %v6775_v17, %v6775_v17  ;;  %v378_v31 = vmul.f32 %v6778_v22, %v6778_v22  ;;  %1481 = vmatpush2.bf16.msra.mxu1 %v5853_v32  ;;  %v5865_v32 = vld [vmem:[#allocation5 + $0x188] ss:$16 sps:$4 sm:$0xff]  }
  0xe0   :  { %v6788_v33 = vsub.f32 %v6202_v9, %v273_v5  ;;  %v6790_v35 = vsub.f32 %v6203_v34, %v273_v5  ;;  %v447_v38 = vadd.f32 %v376_v30, %v375_v25  ;;  %1482 = vmatprep.subr.bf16.mxu1 %v5856_v48  ;;  %v5860_v25 = vld [vmem:[#allocation5 + $0x184] ss:$16 sps:$4 sm:$0xff]   ;;  %v5862_v30 = vld [vmem:[#allocation5 + $0x18c] ss:$16 sps:$4 sm:$0xff]  }
  0xe1   :  { %v6792_v42 = vsub.f32 %v6204_v39, %v274_v26  ;;  %v6794_v44 = vsub.f32 %v6205_v43, %v274_v26  ;;  %v204_v45 = vpop.xlane.xlu0 %203  ;;  %v450_v46 = vadd.f32 %v378_v31, %v377_v27  ;;  %v6210_v9 = vld [vmem:[#allocation2 + $0xe0] sm:$0xff]  ;;  %1291 = vmatprep.subr.bf16.mxu0 %v5860_v25  ;;  %v6217_v25 = vld [vmem:[#allocation2 + $0x118] sm:$0xff] }
  0xe2   :  { %v275_v12 = vmul.f32 0.00390625, %v204_v45  ;;  %445 = vadd.xlane.f32.xlu1 %v444_v6  ;;  %448 = vadd.xlane.f32.xlu0 %v447_v38  ;;  %v207_v13 = vpop.xlane.xlu1 %206  ;;  %v379_v14 = vmul.f32 %v6788_v33, %v6788_v33  ;;  %v380_v47 = vmul.f32 %v6790_v35, %v6790_v35  ;;  %v6211_v38 = vld [vmem:[#allocation2 + $0xe8] sm:$0xff]  ;;  %v6212_v45 = vld [vmem:[#allocation2 + $0xf0] sm:$0xff] }
  0xe3   :  { %v276_v49 = vmul.f32 0.00390625, %v207_v13  ;;  %v381_v56 = vmul.f32 %v6792_v42, %v6792_v42  ;;  %v382_v59 = vmul.f32 %v6794_v44, %v6794_v44  ;;  %1483 = vmatpush2.bf16.msra.mxu1 %v5859_v0  ;;  %v6213_v13 = vld [vmem:[#allocation2 + $0xf8] sm:$0xff]  ;;  %1292 = vmatpush2.bf16.msra.mxu0 %v5864_v8 }
  0xe4   :  { %v6804_v19 = vsub.f32 %v6206_v18, %v275_v12  ;;  %v6806_v61 = vsub.f32 %v6207_v1, %v275_v12  ;;  %v453_v20 = vadd.f32 %v380_v47, %v379_v14  ;;  %1484 = vmatprep.subr.bf16.mxu1 %v5862_v30 }
  0xe5   :  { %v6808_v21 = vsub.f32 %v6208_v62, %v276_v49  ;;  %v6810_v10 = vsub.f32 %v6209_v63, %v276_v49  ;;  %v210_v23 = vpop.xlane.xlu0 %209  ;;  %v456_v5 = vadd.f32 %v382_v59, %v381_v56  ;;  %v5866_v59 = vld [vmem:[#allocation5 + $0x164] ss:$16 sps:$4 sm:$0xff]   ;;  %v5871_v62 = vld [vmem:[#allocation5 + $0x168] ss:$16 sps:$4 sm:$0xff]  }
  0xe6   :  { %v277_v28 = vmul.f32 0.00390625, %v210_v23  ;;  %451 = vadd.xlane.f32.xlu1 %v450_v46  ;;  %454 = vadd.xlane.f32.xlu0 %v453_v20  ;;  %v213_v29 = vpop.xlane.xlu1 %212  ;;  %v383_v24 = vmul.f32 %v6804_v19, %v6804_v19  ;;  %v384_v6 = vmul.f32 %v6806_v61, %v6806_v61  ;;  %v5870_v20 = vld [vmem:[#allocation5 + $0x160] ss:$16 sps:$4 sm:$0xff]  }
  0xe7   :  { %v278_v26 = vmul.f32 0.00390625, %v213_v29  ;;  %v385_v27 = vmul.f32 %v6808_v21, %v6808_v21  ;;  %v386_v31 = vmul.f32 %v6810_v10, %v6810_v10  ;;  %1485 = vmatpush2.bf16.msra.mxu1 %v5865_v32  ;;  %v6214_v63 = vld [vmem:[#allocation2 + $0x100] sm:$0xff]  ;;  %1293 = vmatprep.subr.bf16.mxu0 %v5866_v59 }
  0xe8   :  { %v6820_v34 = vsub.f32 %v6210_v9, %v277_v28  ;;  %v6822_v39 = vsub.f32 %v6211_v38, %v277_v28  ;;  %v459_v43 = vadd.f32 %v384_v6, %v383_v24  ;;  %v6215_v28 = vld [vmem:[#allocation2 + $0x108] sm:$0xff]  ;;  %1486 = vmatprep.subr.bf16.mxu1 %v5868_v60  ;;  %v6216_v24 = vld [vmem:[#allocation2 + $0x110] sm:$0xff]  ;;  %1294 = vmatpush2.bf16.msra.mxu0 %v5870_v20 }
  0xe9   :  { %v6824_v12 = vsub.f32 %v6212_v45, %v278_v26  ;;  %v6826_v46 = vsub.f32 %v6213_v13, %v278_v26  ;;  %v216_v14 = vpop.xlane.xlu0 %215  ;;  %v462_v48 = vadd.f32 %v386_v31, %v385_v27  ;;  %v5872_v38 = vld [vmem:[#allocation5 + $0x144] ss:$16 sps:$4 sm:$0xff]  }
  0xea   :  { %v279_v47 = vmul.f32 0.00390625, %v216_v14  ;;  %457 = vadd.xlane.f32.xlu1 %v456_v5  ;;  %460 = vadd.xlane.f32.xlu0 %v459_v43  ;;  %v219_v15 = vpop.xlane.xlu1 %218  ;;  %v387_v49 = vmul.f32 %v6820_v34, %v6820_v34  ;;  %v388_v56 = vmul.f32 %v6822_v39, %v6822_v39  ;;  %v5874_v43 = vld [vmem:[#allocation5 + $0x14c] ss:$16 sps:$4 sm:$0xff]  }
  0xeb   :  { %v280_v0 = vmul.f32 0.00390625, %v219_v15  ;;  %v389_v18 = vmul.f32 %v6824_v12, %v6824_v12  ;;  %v390_v1 = vmul.f32 %v6826_v46, %v6826_v46  ;;  %1487 = vmatpush2.bf16.msra.mxu1 %v5871_v62  ;;  %v5877_v15 = vld [vmem:[#allocation5 + $0x148] ss:$16 sps:$4 sm:$0xff]   ;;  %1295 = vmatprep.subr.bf16.mxu0 %v5872_v38  ;;  %v5882_v38 = vld [vmem:[#allocation5 + $0x120] ss:$16 sps:$4 sm:$0xff]  }
  0xec   :  { %v6836_v23 = vsub.f32 %v6214_v63, %v279_v47  ;;  %v6838_v29 = vsub.f32 %v6215_v28, %v279_v47  ;;  %v465_v5 = vadd.f32 %v388_v56, %v387_v49  ;;  %v5876_v47 = vld [vmem:[#allocation5 + $0x140] ss:$16 sps:$4 sm:$0xff]   ;;  %v6219_v56 = vld [vmem:[#allocation2 + $0x128] sm:$0xff]  ;;  %1488 = vmatprep.subr.bf16.mxu1 %v5874_v43 }
  0xed   :  { %v6840_v6 = vsub.f32 %v6216_v24, %v280_v0  ;;  %v6842_v30 = vsub.f32 %v6217_v25, %v280_v0  ;;  %v222_v26 = vpop.xlane.xlu0 %221  ;;  %v468_v8 = vadd.f32 %v390_v1, %v389_v18  ;;  %v6220_v0 = vld [vmem:[#allocation2 + $0x130] sm:$0xff]  ;;  %v6221_v1 = vld [vmem:[#allocation2 + $0x138] sm:$0xff]  ;;  %1296 = vmatpush2.bf16.msra.mxu0 %v5876_v47  ;;  %v6222_v43 = vld [vmem:[#allocation2 + $0x140] sm:$0xff] }
  0xee   :  { %v281_v27 = vmul.f32 0.00390625, %v222_v26  ;;  %463 = vadd.xlane.f32.xlu1 %v462_v48  ;;  %466 = vadd.xlane.f32.xlu0 %v465_v5  ;;  %v225_v31 = vpop.xlane.xlu1 %224  ;;  %v391_v32 = vmul.f32 %v6836_v23, %v6836_v23  ;;  %v392_v9 = vmul.f32 %v6838_v29, %v6838_v29  ;;  %v6218_v48 = vld [vmem:[#allocation2 + $0x120] sm:$0xff] }
  0xef   :  { %v282_v45 = vmul.f32 0.00390625, %v225_v31  ;;  %v393_v13 = vmul.f32 %v6840_v6, %v6840_v6  ;;  %v394_v14 = vmul.f32 %v6842_v30, %v6842_v30  ;;  %1489 = vmatpush2.bf16.msra.mxu1 %v5877_v15  ;;  %v5878_v26 = vld [vmem:[#allocation5 + $0x124] ss:$16 sps:$4 sm:$0xff]  }
  0xf0   :  { %v6852_v49 = vsub.f32 %v6218_v48, %v281_v27  ;;  %v6854_v59 = vsub.f32 %v6219_v56, %v281_v27  ;;  %v471_v60 = vadd.f32 %v392_v9, %v391_v32  ;;  %v5880_v27 = vld [vmem:[#allocation5 + $0x12c] ss:$16 sps:$4 sm:$0xff]   ;;  %1297 = vmatprep.subr.bf16.mxu0 %v5878_v26  ;;  %v6224_v15 = vld [vmem:[#allocation2 + $0x150] sm:$0xff] }
  0xf1   :  { %v6856_v18 = vsub.f32 %v6220_v0, %v282_v45  ;;  %v6858_v20 = vsub.f32 %v6221_v1, %v282_v45  ;;  %v228_v62 = vpop.xlane.xlu0 %227  ;;  %v474_v5 = vadd.f32 %v394_v14, %v393_v13  ;;  %v6223_v13 = vld [vmem:[#allocation2 + $0x148] sm:$0xff]  ;;  %1490 = vmatprep.subr.bf16.mxu1 %v5880_v27  ;;  %v6225_v56 = vld [vmem:[#allocation2 + $0x158] sm:$0xff]  ;;  %1298 = vmatpush2.bf16.msra.mxu0 %v5882_v38 }
  0xf2   :  { %9430 = vst [vmem:[#allocation16_spill] sm:$0xff] %v6852_v49  ;;  %9431 = vst [vmem:[#allocation17_spill] sm:$0xff] %v6854_v59  ;;  %v283_v63 = vmul.f32 0.00390625, %v228_v62  ;;  %469 = vadd.xlane.f32.xlu1 %v468_v8  ;;  %472 = vadd.xlane.f32.xlu0 %v471_v60  ;;  %v231_v28 = vpop.xlane.xlu1 %230  ;;  %v395_v24 = vmul.f32 %v6852_v49, %v6852_v49  ;;  %v396_v25 = vmul.f32 %v6854_v59, %v6854_v59  ;;  %v5883_v8 = vld [vmem:[#allocation5 + $0x128] ss:$16 sps:$4 sm:$0xff]  }
  0xf3   :  { %9432 = vst [vmem:[#allocation18_spill] sm:$0xff] %v6856_v18  ;;  %9433 = vst [vmem:[#allocation19_spill] sm:$0xff] %v6858_v20  ;;  %v284_v31 = vmul.f32 0.00390625, %v231_v28  ;;  %v397_v32 = vmul.f32 %v6856_v18, %v6856_v18  ;;  %v398_v9 = vmul.f32 %v6858_v20, %v6858_v20  ;;  %1491 = vmatpush2.bf16.msra.mxu1 %v5883_v8  ;;  %v5886_v26 = vld [vmem:[#allocation5 + $0x10c] ss:$16 sps:$4 sm:$0xff]  }
  0xf4   :  { %v6868_v45 = vsub.f32 %v6222_v43, %v283_v63  ;;  %v6870_v14 = vsub.f32 %v6223_v13, %v283_v63  ;;  %v477_v47 = vadd.f32 %v396_v25, %v395_v24  ;;  %v5884_v25 = vld [vmem:[#allocation5 + $0x104] ss:$16 sps:$4 sm:$0xff]   ;;  %v5888_v8 = vld [vmem:[#allocation5 + $0x100] ss:$16 sps:$4 sm:$0xff]   ;;  %1492 = vmatprep.subr.bf16.mxu1 %v5886_v26 }
  0xf5   :  { %v6872_v48 = vsub.f32 %v6224_v15, %v284_v31  ;;  %v6874_v60 = vsub.f32 %v6225_v56, %v284_v31  ;;  %v234_v0 = vpop.xlane.xlu0 %233  ;;  %v480_v28 = vadd.f32 %v398_v9, %v397_v32  ;;  %v6226_v43 = vld [vmem:[#allocation2 + $0x160] sm:$0xff]  ;;  %v6227_v32 = vld [vmem:[#allocation2 + $0x168] sm:$0xff]  ;;  %1299 = vmatprep.subr.bf16.mxu0 %v5884_v25  ;;  %v6228_v15 = vld [vmem:[#allocation2 + $0x170] sm:$0xff] }
  0xf6   :  { %9434 = vst [vmem:[#allocation20_spill] sm:$0xff] %v6868_v45  ;;  %9435 = vst [vmem:[#allocation21_spill] sm:$0xff] %v6870_v14  ;;  %v285_v1 = vmul.f32 0.00390625, %v234_v0  ;;  %475 = vadd.xlane.f32.xlu1 %v474_v5  ;;  %478 = vadd.xlane.f32.xlu0 %v477_v47  ;;  %v237_v62 = vpop.xlane.xlu1 %236  ;;  %v399_v63 = vmul.f32 %v6868_v45, %v6868_v45  ;;  %v400_v24 = vmul.f32 %v6870_v14, %v6870_v14  ;;  %v5889_v5 = vld [vmem:[#allocation5 + $0x108] ss:$16 sps:$4 sm:$0xff]  }
  0xf7   :  { %9436 = vst [vmem:[#allocation22_spill] sm:$0xff] %v6872_v48  ;;  %9437 = vst [vmem:[#allocation23_spill] sm:$0xff] %v6874_v60  ;;  %v286_v27 = vmul.f32 0.00390625, %v237_v62  ;;  %v401_v31 = vmul.f32 %v6872_v48, %v6872_v48  ;;  %v402_v38 = vmul.f32 %v6874_v60, %v6874_v60  ;;  %v6229_v0 = vld [vmem:[#allocation2 + $0x178] sm:$0xff]  ;;  %1300 = vmatpush2.bf16.msra.mxu0 %v5888_v8  ;;  %1493 = vmatpush2.bf16.msra.mxu1 %v5889_v5 }
  0xf8   :  { %v6884_v13 = vsub.f32 %v6226_v43, %v285_v1  ;;  %v6886_v9 = vsub.f32 %v6227_v32, %v285_v1  ;;  %v483_v47 = vadd.f32 %v400_v24, %v399_v63  ;;  %v6233_v32 = vld [vmem:[#allocation2 + $0x198] sm:$0xff] }
  0xf9   :  { %v6888_v56 = vsub.f32 %v6228_v15, %v286_v27  ;;  %v6890_v62 = vsub.f32 %v6229_v0, %v286_v27  ;;  %v240_v45 = vpop.xlane.xlu0 %239  ;;  %v486_v14 = vadd.f32 %v402_v38, %v401_v31  ;;  %v6230_v27 = vld [vmem:[#allocation2 + $0x180] sm:$0xff]  ;;  %v6232_v38 = vld [vmem:[#allocation2 + $0x190] sm:$0xff] }
  0xfa   :  { %9438 = vst [vmem:[#allocation24_spill] sm:$0xff] %v6884_v13  ;;  %9439 = vst [vmem:[#allocation25_spill] sm:$0xff] %v6886_v9  ;;  %v287_v48 = vmul.f32 0.00390625, %v240_v45  ;;  %481 = vadd.xlane.f32.xlu1 %v480_v28  ;;  %484 = vadd.xlane.f32.xlu0 %v483_v47  ;;  %v243_v43 = vpop.xlane.xlu1 %242  ;;  %v403_v1 = vmul.f32 %v6884_v13, %v6884_v13  ;;  %v404_v63 = vmul.f32 %v6886_v9, %v6886_v9  ;;  %v6231_v45 = vld [vmem:[#allocation2 + $0x188] sm:$0xff] }
  0xfb   :  { %9440 = vst [vmem:[#allocation26_spill] sm:$0xff] %v6888_v56  ;;  %9441 = vst [vmem:[#allocation27_spill] sm:$0xff] %v6890_v62  ;;  %v288_v24 = vmul.f32 0.00390625, %v243_v43  ;;  %v405_v25 = vmul.f32 %v6888_v56, %v6888_v56  ;;  %v406_v26 = vmul.f32 %v6890_v62, %v6890_v62  ;;  %v6243_v62 = vld [vmem:[#allocation2 + $0x1a8] sm:$0xff] }
  0xfc   :  { %v6900_v8 = vsub.f32 %v6230_v27, %v287_v48  ;;  %v6902_v28 = vsub.f32 %v6231_v45, %v287_v48  ;;  %v489_v31 = vadd.f32 %v404_v63, %v403_v1 }
  0xfd   :  { %v6904_v5 = vsub.f32 %v6232_v38, %v288_v24  ;;  %v6906_v47 = vsub.f32 %v6233_v32, %v288_v24  ;;  %v1930_v15 = vpop.xlane.xlu0 %1929  ;;  %v492_v13 = vadd.f32 %v406_v26, %v405_v25  ;;  %v6235_v26 = vld [vmem:[%s9329_s1 + $0x88] sm:$0xff] }
  0xfe   :  { %9442 = vst [vmem:[#allocation28_spill] sm:$0xff] %v6900_v8  ;;  %9443 = vst [vmem:[#allocation29_spill] sm:$0xff] %v6902_v28  ;;  %v1993_v0 = vmul.f32 0.2, %v1930_v15  ;;  %487 = vadd.xlane.f32.xlu1 %v486_v14  ;;  %490 = vadd.xlane.f32.xlu0 %v489_v31  ;;  %v1933_v43 = vpop.xlane.xlu1 %1932  ;;  %v407_v27 = vmul.f32 %v6900_v8, %v6900_v8  ;;  %v408_v48 = vmul.f32 %v6902_v28, %v6902_v28  ;;  %v6234_v14 = vld [vmem:[%s9329_s1 + $0x80] sm:$0xff] }
  0xff   :  { %9444 = vst [vmem:[#allocation30_spill] sm:$0xff] %v6904_v5  ;;  %9445 = vst [vmem:[#allocation31_spill] sm:$0xff] %v6906_v47  ;;  %v1994_v45 = vmul.f32 0.2, %v1933_v43  ;;  %v409_v1 = vmul.f32 %v6904_v5, %v6904_v5  ;;  %v410_v63 = vmul.f32 %v6906_v47, %v6906_v47 }
 0x100   :  { %v6919_v24 = vsub.f32 %v6234_v14, %v1993_v0  ;;  %v495_v25 = vadd.f32 %v408_v48, %v407_v27  ;;  %v6236_v27 = vld [vmem:[%s9329_s1 + $0x90] sm:$0xff] }
 0x101   :  { %v6924_v31 = vsub.f32 %v6235_v26, %v1994_v45  ;;  %v1936_v38 = vpop.xlane.xlu0 %1935  ;;  %v498_v43 = vadd.f32 %v410_v63, %v409_v1 }
 0x102   :  { %v1995_v32 = vmul.f32 0.2, %v1936_v38  ;;  %493 = vadd.xlane.f32.xlu1 %v492_v13  ;;  %496 = vadd.xlane.f32.xlu0 %v495_v25  ;;  %v1939_v15 = vpop.xlane.xlu1 %1938  ;;  %v2057_v8 = vmul.f32 %v6919_v24, %v6919_v24  ;;  %v6237_v13 = vld [vmem:[%s9329_s1 + $0x98] sm:$0xff] }
 0x103   :  { %v1996_v5 = vmul.f32 0.2, %v1939_v15  ;;  %v2058_v0 = vmul.f32 %v6924_v31, %v6924_v31  ;;  %v6238_v15 = vld [vmem:[%s9329_s1] sm:$0xff] }
 0x104   :  { %v6933_v48 = vsub.f32 %v6236_v27, %v1995_v32  ;;  %v2121_v45 = vsel %vm1879_vm0, %v2057_v8, 0.0 }
 0x105   :  { %v6939_v1 = vsub.f32 %v6237_v13, %v1996_v5  ;;  %v1882_v63 = vpop.xlane.xlu0 %1881  ;;  %v2124_v32 = vsel %vm1879_vm0, %v2058_v0, 0.0 }
 0x106   :  { %v1977_v14 = vmul.f32 0.2, %v1882_v63  ;;  %499 = vadd.xlane.f32.xlu1 %v498_v43  ;;  %2122 = vadd.xlane.f32.xlu0 %v2121_v45  ;;  %v1885_v25 = vpop.xlane.xlu1 %1884  ;;  %v2059_v26 = vmul.f32 %v6933_v48, %v6933_v48  ;;  %v6239_v43 = vld [vmem:[%s9329_s1 + $0x8] sm:$0xff] }
 0x107   :  { %v1978_v38 = vmul.f32 0.2, %v1885_v25  ;;  %v2060_v8 = vmul.f32 %v6939_v1, %v6939_v1 }
 0x108   :  { %v6949_v5 = vsub.f32 %v6238_v15, %v1977_v14  ;;  %v2127_v27 = vsel %vm1879_vm0, %v2059_v26, 0.0  ;;  %v6240_v15 = vld [vmem:[%s9329_s1 + $0x10] sm:$0xff] }
 0x109   :  { %v6955_v45 = vsub.f32 %v6239_v43, %v1978_v38  ;;  %v1888_v13 = vpop.xlane.xlu0 %1887  ;;  %v2130_v14 = vsel %vm1879_vm0, %v2060_v8, 0.0 }
 0x10a   :  { %9446 = vst [vmem:[#allocation32_spill] sm:$0xff] %v6949_v5  ;;  %v1979_v63 = vmul.f32 0.2, %v1888_v13  ;;  %2125 = vadd.xlane.f32.xlu1 %v2124_v32  ;;  %2128 = vadd.xlane.f32.xlu0 %v2127_v27  ;;  %v1891_v0 = vpop.xlane.xlu1 %1890  ;;  %v2041_v25 = vmul.f32 %v6949_v5, %v6949_v5  ;;  %v6241_v32 = vld [vmem:[%s9329_s1 + $0x18] sm:$0xff] }
 0x10b   :  { %9447 = vst [vmem:[#allocation33_spill] sm:$0xff] %v6955_v45  ;;  %v1980_v28 = vmul.f32 0.2, %v1891_v0  ;;  %v2042_v26 = vmul.f32 %v6955_v45, %v6955_v45 }
 0x10c   :  { %v6965_v38 = vsub.f32 %v6240_v15, %v1979_v63  ;;  %v2073_v43 = vsel %vm1879_vm0, %v2041_v25, 0.0  ;;  %v6242_v15 = vld [vmem:[#allocation2 + $0x1a0] sm:$0xff] }
 0x10d   :  { %v6971_v27 = vsub.f32 %v6241_v32, %v1980_v28  ;;  %v246_v13 = vpop.xlane.xlu0 %245  ;;  %v2076_v63 = vsel %vm1879_vm0, %v2042_v26, 0.0 }
 0x10e   :  { %9448 = vst [vmem:[#allocation34_spill] sm:$0xff] %v6965_v38  ;;  %v289_v0 = vmul.f32 0.00390625, %v246_v13  ;;  %2131 = vadd.xlane.f32.xlu1 %v2130_v14  ;;  %2074 = vadd.xlane.f32.xlu0 %v2073_v43  ;;  %v249_v8 = vpop.xlane.xlu1 %248  ;;  %v2043_v47 = vmul.f32 %v6965_v38, %v6965_v38  ;;  %v6244_v14 = vld [vmem:[#allocation2 + $0x1b0] sm:$0xff]  ;;  %v6245_v13 = vld [vmem:[#allocation2 + $0x1b8] sm:$0xff] }
 0x10f   :  { %9449 = vst [vmem:[#allocation35_spill] sm:$0xff] %v6971_v27  ;;  %v290_v56 = vmul.f32 0.00390625, %v249_v8  ;;  %v2044_v25 = vmul.f32 %v6971_v27, %v6971_v27 }
 0x110   :  { %v6978_v9 = vsub.f32 %v6242_v15, %v289_v0  ;;  %v6980_v28 = vsub.f32 %v6243_v62, %v289_v0  ;;  %v2079_v32 = vsel %vm1879_vm0, %v2043_v47, 0.0 }
 0x111   :  { %v6983_v43 = vsub.f32 %v6244_v14, %v290_v56  ;;  %v6985_v60 = vsub.f32 %v6245_v13, %v290_v56  ;;  %v1942_v8 = vpop.xlane.xlu0 %1941  ;;  %v2082_v56 = vsel %vm1879_vm0, %v2044_v25, 0.0  ;;  %v6246_v13 = vld [vmem:[%s9329_s1 + $0xa0] sm:$0xff] }
 0x112   :  { %9450 = vst [vmem:[#allocation36_spill] sm:$0xff] %v6978_v9  ;;  %9451 = vst [vmem:[#allocation37_spill] sm:$0xff] %v6980_v28  ;;  %v411_v26 = vmul.f32 %v6978_v9, %v6978_v9  ;;  %v412_v38 = vmul.f32 %v6980_v28, %v6980_v28  ;;  %v1997_v15 = vmul.f32 0.2, %v1942_v8  ;;  %2077 = vadd.xlane.f32.xlu1 %v2076_v63  ;;  %2080 = vadd.xlane.f32.xlu0 %v2079_v32  ;;  %v1945_v62 = vpop.xlane.xlu1 %1944  ;;  %v6247_v63 = vld [vmem:[%s9329_s1 + $0xa8] sm:$0xff] }
 0x113   :  { %9452 = vst [vmem:[#allocation38_spill] sm:$0xff] %v6983_v43  ;;  %9453 = vst [vmem:[#allocation39_spill] sm:$0xff] %v6985_v60  ;;  %v413_v47 = vmul.f32 %v6983_v43, %v6983_v43  ;;  %v414_v0 = vmul.f32 %v6985_v60, %v6985_v60  ;;  %v1998_v14 = vmul.f32 0.2, %v1945_v62 }
 0x114   :  { %v6999_v9 = vsub.f32 %v6246_v13, %v1997_v15  ;;  %v501_v28 = vadd.f32 %v412_v38, %v411_v26  ;;  %v6248_v38 = vld [vmem:[%s9329_s1 + $0xb0] sm:$0xff] }
 0x115   :  { %v7004_v32 = vsub.f32 %v6247_v63, %v1998_v14  ;;  %v1948_v8 = vpop.xlane.xlu0 %1947  ;;  %v504_v60 = vadd.f32 %v414_v0, %v413_v47 }
 0x116   :  { %9454 = vst [vmem:[#allocation40_spill] sm:$0xff] %v6999_v9  ;;  %v1999_v43 = vmul.f32 0.2, %v1948_v8  ;;  %2083 = vadd.xlane.f32.xlu1 %v2082_v56  ;;  %502 = vadd.xlane.f32.xlu0 %v501_v28  ;;  %v1951_v62 = vpop.xlane.xlu1 %1950  ;;  %v2061_v25 = vmul.f32 %v6999_v9, %v6999_v9  ;;  %v6249_v28 = vld [vmem:[%s9329_s1 + $0xb8] sm:$0xff] }
 0x117   :  { %9455 = vst [vmem:[#allocation41_spill] sm:$0xff] %v7004_v32  ;;  %v2000_v18 = vmul.f32 0.2, %v1951_v62  ;;  %v2062_v15 = vmul.f32 %v7004_v32, %v7004_v32 }
 0x118   :  { %v7013_v26 = vsub.f32 %v6248_v38, %v1999_v43  ;;  %v2133_v14 = vsel %vm1879_vm0, %v2061_v25, 0.0  ;;  %v6250_v25 = vld [vmem:[%s9329_s1 + $0x20] sm:$0xff] }
 0x119   :  { %v7019_v47 = vsub.f32 %v6249_v28, %v2000_v18  ;;  %v1894_v0 = vpop.xlane.xlu0 %1893  ;;  %v2136_v43 = vsel %vm1879_vm0, %v2062_v15, 0.0 }
 0x11a   :  { %9456 = vst [vmem:[#allocation42_spill] sm:$0xff] %v7013_v26  ;;  %v1981_v56 = vmul.f32 0.2, %v1894_v0  ;;  %505 = vadd.xlane.f32.xlu1 %v504_v60  ;;  %2134 = vadd.xlane.f32.xlu0 %v2133_v14  ;;  %v1897_v13 = vpop.xlane.xlu1 %1896  ;;  %v2063_v63 = vmul.f32 %v7013_v26, %v7013_v26  ;;  %v6251_v60 = vld [vmem:[%s9329_s1 + $0x28] sm:$0xff] }
 0x11b   :  { %9457 = vst [vmem:[#allocation43_spill] sm:$0xff] %v7019_v47  ;;  %v1982_v8 = vmul.f32 0.2, %v1897_v13  ;;  %v2064_v62 = vmul.f32 %v7019_v47, %v7019_v47  ;;  %v6255_v26 = vld [vmem:[#allocation2 + $0x1c8] sm:$0xff] }
 0x11c   :  { %v7029_v18 = vsub.f32 %v6250_v25, %v1981_v56  ;;  %v2139_v38 = vsel %vm1879_vm0, %v2063_v63, 0.0  ;;  %v6252_v25 = vld [vmem:[%s9329_s1 + $0x30] sm:$0xff] }
 0x11d   :  { %v7035_v14 = vsub.f32 %v6251_v60, %v1982_v8  ;;  %v1900_v28 = vpop.xlane.xlu0 %1899  ;;  %v2142_v56 = vsel %vm1879_vm0, %v2064_v62, 0.0 }
 0x11e   :  { %9458 = vst [vmem:[#allocation44_spill] sm:$0xff] %v7029_v18  ;;  %v1983_v0 = vmul.f32 0.2, %v1900_v28  ;;  %2137 = vadd.xlane.f32.xlu1 %v2136_v43  ;;  %2140 = vadd.xlane.f32.xlu0 %v2139_v38  ;;  %v1903_v15 = vpop.xlane.xlu1 %1902  ;;  %v2045_v13 = vmul.f32 %v7029_v18, %v7029_v18  ;;  %v6253_v43 = vld [vmem:[%s9329_s1 + $0x38] sm:$0xff] }
 0x11f   :  { %9459 = vst [vmem:[#allocation45_spill] sm:$0xff] %v7035_v14  ;;  %v1984_v47 = vmul.f32 0.2, %v1903_v15  ;;  %v2046_v63 = vmul.f32 %v7035_v14, %v7035_v14 }
 0x120   :  { %v7045_v8 = vsub.f32 %v6252_v25, %v1983_v0  ;;  %v2085_v60 = vsel %vm1879_vm0, %v2045_v13, 0.0  ;;  %v6254_v25 = vld [vmem:[#allocation2 + $0x1c0] sm:$0xff] }
 0x121   :  { %v7051_v38 = vsub.f32 %v6253_v43, %v1984_v47  ;;  %v252_v28 = vpop.xlane.xlu0 %251  ;;  %v2088_v0 = vsel %vm1879_vm0, %v2046_v63, 0.0 }
 0x122   :  { %9460 = vst [vmem:[#allocation46_spill] sm:$0xff] %v7045_v8  ;;  %v291_v15 = vmul.f32 0.00390625, %v252_v28  ;;  %2143 = vadd.xlane.f32.xlu1 %v2142_v56  ;;  %2086 = vadd.xlane.f32.xlu0 %v2085_v60  ;;  %v255_v62 = vpop.xlane.xlu1 %254  ;;  %v2047_v14 = vmul.f32 %v7045_v8, %v7045_v8  ;;  %v6256_v56 = vld [vmem:[#allocation2 + $0x1d0] sm:$0xff]  ;;  %v6257_v28 = vld [vmem:[#allocation2 + $0x1d8] sm:$0xff] }
 0x123   :  { %9461 = vst [vmem:[#allocation47_spill] sm:$0xff] %v7051_v38  ;;  %v292_v32 = vmul.f32 0.00390625, %v255_v62  ;;  %v2048_v13 = vmul.f32 %v7051_v38, %v7051_v38 }
 0x124   :  { %v7058_v18 = vsub.f32 %v6254_v25, %v291_v15  ;;  %v7060_v47 = vsub.f32 %v6255_v26, %v291_v15  ;;  %v2091_v43 = vsel %vm1879_vm0, %v2047_v14, 0.0 }
 0x125   :  { %v7063_v60 = vsub.f32 %v6256_v56, %v292_v32  ;;  %v7065_v9 = vsub.f32 %v6257_v28, %v292_v32  ;;  %v1954_v62 = vpop.xlane.xlu0 %1953  ;;  %v2094_v32 = vsel %vm1879_vm0, %v2048_v13, 0.0  ;;  %v6258_v28 = vld [vmem:[%s9329_s1 + $0xc0] sm:$0xff] }
 0x126   :  { %9462 = vst [vmem:[#allocation48_spill] sm:$0xff] %v7058_v18  ;;  %9463 = vst [vmem:[#allocation49_spill] sm:$0xff] %v7060_v47  ;;  %v415_v63 = vmul.f32 %v7058_v18, %v7058_v18  ;;  %v416_v38 = vmul.f32 %v7060_v47, %v7060_v47  ;;  %v2001_v25 = vmul.f32 0.2, %v1954_v62  ;;  %2089 = vadd.xlane.f32.xlu1 %v2088_v0  ;;  %2092 = vadd.xlane.f32.xlu0 %v2091_v43  ;;  %v1957_v26 = vpop.xlane.xlu1 %1956  ;;  %v6259_v0 = vld [vmem:[%s9329_s1 + $0xc8] sm:$0xff] }
 0x127   :  { %9464 = vst [vmem:[#allocation50_spill] sm:$0xff] %v7063_v60  ;;  %9465 = vst [vmem:[#allocation51_spill] sm:$0xff] %v7065_v9  ;;  %v417_v14 = vmul.f32 %v7063_v60, %v7063_v60  ;;  %v418_v15 = vmul.f32 %v7065_v9, %v7065_v9  ;;  %v2002_v56 = vmul.f32 0.2, %v1957_v26 }
 0x128   :  { %v7079_v18 = vsub.f32 %v6258_v28, %v2001_v25  ;;  %v507_v47 = vadd.f32 %v416_v38, %v415_v63  ;;  %v9368_v38 = vmov 0   ;;  %v6260_v63 = vld [vmem:[%s9329_s1 + $0xd0] sm:$0xff] }
 0x129   :  { %v7084_v43 = vsub.f32 %v6259_v0, %v2002_v56  ;;  %v1960_v62 = vpop.xlane.xlu0 %1959  ;;  %v510_v9 = vadd.f32 %v418_v15, %v417_v14  ;;  %5719 = vset.pattern.permute.xlu0 %v9368_v38  ;;  %5720 = vset.pattern.permute.xlu1 %v9368_v38  ;;  %v6261_v14 = vld [vmem:[%s9329_s1 + $0xd8] sm:$0xff] }
 0x12a   :  { %9466 = vst [vmem:[#allocation52_spill] sm:$0xff] %v7079_v18  ;;  %v2003_v60 = vmul.f32 0.2, %v1960_v62  ;;  %2095 = vadd.xlane.f32.xlu1 %v2094_v32  ;;  %508 = vadd.xlane.f32.xlu0 %v507_v47  ;;  %v1963_v26 = vpop.xlane.xlu1 %1962  ;;  %v2065_v13 = vmul.f32 %v7079_v18, %v7079_v18 }
 0x12b   :  { %9467 = vst [vmem:[#allocation53_spill] sm:$0xff] %v7084_v43  ;;  %v2004_v8 = vmul.f32 0.2, %v1963_v26  ;;  %v2066_v25 = vmul.f32 %v7084_v43, %v7084_v43 }
 0x12c   :  { %v7095_v56 = vsub.f32 %v6260_v63, %v2003_v60  ;;  %v2145_v47 = vsel %vm1879_vm0, %v2065_v13, 0.0  ;;  %v6262_v63 = vld [vmem:[%s9329_s1 + $0x40] sm:$0xff] }
 0x12d   :  { %v7101_v15 = vsub.f32 %v6261_v14, %v2004_v8  ;;  %v1906_v32 = vpop.xlane.xlu0 %1905  ;;  %v2148_v60 = vsel %vm1879_vm0, %v2066_v25, 0.0 }
 0x12e   :  { %9468 = vst [vmem:[#allocation54_spill] sm:$0xff] %v7095_v56  ;;  %v1985_v28 = vmul.f32 0.2, %v1906_v32  ;;  %511 = vadd.xlane.f32.xlu1 %v510_v9  ;;  %2146 = vadd.xlane.f32.xlu0 %v2145_v47  ;;  %v1909_v0 = vpop.xlane.xlu1 %1908  ;;  %v2067_v62 = vmul.f32 %v7095_v56, %v7095_v56  ;;  %v6263_v9 = vld [vmem:[%s9329_s1 + $0x48] sm:$0xff] }
 0x12f   :  { %9469 = vst [vmem:[#allocation55_spill] sm:$0xff] %v7101_v15  ;;  %v1986_v26 = vmul.f32 0.2, %v1909_v0  ;;  %v2068_v13 = vmul.f32 %v7101_v15, %v7101_v15  ;;  %v6267_v56 = vld [vmem:[#allocation2 + $0x1e8] sm:$0xff] }
 0x130   :  { %v7111_v8 = vsub.f32 %v6262_v63, %v1985_v28  ;;  %v2151_v14 = vsel %vm1879_vm0, %v2067_v62, 0.0  ;;  %v6264_v63 = vld [vmem:[%s9329_s1 + $0x50] sm:$0xff] }
 0x131   :  { %v7117_v47 = vsub.f32 %v6263_v9, %v1986_v26  ;;  %v1912_v32 = vpop.xlane.xlu0 %1911  ;;  %v2154_v28 = vsel %vm1879_vm0, %v2068_v13, 0.0 }
 0x132   :  { %9470 = vst [vmem:[#allocation56_spill] sm:$0xff] %v7111_v8  ;;  %v1987_v0 = vmul.f32 0.2, %v1912_v32  ;;  %2149 = vadd.xlane.f32.xlu1 %v2148_v60  ;;  %2152 = vadd.xlane.f32.xlu0 %v2151_v14  ;;  %v1915_v25 = vpop.xlane.xlu1 %1914  ;;  %v2049_v38 = vmul.f32 %v7111_v8, %v7111_v8  ;;  %v6265_v60 = vld [vmem:[%s9329_s1 + $0x58] sm:$0xff] }
 0x133   :  { %9471 = vst [vmem:[#allocation57_spill] sm:$0xff] %v7117_v47  ;;  %v1988_v15 = vmul.f32 0.2, %v1915_v25  ;;  %v2050_v62 = vmul.f32 %v7117_v47, %v7117_v47 }
 0x134   :  { %v7127_v26 = vsub.f32 %v6264_v63, %v1987_v0  ;;  %v2097_v9 = vsel %vm1879_vm0, %v2049_v38, 0.0  ;;  %v6266_v63 = vld [vmem:[#allocation2 + $0x1e0] sm:$0xff] }
 0x135   :  { %v7133_v14 = vsub.f32 %v6265_v60, %v1988_v15  ;;  %v258_v32 = vpop.xlane.xlu0 %257  ;;  %v2100_v0 = vsel %vm1879_vm0, %v2050_v62, 0.0 }
 0x136   :  { %9472 = vst [vmem:[#allocation58_spill] sm:$0xff] %v7127_v26  ;;  %v293_v25 = vmul.f32 0.00390625, %v258_v32  ;;  %2155 = vadd.xlane.f32.xlu1 %v2154_v28  ;;  %2098 = vadd.xlane.f32.xlu0 %v2097_v9  ;;  %v261_v13 = vpop.xlane.xlu1 %260  ;;  %v2051_v47 = vmul.f32 %v7127_v26, %v7127_v26  ;;  %v6268_v28 = vld [vmem:[#allocation2 + $0x1f0] sm:$0xff]  ;;  %v6269_v32 = vld [vmem:[#allocation2 + $0x1f8] sm:$0xff] }
 0x137   :  { %9473 = vst [vmem:[#allocation59_spill] sm:$0xff] %v7133_v14  ;;  %v294_v43 = vmul.f32 0.00390625, %v261_v13  ;;  %v2052_v38 = vmul.f32 %v7133_v14, %v7133_v14 }
 0x138   :  { %v7140_v8 = vsub.f32 %v6266_v63, %v293_v25  ;;  %v7142_v15 = vsub.f32 %v6267_v56, %v293_v25  ;;  %v2103_v60 = vsel %vm1879_vm0, %v2051_v47, 0.0 }
 0x139   :  { %v7145_v9 = vsub.f32 %v6268_v28, %v294_v43  ;;  %v7147_v18 = vsub.f32 %v6269_v32, %v294_v43  ;;  %v1966_v13 = vpop.xlane.xlu0 %1965  ;;  %v2106_v43 = vsel %vm1879_vm0, %v2052_v38, 0.0  ;;  %v6270_v32 = vld [vmem:[%s9329_s1 + $0xe0] sm:$0xff] }
 0x13a   :  { %9474 = vst [vmem:[#allocation60_spill] sm:$0xff] %v7140_v8  ;;  %9475 = vst [vmem:[#allocation61_spill] sm:$0xff] %v7142_v15  ;;  %v419_v62 = vmul.f32 %v7140_v8, %v7140_v8  ;;  %v420_v14 = vmul.f32 %v7142_v15, %v7142_v15  ;;  %2101 = vadd.xlane.f32.xlu1 %v2100_v0  ;;  %2104 = vadd.xlane.f32.xlu0 %v2103_v60  ;;  %v2005_v63 = vmul.f32 0.2, %v1966_v13  ;;  %v1969_v56 = vpop.xlane.xlu1 %1968  ;;  %v6271_v0 = vld [vmem:[%s9329_s1 + $0xe8] sm:$0xff] }
 0x13b   :  { %9476 = vst [vmem:[#allocation62_spill] sm:$0xff] %v7145_v9  ;;  %9477 = vst [vmem:[#allocation63_spill] sm:$0xff] %v7147_v18  ;;  %v421_v47 = vmul.f32 %v7145_v9, %v7145_v9  ;;  %v422_v25 = vmul.f32 %v7147_v18, %v7147_v18  ;;  %v2006_v28 = vmul.f32 0.2, %v1969_v56 }
 0x13c   :  { %v7161_v8 = vsub.f32 %v6270_v32, %v2005_v63  ;;  %v513_v15 = vadd.f32 %v420_v14, %v419_v62  ;;  %v6272_v14 = vld [vmem:[%s9329_s1 + $0xf0] sm:$0xff] }
 0x13d   :  { %v7166_v60 = vsub.f32 %v6271_v0, %v2006_v28  ;;  %v1972_v13 = vpop.xlane.xlu0 %1971  ;;  %v516_v18 = vadd.f32 %v422_v25, %v421_v47 }
 0x13e   :  { %9478 = vst [vmem:[#allocation64_spill] sm:$0xff] %v7161_v8  ;;  %2107 = vadd.xlane.f32.xlu1 %v2106_v43  ;;  %514 = vadd.xlane.f32.xlu0 %v513_v15  ;;  %v2007_v9 = vmul.f32 0.2, %v1972_v13  ;;  %v1975_v56 = vpop.xlane.xlu1 %1974  ;;  %v2069_v38 = vmul.f32 %v7161_v8, %v7161_v8  ;;  %v6273_v15 = vld [vmem:[%s9329_s1 + $0xf8] sm:$0xff] }
 0x13f   :  { %9479 = vst [vmem:[#allocation65_spill] sm:$0xff] %v7166_v60  ;;  %v2008_v26 = vmul.f32 0.2, %v1975_v56  ;;  %v2070_v63 = vmul.f32 %v7166_v60, %v7166_v60 }
 0x140   :  { %v7175_v62 = vsub.f32 %v6272_v14, %v2007_v9  ;;  %v2157_v28 = vsel %vm1879_vm0, %v2069_v38, 0.0  ;;  %v6274_v38 = vld [vmem:[%s9329_s1 + $0x60] sm:$0xff]  ;;  %v6275_v14 = vld [vmem:[%s9329_s1 + $0x68] sm:$0xff] }
 0x141   :  { %v7181_v47 = vsub.f32 %v6273_v15, %v2008_v26  ;;  %v1918_v25 = vpop.xlane.xlu0 %1917  ;;  %v2160_v9 = vsel %vm1879_vm0, %v2070_v63, 0.0 }
 0x142   :  { %9480 = vst [vmem:[#allocation66_spill] sm:$0xff] %v7175_v62  ;;  %517 = vadd.xlane.f32.xlu1 %v516_v18  ;;  %2158 = vadd.xlane.f32.xlu0 %v2157_v28  ;;  %v1989_v43 = vmul.f32 0.2, %v1918_v25  ;;  %v1921_v32 = vpop.xlane.xlu1 %1920  ;;  %v2071_v0 = vmul.f32 %v7175_v62, %v7175_v62 }
 0x143   :  { %9481 = vst [vmem:[#allocation67_spill] sm:$0xff] %v7181_v47  ;;  %v1990_v13 = vmul.f32 0.2, %v1921_v32  ;;  %v2072_v56 = vmul.f32 %v7181_v47, %v7181_v47 }
 0x144   :  { %v7191_v26 = vsub.f32 %v6274_v38, %v1989_v43  ;;  %v2163_v18 = vsel %vm1879_vm0, %v2071_v0, 0.0  ;;  %v6276_v38 = vld [vmem:[%s9329_s1 + $0x70] sm:$0xff] }
 0x145   :  { %v7197_v28 = vsub.f32 %v6275_v14, %v1990_v13  ;;  %v1924_v15 = vpop.xlane.xlu0 %1923  ;;  %v2166_v43 = vsel %vm1879_vm0, %v2072_v56, 0.0 }
 0x146   :  { %9482 = vst [vmem:[#allocation68_spill] sm:$0xff] %v7191_v26  ;;  %2161 = vadd.xlane.f32.xlu1 %v2160_v9  ;;  %2164 = vadd.xlane.f32.xlu0 %v2163_v18  ;;  %v1991_v63 = vmul.f32 0.2, %v1924_v15  ;;  %v1927_v25 = vpop.xlane.xlu1 %1926  ;;  %v2053_v32 = vmul.f32 %v7191_v26, %v7191_v26  ;;  %v6277_v18 = vld [vmem:[%s9329_s1 + $0x78] sm:$0xff] }
 0x147   :  { %9483 = vst [vmem:[#allocation69_spill] sm:$0xff] %v7197_v28  ;;  %v1992_v47 = vmul.f32 0.2, %v1927_v25  ;;  %v2054_v0 = vmul.f32 %v7197_v28, %v7197_v28 }
 0x148   :  { %v7207_v13 = vsub.f32 %v6276_v38, %v1991_v63  ;;  %v2109_v9 = vsel %vm1879_vm0, %v2053_v32, 0.0 }
 0x149   :  { %v7213_v14 = vsub.f32 %v6277_v18, %v1992_v47  ;;  %v2112_v15 = vsel %vm1879_vm0, %v2054_v0, 0.0 }
 0x14a   :  { %9484 = vst [vmem:[#allocation70_spill] sm:$0xff] %v7207_v13  ;;  %2167 = vadd.xlane.f32.xlu1 %v2166_v43  ;;  %2110 = vadd.xlane.f32.xlu0 %v2109_v9  ;;  %v2055_v56 = vmul.f32 %v7207_v13, %v7207_v13  ;;  %v681_v13 = vlaneseq }
 0x14b   :  { %9485 = vst [vmem:[#allocation71_spill] sm:$0xff] %v7213_v14  ;;  %v2056_v25 = vmul.f32 %v7213_v14, %v7213_v14 }
 0x14c   :  { %v2115_v63 = vsel %vm1879_vm0, %v2055_v56, 0.0 }
 0x14d   :  { %v2118_v32 = vsel %vm1879_vm0, %v2056_v25, 0.0 }
 0x14e   :  { %2113 = vadd.xlane.f32.xlu1 %v2112_v15  ;;  %2116 = vadd.xlane.f32.xlu0 %v2115_v63  ;;  %v7222_v63 = vshrl.u32 %v681_v13, 7 }
 0x150   :  { %9486 = vst [vmem:[#allocation72_spill] sm:$0xff] %v7222_v63 }
 0x152   :  { %2119 = vadd.xlane.f32.xlu1 %v2118_v32 }
 0x15b   :  { %v425_v38 = vpop.xlane.xlu0 %424 }
 0x15c   :  { %v519_v47 = vmul.f32 0.00390625, %v425_v38 }
 0x15e   :  { %v551_v18 = vadd.f32 1e-05, %v519_v47 }
 0x15f   :  { %v428_v43 = vpop.xlane.xlu1 %427  ;;  %v431_v9 = vpop.xlane.xlu0 %430 }
 0x160   :  { %5946 = vrsqrt.f32 %v551_v18  ;;  %v520_v28 = vmul.f32 0.00390625, %v428_v43  ;;  %v521_v60 = vmul.f32 0.00390625, %v431_v9  ;;  %v7225_v43 = vsub.s32 0, %v7222_v63 }
 0x162   :  { %v552_v0 = vadd.f32 1e-05, %v520_v28  ;;  %v553_v26 = vadd.f32 1e-05, %v521_v60  ;;  %9487 = vst [vmem:[#allocation73_spill] sm:$0xff] %v7225_v43  ;;  %v7228_v60 = vsub.s32 1, %v7222_v63 }
 0x163   :  { %v434_v62 = vpop.xlane.xlu1 %433  ;;  %v437_v14 = vpop.xlane.xlu0 %436 }
 0x164   :  { %5948 = vrsqrt.f32 %v552_v0  ;;  %v522_v56 = vmul.f32 0.00390625, %v434_v62  ;;  %v523_v15 = vmul.f32 0.00390625, %v437_v14  ;;  %9488 = vst [vmem:[#allocation74_spill] sm:$0xff] %v7228_v60  ;;  %v679_v62 = vld [vmem:[%s9330_s2] sm:$0x3] }
 0x165   :  { %5950 = vrsqrt.f32 %v553_v26 }
 0x166   :  { %v554_v25 = vadd.f32 1e-05, %v522_v56  ;;  %v555_v32 = vadd.f32 1e-05, %v523_v15  ;;  %v7234_v56 = vrot.slane %v679_v62, %v7225_v43  ;;  %v7237_v15 = vrot.slane %v679_v62, %v7228_v60 }
 0x167   :  { %v440_v38 = vpop.xlane.xlu1 %439  ;;  %v443_v47 = vpop.xlane.xlu0 %442 }
 0x168   :  { %5952 = vrsqrt.f32 %v554_v25  ;;  %v524_v8 = vmul.f32 0.00390625, %v440_v38  ;;  %v525_v18 = vmul.f32 0.00390625, %v443_v47 }
 0x169   :  { %5954 = vrsqrt.f32 %v555_v32 }
 0x16a   :  { %v556_v28 = vadd.f32 1e-05, %v524_v8  ;;  %v557_v14 = vadd.f32 1e-05, %v525_v18  ;;  %v755_v8 = vld [vmem:[%s9330_s2 + $0x2] sm:$0x3] }
 0x16b   :  { %v446_v26 = vpop.xlane.xlu1 %445  ;;  %v449_v13 = vpop.xlane.xlu0 %448  ;;  %v7245_v63 = vrot.slane %v755_v8, %v7225_v43  ;;  %v7249_v45 = vrot.slane %v755_v8, %v7228_v60 }
 0x16c   :  { %5956 = vrsqrt.f32 %v556_v28  ;;  %v526_v9 = vmul.f32 0.00390625, %v446_v26  ;;  %v527_v18 = vmul.f32 0.00390625, %v449_v13 }
 0x16d   :  { %v5947_v0 = vpop.eup %5946  ;;  %5958 = vrsqrt.f32 %v557_v14 }
 0x16e   :  { %v558_v25 = vadd.f32 1e-05, %v526_v9  ;;  %v616_v32 = vmul.f32 %v5947_v0, %v6692_v53  ;;  %v615_v38 = vmul.f32 %v5947_v0, %v6689_v52  ;;  %v559_v43 = vadd.f32 1e-05, %v527_v18 }
 0x16f   :  { %v452_v47 = vpop.xlane.xlu1 %451  ;;  %v455_v28 = vpop.xlane.xlu0 %454 }
 0x170   :  { %v528_v26 = vmul.f32 0.00390625, %v452_v47  ;;  %5960 = vrsqrt.f32 %v558_v25  ;;  %v692_v62 = vmul.f32 %v7237_v15, %v616_v32  ;;  %v691_v9 = vmul.f32 %v7234_v56, %v615_v38 }
 0x171   :  { %v5949_v49 = vpop.eup %5948 }
 0x172   :  { %v5951_v53 = vpop.eup %5950  ;;  %v618_v52 = vmul.f32 %v5949_v49, %v6712_v7  ;;  %v560_v0 = vadd.f32 1e-05, %v528_v26  ;;  %v617_v13 = vmul.f32 %v5949_v49, %v6709_v3  ;;  %v768_v32 = vadd.f32 %v7249_v45, %v692_v62 }
 0x173   :  { %v458_v27 = vpop.xlane.xlu1 %457  ;;  %v461_v14 = vpop.xlane.xlu0 %460  ;;  %v620_v47 = vmul.f32 %v5951_v53, %v6698_v55  ;;  %v767_v38 = vadd.f32 %v7245_v63, %v691_v9  ;;  %v619_v5 = vmul.f32 %v5951_v53, %v6695_v54  ;;  %v529_v9 = vmul.f32 0.00390625, %v455_v28 }
 0x174   :  { %v694_v25 = vmul.f32 %v7237_v15, %v618_v52  ;;  %v693_v8 = vmul.f32 %v7234_v56, %v617_v13  ;;  %v530_v60 = vmul.f32 0.00390625, %v458_v27  ;;  %5962 = vrsqrt.f32 %v560_v0 }
 0x175   :  { %v5953_v59 = vpop.eup %5952  ;;  %v696_v62 = vmul.f32 %v7237_v15, %v620_v47  ;;  %5964 = vrsqrt.f32 %v559_v43  ;;  %v695_v28 = vmul.f32 %v7234_v56, %v619_v5  ;;  %v561_v47 = vadd.f32 1e-05, %v529_v9 }
 0x176   :  { %v770_v7 = vadd.f32 %v7249_v45, %v694_v25  ;;  %v622_v26 = vmul.f32 %v5953_v59, %v6718_v16  ;;  %v5955_v3 = vpop.eup %5954  ;;  %v769_v18 = vadd.f32 %v7245_v63, %v693_v8  ;;  %v621_v52 = vmul.f32 %v5953_v59, %v6715_v11 }
 0x177   :  { %v464_v55 = vpop.xlane.xlu1 %463  ;;  %v7262_v49 = vpop.xlane.xlu0 %466  ;;  %v562_v53 = vadd.f32 1e-05, %v530_v60  ;;  %v624_v0 = vmul.f32 %v5955_v3, %v6732_v37  ;;  %v772_v59 = vadd.f32 %v7249_v45, %v696_v62  ;;  %v771_v5 = vadd.f32 %v7245_v63, %v695_v28 }
 0x178   :  { %v832_v27 = vpack.c.bf16 %v770_v7, %v768_v32  ;;  %v831_v25 = vpack.c.bf16 %v769_v18, %v767_v38  ;;  %v698_v16 = vmul.f32 %v7237_v15, %v622_v26  ;;  %v697_v54 = vmul.f32 %v7234_v56, %v621_v52 }
 0x179   :  { %v5957_v13 = vpop.eup %5956  ;;  %v700_v32 = vmul.f32 %v7237_v15, %v624_v0  ;;  %5966 = vrsqrt.f32 %v562_v53  ;;  %v532_v26 = vmul.f32 0.00390625, %v464_v55  ;;  %v531_v52 = vmul.f32 0.00390625, %v461_v14 }
 0x17a   :  { %1301 = vmatprep.mubr.bf16.mxu0 %v832_v27  ;;  %1494 = vmatprep.mubr.bf16.mxu1 %v832_v27  ;;  %v626_v8 = vmul.f32 %v5957_v13, %v6738_v41  ;;  %v774_v43 = vadd.f32 %v7249_v45, %v698_v16  ;;  %v5959_v60 = vpop.eup %5958  ;;  %v773_v7 = vadd.f32 %v7245_v63, %v697_v54  ;;  %5968 = vrsqrt.f32 %v561_v47 }
 0x17b   :  { %v470_v20 = vpop.xlane.xlu1 %469  ;;  %1302 = vmatmul.mubr.bf16.vlgmr.msra.gmra.mxu0 %v831_v25  ;;  %1495 = vmatmul.mubr.bf16.vlgmr.msra.gmra.mxu1 %v831_v25  ;;  %v473_v11 = vpop.xlane.xlu0 %472  ;;  %v625_v18 = vmul.f32 %v5957_v13, %v6735_v40  ;;  %v623_v25 = vmul.f32 %v5955_v3, %v6729_v36  ;;  %v776_v16 = vadd.f32 %v7249_v45, %v700_v32  ;;  %v564_v13 = vadd.f32 1e-05, %v532_v26 }
 0x17c   :  { %v834_v38 = vpack.c.bf16 %v774_v43, %v772_v59  ;;  %v702_v37 = vmul.f32 %v7237_v15, %v626_v8  ;;  %v628_v54 = vmul.f32 %v5959_v60, %v6752_v51  ;;  %v833_v55 = vpack.c.bf16 %v773_v7, %v771_v5 }
 0x17d   :  { %v5961_v41 = vpop.eup %5960  ;;  %v701_v40 = vmul.f32 %v7234_v56, %v625_v18  ;;  %v563_v0 = vadd.f32 1e-05, %v531_v52  ;;  %v699_v36 = vmul.f32 %v7234_v56, %v623_v25  ;;  %5970 = vrsqrt.f32 %v564_v13 }
 0x17e   :  { %1311 = vmatprep.mubr.bf16.mxu0 %v834_v38  ;;  %1504 = vmatprep.mubr.bf16.mxu1 %v834_v38  ;;  %v778_v9 = vadd.f32 %v7249_v45, %v702_v37  ;;  %v630_v14 = vmul.f32 %v5961_v41, %v6758_v58  ;;  %v704_v51 = vmul.f32 %v7237_v15, %v628_v54  ;;  %v534_v58 = vmul.f32 0.00390625, %v470_v20 }
 0x17f   :  { %v476_v62 = vpop.xlane.xlu1 %475  ;;  %v7278_v27 = vpop.xlane.xlu0 %478  ;;  %v777_v47 = vadd.f32 %v7245_v63, %v701_v40  ;;  %v629_v32 = vmul.f32 %v5961_v41, %v6755_v57  ;;  %v533_v38 = vmul.f32 0.00390625, %v7262_v49  ;;  %5972 = vrsqrt.f32 %v563_v0 }
 0x180   :  { %v836_v53 = vpack.c.bf16 %v778_v9, %v776_v16  ;;  %v706_v3 = vmul.f32 %v7237_v15, %v630_v14  ;;  %v775_v18 = vadd.f32 %v7245_v63, %v699_v36  ;;  %v627_v52 = vmul.f32 %v5959_v60, %v6749_v50 }
 0x181   :  { %v5963_v43 = vpop.eup %5962  ;;  %v780_v5 = vadd.f32 %v7249_v45, %v704_v51  ;;  %v566_v41 = vadd.f32 1e-05, %v534_v58  ;;  %v705_v49 = vmul.f32 %v7234_v56, %v629_v32  ;;  %v565_v25 = vadd.f32 1e-05, %v533_v38 }
 0x182   :  { %v5965_v28 = vpop.eup %5964  ;;  %v782_v7 = vadd.f32 %v7249_v45, %v706_v3  ;;  %v634_v20 = vmul.f32 %v5963_v43, %v6778_v22  ;;  %v835_v9 = vpack.c.bf16 %v777_v47, %v775_v18  ;;  %v535_v16 = vmul.f32 0.00390625, %v473_v11 }
 0x183   :  { %v7287_v8 = vpop.xlane.xlu1 %481  ;;  %1312 = vmatmul.mubr.bf16.gmra.mxu0 %v833_v55  ;;  %1505 = vmatmul.mubr.bf16.gmra.mxu1 %v833_v55  ;;  %v7289_v59 = vpop.xlane.xlu0 %484  ;;  %v632_v57 = vmul.f32 %v5965_v28, %v6772_v4  ;;  %v536_v14 = vmul.f32 0.00390625, %v476_v62  ;;  %v703_v22 = vmul.f32 %v7234_v56, %v627_v52  ;;  %5974 = vrsqrt.f32 %v566_v41 }
 0x184   :  { %1321 = vmatprep.mubr.bf16.mxu0 %v836_v53  ;;  %1514 = vmatprep.mubr.bf16.mxu1 %v836_v53  ;;  %v838_v54 = vpack.c.bf16 %v782_v7, %v780_v5  ;;  %v710_v55 = vmul.f32 %v7237_v15, %v634_v20  ;;  %v781_v11 = vadd.f32 %v7245_v63, %v705_v49  ;;  %5976 = vrsqrt.f32 %v565_v25 }
 0x185   :  { %v708_v4 = vmul.f32 %v7237_v15, %v632_v57  ;;  %v633_v53 = vmul.f32 %v5963_v43, %v6775_v17  ;;  %v567_v62 = vadd.f32 1e-05, %v535_v16  ;;  %v568_v3 = vadd.f32 1e-05, %v536_v14 }
 0x186   :  { %v5967_v40 = vpop.eup %5966  ;;  %v786_v0 = vadd.f32 %v7249_v45, %v710_v55  ;;  %v537_v51 = vmul.f32 0.00390625, %v7278_v27  ;;  %v779_v32 = vadd.f32 %v7245_v63, %v703_v22  ;;  %v631_v38 = vmul.f32 %v5965_v28, %v6769_v2 }
 0x187   :  { %v7298_v37 = vpop.xlane.xlu1 %487  ;;  %v7300_v26 = vpop.xlane.xlu0 %490  ;;  %v638_v36 = vmul.f32 %v5967_v40, %v6794_v44  ;;  %v784_v18 = vadd.f32 %v7249_v45, %v708_v4  ;;  %v709_v52 = vmul.f32 %v7234_v56, %v633_v53  ;;  %5978 = vrsqrt.f32 %v567_v62 }
 0x188   :  { %v5969_v60 = vpop.eup %5968  ;;  %v837_v43 = vpack.c.bf16 %v781_v11, %v779_v32  ;;  %5980 = vrsqrt.f32 %v568_v3  ;;  %v569_v57 = vadd.f32 1e-05, %v537_v51  ;;  %v538_v41 = vmul.f32 0.00390625, %v7287_v8 }
 0x189   :  { %v636_v17 = vmul.f32 %v5969_v60, %v6790_v35  ;;  %v840_v20 = vpack.c.bf16 %v786_v0, %v784_v18  ;;  %v714_v27 = vmul.f32 %v7237_v15, %v638_v36  ;;  %v707_v28 = vmul.f32 %v7234_v56, %v631_v38 }
 0x18a   :  { %v5971_v5 = vpop.eup %5970  ;;  %v539_v49 = vmul.f32 0.00390625, %v7289_v59  ;;  %v785_v55 = vadd.f32 %v7245_v63, %v709_v52  ;;  %v635_v8 = vmul.f32 %v5969_v60, %v6788_v33  ;;  %v637_v14 = vmul.f32 %v5967_v40, %v6792_v42 }
 0x18b   :  { %v7309_v13 = vpop.xlane.xlu1 %493  ;;  %1322 = vmatmul.mubr.bf16.gmra.mxu0 %v835_v9  ;;  %1515 = vmatmul.mubr.bf16.gmra.mxu1 %v835_v9  ;;  %v7311_v50 = vpop.xlane.xlu0 %496  ;;  %v790_v11 = vadd.f32 %v7249_v45, %v714_v27  ;;  %v642_v53 = vmul.f32 %v5971_v5, %v6810_v10  ;;  %v570_v59 = vadd.f32 1e-05, %v538_v41  ;;  %v540_v62 = vmul.f32 0.00390625, %v7298_v37 }
 0x18c   :  { %1331 = vmatprep.mubr.bf16.mxu0 %v838_v54  ;;  %1524 = vmatprep.mubr.bf16.mxu1 %v838_v54  ;;  %v5973_v35 = vpop.eup %5972  ;;  %v712_v54 = vmul.f32 %v7237_v15, %v636_v17  ;;  %v783_v3 = vadd.f32 %v7245_v63, %v707_v28  ;;  %v541_v40 = vmul.f32 0.00390625, %v7300_v26  ;;  %v713_v10 = vmul.f32 %v7234_v56, %v637_v14 }
 0x18d   :  { %v640_v51 = vmul.f32 %v5973_v35, %v6806_v61  ;;  %v718_v18 = vmul.f32 %v7237_v15, %v642_v53  ;;  %v571_v52 = vadd.f32 1e-05, %v539_v49  ;;  %v572_v27 = vadd.f32 1e-05, %v540_v62  ;;  %v7375_v62 = vld [vmem:[%s9330_s2 + $0x4] ss:$0 sm:$0xff] }
 0x18e   :  { %v788_v42 = vadd.f32 %v7249_v45, %v712_v54  ;;  %v839_v60 = vpack.c.bf16 %v785_v55, %v783_v3  ;;  %v789_v41 = vadd.f32 %v7245_v63, %v713_v10  ;;  %v7383_v3 = vld [vmem:[%s9330_s2 + $0x5] ss:$0 sm:$0xff] }
 0x18f   :  { %v7320_v58 = vpop.xlane.xlu1 %499  ;;  %v2123_v47 = vpop.xlane.xlu0 %2122  ;;  %v794_v49 = vadd.f32 %v7249_v45, %v718_v18 }
 0x190   :  { %v2185_v7 = vmul.f32 0.2, %v2123_v47  ;;  %v7343_v32 = vpop.eup %5974  ;;  %v842_v38 = vpack.c.bf16 %v790_v11, %v788_v42 }
 0x191   :  { %v7347_v61 = vpop.eup %5976 }
 0x192   :  { %v2217_v44 = vadd.f32 1e-05, %v2185_v7  ;;  %v711_v7 = vmul.f32 %v7234_v56, %v635_v8  ;;  %v639_v8 = vmul.f32 %v5973_v35, %v6804_v19  ;;  %v543_v19 = vmul.f32 0.00390625, %v7311_v50 }
 0x193   :  { %v2126_v9 = vpop.xlane.xlu1 %2125  ;;  %1332 = vmatmul.mubr.bf16.gmra.mxu0 %v837_v43  ;;  %1525 = vmatmul.mubr.bf16.gmra.mxu1 %v837_v43  ;;  %v2129_v2 = vpop.xlane.xlu0 %2128 }
 0x194   :  { %v2186_v25 = vmul.f32 0.2, %v2126_v9  ;;  %v2187_v16 = vmul.f32 0.2, %v2129_v2  ;;  %1341 = vmatprep.mubr.bf16.mxu0 %v840_v20  ;;  %1534 = vmatprep.mubr.bf16.mxu1 %v840_v20  ;;  %5982 = vrsqrt.f32 %v2217_v44  ;;  %v716_v20 = vmul.f32 %v7237_v15, %v640_v51 }
 0x195   :  { %v641_v9 = vmul.f32 %v5971_v5, %v6808_v21  ;;  %v573_v2 = vadd.f32 1e-05, %v541_v40  ;;  %v787_v28 = vadd.f32 %v7245_v63, %v711_v7  ;;  %v644_v21 = vmul.f32 %v7347_v61, %v6822_v39 }
 0x196   :  { %v2218_v22 = vadd.f32 1e-05, %v2186_v25  ;;  %v2219_v4 = vadd.f32 1e-05, %v2187_v16  ;;  %v7358_v25 = vpop.eup %5978  ;;  %v715_v50 = vmul.f32 %v7234_v56, %v639_v8 }
 0x197   :  { %v2132_v0 = vpop.xlane.xlu1 %2131  ;;  %v2075_v36 = vpop.xlane.xlu0 %2074  ;;  %v717_v11 = vmul.f32 %v7234_v56, %v641_v9  ;;  %v720_v51 = vmul.f32 %v7237_v15, %v644_v21 }
 0x198   :  { %5984 = vrsqrt.f32 %v2218_v22  ;;  %v2188_v47 = vmul.f32 0.2, %v2132_v0  ;;  %v2169_v33 = vmul.f32 0.2, %v2075_v36  ;;  %v7365_v5 = vpop.eup %5980  ;;  %v792_v22 = vadd.f32 %v7249_v45, %v716_v20 }
 0x199   :  { %5986 = vrsqrt.f32 %v2219_v4  ;;  %v841_v4 = vpack.c.bf16 %v789_v41, %v787_v28  ;;  %v791_v20 = vadd.f32 %v7245_v63, %v715_v50 }
 0x19a   :  { %v2220_v37 = vadd.f32 1e-05, %v2188_v47  ;;  %5988 = vrsqrt.f32 %v569_v57  ;;  %v2201_v17 = vadd.f32 1e-05, %v2169_v33  ;;  %v646_v57 = vmul.f32 %v7343_v32, %v6826_v46 }
 0x19b   :  { %v2078_v43 = vpop.xlane.xlu1 %2077  ;;  %1342 = vmatmul.mubr.bf16.gmra.mxu0 %v839_v60  ;;  %1535 = vmatmul.mubr.bf16.gmra.mxu1 %v839_v60  ;;  %v7349_v26 = vpop.xlane.xlu0 %2080  ;;  %v542_v46 = vmul.f32 0.00390625, %v7309_v13  ;;  %v844_v39 = vpack.c.bf16 %v794_v49, %v792_v22  ;;  %v544_v33 = vmul.f32 0.00390625, %v7320_v58  ;;  %v643_v58 = vmul.f32 %v7347_v61, %v6820_v34 }
 0x19c   :  { %5990 = vrsqrt.f32 %v2220_v37  ;;  %v2170_v44 = vmul.f32 0.2, %v2078_v43  ;;  %1351 = vmatprep.mubr.bf16.mxu0 %v842_v38  ;;  %1544 = vmatprep.mubr.bf16.mxu1 %v842_v38  ;;  %v722_v53 = vmul.f32 %v7237_v15, %v646_v57  ;;  %v645_v37 = vmul.f32 %v7343_v32, %v6824_v12 }
 0x19d   :  { %5992 = vrsqrt.f32 %v570_v59  ;;  %v574_v47 = vadd.f32 1e-05, %v542_v46  ;;  %v796_v12 = vadd.f32 %v7249_v45, %v720_v51  ;;  %v719_v21 = vmul.f32 %v7234_v56, %v643_v58  ;;  %v9489_v51 = vld [vmem:[#allocation19_spill] sm:$0xff] }
 0x19e   :  { %5994 = vrsqrt.f32 %v2201_v17  ;;  %v2202_v16 = vadd.f32 1e-05, %v2170_v44  ;;  %v798_v10 = vadd.f32 %v7249_v45, %v722_v53  ;;  %v650_v17 = vmul.f32 %v7365_v5, %v6842_v30 }
 0x19f   :  { %v2084_v54 = vpop.xlane.xlu1 %2083  ;;  %v7360_v55 = vpop.xlane.xlu0 %502  ;;  %5996 = vrsqrt.f32 %v571_v52  ;;  %v648_v30 = vmul.f32 %v7358_v25, %v6838_v29  ;;  %v7421_v29 = vadd.f32 1e-05, %v543_v19  ;;  %v576_v22 = vadd.f32 1e-05, %v544_v33 }
 0x1a0   :  { %v2172_v14 = vmul.f32 0.2, %v2084_v54  ;;  %5998 = vrsqrt.f32 %v572_v27  ;;  %v846_v57 = vpack.c.bf16 %v798_v10, %v796_v12  ;;  %v726_v49 = vmul.f32 %v7237_v15, %v650_v17  ;;  %v9492_v12 = vld [vmem:[#allocation35_spill] sm:$0xff] }
 0x1a1   :  { %v5983_v59 = vpop.eup %5982  ;;  %6000 = vrsqrt.f32 %v573_v2  ;;  %v721_v2 = vmul.f32 %v7234_v56, %v645_v37  ;;  %v724_v53 = vmul.f32 %v7237_v15, %v648_v30 }
 0x1a2   :  { %v2204_v35 = vadd.f32 1e-05, %v2172_v14  ;;  %6002 = vrsqrt.f32 %v2202_v16  ;;  %v2281_v36 = vmul.f32 %v5983_v59, %v6919_v24  ;;  %v793_v24 = vadd.f32 %v7245_v63, %v717_v11 }
 0x1a3   :  { %v7377_v13 = vpop.xlane.xlu1 %505  ;;  %1352 = vmatmul.mubr.bf16.gmra.mxu0 %v841_v4  ;;  %1545 = vmatmul.mubr.bf16.gmra.mxu1 %v841_v4  ;;  %v2135_v0 = vpop.xlane.xlu0 %2134  ;;  %v797_v19 = vadd.f32 %v7245_v63, %v721_v2  ;;  %v802_v50 = vadd.f32 %v7249_v45, %v726_v49  ;;  %v800_v37 = vadd.f32 %v7249_v45, %v724_v53 }
 0x1a4   :  { %6004 = vrsqrt.f32 %v2204_v35  ;;  %v2189_v42 = vmul.f32 0.2, %v2135_v0  ;;  %1361 = vmatprep.mubr.bf16.mxu0 %v844_v39  ;;  %1554 = vmatprep.mubr.bf16.mxu1 %v844_v39  ;;  %v2320_v60 = vmul.f32 %v7375_v62, %v2281_v36  ;;  %v843_v9 = vpack.c.bf16 %v793_v24, %v791_v20 }
 0x1a5   :  { %v5985_v40 = vpop.eup %5984  ;;  %v647_v35 = vmul.f32 %v7358_v25, %v6836_v23  ;;  %v848_v20 = vpack.c.bf16 %v802_v50, %v800_v37 }
 0x1a6   :  { %v5987_v38 = vpop.eup %5986  ;;  %v2221_v7 = vadd.f32 1e-05, %v2189_v42  ;;  %v2282_v18 = vmul.f32 %v5985_v40, %v6924_v31  ;;  %v7401_v44 = vadd.f32 %v7383_v3, %v2320_v60  ;;  %v2171_v31 = vmul.f32 0.2, %v7349_v26 }
 0x1a7   :  { %v7398_v43 = vpop.xlane.xlu1 %2137  ;;  %v2141_v52 = vpop.xlane.xlu0 %2140  ;;  %v2283_v32 = vmul.f32 %v5987_v38, %v6933_v48  ;;  %v545_v42 = vmul.f32 0.00390625, %v7360_v55  ;;  %v9491_v38 = vld [vmem:[#allocation17_spill] sm:$0xff]  ;;  %v723_v58 = vmul.f32 %v7234_v56, %v647_v35 }
 0x1a8   :  { %v7406_v27 = vpop.eup %5988  ;;  %v2191_v34 = vmul.f32 0.2, %v2141_v52  ;;  %v2321_v61 = vmul.f32 %v7375_v62, %v2282_v18  ;;  %6006 = vrsqrt.f32 %v2221_v7  ;;  %2459 = vperm.xlu0 %5719, %v7401_v44   ;;  %v2203_v4 = vadd.f32 1e-05, %v2171_v31 }
 0x1a9   :  { %v5991_v41 = vpop.eup %5990  ;;  %v2322_v26 = vmul.f32 %v7375_v62, %v2283_v32  ;;  %6008 = vrsqrt.f32 %v574_v47  ;;  %v652_v7 = vmul.f32 %v7406_v27, %v9491_v38 }
 0x1aa   :  { %v2223_v28 = vadd.f32 1e-05, %v2191_v34  ;;  %v7415_v48 = vadd.f32 %v7383_v3, %v2321_v61  ;;  %v7419_v16 = vpop.eup %5992  ;;  %v2284_v46 = vmul.f32 %v5991_v41, %v6939_v1  ;;  %v649_v1 = vmul.f32 %v7365_v5, %v6840_v6  ;;  %v9490_v5 = vld [vmem:[#allocation32_spill] sm:$0xff] }
 0x1ab   :  { %v7423_v54 = vpop.xlane.xlu1 %2143  ;;  %1362 = vmatmul.mubr.bf16.gmra.mxu0 %v843_v9  ;;  %1555 = vmatmul.mubr.bf16.gmra.mxu1 %v843_v9  ;;  %v2087_v8 = vpop.xlane.xlu0 %2086  ;;  %v7439_v36 = vadd.f32 %v7383_v3, %v2322_v26  ;;  %v654_v47 = vmul.f32 %v7419_v16, %v9489_v51  ;;  %v795_v6 = vadd.f32 %v7245_v63, %v719_v21  ;;  %v546_v34 = vmul.f32 0.00390625, %v7377_v13  ;;  %v9494_v26 = vld [vmem:[#allocation16_spill] sm:$0xff] }
 0x1ac   :  { %v5995_v14 = vpop.eup %5994  ;;  %v2173_v11 = vmul.f32 0.2, %v2087_v8  ;;  %2464 = vperm.xlu1 %5720, %v7415_v48   ;;  %1371 = vmatprep.mubr.bf16.mxu0 %v846_v57  ;;  %6010 = vrsqrt.f32 %v2223_v28  ;;  %v2323_v25 = vmul.f32 %v7375_v62, %v2284_v46  ;;  %v725_v17 = vmul.f32 %v7234_v56, %v649_v1  ;;  %v9495_v46 = vld [vmem:[#allocation18_spill] sm:$0xff] }
 0x1ad   :  { %v7429_v59 = vpop.eup %5996  ;;  %1564 = vmatprep.mubr.bf16.mxu1 %v846_v57  ;;  %v2265_v60 = vmul.f32 %v5995_v14, %v9490_v5  ;;  %6012 = vrsqrt.f32 %v2203_v4  ;;  %v845_v18 = vpack.c.bf16 %v797_v19, %v795_v6  ;;  %v730_v31 = vmul.f32 %v7237_v15, %v654_v47  ;;  %v9493_v57 = vld [vmem:[#allocation33_spill] sm:$0xff]  ;;  %v9496_v19 = vld [vmem:[#allocation23_spill] sm:$0xff] }
 0x1ae   :  { %v7436_v39 = vpop.eup %5998  ;;  %v2205_v0 = vadd.f32 1e-05, %v2173_v11  ;;  %v7466_v41 = vadd.f32 %v7383_v3, %v2323_v25  ;;  %v728_v13 = vmul.f32 %v7237_v15, %v652_v7  ;;  %v651_v49 = vmul.f32 %v7406_v27, %v9494_v26  ;;  %v9498_v5 = vld [vmem:[#allocation21_spill] sm:$0xff] }
 0x1af   :  { %v7444_v33 = vpop.eup %6000  ;;  %v7447_v40 = vpop.xlane.xlu1 %2089  ;;  %v2304_v9 = vmul.f32 %v7375_v62, %v2265_v60  ;;  %v577_v8 = vadd.f32 1e-05, %v545_v42  ;;  %v801_v21 = vadd.f32 %v7245_v63, %v725_v17  ;;  %v653_v14 = vmul.f32 %v7419_v16, %v9495_v46  ;;  %v9497_v16 = vld [vmem:[#allocation40_spill] sm:$0xff]  ;;  %v9501_v46 = vld [vmem:[#allocation27_spill] sm:$0xff] }
 0x1b0   :  { %v2093_v23 = vpop.xlane.xlu0 %2092  ;;  %v6003_v24 = vpop.eup %6002  ;;  %2469 = vperm.xlu1 %5720, %v7439_v36   ;;  %6014 = vrsqrt.f32 %v2205_v0  ;;  %v799_v11 = vadd.f32 %v7245_v63, %v723_v58  ;;  %v806_v53 = vadd.f32 %v7249_v45, %v730_v31  ;;  %v658_v27 = vmul.f32 %v7436_v39, %v9496_v19 }
 0x1b1   :  { %v2175_v10 = vmul.f32 0.2, %v2093_v23  ;;  %v6005_v55 = vpop.eup %6004  ;;  %v2266_v2 = vmul.f32 %v6003_v24, %v9493_v57  ;;  %6016 = vrsqrt.f32 %v576_v22  ;;  %v578_v35 = vadd.f32 1e-05, %v546_v34 }
 0x1b2   :  { %v2268_v32 = vmul.f32 %v6005_v55, %v9492_v12  ;;  %v7486_v50 = vadd.f32 %v7383_v3, %v2304_v9  ;;  %v804_v6 = vadd.f32 %v7249_v45, %v728_v13  ;;  %v727_v25 = vmul.f32 %v7234_v56, %v651_v49 }
 0x1b3   :  { %v2207_v52 = vadd.f32 1e-05, %v2175_v10  ;;  %v7461_v61 = vpop.xlane.xlu1 %2095  ;;  %1372 = vmatmul.mubr.bf16.gmra.mxu0 %v845_v18  ;;  %1565 = vmatmul.mubr.bf16.gmra.mxu1 %v845_v18  ;;  %v2305_v51 = vmul.f32 %v7375_v62, %v2266_v2  ;;  %v656_v60 = vmul.f32 %v7429_v59, %v9498_v5  ;;  %v847_v24 = vpack.c.bf16 %v801_v21, %v799_v11 }
 0x1b4   :  { %v7463_v30 = vpop.xlane.xlu0 %508  ;;  %1381 = vmatprep.mubr.bf16.mxu0 %v848_v20  ;;  %1574 = vmatprep.mubr.bf16.mxu1 %v848_v20  ;;  %v2307_v28 = vmul.f32 %v7375_v62, %v2268_v32  ;;  %v729_v37 = vmul.f32 %v7234_v56, %v653_v14  ;;  %v850_v55 = vpack.c.bf16 %v806_v53, %v804_v6  ;;  %v9499_v20 = vld [vmem:[#allocation42_spill] sm:$0xff] }
 0x1b5   :  { %6018 = vrsqrt.f32 %v2207_v52  ;;  %2474 = vperm.xlu1 %5720, %v7466_v41   ;;  %v6007_v4 = vpop.eup %6006  ;;  %v734_v18 = vmul.f32 %v7237_v15, %v658_v27  ;;  %v803_v31 = vadd.f32 %v7245_v63, %v727_v25  ;;  %v732_v34 = vmul.f32 %v7237_v15, %v656_v60  ;;  %v9502_v27 = vld [vmem:[#allocation44_spill] sm:$0xff] }
 0x1b6   :  { %v7479_v22 = vadd.f32 %v7383_v3, %v2307_v28  ;;  %v2285_v47 = vmul.f32 %v6007_v4, %v9497_v16  ;;  %v7490_v42 = vpop.eup %6008  ;;  %6020 = vrsqrt.f32 %v7421_v29  ;;  %v7505_v29 = vadd.f32 %v7383_v3, %v2305_v51  ;;  %v9500_v28 = vld [vmem:[#allocation22_spill] sm:$0xff] }
 0x1b7   :  { %v512_v1 = vpop.xlane.xlu1 %511  ;;  %6022 = vrsqrt.f32 %v577_v8  ;;  %v805_v2 = vadd.f32 %v7245_v63, %v729_v37  ;;  %v657_v13 = vmul.f32 %v7436_v39, %v9500_v28  ;;  %v810_v21 = vadd.f32 %v7249_v45, %v734_v18  ;;  %v9504_v16 = vld [vmem:[#allocation34_spill] sm:$0xff] }
 0x1b8   :  { %v2147_v0 = vpop.xlane.xlu0 %2146  ;;  %2394 = vperm.xlu0 %5719, %v7479_v22   ;;  %v2324_v10 = vmul.f32 %v7375_v62, %v2285_v47  ;;  %6024 = vrsqrt.f32 %v578_v35  ;;  %v548_v49 = vmul.f32 0.00390625, %v512_v1  ;;  %v662_v14 = vmul.f32 %v7490_v42, %v9501_v46 }
 0x1b9   :  { %v2193_v23 = vmul.f32 0.2, %v2147_v0  ;;  %2379 = vperm.xlu1 %5720, %v7486_v50   ;;  %v6011_v38 = vpop.eup %6010  ;;  %v547_v4 = vmul.f32 0.00390625, %v7463_v30  ;;  %v9503_v0 = vld [vmem:[#allocation20_spill] sm:$0xff]  ;;  %v808_v51 = vadd.f32 %v7249_v45, %v732_v34  ;;  %v9402_v25 = vmov 1  }
 0x1ba   :  { %v7508_v52 = vadd.f32 %v7383_v3, %v2324_v10  ;;  %v2287_v12 = vmul.f32 %v6011_v38, %v9499_v20  ;;  %v6013_v9 = vpop.eup %6012  ;;  %v655_v39 = vmul.f32 %v7429_v59, %v9503_v0  ;;  %v849_v5 = vpack.c.bf16 %v805_v2, %v803_v31  ;;  %v9507_v2 = vld [vmem:[#allocation26_spill] sm:$0xff] }
 0x1bb   :  { %v2225_v7 = vadd.f32 1e-05, %v2193_v23  ;;  %v7502_v58 = vpop.xlane.xlu1 %2149  ;;  %1382 = vmatmul.mubr.bf16.gmra.mxu0 %v847_v24  ;;  %1575 = vmatmul.mubr.bf16.gmra.mxu1 %v847_v24  ;;  %v2267_v47 = vmul.f32 %v6013_v9, %v9504_v16  ;;  %v9505_v23 = vld [vmem:[#allocation25_spill] sm:$0xff]  ;;  %v733_v59 = vmul.f32 %v7234_v56, %v657_v13  ;;  %v580_v10 = vadd.f32 1e-05, %v548_v49  ;;  %v9508_v49 = vld [vmem:[#allocation24_spill] sm:$0xff] }
 0x1bc   :  { %v2153_v17 = vpop.xlane.xlu0 %2152  ;;  %1391 = vmatprep.mubr.bf16.mxu0 %v850_v55  ;;  %1584 = vmatprep.mubr.bf16.mxu1 %v850_v55  ;;  %v2326_v57 = vmul.f32 %v7375_v62, %v2287_v12  ;;  %v660_v6 = vmul.f32 %v7444_v33, %v9505_v23  ;;  %v852_v38 = vpack.c.bf16 %v810_v21, %v808_v51  ;;  %v579_v55 = vadd.f32 1e-05, %v547_v4  ;;  %v9506_v12 = vld [vmem:[#allocation46_spill] sm:$0xff]  ;;  %v9509_v4 = vld [vmem:[#allocation31_spill] sm:$0xff] }
 0x1bd   :  { %v2195_v32 = vmul.f32 0.2, %v2153_v17  ;;  %6026 = vrsqrt.f32 %v2225_v7  ;;  %2384 = vperm.xlu1 %5720, %v7505_v29   ;;  %2479 = vperm.xlu0 %5719, %v7508_v52   ;;  %v6015_v26 = vpop.eup %6014  ;;  %v738_v7 = vmul.f32 %v7237_v15, %v662_v14  ;;  %v731_v31 = vmul.f32 %v7234_v56, %v655_v39 }
 0x1be   :  { %v7526_v19 = vadd.f32 %v7383_v3, %v2326_v57  ;;  %v2269_v35 = vmul.f32 %v6015_v26, %v9502_v27  ;;  %v7535_v30 = vpop.eup %6016  ;;  %v2306_v9 = vmul.f32 %v7375_v62, %v2267_v47  ;;  %v736_v57 = vmul.f32 %v7237_v15, %v660_v6 }
 0x1bf   :  { %v2227_v8 = vadd.f32 1e-05, %v2195_v32  ;;  %v7523_v11 = vpop.xlane.xlu1 %2155  ;;  %v661_v28 = vmul.f32 %v7490_v42, %v9507_v2  ;;  %v809_v26 = vadd.f32 %v7245_v63, %v733_v59  ;;  %v814_v14 = vadd.f32 %v7249_v45, %v738_v7 }
 0x1c0   :  { %v2099_v53 = vpop.xlane.xlu0 %2098  ;;  %v2308_v60 = vmul.f32 %v7375_v62, %v2269_v35  ;;  %v666_v42 = vmul.f32 %v7535_v30, %v9509_v4  ;;  %v807_v0 = vadd.f32 %v7245_v63, %v731_v31  ;;  %v812_v51 = vadd.f32 %v7249_v45, %v736_v57 }
 0x1c1   :  { %v2177_v1 = vmul.f32 0.2, %v2099_v53  ;;  %6028 = vrsqrt.f32 %v2227_v8  ;;  %5721 = vset.pattern.permute.xlu1 %v9402_v25  ;;  %2489 = vperm.xlu0 %5719, %v7526_v19   ;;  %v659_v8 = vmul.f32 %v7444_v33, %v9508_v49  ;;  %v737_v16 = vmul.f32 %v7234_v56, %v661_v28 }
 0x1c2   :  { %v6019_v24 = vpop.eup %6018  ;;  %2676 = vperm.xlu1 %5721, %v7401_v44   ;;  %v7546_v20 = vadd.f32 %v7383_v3, %v2308_v60  ;;  %v851_v23 = vpack.c.bf16 %v809_v26, %v807_v0 }
 0x1c3   :  { %v2209_v37 = vadd.f32 1e-05, %v2177_v1  ;;  %v7543_v18 = vpop.xlane.xlu1 %2101  ;;  %1392 = vmatmul.mubr.bf16.gmra.mxu0 %v849_v5  ;;  %1585 = vmatmul.mubr.bf16.gmra.mxu1 %v849_v5  ;;  %v2271_v32 = vmul.f32 %v6019_v24, %v9506_v12  ;;  %v6021_v21 = vpop.eup %6020  ;;  %v7572_v1 = vadd.f32 %v7383_v3, %v2306_v9  ;;  %v735_v6 = vmul.f32 %v7234_v56, %v659_v8  ;;  %v9510_v5 = vld [vmem:[#allocation29_spill] sm:$0xff]  ;;  %v9513_v9 = vld [vmem:[#allocation30_spill] sm:$0xff] }
 0x1c4   :  { %v2105_v17 = vpop.xlane.xlu0 %2104  ;;  %1401 = vmatprep.mubr.bf16.mxu0 %v852_v38  ;;  %1594 = vmatprep.mubr.bf16.mxu1 %v852_v38  ;;  %v7569_v33 = vpop.eup %6022  ;;  %v664_v60 = vmul.f32 %v6021_v21, %v9510_v5  ;;  %v9511_v24 = vmov 0   ;;  %v665_v57 = vmul.f32 %v7535_v30, %v9513_v9 }
 0x1c5   :  { %v2179_v34 = vmul.f32 0.2, %v2105_v17  ;;  %6030 = vrsqrt.f32 %v2209_v37  ;;  %2399 = vperm.xlu0 %5719, %v7546_v20   ;;  %v2310_v13 = vmul.f32 %v7375_v62, %v2271_v32  ;;  %v7576_v47 = vpop.eup %6024  ;;  %v742_v37 = vmul.f32 %v7237_v15, %v666_v42  ;;  %v9512_v17 = vld [vmem:[#allocation52_spill] sm:$0xff] }
 0x1c6   :  { %6032 = vrsqrt.f32 %v580_v10  ;;  %2680 = vperm.xlu1 %5721, %v7415_v48   ;;  %v854_v10 = vpack.c.bf16 %v814_v14, %v812_v51  ;;  %v811_v28 = vadd.f32 %v7245_v63, %v735_v6  ;;  %v9514_v14 = vld [vmem:[#allocation28_spill] sm:$0xff]  ;;  %v741_v6 = vmul.f32 %v7234_v56, %v665_v57 }
 0x1c7   :  { %v2211_v46 = vadd.f32 1e-05, %v2179_v34  ;;  %6034 = vrsqrt.f32 %v579_v55  ;;  %v7563_v53 = vpop.xlane.xlu1 %2107  ;;  %v7566_v35 = vadd.f32 %v7383_v3, %v2310_v13  ;;  %v813_v34 = vadd.f32 %v7245_v63, %v737_v16 }
 0x1c8   :  { %v515_v27 = vpop.xlane.xlu0 %514  ;;  %v740_v13 = vmul.f32 %v7237_v15, %v664_v60  ;;  %v663_v4 = vmul.f32 %v6021_v21, %v9514_v14  ;;  %v9518_v60 = vld [vmem:[#allocation37_spill] sm:$0xff] }
 0x1c9   :  { %v549_v39 = vmul.f32 0.00390625, %v515_v27  ;;  %6036 = vrsqrt.f32 %v2211_v46  ;;  %2409 = vperm.xlu0 %5719, %v7566_v35   ;;  %v818_v46 = vadd.f32 %v7249_v45, %v742_v37  ;;  %v9516_v27 = vld [vmem:[#allocation54_spill] sm:$0xff] }
 0x1ca   :  { %v6027_v59 = vpop.eup %6026  ;;  %5722 = vset.pattern.permute.xlu1 %v9511_v24  ;;  %v816_v21 = vadd.f32 %v7249_v45, %v740_v13 }
 0x1cb   :  { %v581_v38 = vadd.f32 1e-05, %v549_v39  ;;  %2389 = vperm.xlu1 %5722, %v7572_v1   ;;  %v518_v7 = vpop.xlane.xlu1 %517  ;;  %1402 = vmatmul.mubr.bf16.gmra.mxu0 %v851_v23  ;;  %v2289_v12 = vmul.f32 %v6027_v59, %v9512_v17  ;;  %v9517_v39 = vld [vmem:[#allocation39_spill] sm:$0xff]  ;;  %v668_v59 = vmul.f32 %v7569_v33, %v9518_v60 }
 0x1cc   :  { %v2159_v55 = vpop.xlane.xlu0 %2158  ;;  %v550_v32 = vmul.f32 0.00390625, %v518_v7  ;;  %1595 = vmatmul.mubr.bf16.gmra.mxu1 %v851_v23  ;;  %1411 = vmatprep.mubr.bf16.mxu0 %v854_v10  ;;  %v670_v51 = vmul.f32 %v7576_v47, %v9517_v39  ;;  %v853_v23 = vpack.c.bf16 %v813_v34, %v811_v28  ;;  %v856_v17 = vpack.c.bf16 %v818_v46, %v816_v21 }
 0x1cd   :  { %v2197_v31 = vmul.f32 0.2, %v2159_v55  ;;  %1604 = vmatprep.mubr.bf16.mxu1 %v854_v10  ;;  %v2328_v2 = vmul.f32 %v7375_v62, %v2289_v12  ;;  %6038 = vrsqrt.f32 %v581_v38  ;;  %v739_v38 = vmul.f32 %v7234_v56, %v663_v4  ;;  %v9521_v4 = vld [vmem:[#allocation51_spill] sm:$0xff] }
 0x1ce   :  { %v6029_v26 = vpop.eup %6028  ;;  %v582_v49 = vadd.f32 1e-05, %v550_v32  ;;  %v9519_v32 = vld [vmem:[#allocation56_spill] sm:$0xff]  ;;  %v746_v34 = vmul.f32 %v7237_v15, %v670_v51  ;;  %v744_v13 = vmul.f32 %v7237_v15, %v668_v59  ;;  %v9523_v51 = vld [vmem:[#allocation58_spill] sm:$0xff] }
 0x1cf   :  { %v2229_v8 = vadd.f32 1e-05, %v2197_v31  ;;  %5723 = vset.pattern.permute.xlu1 %v9402_v25  ;;  %v7595_v30 = vadd.f32 %v7383_v3, %v2328_v2  ;;  %v2291_v0 = vmul.f32 %v6029_v26, %v9516_v27  ;;  %v817_v2 = vadd.f32 %v7245_v63, %v741_v6  ;;  %v9520_v26 = vld [vmem:[#allocation38_spill] sm:$0xff] }
 0x1d0   :  { %v2165_v42 = vpop.xlane.xlu0 %2164  ;;  %6040 = vrsqrt.f32 %v582_v49  ;;  %2684 = vperm.xlu1 %5723, %v7439_v36   ;;  %v669_v49 = vmul.f32 %v7576_v47, %v9520_v26  ;;  %v815_v14 = vadd.f32 %v7245_v63, %v739_v38  ;;  %v822_v39 = vadd.f32 %v7249_v45, %v746_v34  ;;  %v9526_v26 = vld [vmem:[#allocation50_spill] sm:$0xff] }
 0x1d1   :  { %9515 = vst [vmem:[#allocation19_spill] sm:$0xff] %v7595_v30  ;;  %v2199_v16 = vmul.f32 0.2, %v2165_v42  ;;  %6042 = vrsqrt.f32 %v2229_v8  ;;  %2499 = vperm.xlu0 %5719, %v7595_v30   ;;  %v2330_v5 = vmul.f32 %v7375_v62, %v2291_v0  ;;  %v820_v59 = vadd.f32 %v7249_v45, %v744_v13 }
 0x1d2   :  { %v6031_v10 = vpop.eup %6030  ;;  %v855_v21 = vpack.c.bf16 %v817_v2, %v815_v14  ;;  %v2190_v34 = vmul.f32 0.2, %v7398_v43 }
 0x1d3   :  { %v2231_v37 = vadd.f32 1e-05, %v2199_v16  ;;  %v6033_v7 = vpop.eup %6032  ;;  %1412 = vmatmul.mubr.bf16.gmra.mxu0 %v853_v23  ;;  %v7609_v12 = vadd.f32 %v7383_v3, %v2330_v5  ;;  %v2273_v31 = vmul.f32 %v6031_v10, %v9519_v32  ;;  %v9525_v5 = vld [vmem:[#allocation49_spill] sm:$0xff] }
 0x1d4   :  { %v2111_v55 = vpop.xlane.xlu0 %2110  ;;  %v6035_v9 = vpop.eup %6034  ;;  %1605 = vmatmul.mubr.bf16.gmra.mxu1 %v853_v23  ;;  %2612 = vperm.xlu1 %5723, %v7486_v50   ;;  %v674_v42 = vmul.f32 %v6033_v7, %v9521_v4  ;;  %v9524_v23 = vld [vmem:[#allocation36_spill] sm:$0xff] }
 0x1d5   :  { %v2181_v57 = vmul.f32 0.2, %v2111_v55  ;;  %6044 = vrsqrt.f32 %v2231_v37  ;;  %1421 = vmatprep.mubr.bf16.mxu0 %v856_v17  ;;  %1614 = vmatprep.mubr.bf16.mxu1 %v856_v17  ;;  %v2312_v28 = vmul.f32 %v7375_v62, %v2273_v31  ;;  %v667_v6 = vmul.f32 %v7569_v33, %v9524_v23 }
 0x1d6   :  { %v6037_v8 = vpop.eup %6036  ;;  %2509 = vperm.xlu0 %5719, %v7609_v12   ;;  %v672_v60 = vmul.f32 %v6035_v9, %v9525_v5  ;;  %v745_v37 = vmul.f32 %v7234_v56, %v669_v49  ;;  %v750_v55 = vmul.f32 %v7237_v15, %v674_v42  ;;  %v858_v33 = vpack.c.bf16 %v822_v39, %v820_v59  ;;  %v9528_v42 = vld [vmem:[#allocation64_spill] sm:$0xff] }
 0x1d7   :  { %v2213_v46 = vadd.f32 1e-05, %v2181_v57  ;;  %v7623_v0 = vadd.f32 %v7383_v3, %v2312_v28  ;;  %v2275_v16 = vmul.f32 %v6037_v8, %v9523_v51  ;;  %v743_v32 = vmul.f32 %v7234_v56, %v667_v6  ;;  %v9529_v39 = vld [vmem:[#allocation48_spill] sm:$0xff] }
 0x1d8   :  { %v2117_v27 = vpop.xlane.xlu0 %2116  ;;  %2616 = vperm.xlu1 %5723, %v7505_v29   ;;  %v9408_v57 = vmov 2   ;;  %v748_v2 = vmul.f32 %v7237_v15, %v672_v60  ;;  %v821_v13 = vadd.f32 %v7245_v63, %v745_v37  ;;  %v673_v49 = vmul.f32 %v6033_v7, %v9526_v26  ;;  %v9530_v7 = vld [vmem:[#allocation61_spill] sm:$0xff]  ;;  %v9532_v37 = vld [vmem:[#allocation66_spill] sm:$0xff] }
 0x1d9   :  { %9522 = vst [vmem:[#allocation32_spill] sm:$0xff] %v7623_v0  ;;  %v2183_v47 = vmul.f32 0.2, %v2117_v27  ;;  %6046 = vrsqrt.f32 %v2213_v46  ;;  %v2314_v10 = vmul.f32 %v7375_v62, %v2275_v16  ;;  %v826_v43 = vadd.f32 %v7249_v45, %v750_v55  ;;  %v9527_v46 = vld [vmem:[#allocation63_spill] sm:$0xff] }
 0x1da   :  { %2419 = vperm.xlu0 %5719, %v7623_v0   ;;  %v6039_v31 = vpop.eup %6038  ;;  %v819_v4 = vadd.f32 %v7245_v63, %v743_v32  ;;  %v671_v51 = vmul.f32 %v6035_v9, %v9529_v39  ;;  %v2222_v16 = vadd.f32 1e-05, %v2190_v34  ;;  %v2192_v23 = vmul.f32 0.2, %v7423_v54 }
 0x1db   :  { %v2215_v38 = vadd.f32 1e-05, %v2183_v47  ;;  %1422 = vmatmul.mubr.bf16.gmra.mxu0 %v855_v21  ;;  %v7637_v17 = vadd.f32 %v7383_v3, %v2314_v10  ;;  %v824_v6 = vadd.f32 %v7249_v45, %v748_v2  ;;  %v676_v47 = vmul.f32 %v6039_v31, %v9530_v7 }
 0x1dc   :  { %1615 = vmatmul.mubr.bf16.gmra.mxu1 %v855_v21  ;;  %5724 = vset.pattern.permute.xlu1 %v9408_v57  ;;  %v857_v21 = vpack.c.bf16 %v821_v13, %v819_v4  ;;  %v749_v60 = vmul.f32 %v7234_v56, %v673_v49  ;;  %v747_v55 = vmul.f32 %v7234_v56, %v671_v51  ;;  %v9533_v13 = vld [vmem:[#allocation62_spill] sm:$0xff]  ;;  %v9536_v4 = vld [vmem:[#allocation60_spill] sm:$0xff] }
 0x1dd   :  { %v6041_v28 = vpop.eup %6040  ;;  %6048 = vrsqrt.f32 %v2215_v38  ;;  %2876 = vperm.xlu1 %5724, %v7415_v48   ;;  %1431 = vmatprep.mubr.bf16.mxu0 %v858_v33  ;;  %v860_v10 = vpack.c.bf16 %v826_v43, %v824_v6  ;;  %v752_v32 = vmul.f32 %v7237_v15, %v676_v47 }
 0x1de   :  { %v6043_v8 = vpop.eup %6042  ;;  %1624 = vmatprep.mubr.bf16.mxu1 %v858_v33  ;;  %2429 = vperm.xlu0 %5719, %v7637_v17   ;;  %v678_v14 = vmul.f32 %v6041_v28, %v9527_v46  ;;  %6050 = vrsqrt.f32 %v2222_v16  ;;  %v2224_v33 = vadd.f32 1e-05, %v2192_v23  ;;  %v825_v2 = vadd.f32 %v7245_v63, %v749_v60  ;;  %v9535_v46 = vld [vmem:[#allocation68_spill] sm:$0xff] }
 0x1df   :  { %v2293_v27 = vmul.f32 %v6043_v8, %v9528_v42  ;;  %v677_v26 = vmul.f32 %v6041_v28, %v9533_v13  ;;  %v675_v42 = vmul.f32 %v6039_v31, %v9536_v4  ;;  %v828_v28 = vadd.f32 %v7249_v45, %v752_v32  ;;  %v9537_v31 = vld [vmem:[#allocation70_spill] sm:$0xff]  ;;  %v9539_v32 = vld [vmem:[#allocation41_spill] sm:$0xff]  ;;  %v9540_v13 = vld [vmem:[#allocation43_spill] sm:$0xff] }
 0x1e0   :  { %v754_v9 = vmul.f32 %v7237_v15, %v678_v14  ;;  %v823_v15 = vadd.f32 %v7245_v63, %v747_v55  ;;  %6052 = vrsqrt.f32 %v2224_v33  ;;  %v9406_v55 = vmov 3  }
 0x1e1   :  { %5725 = vset.pattern.permute.xlu1 %v9402_v25  ;;  %v2332_v5 = vmul.f32 %v7375_v62, %v2293_v27  ;;  %v2176_v27 = vmul.f32 0.2, %v7461_v61  ;;  %v753_v16 = vmul.f32 %v7234_v56, %v677_v26  ;;  %v751_v61 = vmul.f32 %v7234_v56, %v675_v42 }
 0x1e2   :  { %v6045_v59 = vpop.eup %6044  ;;  %2620 = vperm.xlu1 %5725, %v7572_v1   ;;  %v830_v8 = vadd.f32 %v7249_v45, %v754_v9  ;;  %v859_v39 = vpack.c.bf16 %v825_v2, %v823_v15 }
 0x1e3   :  { %1432 = vmatmul.mubr.bf16.gmra.mxu0 %v857_v21  ;;  %v7661_v54 = vadd.f32 %v7383_v3, %v2332_v5  ;;  %v2295_v38 = vmul.f32 %v6045_v59, %v9532_v37  ;;  %v2208_v45 = vadd.f32 1e-05, %v2176_v27  ;;  %v829_v60 = vadd.f32 %v7245_v63, %v753_v16 }
 0x1e4   :  { %1625 = vmatmul.mubr.bf16.gmra.mxu1 %v857_v21  ;;  %1441 = vmatprep.mubr.bf16.mxu0 %v860_v10  ;;  %v862_v6 = vpack.c.bf16 %v830_v8, %v828_v28  ;;  %v2194_v21 = vmul.f32 0.2, %v7502_v58  ;;  %v2196_v58 = vmul.f32 0.2, %v7523_v11  ;;  %v2180_v11 = vmul.f32 0.2, %v7563_v53 }
 0x1e5   :  { %9531 = vst [vmem:[#allocation17_spill] sm:$0xff] %v7661_v54  ;;  %1634 = vmatprep.mubr.bf16.mxu1 %v860_v10  ;;  %2519 = vperm.xlu0 %5719, %v7661_v54   ;;  %v2334_v34 = vmul.f32 %v7375_v62, %v2295_v38  ;;  %v827_v10 = vadd.f32 %v7245_v63, %v751_v61  ;;  %6054 = vrsqrt.f32 %v2208_v45  ;;  %v2162_v38 = vpop.xlane.xlu1 %2161 }
 0x1e6   :  { %v6047_v49 = vpop.eup %6046  ;;  %5726 = vset.pattern.permute.xlu1 %v9408_v57  ;;  %v2226_v56 = vadd.f32 1e-05, %v2194_v21  ;;  %v2228_v33 = vadd.f32 1e-05, %v2196_v58  ;;  %v2212_v8 = vadd.f32 1e-05, %v2180_v11 }
 0x1e7   :  { %2880 = vperm.xlu1 %5726, %v7439_v36   ;;  %v7674_v43 = vadd.f32 %v7383_v3, %v2334_v34  ;;  %v2277_v14 = vmul.f32 %v6047_v49, %v9535_v46  ;;  %v861_v37 = vpack.c.bf16 %v829_v60, %v827_v10  ;;  %v2198_v15 = vmul.f32 0.2, %v2162_v38  ;;  %v9544_v10 = vld [vmem:[#allocation55_spill] sm:$0xff] }
 0x1e8   :  { %6056 = vrsqrt.f32 %v2226_v56  ;;  %v2174_v58 = vmul.f32 0.2, %v7447_v40 }
 0x1e9   :  { %9534 = vst [vmem:[#allocation35_spill] sm:$0xff] %v7674_v43  ;;  %2529 = vperm.xlu0 %5719, %v7674_v43   ;;  %v2316_v51 = vmul.f32 %v7375_v62, %v2277_v14  ;;  %6058 = vrsqrt.f32 %v2228_v33  ;;  %v2168_v49 = vpop.xlane.xlu1 %2167  ;;  %v2230_v27 = vadd.f32 1e-05, %v2198_v15 }
 0x1ea   :  { %v6049_v23 = vpop.eup %6048  ;;  %v2200_v53 = vmul.f32 0.2, %v2168_v49  ;;  %6060 = vrsqrt.f32 %v2212_v8  ;;  %v9546_v49 = vld [vmem:[#allocation65_spill] sm:$0xff] }
 0x1eb   :  { %2884 = vperm.xlu1 %5726, %v7466_v41   ;;  %1442 = vmatmul.mubr.bf16.gmra.mxu0 %v859_v39  ;;  %v7686_v7 = vadd.f32 %v7383_v3, %v2316_v51  ;;  %v2279_v47 = vmul.f32 %v6049_v23, %v9537_v31  ;;  %v6051_v9 = vpop.eup %6050  ;;  %6062 = vrsqrt.f32 %v2230_v27  ;;  %v9543_v31 = vld [vmem:[#allocation53_spill] sm:$0xff] }
 0x1ec   :  { %1635 = vmatmul.mubr.bf16.gmra.mxu1 %v859_v39  ;;  %1451 = vmatprep.mubr.bf16.mxu0 %v862_v6  ;;  %v2286_v63 = vmul.f32 %v6051_v9, %v9539_v32  ;;  %v9542_v39 = vld [vmem:[#allocation47_spill] sm:$0xff]  ;;  %v2232_v23 = vadd.f32 1e-05, %v2200_v53  ;;  %v2206_v32 = vadd.f32 1e-05, %v2174_v58 }
 0x1ed   :  { %1644 = vmatprep.mubr.bf16.mxu1 %v862_v6  ;;  %2439 = vperm.xlu0 %5719, %v7686_v7   ;;  %v2318_v5 = vmul.f32 %v7375_v62, %v2279_v47  ;;  %v6053_v34 = vpop.eup %6052  ;;  %v7718_v42 = vpop.xlane.xlu1 %2113 }
 0x1ee   :  { %v2325_v2 = vmul.f32 %v7375_v62, %v2286_v63  ;;  %v2288_v26 = vmul.f32 %v6053_v34, %v9540_v13  ;;  %9541 = vst [vmem:[#allocation16_spill] sm:$0xff] %v7718_v42  ;;  %6064 = vrsqrt.f32 %v2232_v23  ;;  %v9404_v63 = vmov 4   ;;  %v9545_v34 = vld [vmem:[#allocation59_spill] sm:$0xff] }
 0x1ef   :  { %2812 = vperm.xlu1 %5726, %v7505_v29   ;;  %v7696_v59 = vadd.f32 %v7383_v3, %v2318_v5 }
 0x1f0   :  { %v7713_v46 = vadd.f32 %v7383_v3, %v2325_v2  ;;  %v2327_v14 = vmul.f32 %v7375_v62, %v2288_v26 }
 0x1f1   :  { %9538 = vst [vmem:[#allocation33_spill] sm:$0xff] %v7696_v59  ;;  %2449 = vperm.xlu0 %5719, %v7696_v59   ;;  %v2120_v45 = vpop.xlane.xlu1 %2119 }
 0x1f2   :  { %v6055_v4 = vpop.eup %6054  ;;  %v7721_v28 = vadd.f32 %v7383_v3, %v2327_v14  ;;  %v2184_v21 = vmul.f32 0.2, %v2120_v45 }
 0x1f3   :  { %5727 = vset.pattern.permute.xlu1 %v9406_v55  ;;  %1452 = vmatmul.mubr.bf16.gmra.mxu0 %v861_v37  ;;  %v2272_v51 = vmul.f32 %v6055_v4, %v9542_v39  ;;  %v9547_v4 = vld [vmem:[#allocation67_spill] sm:$0xff] }
 0x1f4   :  { %3068 = vperm.xlu1 %5727, %v7401_v44   ;;  %1645 = vmatmul.mubr.bf16.gmra.mxu1 %v861_v37  ;;  %v2216_v9 = vadd.f32 1e-05, %v2184_v21 }
 0x1f5   :  { %5777 = vset.pattern.permute.xlu0 %v9402_v25  ;;  %v6057_v16 = vpop.eup %6056  ;;  %v2311_v6 = vmul.f32 %v7375_v62, %v2272_v51 }
 0x1f6   :  { %2688 = vperm.xlu0 %5777, %v7466_v41   ;;  %v2290_v47 = vmul.f32 %v6057_v16, %v9543_v31  ;;  %v6059_v61 = vpop.eup %6058  ;;  %6066 = vrsqrt.f32 %v2216_v9 }
 0x1f7   :  { %v7733_v5 = vadd.f32 %v7383_v3, %v2311_v6  ;;  %v2292_v56 = vmul.f32 %v6059_v61, %v9544_v10  ;;  %v6061_v33 = vpop.eup %6060  ;;  %6068 = vrsqrt.f32 %v2206_v32  ;;  %v9550_v6 = vld [vmem:[#allocation71_spill] sm:$0xff] }
 0x1f8   :  { %5728 = vset.pattern.permute.xlu1 %v9408_v57  ;;  %v2329_v60 = vmul.f32 %v7375_v62, %v2290_v47  ;;  %v2276_v11 = vmul.f32 %v6061_v33, %v9545_v34  ;;  %v6063_v2 = vpop.eup %6062  ;;  %v9551_v47 = vld [vmem:[#allocation45_spill] sm:$0xff]  ;;  %v5890_v34 = vld [vmem:[#allocation7 + $0x38] sm:$0xff]  }
 0x1f9   :  { %2816 = vperm.xlu1 %5728, %v7572_v1   ;;  %v2331_v38 = vmul.f32 %v7375_v62, %v2292_v56  ;;  %v2294_v8 = vmul.f32 %v6063_v2, %v9546_v49  ;;  %5686 = vmatprep.subr.bf16.mxu1 %v5890_v34 }
 0x1fa   :  { %2624 = vperm.xlu0 %5777, %v7479_v22   ;;  %v7742_v37 = vadd.f32 %v7383_v3, %v2329_v60  ;;  %v2315_v26 = vmul.f32 %v7375_v62, %v2276_v11  ;;  %5694 = vmatpush3.bf16.msra.mxu1 %v5890_v34 }
 0x1fb   :  { %v7748_v40 = vadd.f32 %v7383_v3, %v2331_v38  ;;  %v6065_v13 = vpop.eup %6064  ;;  %v2333_v14 = vmul.f32 %v7375_v62, %v2294_v8  ;;  %5542 = vmatprep.subr.bf16.mxu0 %v5890_v34  ;;  %v5893_v8 = vld [vmem:[#allocation7 + $0x20] sm:$0xff]  }
 0x1fc   :  { %v7758_v15 = vadd.f32 %v7383_v3, %v2315_v26  ;;  %v2296_v53 = vmul.f32 %v6065_v13, %v9547_v4  ;;  %5543 = vmatpush3.bf16.msra.mxu0 %v5890_v34  ;;  %v5892_v13 = vld [vmem:[#allocation7 + $0x28] sm:$0xff]  }
 0x1fd   :  { %2820 = vperm.xlu1 %5728, %v7479_v22   ;;  %v7766_v27 = vadd.f32 %v7383_v3, %v2333_v14  ;;  %v5894_v14 = vld [vmem:[#allocation7 + $0x18] sm:$0xff]  }
 0x1fe   :  { %2696 = vperm.xlu0 %5777, %v7713_v46   ;;  %v2335_v39 = vmul.f32 %v7375_v62, %v2296_v53 }
 0x1ff   :  { %9548 = vst [vmem:[#allocation18_spill] sm:$0xff] %v7766_v27 }
 0x200   :  { %v7773_v23 = vadd.f32 %v7383_v3, %v2335_v39 }
 0x201   :  { %5729 = vset.pattern.permute.xlu1 %v9406_v55 }
 0x202   :  { %3080 = vperm.xlu1 %5729, %v7466_v41   ;;  %2704 = vperm.xlu0 %5777, %v7721_v28   ;;  %9549 = vst [vmem:[#allocation23_spill] sm:$0xff] %v7773_v23 }
 0x203   :  { %v6067_v51 = vpop.eup %6066 }
 0x204   :  { %v6069_v16 = vpop.eup %6068  ;;  %v2280_v31 = vmul.f32 %v6067_v51, %v9550_v6  ;;  %v5895_v51 = vld [vmem:[#allocation7 + $0x10] sm:$0xff]   ;;  %v2178_v6 = vmul.f32 0.2, %v7543_v18 }
 0x205   :  { %v2270_v61 = vmul.f32 %v6069_v16, %v9551_v47  ;;  %v5896_v47 = vld [vmem:[#allocation7 + $0x8] sm:$0xff]  }
 0x206   :  { %5730 = vset.pattern.permute.xlu1 %v9511_v24  ;;  %2628 = vperm.xlu0 %5777, %v7546_v20   ;;  %v2319_v45 = vmul.f32 %v7375_v62, %v2280_v31 }
 0x207   :  { %2484 = vperm.xlu1 %5730, %v7713_v46   ;;  %v2309_v60 = vmul.f32 %v7375_v62, %v2270_v61  ;;  %v2210_v61 = vadd.f32 1e-05, %v2178_v6 }
 0x208   :  { %v7787_v10 = vadd.f32 %v7383_v3, %v2319_v45 }
 0x209   :  { %v7793_v58 = vadd.f32 %v7383_v3, %v2309_v60  ;;  %6070 = vrsqrt.f32 %v2210_v61 }
 0x20a   :  { %2640 = vperm.xlu0 %5777, %v7733_v5   ;;  %9552 = vst [vmem:[#allocation40_spill] sm:$0xff] %v7787_v10 }
 0x20b   :  { %5731 = vset.pattern.permute.xlu1 %v9406_v55 }
 0x20c   :  { %3004 = vperm.xlu1 %5731, %v7486_v50  }
 0x20e   :  { %2712 = vperm.xlu0 %5777, %v7742_v37  }
 0x210   :  { %5732 = vset.pattern.permute.xlu1 %v9404_v63 }
 0x211   :  { %3264 = vperm.xlu1 %5732, %v7401_v44  }
 0x212   :  { %2720 = vperm.xlu0 %5777, %v7748_v40  }
 0x215   :  { %3268 = vperm.xlu1 %5732, %v7415_v48  }
 0x216   :  { %2644 = vperm.xlu0 %5777, %v7623_v0  }
 0x219   :  { %5733 = vset.pattern.permute.xlu1 %v9511_v24 }
 0x21a   :  { %2494 = vperm.xlu1 %5733, %v7721_v28   ;;  %2656 = vperm.xlu0 %5777, %v7758_v15  }
 0x21e   :  { %5734 = vset.pattern.permute.xlu1 %v9406_v55  ;;  %2728 = vperm.xlu0 %5777, %v7766_v27  }
 0x21f   :  { %3012 = vperm.xlu1 %5734, %v7572_v1  }
 0x222   :  { %2736 = vperm.xlu0 %5777, %v7773_v23   ;;  %v9574_v23 = vld [vmem:[#allocation74_spill] sm:$0xff] }
 0x223   :  { %5735 = vset.pattern.permute.xlu1 %v9404_v63  ;;  %v7798_v9 = vpop.permute.xlu0 %2459 }
 0x224   :  { %3272 = vperm.xlu1 %5735, %v7439_v36  }
 0x226   :  { %2660 = vperm.xlu0 %5777, %v7686_v7  }
 0x227   :  { %v7782_v21 = vpop.permute.xlu1 %2464 }
 0x228   :  { %3276 = vperm.xlu1 %5735, %v7466_v41  }
 0x22a   :  { %2672 = vperm.xlu0 %5777, %v7787_v10  }
 0x22b   :  { %v7790_v56 = vpop.permute.xlu1 %2469 }
 0x22c   :  { %5736 = vset.pattern.permute.xlu1 %v9511_v24 }
 0x22d   :  { %2404 = vperm.xlu1 %5736, %v7793_v58  }
 0x22e   :  { %5784 = vset.pattern.permute.xlu0 %v9408_v57 }
 0x22f   :  { %2872 = vperm.xlu0 %5784, %v7401_v44  }
 0x230   :  { %v7801_v62 = vpop.permute.xlu1 %2474 }
 0x231   :  { %5737 = vset.pattern.permute.xlu1 %v9402_v25 }
 0x232   :  { %2692 = vperm.xlu1 %5737, %v7508_v52  }
 0x233   :  { %2808 = vperm.xlu0 %5784, %v7486_v50   ;;  %v7806_v3 = vpop.permute.xlu0 %2394 }
 0x234   :  { %v7808_v41 = vpop.permute.xlu1 %2379 }
 0x236   :  { %5738 = vset.pattern.permute.xlu1 %v9404_v63 }
 0x237   :  { %3200 = vperm.xlu1 %5738, %v7486_v50   ;;  %2888 = vperm.xlu0 %5784, %v7508_v52   ;;  %v5891_v50 = vld [vmem:[#allocation7 + $0x30] sm:$0xff]  }
 0x238   :  { %v7813_v38 = vpop.permute.xlu1 %2384  ;;  %v7815_v44 = vpop.permute.xlu0 %2479  ;;  %5687 = vmatprep.subr.bf16.mxu1 %v5891_v50  ;;  %5544 = vmatprep.subr.bf16.mxu0 %v5891_v50 }
 0x239   :  { %9553 = vst [vmem:[#allocation21_spill] sm:$0xff] %v7815_v44  ;;  %5695 = vmatpush3.bf16.msra.mxu1 %v5891_v50  ;;  %5545 = vmatpush3.bf16.msra.mxu0 %v5891_v50 }
 0x23a   :  { %5688 = vmatprep.subr.bf16.mxu1 %v5892_v13  ;;  %5546 = vmatprep.subr.bf16.mxu0 %v5892_v13 }
 0x23b   :  { %3204 = vperm.xlu1 %5738, %v7505_v29   ;;  %2824 = vperm.xlu0 %5784, %v7546_v20  }
 0x23c   :  { %v7819_v33 = vpop.permute.xlu0 %2489 }
 0x23d   :  { %9554 = vst [vmem:[#allocation42_spill] sm:$0xff] %v7819_v33  ;;  %v7821_v32 = vpop.permute.xlu1 %2676  ;;  %5696 = vmatpush3.bf16.msra.mxu1 %v5892_v13  ;;  %5547 = vmatpush3.bf16.msra.mxu0 %v5892_v13 }
 0x23e   :  { %5689 = vmatprep.subr.bf16.mxu1 %v5893_v8  ;;  %5548 = vmatprep.subr.bf16.mxu0 %v5893_v8 }
 0x23f   :  { %5739 = vset.pattern.permute.xlu1 %v9511_v24  ;;  %2904 = vperm.xlu0 %5784, %v7595_v30  }
 0x240   :  { %2414 = vperm.xlu1 %5739, %v7733_v5   ;;  %v7828_v2 = vpop.permute.xlu0 %2399 }
 0x241   :  { %v7826_v11 = vpop.permute.xlu1 %2680  ;;  %5697 = vmatpush3.bf16.msra.mxu1 %v5893_v8  ;;  %5549 = vmatpush3.bf16.msra.mxu0 %v5893_v8  ;;  %v6071_v8 = vpop.eup %6070 }
 0x242   :  { %5690 = vmatprep.subr.bf16.mxu1 %v5894_v14  ;;  %5550 = vmatprep.subr.bf16.mxu0 %v5894_v14 }
 0x243   :  { %2840 = vperm.xlu0 %5784, %v7623_v0  }
 0x244   :  { %5740 = vset.pattern.permute.xlu1 %v9402_v25  ;;  %v7836_v49 = vpop.permute.xlu0 %2409 }
 0x245   :  { %2700 = vperm.xlu1 %5740, %v7526_v19   ;;  %9555 = vst [vmem:[#allocation22_spill] sm:$0xff] %v7836_v49  ;;  %5698 = vmatpush3.bf16.msra.mxu1 %v5894_v14 }
 0x246   :  { %v7833_v26 = vpop.permute.xlu1 %2389  ;;  %5551 = vmatpush3.bf16.msra.mxu0 %v5894_v14  ;;  %5691 = vmatprep.subr.bf16.mxu1 %v5895_v51 }
 0x247   :  { %2920 = vperm.xlu0 %5784, %v7661_v54   ;;  %5552 = vmatprep.subr.bf16.mxu0 %v5895_v51 }
 0x249   :  { %5741 = vset.pattern.permute.xlu1 %v9404_v63  ;;  %5699 = vmatpush3.bf16.msra.mxu1 %v5895_v51 }
 0x24a   :  { %3208 = vperm.xlu1 %5741, %v7572_v1   ;;  %5553 = vmatpush3.bf16.msra.mxu0 %v5895_v51  ;;  %v9562_v51 = vld [vmem:[#allocation57_spill] sm:$0xff] }
 0x24b   :  { %v7840_v4 = vpop.permute.xlu1 %2684  ;;  %2856 = vperm.xlu0 %5784, %v7686_v7   ;;  %5692 = vmatprep.subr.bf16.mxu1 %v5896_v47  ;;  %v2274_v6 = vmul.f32 %v6071_v8, %v9562_v51  ;;  %v7918_v51 = vld [vmem:[%s9330_s2 + $0x5] ss:$0 sm:$0xff] }
 0x24c   :  { %v7843_v53 = vpop.permute.xlu0 %2499  ;;  %5554 = vmatprep.subr.bf16.mxu0 %v5896_v47  ;;  %9564 = vst [vmem:[#allocation24_spill] sm:$0xff] %v7918_v51 }
 0x24d   :  { %9556 = vst [vmem:[#allocation27_spill] sm:$0xff] %v7843_v53  ;;  %5700 = vmatpush3.bf16.msra.mxu1 %v5896_v47 }
 0x24e   :  { %3212 = vperm.xlu1 %5741, %v7479_v22   ;;  %5555 = vmatpush3.bf16.msra.mxu0 %v5896_v47 }
 0x24f   :  { %v7846_v39 = vpop.permute.xlu1 %2612  ;;  %5786 = vset.pattern.permute.xlu0 %v9406_v55 }
 0x250   :  { %3072 = vperm.xlu0 %5786, %v7415_v48  }
 0x251   :  { %v7850_v1 = vpop.permute.xlu0 %2509 }
 0x252   :  { %9557 = vst [vmem:[#allocation44_spill] sm:$0xff] %v7850_v1  ;;  %5742 = vset.pattern.permute.xlu1 %v9402_v25  ;;  %v7954_v1 = vld [vmem:[%s9332_s4] sm:$0x1f] }
 0x253   :  { %v7853_v16 = vpop.permute.xlu1 %2616  ;;  %2632 = vperm.xlu1 %5742, %v7793_v58  }
 0x254   :  { %3076 = vperm.xlu0 %5786, %v7439_v36   ;;  %v5897_v36 = vld [vmem:[#allocation7] sm:$0xff]  }
 0x255   :  { %v7858_v48 = vpop.permute.xlu0 %2419  ;;  %5693 = vmatprep.subr.bf16.mxu1 %v5897_v36  ;;  %5556 = vmatprep.subr.bf16.mxu0 %v5897_v36 }
 0x256   :  { %5701 = vmatpush3.bf16.msra.mxu1 %v5897_v36  ;;  %5557 = vmatpush3.bf16.msra.mxu0 %v5897_v36  ;;  %v7905_v36 = vld [vmem:[%s9330_s2 + $0x4] ss:$0 sm:$0xff] }
 0x257   :  { %5743 = vset.pattern.permute.xlu1 %v9408_v57  ;;  %9563 = vst [vmem:[#allocation26_spill] sm:$0xff] %v7905_v36 }
 0x258   :  { %v7861_v31 = vpop.permute.xlu1 %2876  ;;  %2892 = vperm.xlu1 %5743, %v7713_v46   ;;  %3008 = vperm.xlu0 %5786, %v7505_v29  }
 0x259   :  { %v7865_v45 = vpop.permute.xlu0 %2429 }
 0x25a   :  { %9558 = vst [vmem:[#allocation20_spill] sm:$0xff] %v7865_v45 }
 0x25c   :  { %5744 = vset.pattern.permute.xlu1 %v9402_v25  ;;  %3016 = vperm.xlu0 %5786, %v7479_v22   ;;  %v2313_v25 = vmul.f32 %v7905_v36, %v2274_v6 }
 0x25d   :  { %v7869_v18 = vpop.permute.xlu1 %2620  ;;  %2636 = vperm.xlu1 %5744, %v7566_v35  }
 0x260   :  { %3088 = vperm.xlu0 %5786, %v7713_v46   ;;  %v7873_v29 = vpop.permute.xlu0 %2519 }
 0x261   :  { %9559 = vst [vmem:[#allocation34_spill] sm:$0xff] %v7873_v29  ;;  %5745 = vset.pattern.permute.xlu1 %v9408_v57 }
 0x262   :  { %v7876_v60 = vpop.permute.xlu1 %2880  ;;  %2896 = vperm.xlu1 %5745, %v7526_v19  }
 0x264   :  { %3092 = vperm.xlu0 %5786, %v7526_v19   ;;  %v7880_v22 = vpop.permute.xlu0 %2529 }
 0x265   :  { %9560 = vst [vmem:[#allocation25_spill] sm:$0xff] %v7880_v22 }
 0x266   :  { %v7882_v34 = vpop.permute.xlu1 %2884  ;;  %2900 = vperm.xlu1 %5745, %v7721_v28  }
 0x268   :  { %3024 = vperm.xlu0 %5786, %v7793_v58   ;;  %v7886_v50 = vpop.permute.xlu0 %2439 }
 0x26a   :  { %v7888_v13 = vpop.permute.xlu1 %2812  ;;  %2828 = vperm.xlu1 %5745, %v7793_v58  }
 0x26c   :  { %3032 = vperm.xlu0 %5786, %v7733_v5   ;;  %v7892_v14 = vpop.permute.xlu0 %2449 }
 0x26d   :  { %9561 = vst [vmem:[#allocation46_spill] sm:$0xff] %v7892_v14 }
 0x26e   :  { %5746 = vset.pattern.permute.xlu1 %v9406_v55  ;;  %v7921_v55 = vadd.f32 %v7918_v51, %v2313_v25  ;;  %v9571_v51 = vmov 4  }
 0x26f   :  { %v7896_v47 = vpop.permute.xlu1 %3068  ;;  %3084 = vperm.xlu1 %5746, %v7508_v52  }
 0x270   :  { %3104 = vperm.xlu0 %5786, %v7742_v37  }
 0x271   :  { %v7900_v61 = vpop.permute.xlu0 %2688 }
 0x273   :  { %5747 = vset.pattern.permute.xlu1 %v9408_v57  ;;  %v9566_v57 = vmov 3  }
 0x274   :  { %v7909_v63 = vpop.permute.xlu1 %2816  ;;  %2832 = vperm.xlu1 %5747, %v7566_v35   ;;  %3108 = vperm.xlu0 %5786, %v7609_v12  }
 0x275   :  { %v7913_v8 = vpop.permute.xlu0 %2624 }
 0x278   :  { %v7923_v14 = vpop.permute.xlu1 %2820  ;;  %2836 = vperm.xlu1 %5747, %v7733_v5   ;;  %3040 = vperm.xlu0 %5786, %v7921_v55  }
 0x279   :  { %v7927_v6 = vpop.permute.xlu0 %2696 }
 0x27a   :  { %9565 = vst [vmem:[#allocation31_spill] sm:$0xff] %v7927_v6 }
 0x27c   :  { %5748 = vset.pattern.permute.xlu1 %v9566_v57  ;;  %3048 = vperm.xlu0 %5786, %v7758_v15  }
 0x27d   :  { %v7931_v22 = vpop.permute.xlu1 %3080  ;;  %3096 = vperm.xlu1 %5748, %v7721_v28   ;;  %v7934_v29 = vpop.permute.xlu0 %2704 }
 0x27e   :  { %9567 = vst [vmem:[#allocation29_spill] sm:$0xff] %v7934_v29 }
 0x280   :  { %3120 = vperm.xlu0 %5786, %v7766_v27  }
 0x281   :  { %5749 = vset.pattern.permute.xlu1 %v9511_v24  ;;  %v7938_v25 = vpop.permute.xlu0 %2628 }
 0x282   :  { %2504 = vperm.xlu1 %5749, %v7742_v37   ;;  %v7941_v59 = vpop.permute.xlu1 %2484 }
 0x283   :  { %9568 = vst [vmem:[#allocation52_spill] sm:$0xff] %v7941_v59  ;;  %v9581_v59 = vmov 1  }
 0x284   :  { %3124 = vperm.xlu0 %5786, %v7674_v43   ;;  %v9572_v43 = vld [vmem:[#allocation73_spill] sm:$0xff] }
 0x285   :  { %v7944_v45 = vpop.permute.xlu0 %2640 }
 0x286   :  { %9569 = vst [vmem:[#allocation30_spill] sm:$0xff] %v7944_v45  ;;  %5750 = vset.pattern.permute.xlu1 %v9566_v57  ;;  %v7961_v45 = vrot.slane %v7954_v1, %v9572_v43 }
 0x287   :  { %v7947_v49 = vpop.permute.xlu1 %3004  ;;  %3020 = vperm.xlu1 %5750, %v7546_v20  }
 0x288   :  { %3052 = vperm.xlu0 %5786, %v7686_v7   ;;  %v2549_v33 = vmul.f32 %v7961_v45, %v7858_v48 }
 0x289   :  { %v7956_v53 = vpop.permute.xlu0 %2712 }
 0x28a   :  { %9570 = vst [vmem:[#allocation28_spill] sm:$0xff] %v7956_v53  ;;  %v7973_v53 = vrot.slane %v7954_v1, %v9574_v23 }
 0x28b   :  { %5751 = vset.pattern.permute.xlu1 %v9571_v51 }
 0x28c   :  { %3280 = vperm.xlu1 %5751, %v7508_v52   ;;  %3064 = vperm.xlu0 %5786, %v7787_v10   ;;  %v7965_v36 = vpop.permute.xlu1 %3264  ;;  %v7980_v52 = vld [vmem:[%s9330_s2 + $0xa] ss:$0 sm:$0xff]  ;;  %v2747_v44 = vmul.f32 %v7973_v53, %v7938_v25 }
 0x28d   :  { %v7967_v29 = vpop.permute.xlu0 %2720  ;;  %v2587_v48 = vadd.f32 %v7980_v52, %v2549_v33 }
 0x28e   :  { %9573 = vst [vmem:[#allocation54_spill] sm:$0xff] %v7967_v29 }
 0x290   :  { %3284 = vperm.xlu1 %5751, %v7713_v46   ;;  %5792 = vset.pattern.permute.xlu0 %v9571_v51  ;;  %v7982_v43 = vpop.permute.xlu1 %3268 }
 0x291   :  { %3312 = vperm.xlu0 %5792, %v7661_v54   ;;  %v2645_v29 = vpop.permute.xlu0 %2644 }
 0x292   :  { %v2751_v6 = vmul.f32 %v7973_v53, %v2645_v29 }
 0x294   :  { %v2783_v23 = vadd.f32 %v2751_v6, %v2587_v48  ;;  %5752 = vset.pattern.permute.xlu1 %v9511_v24  ;;  %v2553_v6 = vmul.f32 %v7961_v45, %v7886_v50 }
 0x295   :  { %v7988_v46 = vpop.permute.xlu1 %2494  ;;  %2514 = vperm.xlu1 %5752, %v7748_v40   ;;  %3248 = vperm.xlu0 %5792, %v7686_v7   ;;  %v7992_v0 = vpop.permute.xlu0 %2656 }
 0x296   :  { %9575 = vst [vmem:[#allocation39_spill] sm:$0xff] %v7988_v46  ;;  %9576 = vst [vmem:[#allocation37_spill] sm:$0xff] %v7992_v0  ;;  %v2591_v0 = vadd.f32 %v7980_v52, %v2553_v6 }
 0x299   :  { %5753 = vset.pattern.permute.xlu1 %v9566_v57  ;;  %3260 = vperm.xlu0 %5792, %v7787_v10   ;;  %v7996_v54 = vpop.permute.xlu0 %2728 }
 0x29a   :  { %9577 = vst [vmem:[#allocation56_spill] sm:$0xff] %v7996_v54  ;;  %3028 = vperm.xlu1 %5753, %v7566_v35   ;;  %v7999_v33 = vpop.permute.xlu1 %3012 }
 0x29d   :  { %v8001_v29 = vpop.permute.xlu0 %2736 }
 0x29e   :  { %9578 = vst [vmem:[#allocation38_spill] sm:$0xff] %v8001_v29  ;;  %5754 = vset.pattern.permute.xlu1 %v9571_v51 }
 0x29f   :  { %v8006_v7 = vpop.permute.xlu1 %3272  ;;  %3288 = vperm.xlu1 %5754, %v7526_v19  }
 0x2a1   :  { %v2661_v48 = vpop.permute.xlu0 %2660 }
 0x2a2   :  { %v2755_v54 = vmul.f32 %v7973_v53, %v2661_v48 }
 0x2a3   :  { %v8011_v10 = vpop.permute.xlu1 %3276  ;;  %3292 = vperm.xlu1 %5754, %v7721_v28  }
 0x2a4   :  { %v8014_v46 = vadd.f32 %v2755_v54, %v2591_v0  ;;  %v2545_v0 = vmul.f32 %v7961_v45, %v7828_v2 }
 0x2a5   :  { %v8016_v29 = vpop.permute.xlu0 %2672 }
 0x2a6   :  { %9579 = vst [vmem:[#allocation51_spill] sm:$0xff] %v8016_v29  ;;  %v9584_v29 = vld [vmem:[#allocation72_spill] sm:$0xff] }
 0x2a7   :  { %5755 = vset.pattern.permute.xlu1 %v9511_v24 }
 0x2a8   :  { %v8019_v50 = vpop.permute.xlu1 %2404  ;;  %2424 = vperm.xlu1 %5755, %v7921_v55  }
 0x2a9   :  { %9580 = vst [vmem:[#allocation58_spill] sm:$0xff] %v8019_v50  ;;  %v9428_v50 = vsub.s32 2, %v9584_v29 }
 0x2aa   :  { %v2873_v19 = vpop.permute.xlu0 %2872 }
 0x2ab   :  { %v8041_v42 = vrot.slane %v7954_v1, %v9428_v50  ;;  %v2557_v50 = vmul.f32 %v7961_v45, %v7798_v9  ;;  %v2558_v9 = vmul.f32 %v7961_v45, %v7782_v21  ;;  %v9589_v21 = vsub.s32 3, %v9584_v29 }
 0x2ac   :  { %5756 = vset.pattern.permute.xlu1 %v9581_v59 }
 0x2ad   :  { %v8023_v6 = vpop.permute.xlu1 %2692  ;;  %2708 = vperm.xlu1 %5756, %v7595_v30  }
 0x2ae   :  { %9582 = vst [vmem:[#allocation36_spill] sm:$0xff] %v8023_v6  ;;  %v2809_v48 = vpop.permute.xlu0 %2808  ;;  %v2583_v6 = vadd.f32 %v7980_v52, %v2545_v0 }
 0x2b1   :  { %5757 = vset.pattern.permute.xlu1 %v9571_v51 }
 0x2b2   :  { %v8029_v54 = vpop.permute.xlu1 %3200  ;;  %3216 = vperm.xlu1 %5757, %v7546_v20   ;;  %v8032_v28 = vpop.permute.xlu0 %2888  ;;  %v2779_v20 = vadd.f32 %v2747_v44, %v2583_v6 }
 0x2b3   :  { %9583 = vst [vmem:[#allocation49_spill] sm:$0xff] %v8032_v28 }
 0x2b6   :  { %v8043_v27 = vpop.permute.xlu1 %3204  ;;  %3220 = vperm.xlu1 %5757, %v7793_v58   ;;  %v2825_v2 = vpop.permute.xlu0 %2824  ;;  %v2759_v58 = vmul.f32 %v7973_v53, %v7821_v32  ;;  %v2560_v32 = vmul.f32 %v7961_v45, %v7801_v62  ;;  %v2762_v62 = vmul.f32 %v7973_v53, %v7900_v61 }
 0x2b7   :  { %v2943_v28 = vmul.f32 %v8041_v42, %v2825_v2  ;;  %v3329_v2 = vsub.s32 4, %v9584_v29 }
 0x2b8   :  { %v2598_v61 = vadd.f32 %v7980_v52, %v2560_v32 }
 0x2b9   :  { %v8047_v30 = vadd.f32 %v2943_v28, %v2779_v20  ;;  %v2595_v20 = vadd.f32 %v7980_v52, %v2557_v50  ;;  %v2544_v28 = vmul.f32 %v7961_v45, %v7806_v3  ;;  %v2541_v50 = vmul.f32 %v7961_v45, %v7808_v41 }
 0x2ba   :  { %5758 = vset.pattern.permute.xlu1 %v9511_v24  ;;  %v8050_v25 = vpop.permute.xlu0 %2904  ;;  %v8093_v3 = vrot.slane %v7954_v1, %v3329_v2  ;;  %v2596_v41 = vadd.f32 %v7980_v52, %v2558_v9  ;;  %v2743_v2 = vmul.f32 %v7973_v53, %v7846_v39  ;;  %v2956_v9 = vmul.f32 %v8041_v42, %v7861_v31 }
 0x2bb   :  { %9585 = vst [vmem:[#allocation50_spill] sm:$0xff] %v8047_v30  ;;  %9586 = vst [vmem:[#allocation63_spill] sm:$0xff] %v8050_v25  ;;  %2434 = vperm.xlu1 %5758, %v7758_v15   ;;  %v8053_v0 = vpop.permute.xlu1 %2414 }
 0x2bc   :  { %9587 = vst [vmem:[#allocation64_spill] sm:$0xff] %v8053_v0  ;;  %v2955_v0 = vmul.f32 %v8041_v42, %v2873_v19 }
 0x2be   :  { %v2841_v57 = vpop.permute.xlu0 %2840 }
 0x2bf   :  { %5759 = vset.pattern.permute.xlu1 %v9581_v59  ;;  %v2947_v44 = vmul.f32 %v8041_v42, %v2841_v57  ;;  %v2559_v57 = vmul.f32 %v7961_v45, %v7790_v56  ;;  %v2542_v56 = vmul.f32 %v7961_v45, %v7813_v38 }
 0x2c0   :  { %v8061_v6 = vpop.permute.xlu1 %2700  ;;  %2716 = vperm.xlu1 %5759, %v7609_v12  }
 0x2c1   :  { %9588 = vst [vmem:[#allocation48_spill] sm:$0xff] %v8061_v6  ;;  %v8070_v30 = vadd.f32 %v2947_v44, %v2783_v23  ;;  %v2791_v6 = vadd.f32 %v2759_v58, %v2595_v20  ;;  %v8085_v23 = vrot.slane %v7954_v1, %v9589_v21  ;;  %v2760_v58 = vmul.f32 %v7973_v53, %v7826_v11 }
 0x2c2   :  { %v8078_v25 = vpop.permute.xlu0 %2920  ;;  %v2543_v44 = vmul.f32 %v7961_v45, %v7833_v26  ;;  %v2597_v38 = vadd.f32 %v7980_v52, %v2559_v57  ;;  %v2582_v1 = vadd.f32 %v7980_v52, %v2544_v28  ;;  %v2794_v28 = vadd.f32 %v2762_v62, %v2598_v61 }
 0x2c3   :  { %v2987_v20 = vadd.f32 %v2955_v0, %v2791_v6  ;;  %v3151_v11 = vmul.f32 %v8085_v23, %v7896_v47  ;;  %v2580_v0 = vadd.f32 %v7980_v52, %v2542_v56  ;;  %v2761_v6 = vmul.f32 %v7973_v53, %v7840_v4 }
 0x2c4   :  { %5760 = vset.pattern.permute.xlu1 %v9571_v51  ;;  %v2939_v57 = vmul.f32 %v8041_v42, %v2809_v48  ;;  %v2792_v32 = vadd.f32 %v2760_v58, %v2596_v41  ;;  %v2581_v31 = vadd.f32 %v7980_v52, %v2543_v44  ;;  %v2744_v56 = vmul.f32 %v7973_v53, %v7853_v16 }
 0x2c5   :  { %v8095_v19 = vpop.permute.xlu1 %3208  ;;  %3224 = vperm.xlu1 %5760, %v7566_v35   ;;  %v2579_v35 = vadd.f32 %v7980_v52, %v2541_v50  ;;  %v3183_v50 = vadd.f32 %v3151_v11, %v2987_v20  ;;  %v2958_v4 = vmul.f32 %v8041_v42, %v7882_v34  ;;  %v3154_v48 = vmul.f32 %v8085_v23, %v7931_v22 }
 0x2c6   :  { %v2857_v21 = vpop.permute.xlu0 %2856  ;;  %v2988_v61 = vadd.f32 %v2956_v9, %v2792_v32  ;;  %v3347_v41 = vmul.f32 %v8093_v3, %v7965_v36  ;;  %v2793_v58 = vadd.f32 %v2761_v6, %v2597_v38  ;;  %v3350_v16 = vmul.f32 %v8093_v3, %v8011_v10 }
 0x2c7   :  { %v2951_v26 = vmul.f32 %v8041_v42, %v2857_v21  ;;  %v2775_v21 = vadd.f32 %v2743_v2, %v2579_v35  ;;  %v2990_v44 = vadd.f32 %v2958_v4, %v2794_v28  ;;  %v2745_v22 = vmul.f32 %v7973_v53, %v7869_v18 }
 0x2c8   :  { %v3348_v34 = vmul.f32 %v8093_v3, %v7982_v43  ;;  %v3379_v36 = vadd.f32 %v3347_v41, %v3183_v50  ;;  %v2940_v38 = vmul.f32 %v8041_v42, %v7888_v13  ;;  %v2746_v10 = vmul.f32 %v7973_v53, %v7913_v8 }
 0x2c9   :  { %v8118_v39 = vpop.permute.xlu1 %3212  ;;  %3228 = vperm.xlu1 %5760, %v7733_v5   ;;  %v8123_v47 = vadd.f32 %v2951_v26, %v8014_v46  ;;  %v2957_v5 = vmul.f32 %v8041_v42, %v7876_v60  ;;  %v2971_v20 = vadd.f32 %v2939_v57, %v2775_v21  ;;  %v3186_v35 = vadd.f32 %v3154_v48, %v2990_v44 }
 0x2ca   :  { %v3135_v9 = vmul.f32 %v8085_v23, %v7947_v49  ;;  %v2776_v11 = vadd.f32 %v2744_v56, %v2580_v0  ;;  %v2941_v28 = vmul.f32 %v8041_v42, %v7909_v63  ;;  %v3331_v13 = vmul.f32 %v8093_v3, %v8029_v54 }
 0x2cb   :  { %v3073_v62 = vpop.permute.xlu0 %3072  ;;  %v2989_v26 = vadd.f32 %v2957_v5, %v2793_v58  ;;  %v3382_v57 = vadd.f32 %v3350_v16, %v3186_v35  ;;  %v3349_v8 = vmul.f32 %v8093_v3, %v8006_v7  ;;  %v9590_v49 = vmov 2  }
 0x2cc   :  { %v3152_v46 = vmul.f32 %v8085_v23, %v3073_v62  ;;  %v3167_v32 = vadd.f32 %v3135_v9, %v2971_v20  ;;  %v3411_v0 = vmax.f32 %v3379_v36, 0.0  ;;  %v2777_v56 = vadd.f32 %v2745_v22, %v2581_v31 }
 0x2cd   :  { %5761 = vset.pattern.permute.xlu1 %v9581_v59  ;;  %v2972_v4 = vadd.f32 %v2940_v38, %v2776_v11  ;;  %v2778_v48 = vadd.f32 %v2746_v10, %v2582_v1  ;;  %v2942_v62 = vmul.f32 %v8041_v42, %v7923_v14  ;;  %v3137_v54 = vmul.f32 %v8085_v23, %v7999_v33 }
 0x2ce   :  { %v3184_v60 = vadd.f32 %v3152_v46, %v2988_v61  ;;  %v8143_v2 = vpop.permute.xlu1 %2632  ;;  %2648 = vperm.xlu1 %5761, %v7921_v55   ;;  %v2973_v46 = vadd.f32 %v2941_v28, %v2777_v56  ;;  %v3414_v58 = vmax.f32 %v3382_v57, 0.0  ;;  %v3363_v31 = vadd.f32 %v3331_v13, %v3167_v32 }
 0x2cf   :  { %v3077_v18 = vpop.permute.xlu0 %3076  ;;  %v3332_v1 = vmul.f32 %v8093_v3, %v8043_v27  ;;  %v3333_v14 = vmul.f32 %v8093_v3, %v8095_v19  ;;  %v2974_v20 = vadd.f32 %v2942_v62, %v2778_v48  ;;  %v3334_v19 = vmul.f32 %v8093_v3, %v8118_v39  ;;  %v9594_v48 = vld [vmem:[#allocation16_spill] sm:$0xff] }
 0x2d0   :  { %v3380_v43 = vadd.f32 %v3348_v34, %v3184_v60  ;;  %v3153_v6 = vmul.f32 %v8085_v23, %v3077_v18  ;;  %v3169_v22 = vadd.f32 %v3137_v54, %v2973_v46  ;;  %v3395_v27 = vmax.f32 %v3363_v31, 0.0  ;;  %v9598_v31 = vld [vmem:[#allocation32_spill] sm:$0xff] }
 0x2d1   :  { %v9591_v32 = vmov 3   ;;  %v2182_v62 = vmul.f32 0.2, %v9594_v48 }
 0x2d2   :  { %v3412_v50 = vmax.f32 %v3380_v43, 0.0  ;;  %v3185_v21 = vadd.f32 %v3153_v6, %v2989_v26  ;;  %5762 = vset.pattern.permute.xlu1 %v9590_v49  ;;  %v3365_v10 = vadd.f32 %v3333_v14, %v3169_v22  ;;  %v9600_v22 = vld [vmem:[#allocation31_spill] sm:$0xff] }
 0x2d3   :  { %v8162_v63 = vpop.permute.xlu1 %2892  ;;  %2908 = vperm.xlu1 %5762, %v7742_v37   ;;  %v3009_v61 = vpop.permute.xlu0 %3008 }
 0x2d4   :  { %v3381_v7 = vadd.f32 %v3349_v8, %v3185_v21  ;;  %v3136_v5 = vmul.f32 %v8085_v23, %v3009_v61  ;;  %v3435_v41 = vpack.c.bf16 %v3412_v50, %v3411_v0  ;;  %v3397_v43 = vmax.f32 %v3365_v10, 0.0  ;;  %v9592_v8 = vld [vmem:[#allocation19_spill] sm:$0xff]  ;;  %v9595_v61 = vld [vmem:[#allocation21_spill] sm:$0xff] }
 0x2d5   :  { %v2561_v54 = vmul.f32 %v7961_v45, %v9595_v61 }
 0x2d6   :  { %v3413_v44 = vmax.f32 %v3381_v7, 0.0  ;;  %v3168_v16 = vadd.f32 %v3136_v5, %v2972_v4  ;;  %5574 = vmatprep.mubr.bf16.mxu1 %v3435_v41  ;;  %v9593_v4 = vld [vmem:[#allocation18_spill] sm:$0xff]  ;;  %v9596_v7 = vld [vmem:[#allocation52_spill] sm:$0xff] }
 0x2d7   :  { %5763 = vset.pattern.permute.xlu1 %v9581_v59  ;;  %v3017_v33 = vpop.permute.xlu0 %3016  ;;  %v2562_v5 = vmul.f32 %v7961_v45, %v9596_v7  ;;  %v9597_v41 = vld [vmem:[#allocation36_spill] sm:$0xff]  ;;  %v2599_v14 = vadd.f32 %v7980_v52, %v2561_v54  ;;  %v9601_v54 = vld [vmem:[#allocation23_spill] sm:$0xff]  ;;  %v9602_v7 = vld [vmem:[#allocation42_spill] sm:$0xff] }
 0x2d8   :  { %v3436_v34 = vpack.c.bf16 %v3414_v58, %v3413_v44  ;;  %v3364_v60 = vadd.f32 %v3332_v1, %v3168_v16  ;;  %v3138_v36 = vmul.f32 %v8085_v23, %v3017_v33  ;;  %v8174_v38 = vpop.permute.xlu1 %2636  ;;  %2652 = vperm.xlu1 %5763, %v7637_v17   ;;  %v2763_v46 = vmul.f32 %v7973_v53, %v9597_v41  ;;  %v9599_v16 = vld [vmem:[#allocation49_spill] sm:$0xff] }
 0x2d9   :  { %v2214_v1 = vadd.f32 1e-05, %v2182_v62  ;;  %v2600_v44 = vadd.f32 %v7980_v52, %v2562_v5  ;;  %v2563_v5 = vmul.f32 %v7961_v45, %v9602_v7 }
 0x2da   :  { %v3396_v35 = vmax.f32 %v3364_v60, 0.0  ;;  %v3170_v9 = vadd.f32 %v3138_v36, %v2974_v20  ;;  %5575 = vmatmul.mubr.bf16.vlgmr.msra.gmra.mxu1 %v3436_v34  ;;  %v2959_v20 = vmul.f32 %v8041_v42, %v9599_v16  ;;  %v2764_v34 = vmul.f32 %v7973_v53, %v9600_v22 }
 0x2db   :  { %v3089_v33 = vpop.permute.xlu0 %3088  ;;  %v2795_v60 = vadd.f32 %v2763_v46, %v2599_v14  ;;  %v2960_v36 = vmul.f32 %v8041_v42, %v8162_v63  ;;  %6072 = vrsqrt.f32 %v2214_v1  ;;  %v9603_v46 = vld [vmem:[#allocation39_spill] sm:$0xff]  ;;  %v9604_v1 = vld [vmem:[#allocation48_spill] sm:$0xff]  ;;  %v2601_v16 = vadd.f32 %v7980_v52, %v2563_v5 }
 0x2dc   :  { %v3366_v18 = vadd.f32 %v3334_v19, %v3170_v9  ;;  %5764 = vset.pattern.permute.xlu1 %v9590_v49  ;;  %v3427_v11 = vpack.c.bf16 %v3396_v35, %v3395_v27  ;;  %v2796_v35 = vadd.f32 %v2764_v34, %v2600_v44  ;;  %v3156_v9 = vmul.f32 %v8085_v23, %v3089_v33 }
 0x2dd   :  { %v8180_v26 = vpop.permute.xlu1 %2896  ;;  %2912 = vperm.xlu1 %5764, %v7609_v12   ;;  %v2991_v19 = vadd.f32 %v2959_v20, %v2795_v60  ;;  %v2765_v14 = vmul.f32 %v7973_v53, %v9604_v1  ;;  %v9609_v1 = vld [vmem:[#allocation27_spill] sm:$0xff] }
 0x2de   :  { %v3398_v6 = vmax.f32 %v3366_v18, 0.0  ;;  %5558 = vmatprep.mubr.bf16.mxu0 %v3427_v11  ;;  %v2992_v11 = vadd.f32 %v2960_v36, %v2796_v35  ;;  %v2961_v20 = vmul.f32 %v8041_v42, %v8180_v26  ;;  %v9605_v36 = vld [vmem:[#allocation69_spill] sm:$0xff] }
 0x2df   :  { %v3093_v22 = vpop.permute.xlu0 %3092  ;;  %v2797_v60 = vadd.f32 %v2765_v14, %v2601_v16  ;;  %v2565_v14 = vmul.f32 %v7961_v45, %v9609_v1 }
 0x2e0   :  { %v3428_v28 = vpack.c.bf16 %v3398_v6, %v3397_v43  ;;  %v3188_v63 = vadd.f32 %v3156_v9, %v2992_v11  ;;  %v3157_v9 = vmul.f32 %v8085_v23, %v3093_v22 }
 0x2e1   :  { %v8183_v57 = vpop.permute.xlu1 %2900  ;;  %2916 = vperm.xlu1 %5764, %v7748_v40   ;;  %v2993_v35 = vadd.f32 %v2961_v20, %v2797_v60  ;;  %v2748_v20 = vmul.f32 %v7973_v53, %v8143_v2  ;;  %v2603_v60 = vadd.f32 %v7980_v52, %v2565_v14  ;;  %v9616_v14 = vld [vmem:[#allocation44_spill] sm:$0xff] }
 0x2e2   :  { %5559 = vmatmul.mubr.bf16.vlgmr.msra.gmra.mxu0 %v3428_v28 }
 0x2e5   :  { %v8186_v39 = vpop.permute.xlu1 %2828  ;;  %2844 = vperm.xlu1 %5764, %v7921_v55  }
 0x2e8   :  { %v6073_v44 = vpop.eup %6072 }
 0x2e9   :  { %5765 = vset.pattern.permute.xlu1 %v9591_v32 }
 0x2ea   :  { %v3085_v13 = vpop.permute.xlu1 %3084  ;;  %3100 = vperm.xlu1 %5765, %v9592_v8  }
 0x2eb   :  { %v3155_v27 = vmul.f32 %v8085_v23, %v3085_v13 }
 0x2ed   :  { %v3187_v43 = vadd.f32 %v3155_v27, %v2991_v19  ;;  %v2278_v27 = vmul.f32 %v6073_v44, %v9605_v36  ;;  %v9610_v44 = vld [vmem:[#allocation58_spill] sm:$0xff] }
 0x2ee   :  { %5766 = vset.pattern.permute.xlu1 %v9590_v49  ;;  %v2546_v16 = vmul.f32 %v7961_v45, %v9610_v44  ;;  %v9617_v44 = vld [vmem:[#allocation22_spill] sm:$0xff] }
 0x2ef   :  { %v8192_v50 = vpop.permute.xlu1 %2832  ;;  %2848 = vperm.xlu1 %5766, %v7637_v17  }
 0x2f3   :  { %v8195_v21 = vpop.permute.xlu1 %2836  ;;  %2852 = vperm.xlu1 %5766, %v7758_v15  }
 0x2f7   :  { %5767 = vset.pattern.permute.xlu1 %v9591_v32 }
 0x2f8   :  { %v8199_v0 = vpop.permute.xlu1 %3096  ;;  %3112 = vperm.xlu1 %5767, %v7748_v40  }
 0x2fc   :  { %5768 = vset.pattern.permute.xlu1 %v9511_v24 }
 0x2fd   :  { %v8203_v56 = vpop.permute.xlu1 %2504  ;;  %2524 = vperm.xlu1 %5768, %v9593_v4  }
 0x301   :  { %5769 = vset.pattern.permute.xlu1 %v9591_v32 }
 0x302   :  { %v8214_v58 = vpop.permute.xlu1 %3020  ;;  %3036 = vperm.xlu1 %5769, %v9598_v31  }
 0x303   :  { %v3139_v2 = vmul.f32 %v8085_v23, %v8214_v58 }
 0x306   :  { %5770 = vset.pattern.permute.xlu1 %v9571_v51 }
 0x307   :  { %v3281_v10 = vpop.permute.xlu1 %3280  ;;  %3296 = vperm.xlu1 %5770, %v9592_v8  }
 0x308   :  { %v3351_v18 = vmul.f32 %v8093_v3, %v3281_v10  ;;  %v9606_v10 = vld [vmem:[#allocation29_spill] sm:$0xff] }
 0x309   :  { %v2766_v19 = vmul.f32 %v7973_v53, %v9606_v10  ;;  %v2944_v10 = vmul.f32 %v8041_v42, %v8186_v39 }
 0x30a   :  { %v3383_v28 = vadd.f32 %v3351_v18, %v3187_v43  ;;  %v2962_v18 = vmul.f32 %v8041_v42, %v8183_v57  ;;  %v3158_v43 = vmul.f32 %v8085_v23, %v8199_v0 }
 0x30b   :  { %v3285_v6 = vpop.permute.xlu1 %3284  ;;  %3300 = vperm.xlu1 %5770, %v7742_v37   ;;  %v2564_v37 = vmul.f32 %v7961_v45, %v9603_v46 }
 0x30c   :  { %v3352_v13 = vmul.f32 %v8093_v3, %v3285_v6  ;;  %v3415_v62 = vmax.f32 %v3383_v28, 0.0 }
 0x30d   :  { %v2602_v34 = vadd.f32 %v7980_v52, %v2564_v37 }
 0x30e   :  { %v3384_v48 = vadd.f32 %v3352_v13, %v3188_v63  ;;  %v3189_v63 = vadd.f32 %v3157_v9, %v2993_v35  ;;  %v9607_v13 = vld [vmem:[#allocation26_spill] sm:$0xff] }
 0x30f   :  { %5771 = vset.pattern.permute.xlu1 %v9511_v24  ;;  %v2798_v11 = vadd.f32 %v2766_v19, %v2602_v34  ;;  %v9611_v34 = vld [vmem:[#allocation17_spill] sm:$0xff]  ;;  %v9612_v19 = vld [vmem:[#allocation63_spill] sm:$0xff] }
 0x310   :  { %v3416_v8 = vmax.f32 %v3384_v48, 0.0  ;;  %v8233_v61 = vpop.permute.xlu1 %2514  ;;  %2534 = vperm.xlu1 %5771, %v9601_v54   ;;  %v2317_v48 = vmul.f32 %v9607_v13, %v2278_v27  ;;  %v2584_v27 = vadd.f32 %v7980_v52, %v2546_v16  ;;  %v2963_v35 = vmul.f32 %v8041_v42, %v9612_v19 }
 0x311   :  { %v2994_v28 = vadd.f32 %v2962_v18, %v2798_v11  ;;  %v2547_v16 = vmul.f32 %v7961_v45, %v9617_v44  ;;  %v9622_v44 = vld [vmem:[#allocation33_spill] sm:$0xff] }
 0x312   :  { %v3437_v41 = vpack.c.bf16 %v3416_v8, %v3415_v62  ;;  %v2780_v18 = vadd.f32 %v2748_v20, %v2584_v27  ;;  %v9618_v20 = vld [vmem:[#allocation37_spill] sm:$0xff] }
 0x313   :  { %v3190_v8 = vadd.f32 %v3158_v43, %v2994_v28  ;;  %v9613_v28 = vld [vmem:[#allocation50_spill] sm:$0xff] }
 0x314   :  { %5772 = vset.pattern.permute.xlu1 %v9591_v32  ;;  %5578 = vmatprep.mubr.bf16.mxu1 %v3437_v41  ;;  %v9608_v41 = vld [vmem:[#allocation24_spill] sm:$0xff]  ;;  %v3171_v13 = vadd.f32 %v3139_v2, %v9613_v28  ;;  %v9620_v2 = vld [vmem:[#allocation30_spill] sm:$0xff] }
 0x315   :  { %v8246_v33 = vpop.permute.xlu1 %3028  ;;  %3044 = vperm.xlu1 %5772, %v7637_v17  }
 0x316   :  { %v3141_v28 = vmul.f32 %v8085_v23, %v8246_v33 }
 0x319   :  { %5773 = vset.pattern.permute.xlu1 %v9571_v51 }
 0x31a   :  { %v3289_v26 = vpop.permute.xlu1 %3288  ;;  %3304 = vperm.xlu1 %5773, %v7609_v12   ;;  %v8265_v12 = vadd.f32 %v9608_v41, %v2317_v48  ;;  %v9614_v41 = vld [vmem:[#allocation40_spill] sm:$0xff] }
 0x31b   :  { %v3353_v6 = vmul.f32 %v8093_v3, %v3289_v26  ;;  %v3025_v26 = vpop.permute.xlu0 %3024 }
 0x31c   :  { %v3140_v39 = vmul.f32 %v8085_v23, %v3025_v26  ;;  %v2750_v26 = vmul.f32 %v7973_v53, %v9620_v2 }
 0x31d   :  { %v3385_v57 = vadd.f32 %v3353_v6, %v3189_v63  ;;  %v2976_v6 = vadd.f32 %v2944_v10, %v2780_v18  ;;  %v9619_v10 = vld [vmem:[#allocation35_spill] sm:$0xff]  ;;  %v2585_v18 = vadd.f32 %v7980_v52, %v2547_v16 }
 0x31e   :  { %v3293_v62 = vpop.permute.xlu1 %3292  ;;  %3308 = vperm.xlu1 %5773, %v7748_v40  }
 0x31f   :  { %v3354_v7 = vmul.f32 %v8093_v3, %v3293_v62  ;;  %v3417_v0 = vmax.f32 %v3385_v57, 0.0  ;;  %v3172_v58 = vadd.f32 %v3140_v39, %v2976_v6 }
 0x321   :  { %v3386_v5 = vadd.f32 %v3354_v7, %v3190_v8 }
 0x322   :  { %5774 = vset.pattern.permute.xlu1 %v9511_v24 }
 0x323   :  { %v3418_v46 = vmax.f32 %v3386_v5, 0.0  ;;  %v8268_v37 = vpop.permute.xlu1 %2424  ;;  %2444 = vperm.xlu1 %5774, %v8265_v12  }
 0x325   :  { %v3438_v40 = vpack.c.bf16 %v3418_v46, %v3417_v0  ;;  %v9615_v0 = vld [vmem:[#allocation64_spill] sm:$0xff] }
 0x326   :  { %v2548_v46 = vmul.f32 %v7961_v45, %v9615_v0 }
 0x327   :  { %5775 = vset.pattern.permute.xlu1 %v9581_v59  ;;  %5579 = vmatmul.mubr.bf16.gmra.mxu1 %v3438_v40 }
 0x328   :  { %v2709_v22 = vpop.permute.xlu1 %2708  ;;  %2724 = vperm.xlu1 %5775, %v9611_v34  }
 0x329   :  { %v2767_v36 = vmul.f32 %v7973_v53, %v2709_v22 }
 0x32b   :  { %v2799_v9 = vadd.f32 %v2767_v36, %v2603_v60  ;;  %v2586_v60 = vadd.f32 %v7980_v52, %v2548_v46  ;;  %v2749_v36 = vmul.f32 %v7973_v53, %v8174_v38  ;;  %v2946_v38 = vmul.f32 %v8041_v42, %v8195_v21 }
 0x32c   :  { %5776 = vset.pattern.permute.xlu1 %v9571_v51 }
 0x32d   :  { %v3217_v11 = vpop.permute.xlu1 %3216  ;;  %3232 = vperm.xlu1 %5776, %v9598_v31   ;;  %v8290_v43 = vadd.f32 %v2963_v35, %v2799_v9  ;;  %v2782_v39 = vadd.f32 %v2750_v26, %v2586_v60  ;;  %v2550_v60 = vmul.f32 %v7961_v45, %v8268_v37 }
 0x32e   :  { %v3335_v63 = vmul.f32 %v8093_v3, %v3217_v11  ;;  %v2945_v11 = vmul.f32 %v8041_v42, %v8192_v50 }
 0x330   :  { %v3367_v62 = vadd.f32 %v3335_v63, %v3171_v13  ;;  %v2781_v63 = vadd.f32 %v2749_v36, %v2585_v18  ;;  %v3033_v13 = vpop.permute.xlu0 %3032 }
 0x331   :  { %v3221_v48 = vpop.permute.xlu1 %3220  ;;  %3236 = vperm.xlu1 %5776, %v7921_v55   ;;  %v2567_v55 = vmul.f32 %v7961_v45, %v9616_v14 }
 0x332   :  { %v3336_v8 = vmul.f32 %v8093_v3, %v3221_v48  ;;  %v3399_v31 = vmax.f32 %v3367_v62, 0.0  ;;  %v2977_v62 = vadd.f32 %v2945_v11, %v2781_v63 }
 0x333   :  { %v2605_v35 = vadd.f32 %v7980_v52, %v2567_v55 }
 0x334   :  { %v3368_v57 = vadd.f32 %v3336_v8, %v3172_v58  ;;  %v2978_v58 = vadd.f32 %v2946_v38, %v2782_v39  ;;  %v3142_v8 = vmul.f32 %v8085_v23, %v3033_v13  ;;  %v3173_v21 = vadd.f32 %v3141_v28, %v2977_v62 }
 0x335   :  { %5778 = vset.pattern.permute.xlu1 %v9511_v24  ;;  %v2754_v24 = vmul.f32 %v7973_v53, %v9618_v20 }
 0x336   :  { %v3400_v7 = vmax.f32 %v3368_v57, 0.0  ;;  %v2435_v5 = vpop.permute.xlu1 %2434  ;;  %2454 = vperm.xlu1 %5778, %v9614_v41  }
 0x337   :  { %v2552_v1 = vmul.f32 %v7961_v45, %v2435_v5 }
 0x338   :  { %v3429_v40 = vpack.c.bf16 %v3400_v7, %v3399_v31  ;;  %v3174_v7 = vadd.f32 %v3142_v8, %v2978_v58  ;;  %v5900_v8 = vld [vmem:[%s9333_s5 + $0x70] sm:$0xff]  }
 0x339   :  { %v2590_v22 = vadd.f32 %v7980_v52, %v2552_v1 }
 0x33a   :  { %5779 = vset.pattern.permute.xlu1 %v9581_v59  ;;  %5562 = vmatprep.mubr.bf16.mxu0 %v3429_v40 }
 0x33b   :  { %v2717_v27 = vpop.permute.xlu1 %2716  ;;  %2732 = vperm.xlu1 %5779, %v9619_v10   ;;  %v8314_v19 = vadd.f32 %v2754_v24, %v2590_v22 }
 0x33c   :  { %v2769_v9 = vmul.f32 %v7973_v53, %v2717_v27  ;;  %v2588_v27 = vadd.f32 %v7980_v52, %v2550_v60 }
 0x33e   :  { %v8325_v6 = vadd.f32 %v2769_v9, %v2605_v35 }
 0x33f   :  { %5780 = vset.pattern.permute.xlu1 %v9571_v51 }
 0x340   :  { %v3225_v48 = vpop.permute.xlu1 %3224  ;;  %3240 = vperm.xlu1 %5780, %v7637_v17  }
 0x341   :  { %v3337_v50 = vmul.f32 %v8093_v3, %v3225_v48  ;;  %v9623_v48 = vld [vmem:[#allocation56_spill] sm:$0xff] }
 0x342   :  { %v2772_v62 = vmul.f32 %v7973_v53, %v9623_v48 }
 0x343   :  { %v3369_v31 = vadd.f32 %v3337_v50, %v3173_v21  ;;  %v5899_v50 = vld [vmem:[%s9333_s5 + $0x38] sm:$0xff]  }
 0x344   :  { %v3229_v57 = vpop.permute.xlu1 %3228  ;;  %3244 = vperm.xlu1 %5780, %v7758_v15   ;;  %v9621_v15 = vld [vmem:[#allocation20_spill] sm:$0xff] }
 0x345   :  { %v3338_v33 = vmul.f32 %v8093_v3, %v3229_v57  ;;  %v3401_v0 = vmax.f32 %v3369_v31, 0.0  ;;  %v2551_v55 = vmul.f32 %v7961_v45, %v9621_v15 }
 0x347   :  { %v3370_v5 = vadd.f32 %v3338_v33, %v3174_v7  ;;  %v2589_v16 = vadd.f32 %v7980_v52, %v2551_v55  ;;  %v9624_v7 = vld [vmem:[#allocation28_spill] sm:$0xff]  ;;  %v3105_v55 = vpop.permute.xlu0 %3104 }
 0x348   :  { %5781 = vset.pattern.permute.xlu1 %v9581_v59  ;;  %v2768_v33 = vmul.f32 %v7973_v53, %v9624_v7  ;;  %v3160_v60 = vmul.f32 %v8085_v23, %v3105_v55 }
 0x349   :  { %v3402_v46 = vmax.f32 %v3370_v5, 0.0  ;;  %v2649_v17 = vpop.permute.xlu1 %2648  ;;  %2664 = vperm.xlu1 %5781, %v8265_v12  }
 0x34b   :  { %v3430_v1 = vpack.c.bf16 %v3402_v46, %v3401_v0  ;;  %v5902_v0 = vld [vmem:[%s9333_s5 + $0xf8] sm:$0xff]   ;;  %v5903_v46 = vld [vmem:[%s9333_s5 + $0x68] sm:$0xff]  }
 0x34c   :  { %5382 = vmatprep.subr.bf16.mxu0 %v5902_v0  ;;  %v5914_v0 = vld [vmem:[%s9333_s5 + $0xe0] sm:$0xff]  }
 0x34d   :  { %5782 = vset.pattern.permute.xlu1 %v9590_v49  ;;  %5563 = vmatmul.mubr.bf16.gmra.mxu0 %v3430_v1 }
 0x34e   :  { %v2909_v14 = vpop.permute.xlu1 %2908  ;;  %2924 = vperm.xlu1 %5782, %v9593_v4  }
 0x34f   :  { %v2964_v5 = vmul.f32 %v8041_v42, %v2909_v14 }
 0x352   :  { %5783 = vset.pattern.permute.xlu1 %v9581_v59  ;;  %v2752_v59 = vmul.f32 %v7973_v53, %v2649_v17  ;;  %v5904_v17 = vld [vmem:[%s9333_s5 + $0xb8] sm:$0xff]  }
 0x353   :  { %v2653_v40 = vpop.permute.xlu1 %2652  ;;  %2668 = vperm.xlu1 %5783, %v9622_v44   ;;  %5383 = vmatpush3.bf16.msra.mxu0 %v5904_v17  ;;  %v5916_v17 = vld [vmem:[%s9333_s5 + $0xa0] sm:$0xff]  }
 0x354   :  { %v2753_v20 = vmul.f32 %v7973_v53, %v2653_v40  ;;  %v2784_v9 = vadd.f32 %v2752_v59, %v2588_v27 }
 0x356   :  { %v2785_v24 = vadd.f32 %v2753_v20, %v2589_v16  ;;  %v5905_v16 = vld [vmem:[%s9333_s5 + $0x28] sm:$0xff]  }
 0x357   :  { %5785 = vset.pattern.permute.xlu1 %v9590_v49 }
 0x358   :  { %v8346_v22 = vpop.permute.xlu1 %2912  ;;  %2928 = vperm.xlu1 %5785, %v9619_v10  }
 0x35c   :  { %v8351_v36 = vpop.permute.xlu1 %2916  ;;  %2932 = vperm.xlu1 %5785, %v9601_v54  }
 0x360   :  { %v2845_v35 = vpop.permute.xlu1 %2844  ;;  %2860 = vperm.xlu1 %5785, %v8265_v12  }
 0x361   :  { %v2948_v18 = vmul.f32 %v8041_v42, %v2845_v35 }
 0x363   :  { %v8358_v2 = vadd.f32 %v2948_v18, %v2784_v9  ;;  %v5906_v9 = vld [vmem:[%s9333_s5 + $0xf0] sm:$0xff]   ;;  %v5907_v18 = vld [vmem:[%s9333_s5 + $0x60] sm:$0xff]  }
 0x364   :  { %5787 = vset.pattern.permute.xlu1 %v9591_v32  ;;  %5384 = vmatprep.subr.bf16.mxu0 %v5906_v9 }
 0x365   :  { %v3101_v26 = vpop.permute.xlu1 %3100  ;;  %3116 = vperm.xlu1 %5787, %v9611_v34  }
 0x366   :  { %v3159_v14 = vmul.f32 %v8085_v23, %v3101_v26 }
 0x368   :  { %v3191_v59 = vadd.f32 %v3159_v14, %v8290_v43  ;;  %v5908_v43 = vld [vmem:[%s9333_s5 + $0xb0] sm:$0xff]  }
 0x369   :  { %5788 = vset.pattern.permute.xlu1 %v9590_v49  ;;  %v5898_v49 = vld [vmem:[%s9333_s5 + $0x78] sm:$0xff]   ;;  %5385 = vmatpush3.bf16.msra.mxu0 %v5908_v43  ;;  %v2966_v43 = vmul.f32 %v8041_v42, %v8351_v36 }
 0x36a   :  { %v2849_v37 = vpop.permute.xlu1 %2848  ;;  %2864 = vperm.xlu1 %5788, %v9622_v44   ;;  %5270 = vmatprep.subr.bf16.mxu1 %v5898_v49  ;;  %v5910_v49 = vld [vmem:[%s9333_s5 + $0xe8] sm:$0xff]  }
 0x36b   :  { %v2949_v11 = vmul.f32 %v8041_v42, %v2849_v37  ;;  %5271 = vmatpush3.bf16.msra.mxu1 %v5899_v50  ;;  %5386 = vmatprep.subr.bf16.mxu0 %v5910_v49 }
 0x36c   :  { %5272 = vmatprep.subr.bf16.mxu1 %v5900_v8 }
 0x36d   :  { %v8365_v38 = vadd.f32 %v2949_v11, %v2785_v24 }
 0x36e   :  { %v2853_v63 = vpop.permute.xlu1 %2852  ;;  %2868 = vperm.xlu1 %5788, %v9614_v41   ;;  %v2566_v41 = vmul.f32 %v7961_v45, %v8203_v56  ;;  %v8394_v56 = vpop.f32.mrf.mxu0 }
 0x36f   :  { %v2950_v39 = vmul.f32 %v8041_v42, %v2853_v63 }
 0x370   :  { %v2604_v21 = vadd.f32 %v7980_v52, %v2566_v41  ;;  %v8417_v1 = vpop.f32.mrf.mxu0  ;;  %v5912_v41 = vld [vmem:[%s9333_s5 + $0xa8] sm:$0xff]  }
 0x371   :  { %v8370_v28 = vadd.f32 %v2950_v39, %v8314_v19  ;;  %5387 = vmatpush3.bf16.msra.mxu0 %v5912_v41  ;;  %v5926_v41 = vld [vmem:[%s9333_s5 + $0xc8] sm:$0xff]  }
 0x372   :  { %5789 = vset.pattern.permute.xlu1 %v9591_v32  ;;  %v2800_v15 = vadd.f32 %v2768_v33, %v2604_v21  ;;  %v8430_v27 = vpop.f32.mrf.mxu0  ;;  %v2568_v33 = vmul.f32 %v7961_v45, %v8233_v61  ;;  %v5917_v61 = vld [vmem:[%s9333_s5 + $0x10] sm:$0xff]   ;;  %5388 = vmatprep.subr.bf16.mxu0 %v5914_v0 }
 0x373   :  { %v8373_v34 = vpop.permute.xlu1 %3112  ;;  %3128 = vperm.xlu1 %5789, %v9601_v54  }
 0x374   :  { %v2996_v20 = vadd.f32 %v2964_v5, %v2800_v15  ;;  %v8448_v39 = vpop.f32.mrf.mxu0 }
 0x375   :  { %5389 = vmatpush3.bf16.msra.mxu0 %v5916_v17 }
 0x376   :  { %v8466_v21 = vpop.f32.mrf.mxu0 }
 0x377   :  { %3056 = vperm.xlu1 %5789, %v8265_v12  }
 0x378   :  { %v2525_v13 = vpop.permute.xlu1 %2524 }
 0x379   :  { %v2570_v19 = vmul.f32 %v7961_v45, %v2525_v13  ;;  %v5911_v13 = vld [vmem:[%s9333_s5 + $0x58] sm:$0xff]  }
 0x37b   :  { %v2608_v58 = vadd.f32 %v7980_v52, %v2570_v19  ;;  %5790 = vset.pattern.permute.xlu1 %v9571_v51 }
 0x37c   :  { %3316 = vperm.xlu1 %5790, %v9593_v4   ;;  %v5901_v4 = vld [vmem:[%s9333_s5 + $0x30] sm:$0xff]  }
 0x37d   :  { %v8397_v57 = vpop.permute.xlu1 %3036  ;;  %v8399_v31 = vadd.f32 %v2772_v62, %v2608_v58  ;;  %5273 = vmatpush3.bf16.msra.mxu1 %v5901_v4  ;;  %v9625_v4 = vld [vmem:[#allocation38_spill] sm:$0xff] }
 0x37e   :  { %5274 = vmatprep.subr.bf16.mxu1 %v5903_v46  ;;  %v2774_v7 = vmul.f32 %v7973_v53, %v9625_v4  ;;  %v5915_v46 = vld [vmem:[%s9333_s5 + $0x50] sm:$0xff]  }
 0x380   :  { %5791 = vset.pattern.permute.xlu1 %v9591_v32  ;;  %v8425_v32 = vpop.f32.mrf.mxu1 }
 0x381   :  { %3060 = vperm.xlu1 %5791, %v9622_v44   ;;  %5275 = vmatpush3.bf16.msra.mxu1 %v5905_v16  ;;  %v3109_v16 = vpop.permute.xlu0 %3108 }
 0x382   :  { %v3297_v40 = vpop.permute.xlu1 %3296  ;;  %5276 = vmatprep.subr.bf16.mxu1 %v5907_v18  ;;  %v8446_v11 = vpop.f32.mrf.mxu1 }
 0x383   :  { %v3355_v24 = vmul.f32 %v8093_v3, %v3297_v40  ;;  %v8494_v40 = vpop.f32.mrf.mxu0 }
 0x384   :  { %v8464_v50 = vpop.f32.mrf.mxu1 }
 0x385   :  { %5793 = vset.pattern.permute.xlu1 %v9571_v51  ;;  %v3387_v26 = vadd.f32 %v3355_v24, %v3191_v59  ;;  %v3192_v51 = vadd.f32 %v3160_v60, %v2996_v20  ;;  %v2606_v20 = vadd.f32 %v7980_v52, %v2568_v33  ;;  %v5919_v24 = vld [vmem:[%s9333_s5 + $0x48] sm:$0xff]   ;;  %v5920_v60 = vld [vmem:[%s9333_s5 + $0x98] sm:$0xff]   ;;  %v5928_v33 = vld [vmem:[%s9333_s5 + $0xc0] sm:$0xff]  }
 0x386   :  { %v3301_v35 = vpop.permute.xlu1 %3300  ;;  %3320 = vperm.xlu1 %5793, %v9619_v10   ;;  %v5909_v10 = vld [vmem:[%s9333_s5 + $0x20] sm:$0xff]   ;;  %v8492_v55 = vpop.f32.mrf.mxu1  ;;  %v5921_v59 = vld [vmem:[%s9333_s5 + $0x8] sm:$0xff]  }
 0x387   :  { %v3356_v37 = vmul.f32 %v8093_v3, %v3301_v35  ;;  %5277 = vmatpush3.bf16.msra.mxu1 %v5909_v10  ;;  %v3419_v19 = vmax.f32 %v3387_v26, 0.0  ;;  %v9626_v35 = vld [vmem:[#allocation54_spill] sm:$0xff] }
 0x388   :  { %5278 = vmatprep.subr.bf16.mxu1 %v5911_v13  ;;  %v2770_v9 = vmul.f32 %v7973_v53, %v9626_v35  ;;  %v8521_v26 = vpop.f32.mrf.mxu1  ;;  %v5924_v10 = vld [vmem:[%s9333_s5 + $0x90] sm:$0xff]   ;;  %v5925_v13 = vld [vmem:[%s9333_s5] sm:$0xff]  }
 0x389   :  { %v3388_v63 = vadd.f32 %v3356_v37, %v3192_v51  ;;  %v3161_v51 = vmul.f32 %v8085_v23, %v3109_v16 }
 0x38a   :  { %3324 = vperm.xlu1 %5793, %v9601_v54   ;;  %v5913_v54 = vld [vmem:[%s9333_s5 + $0x18] sm:$0xff]   ;;  %v2802_v49 = vadd.f32 %v2770_v9, %v2606_v20  ;;  %v9627_v20 = vld [vmem:[#allocation34_spill] sm:$0xff] }
 0x38b   :  { %v3420_v48 = vmax.f32 %v3388_v63, 0.0  ;;  %v2535_v62 = vpop.permute.xlu1 %2534  ;;  %5279 = vmatpush3.bf16.msra.mxu1 %v5913_v54  ;;  %v8527_v63 = vpop.f32.mrf.mxu0 }
 0x38c   :  { %v2572_v58 = vmul.f32 %v7961_v45, %v2535_v62  ;;  %5280 = vmatprep.subr.bf16.mxu1 %v5915_v46  ;;  %v8538_v62 = vpop.f32.mrf.mxu1  ;;  %v5929_v46 = vld [vmem:[%s9333_s5 + $0x80] sm:$0xff]  }
 0x38d   :  { %v3439_v8 = vpack.c.bf16 %v3420_v48, %v3419_v19  ;;  %v2998_v19 = vadd.f32 %v2966_v43, %v2802_v49  ;;  %v3041_v49 = vpop.permute.xlu0 %3040 }
 0x38e   :  { %v2610_v5 = vadd.f32 %v7980_v52, %v2572_v58  ;;  %3252 = vperm.xlu1 %5793, %v8265_v12   ;;  %v2965_v12 = vmul.f32 %v8041_v42, %v8346_v22  ;;  %v5918_v22 = vld [vmem:[%s9333_s5 + $0xd8] sm:$0xff]   ;;  %v5922_v52 = vld [vmem:[%s9333_s5 + $0xd0] sm:$0xff]   ;;  %v8543_v58 = vpop.f32.mrf.mxu0  ;;  %v8549_v0 = vpop.f32.mrf.mxu1 }
 0x38f   :  { %5582 = vmatprep.mubr.bf16.mxu1 %v3439_v8  ;;  %5281 = vmatpush3.bf16.msra.mxu1 %v5917_v61 }
 0x390   :  { %v8488_v15 = vpop.permute.xlu1 %3044  ;;  %v8490_v14 = vadd.f32 %v2774_v7, %v2610_v5  ;;  %v2997_v18 = vadd.f32 %v2965_v12, %v8325_v6  ;;  %5390 = vmatprep.subr.bf16.mxu0 %v5918_v22  ;;  %5282 = vmatprep.subr.bf16.mxu1 %v5919_v24  ;;  %v3162_v6 = vmul.f32 %v8085_v23, %v8373_v34  ;;  %v5927_v34 = vld [vmem:[%s9333_s5 + $0x88] sm:$0xff]   ;;  %v8554_v17 = vpop.f32.mrf.mxu0 }
 0x391   :  { %5391 = vmatpush3.bf16.msra.mxu0 %v5920_v60  ;;  %v2569_v22 = vmul.f32 %v7961_v45, %v9627_v20  ;;  %v8560_v60 = vpop.f32.mrf.mxu1 }
 0x392   :  { %3256 = vperm.xlu1 %5793, %v9622_v44   ;;  %v5923_v44 = vld [vmem:[%s9333_s5 + $0x40] sm:$0xff]   ;;  %5392 = vmatprep.subr.bf16.mxu0 %v5922_v52  ;;  %v3193_v48 = vadd.f32 %v3161_v51, %v2997_v18  ;;  %v3194_v8 = vadd.f32 %v3162_v6, %v2998_v19  ;;  %v2967_v51 = vmul.f32 %v8041_v42, %v8078_v25 }
 0x393   :  { %5283 = vmatpush3.bf16.msra.mxu1 %v5921_v59  ;;  %v8562_v59 = vpop.f32.mrf.mxu0  ;;  %v8571_v18 = vpop.f32.mrf.mxu1 }
 0x394   :  { %5284 = vmatprep.subr.bf16.mxu1 %v5923_v44  ;;  %v8567_v44 = vld [vmem:[%s9330_s2 + $0xa] ss:$0 sm:$0xff]  ;;  %9628 = vst [vmem:[#allocation61_spill] sm:$0xff] %v8571_v18 }
 0x395   :  { %v3305_v37 = vpop.permute.xlu1 %3304  ;;  %5393 = vmatpush3.bf16.msra.mxu0 %v5924_v10  ;;  %v2607_v35 = vadd.f32 %v8567_v44, %v2569_v22  ;;  %v8573_v43 = vpop.f32.mrf.mxu0  ;;  %v3143_v10 = vmul.f32 %v8085_v23, %v8397_v57  ;;  %v9633_v22 = vld [vmem:[#allocation25_spill] sm:$0xff] }
 0x396   :  { %v3357_v36 = vmul.f32 %v8093_v3, %v3305_v37  ;;  %5394 = vmatprep.subr.bf16.mxu0 %v5926_v41 }
 0x397   :  { %5285 = vmatpush3.bf16.msra.mxu1 %v5925_v13  ;;  %v8581_v13 = vpop.f32.mrf.mxu1  ;;  %v8584_v19 = vpop.f32.mrf.mxu0 }
 0x398   :  { %v3389_v4 = vadd.f32 %v3357_v36, %v3193_v48  ;;  %9629 = vst [vmem:[#allocation66_spill] sm:$0xff] %v8581_v13  ;;  %v3144_v48 = vmul.f32 %v8085_v23, %v3041_v49 }
 0x399   :  { %v3309_v54 = vpop.permute.xlu1 %3308  ;;  %5395 = vmatpush3.bf16.msra.mxu0 %v5927_v34  ;;  %v8588_v25 = vpop.f32.mrf.mxu1 }
 0x39a   :  { %v3358_v7 = vmul.f32 %v8093_v3, %v3309_v54  ;;  %v3421_v61 = vmax.f32 %v3389_v4, 0.0  ;;  %5396 = vmatprep.subr.bf16.mxu0 %v5928_v33  ;;  %v3175_v54 = vadd.f32 %v3143_v10, %v8070_v30  ;;  %9630 = vst [vmem:[#allocation62_spill] sm:$0xff] %v8588_v25  ;;  %v3176_v57 = vadd.f32 %v3144_v48, %v8358_v2 }
 0x39c   :  { %v3390_v5 = vadd.f32 %v3358_v7, %v3194_v8  ;;  %v8592_v7 = vpop.f32.mrf.mxu0 }
 0x39d   :  { %5397 = vmatpush3.bf16.msra.mxu0 %v5929_v46  ;;  %9631 = vst [vmem:[#allocation68_spill] sm:$0xff] %v8592_v7 }
 0x39e   :  { %v3422_v12 = vmax.f32 %v3390_v5, 0.0  ;;  %v8556_v16 = vpop.permute.xlu1 %2444  ;;  %v8594_v5 = vpop.f32.mrf.mxu1 }
 0x39f   :  { %v8596_v20 = vpop.f32.mrf.mxu0 }
 0x3a0   :  { %v3440_v24 = vpack.c.bf16 %v3422_v12, %v3421_v61  ;;  %9632 = vst [vmem:[#allocation60_spill] sm:$0xff] %v8596_v20 }
 0x3a2   :  { %5583 = vmatmul.mubr.bf16.gmra.mxu1 %v3440_v24  ;;  %v2571_v24 = vmul.f32 %v7961_v45, %v9633_v22 }
 0x3a3   :  { %v2725_v52 = vpop.permute.xlu1 %2724 }
 0x3a4   :  { %v2771_v9 = vmul.f32 %v7973_v53, %v2725_v52 }
 0x3a6   :  { %v2803_v37 = vadd.f32 %v2771_v9, %v2607_v35  ;;  %v9634_v35 = vld [vmem:[#allocation51_spill] sm:$0xff] }
 0x3a7   :  { %v2758_v2 = vmul.f32 %v7973_v53, %v9634_v35 }
 0x3a8   :  { %v3233_v6 = vpop.permute.xlu1 %3232  ;;  %v8579_v36 = vadd.f32 %v2967_v51, %v2803_v37  ;;  %v8604_v51 = vpop.f32.mrf.mxu1 }
 0x3a9   :  { %v3339_v41 = vmul.f32 %v8093_v3, %v3233_v6  ;;  %9635 = vst [vmem:[#allocation70_spill] sm:$0xff] %v8604_v51  ;;  %v8606_v37 = vpop.f32.mrf.mxu0  ;;  %v2609_v6 = vadd.f32 %v8567_v44, %v2571_v24 }
 0x3aa   :  { %9636 = vst [vmem:[#allocation41_spill] sm:$0xff] %v8606_v37  ;;  %v8612_v48 = vpop.f32.mrf.mxu1 }
 0x3ab   :  { %v3371_v8 = vadd.f32 %v3339_v41, %v3175_v54  ;;  %9637 = vst [vmem:[#allocation43_spill] sm:$0xff] %v8612_v48 }
 0x3ac   :  { %v3237_v34 = vpop.permute.xlu1 %3236 }
 0x3ad   :  { %v3340_v4 = vmul.f32 %v8093_v3, %v3237_v34  ;;  %v3403_v46 = vmax.f32 %v3371_v8, 0.0  ;;  %v8616_v34 = vpop.f32.mrf.mxu0  ;;  %v3145_v8 = vmul.f32 %v8085_v23, %v8488_v15 }
 0x3af   :  { %v3372_v33 = vadd.f32 %v3340_v4, %v3176_v57  ;;  %v3049_v57 = vpop.permute.xlu0 %3048 }
 0x3b1   :  { %v3404_v61 = vmax.f32 %v3372_v33, 0.0  ;;  %v2455_v12 = vpop.permute.xlu1 %2454 }
 0x3b2   :  { %v2556_v30 = vmul.f32 %v7961_v45, %v2455_v12  ;;  %v3146_v12 = vmul.f32 %v8085_v23, %v3049_v57 }
 0x3b3   :  { %v3431_v52 = vpack.c.bf16 %v3404_v61, %v3403_v46  ;;  %v8621_v46 = vpop.f32.mrf.mxu1  ;;  %v8623_v61 = vpop.f32.mrf.mxu0 }
 0x3b4   :  { %v2594_v9 = vadd.f32 %v8567_v44, %v2556_v30  ;;  %9638 = vst [vmem:[#allocation47_spill] sm:$0xff] %v8621_v46  ;;  %9639 = vst [vmem:[#allocation53_spill] sm:$0xff] %v8623_v61  ;;  %v3177_v30 = vadd.f32 %v3145_v8, %v8365_v38 }
 0x3b5   :  { %5566 = vmatprep.mubr.bf16.mxu0 %v3431_v52  ;;  %v3178_v52 = vadd.f32 %v3146_v12, %v8370_v28  ;;  %v8631_v15 = vpop.f32.mrf.mxu0 }
 0x3b6   :  { %v2733_v10 = vpop.permute.xlu1 %2732  ;;  %v8608_v49 = vadd.f32 %v2758_v2, %v2594_v9  ;;  %v8629_v2 = vpop.f32.mrf.mxu1  ;;  %9641 = vst [vmem:[#allocation59_spill] sm:$0xff] %v8631_v15 }
 0x3b7   :  { %v2773_v41 = vmul.f32 %v7973_v53, %v2733_v10  ;;  %9640 = vst [vmem:[#allocation55_spill] sm:$0xff] %v8629_v2  ;;  %v8637_v57 = vpop.f32.mrf.mxu0 }
 0x3b8   :  { %9643 = vst [vmem:[#allocation67_spill] sm:$0xff] %v8637_v57 }
 0x3b9   :  { %v8614_v54 = vadd.f32 %v2773_v41, %v2609_v6 }
 0x3bb   :  { %v3241_v4 = vpop.permute.xlu1 %3240 }
 0x3bc   :  { %v3341_v33 = vmul.f32 %v8093_v3, %v3241_v4  ;;  %v8635_v4 = vpop.f32.mrf.mxu1 }
 0x3bd   :  { %9642 = vst [vmem:[#allocation65_spill] sm:$0xff] %v8635_v4 }
 0x3be   :  { %v3373_v24 = vadd.f32 %v3341_v33, %v3177_v30  ;;  %v8639_v8 = vpop.f32.mrf.mxu1  ;;  %v8641_v33 = vpop.f32.mrf.mxu0 }
 0x3bf   :  { %v3245_v22 = vpop.permute.xlu1 %3244  ;;  %9644 = vst [vmem:[#allocation71_spill] sm:$0xff] %v8639_v8  ;;  %9645 = vst [vmem:[#allocation45_spill] sm:$0xff] %v8641_v33  ;;  %v3121_v8 = vpop.permute.xlu0 %3120 }
 0x3c0   :  { %v3342_v35 = vmul.f32 %v8093_v3, %v3245_v22  ;;  %v3405_v10 = vmax.f32 %v3373_v24, 0.0  ;;  %v8643_v12 = vpop.f32.mrf.mxu1  ;;  %v8645_v30 = vpop.f32.mrf.mxu0 }
 0x3c1   :  { %9646 = vst [vmem:[#allocation57_spill] sm:$0xff] %v8643_v12  ;;  %9647 = vst [vmem:[#allocation72_spill] sm:$0xff] %v8645_v30 }
 0x3c2   :  { %v3374_v9 = vadd.f32 %v3342_v35, %v3178_v52  ;;  %v8649_v24 = vpop.f32.mrf.mxu1  ;;  %v8651_v52 = vpop.f32.mrf.mxu0 }
 0x3c3   :  { %9648 = vst [vmem:[#allocation19_spill] sm:$0xff] %v8649_v24  ;;  %9649 = vst [vmem:[#allocation18_spill] sm:$0xff] %v8651_v52  ;;  %v3125_v52 = vpop.permute.xlu0 %3124 }
 0x3c4   :  { %v3406_v6 = vmax.f32 %v3374_v9, 0.0  ;;  %v8633_v41 = vpop.permute.xlu1 %2664  ;;  %v8653_v9 = vpop.f32.mrf.mxu1 }
 0x3c5   :  { %9650 = vst [vmem:[#allocation16_spill] sm:$0xff] %v8653_v9 }
 0x3c6   :  { %v3432_v38 = vpack.c.bf16 %v3406_v6, %v3405_v10  ;;  %v8655_v10 = vpop.f32.mrf.mxu0 }
 0x3c7   :  { %9651 = vst [vmem:[#allocation21_spill] sm:$0xff] %v8655_v10 }
 0x3c8   :  { %5567 = vmatmul.mubr.bf16.gmra.mxu0 %v3432_v38  ;;  %v8657_v38 = vpop.f32.mrf.mxu1  ;;  %v8659_v4 = vpop.f32.mrf.mxu0 }
 0x3c9   :  { %v2925_v28 = vpop.permute.xlu1 %2924  ;;  %9652 = vst [vmem:[#allocation52_spill] sm:$0xff] %v8657_v38  ;;  %9653 = vst [vmem:[#allocation36_spill] sm:$0xff] %v8659_v4  ;;  %v3053_v4 = vpop.permute.xlu0 %3052 }
 0x3ca   :  { %v8663_v30 = vpop.f32.mrf.mxu1  ;;  %v8665_v61 = vpop.f32.mrf.mxu0 }
 0x3cb   :  { %9654 = vst [vmem:[#allocation32_spill] sm:$0xff] %v8663_v30  ;;  %9655 = vst [vmem:[#allocation49_spill] sm:$0xff] %v8665_v61 }
 0x3cc   :  { %v8667_v24 = vpop.f32.mrf.mxu1  ;;  %v8669_v57 = vpop.f32.mrf.mxu0 }
 0x3cd   :  { %9656 = vst [vmem:[#allocation31_spill] sm:$0xff] %v8667_v24  ;;  %9657 = vst [vmem:[#allocation23_spill] sm:$0xff] %v8669_v57  ;;  %v8683_v61 = vpop.permute.xlu0 %3064  ;;  %v2968_v57 = vmul.f32 %v8041_v42, %v2925_v28 }
 0x3ce   :  { %v8647_v22 = vpop.permute.xlu1 %2668  ;;  %v8671_v9 = vpop.f32.mrf.mxu1 }
 0x3cf   :  { %9658 = vst [vmem:[#allocation42_spill] sm:$0xff] %v8671_v9  ;;  %v8675_v38 = vpop.f32.mrf.mxu0  ;;  %v3000_v2 = vadd.f32 %v2968_v57, %v8399_v31 }
 0x3d0   :  { %9659 = vst [vmem:[#allocation39_spill] sm:$0xff] %v8675_v38  ;;  %v8677_v46 = vpop.f32.mrf.mxu1 }
 0x3d1   :  { %9660 = vst [vmem:[#allocation48_spill] sm:$0xff] %v8677_v46  ;;  %v8679_v48 = vpop.f32.mrf.mxu0  ;;  %v3313_v46 = vpop.permute.xlu0 %3312 }
 0x3d2   :  { %9661 = vst [vmem:[#allocation69_spill] sm:$0xff] %v8679_v48  ;;  %v8681_v30 = vpop.f32.mrf.mxu1  ;;  %v3359_v28 = vmul.f32 %v8093_v3, %v3313_v46 }
 0x3d3   :  { %v2929_v35 = vpop.permute.xlu1 %2928  ;;  %9662 = vst [vmem:[#allocation29_spill] sm:$0xff] %v8681_v30  ;;  %v8685_v24 = vpop.f32.mrf.mxu0 }
 0x3d4   :  { %9663 = vst [vmem:[#allocation26_spill] sm:$0xff] %v8685_v24  ;;  %v8689_v18 = vpop.f32.mrf.mxu1  ;;  %v3164_v24 = vmul.f32 %v8085_v23, %v3121_v8  ;;  %v8710_v8 = vld [vmem:[%s9330_s2 + $0x6] sm:$0xf] }
 0x3d5   :  { %9664 = vst [vmem:[#allocation24_spill] sm:$0xff] %v8689_v18  ;;  %v8691_v38 = vpop.f32.mrf.mxu0 }
 0x3d6   :  { %9665 = vst [vmem:[#allocation27_spill] sm:$0xff] %v8691_v38  ;;  %v8695_v30 = vpop.f32.mrf.mxu1  ;;  %v3196_v20 = vadd.f32 %v3164_v24, %v3000_v2  ;;  %v2554_v2 = vmul.f32 %v7961_v45, %v8556_v16  ;;  %v9671_v24 = vld [vmem:[#allocation73_spill] sm:$0xff] }
 0x3d7   :  { %v2933_v6 = vpop.permute.xlu1 %2932  ;;  %9666 = vst [vmem:[#allocation58_spill] sm:$0xff] %v8695_v30  ;;  %v8697_v37 = vpop.f32.mrf.mxu0 }
 0x3d8   :  { %9667 = vst [vmem:[#allocation17_spill] sm:$0xff] %v8697_v37  ;;  %v8702_v38 = vpop.f32.mrf.mxu1 }
 0x3d9   :  { %9668 = vst [vmem:[#allocation63_spill] sm:$0xff] %v8702_v38  ;;  %v8704_v13 = vpop.f32.mrf.mxu0 }
 0x3da   :  { %v8712_v46 = vpop.f32.mrf.mxu1 }
 0x3db   :  { %v8661_v12 = vpop.permute.xlu1 %2860  ;;  %9669 = vst [vmem:[#allocation50_spill] sm:$0xff] %v8712_v46  ;;  %v2592_v46 = vadd.f32 %v8567_v44, %v2554_v2 }
 0x3dc   :  { %v8731_v16 = vpop.f32.mrf.mxu1 }
 0x3dd   :  { %9673 = vst [vmem:[#allocation64_spill] sm:$0xff] %v8731_v16 }
 0x3e0   :  { %v3117_v51 = vpop.permute.xlu1 %3116 }
 0x3e1   :  { %v3163_v9 = vmul.f32 %v8085_v23, %v3117_v51 }
 0x3e3   :  { %v3195_v48 = vadd.f32 %v3163_v9, %v8579_v36  ;;  %v2969_v36 = vmul.f32 %v8041_v42, %v2929_v35  ;;  %v8722_v35 = vrot.slane %v8710_v8, %v9671_v24  ;;  %v9675_v24 = vld [vmem:[#allocation46_spill] sm:$0xff] }
 0x3e5   :  { %v8673_v10 = vpop.permute.xlu1 %2864  ;;  %v3391_v51 = vadd.f32 %v3359_v28, %v3195_v48  ;;  %v8714_v48 = vpop.f32.mrf.mxu0 }
 0x3e6   :  { %9670 = vst [vmem:[#allocation40_spill] sm:$0xff] %v8714_v48  ;;  %v3249_v28 = vpop.permute.xlu0 %3248 }
 0x3e7   :  { %v3423_v57 = vmax.f32 %v3391_v51, 0.0  ;;  %v2756_v51 = vmul.f32 %v7973_v53, %v8633_v41  ;;  %v2555_v41 = vmul.f32 %v7961_v45, %v9675_v24  ;;  %v8754_v24 = vpop.f32.mrf.mxu1 }
 0x3e9   :  { %v2869_v15 = vpop.permute.xlu1 %2868  ;;  %v2788_v16 = vadd.f32 %v2756_v51, %v2592_v46  ;;  %v2593_v46 = vadd.f32 %v8567_v44, %v2555_v41 }
 0x3ea   :  { %v3261_v51 = vpop.permute.xlu0 %3260 }
 0x3ee   :  { %v3129_v7 = vpop.permute.xlu1 %3128 }
 0x3f2   :  { %v3057_v33 = vpop.permute.xlu1 %3056 }
 0x3f7   :  { %v3317_v25 = vpop.permute.xlu1 %3316 }
 0x3f8   :  { %v3360_v18 = vmul.f32 %v8093_v3, %v3317_v25 }
 0x3fa   :  { %v3392_v31 = vadd.f32 %v3360_v18, %v3196_v20  ;;  %v3001_v18 = vadd.f32 %v2969_v36, %v8614_v54  ;;  %v2970_v20 = vmul.f32 %v8041_v42, %v2933_v6  ;;  %v8733_v54 = vpop.f32.mrf.mxu0  ;;  %v3165_v6 = vmul.f32 %v8085_v23, %v3125_v52 }
 0x3fb   :  { %9674 = vst [vmem:[#allocation44_spill] sm:$0xff] %v8733_v54  ;;  %v3166_v36 = vmul.f32 %v8085_v23, %v3129_v7  ;;  %v3343_v54 = vmul.f32 %v8093_v3, %v3249_v28 }
 0x3fc   :  { %v3424_v9 = vmax.f32 %v3392_v31, 0.0  ;;  %v3061_v30 = vpop.permute.xlu1 %3060  ;;  %v2954_v31 = vmul.f32 %v8041_v42, %v2869_v15  ;;  %v3147_v15 = vmul.f32 %v8085_v23, %v3053_v4  ;;  %v3002_v52 = vadd.f32 %v2970_v20, %v8490_v14 }
 0x3fd   :  { %v3197_v7 = vadd.f32 %v3165_v6, %v3001_v18  ;;  %v3148_v4 = vmul.f32 %v8085_v23, %v3057_v33 }
 0x3fe   :  { %v3441_v25 = vpack.c.bf16 %v3424_v9, %v3423_v57  ;;  %v9672_v57 = vld [vmem:[#allocation74_spill] sm:$0xff]  ;;  %v2986_v45 = vadd.f32 %v2954_v31, %v8608_v49  ;;  %v3198_v28 = vadd.f32 %v3166_v36, %v3002_v52  ;;  %v3150_v49 = vmul.f32 %v8085_v23, %v8683_v61  ;;  %v8765_v52 = vpop.f32.mrf.mxu1 }
 0x3ff   :  { %v8729_v9 = vrot.slane %v8710_v8, %v9672_v57  ;;  %v2952_v57 = vmul.f32 %v8041_v42, %v8661_v12 }
 0x400   :  { %5586 = vmatprep.mubr.bf16.mxu1 %v3441_v25  ;;  %v3182_v6 = vadd.f32 %v3150_v49, %v2986_v45 }
 0x401   :  { %v3321_v48 = vpop.permute.xlu1 %3320  ;;  %v1310_v38 = vadd.f32 %v8448_v39, %v8729_v9  ;;  %v1306_v12 = vadd.f32 %v8417_v1, %v8729_v9  ;;  %v8756_v39 = vpop.f32.mrf.mxu0  ;;  %v2984_v33 = vadd.f32 %v2952_v57, %v2788_v16  ;;  %v2953_v1 = vmul.f32 %v8041_v42, %v8673_v10 }
 0x402   :  { %v3361_v25 = vmul.f32 %v8093_v3, %v3321_v48  ;;  %v2757_v48 = vmul.f32 %v7973_v53, %v8647_v22  ;;  %v3179_v53 = vadd.f32 %v3147_v15, %v8123_v47  ;;  %v3149_v47 = vmul.f32 %v8085_v23, %v3061_v30 }
 0x403   :  { %v1660_v22 = vmax.f32 %v1310_v38, 0.0  ;;  %v3180_v36 = vadd.f32 %v3148_v4, %v2984_v33  ;;  %v8767_v44 = vpop.f32.mrf.mxu0  ;;  %v1304_v42 = vadd.f32 %v8394_v56, %v8722_v35  ;;  %v1656_v10 = vmax.f32 %v1306_v12, 0.0 }
 0x404   :  { %v3393_v37 = vadd.f32 %v3361_v25, %v3197_v7  ;;  %v3375_v20 = vadd.f32 %v3343_v54, %v3179_v53  ;;  %v2789_v31 = vadd.f32 %v2757_v48, %v2593_v46  ;;  %v9676_v16 = vsub.s32 3, %v9584_v29 }
 0x405   :  { %v3325_v2 = vpop.permute.xlu1 %3324  ;;  %v1308_v15 = vadd.f32 %v8430_v27, %v8722_v35  ;;  %v3346_v57 = vmul.f32 %v8093_v3, %v3261_v51  ;;  %v1320_v56 = vadd.f32 %v8543_v58, %v8729_v9  ;;  %v1784_v4 = vpack.c.bf16 %v1660_v22, %v1656_v10  ;;  %v8787_v12 = vpop.f32.mrf.mxu0 }
 0x406   :  { %v3362_v14 = vmul.f32 %v8093_v3, %v3325_v2  ;;  %v3425_v41 = vmax.f32 %v3393_v37, 0.0  ;;  %v8776_v54 = vrot.slane %v8710_v8, %v9676_v16  ;;  %v2985_v7 = vadd.f32 %v2953_v1, %v2789_v31  ;;  %v8785_v2 = vpop.f32.mrf.mxu1 }
 0x407   :  { %v3407_v48 = vmax.f32 %v3375_v20, 0.0  ;;  %v3378_v46 = vadd.f32 %v3346_v57, %v3182_v6  ;;  %v1659_v58 = vmax.f32 %v1308_v15, 0.0  ;;  %v1668_v1 = vmax.f32 %v1320_v56, 0.0  ;;  %v8801_v31 = vpop.f32.mrf.mxu0  ;;  %v5931_v57 = vld [vmem:[#allocation8 + $0x30] sm:$0xff]  }
 0x408   :  { %v3394_v18 = vadd.f32 %v3362_v14, %v3198_v28  ;;  %v1503_v30 = vadd.f32 %v8492_v55, %v8776_v54  ;;  %v3181_v28 = vadd.f32 %v3149_v47, %v2985_v7  ;;  %v1499_v53 = vadd.f32 %v8446_v11, %v8776_v54 }
 0x409   :  { %v3253_v25 = vpop.permute.xlu1 %3252  ;;  %v1316_v55 = vadd.f32 %v8494_v40, %v8729_v9  ;;  %v9677_v20 = vsub.s32 2, %v9584_v29  ;;  %v3410_v6 = vmax.f32 %v3378_v46, 0.0  ;;  %v1314_v16 = vadd.f32 %v8466_v21, %v8722_v35 }
 0x40a   :  { %v3426_v61 = vmax.f32 %v3394_v18, 0.0  ;;  %v3344_v38 = vmul.f32 %v8093_v3, %v3253_v25  ;;  %v1662_v22 = vmax.f32 %v1503_v30, 0.0  ;;  %v1655_v18 = vmax.f32 %v1304_v42, 0.0 }
 0x40b   :  { %v8797_v51 = vrot.slane %v8710_v8, %v9677_v20  ;;  %v1658_v40 = vmax.f32 %v1499_v53, 0.0  ;;  %v1513_v8 = vadd.f32 %v8560_v60, %v8776_v54  ;;  %v1509_v60 = vadd.f32 %v8538_v62, %v8776_v54 }
 0x40c   :  { %v3376_v23 = vadd.f32 %v3344_v38, %v3180_v36  ;;  %v3442_v37 = vpack.c.bf16 %v3426_v61, %v3425_v41  ;;  %v1664_v36 = vmax.f32 %v1316_v55, 0.0  ;;  %v1783_v25 = vpack.c.bf16 %v1659_v58, %v1655_v18 }
 0x40d   :  { %v3257_v45 = vpop.permute.xlu1 %3256  ;;  %v1501_v47 = vadd.f32 %v8464_v50, %v8797_v51  ;;  %v1318_v41 = vadd.f32 %v8527_v63, %v8722_v35  ;;  %v1330_v61 = vadd.f32 %v8584_v19, %v8729_v9  ;;  %v1786_v42 = vpack.c.bf16 %v1662_v22, %v1658_v40  ;;  %v8817_v50 = vpop.f32.mrf.mxu0  ;;  %v5930_v63 = vld [vmem:[#allocation8 + $0x38] sm:$0xff]  }
 0x40e   :  { %v3408_v27 = vmax.f32 %v3376_v23, 0.0  ;;  %v3345_v14 = vmul.f32 %v8093_v3, %v3257_v45  ;;  %5587 = vmatmul.mubr.bf16.gmra.mxu1 %v3442_v37  ;;  %v8799_v3 = vpop.f32.mrf.mxu1  ;;  %v1788_v38 = vpack.c.bf16 %v1668_v1, %v1664_v36  ;;  %v1497_v10 = vadd.f32 %v8425_v32, %v8797_v51  ;;  %5590 = vmatprep.subr.bf16.mxu1 %v5930_v63 }
 0x40f   :  { %3956 = vmatprep.mubr.bf16.mxu1 %v1784_v4  ;;  %v1326_v19 = vadd.f32 %v8562_v59, %v8729_v9  ;;  %v1661_v32 = vmax.f32 %v1501_v47, 0.0  ;;  %v1667_v7 = vmax.f32 %v1318_v41, 0.0  ;;  %v1670_v21 = vmax.f32 %v1513_v8, 0.0 }
 0x410   :  { %v3377_v49 = vadd.f32 %v3345_v14, %v3181_v28  ;;  %v3433_v33 = vpack.c.bf16 %v3408_v27, %v3407_v48  ;;  %v8815_v15 = vpop.f32.mrf.mxu1  ;;  %v1676_v23 = vmax.f32 %v1330_v61, 0.0  ;;  %v1657_v37 = vmax.f32 %v1497_v10, 0.0  ;;  %v8825_v48 = vpop.f32.mrf.mxu0  ;;  %v9681_v61 = vld [vmem:[#allocation41_spill] sm:$0xff] }
 0x411   :  { %v1663_v30 = vmax.f32 %v1314_v16, 0.0  ;;  %v1666_v45 = vmax.f32 %v1509_v60, 0.0  ;;  %v1672_v62 = vmax.f32 %v1326_v19, 0.0  ;;  %v1511_v59 = vadd.f32 %v8549_v0, %v8797_v51  ;;  %v9683_v16 = vld [vmem:[#allocation45_spill] sm:$0xff] }
 0x412   :  { %v3409_v11 = vmax.f32 %v3377_v49, 0.0  ;;  %5570 = vmatprep.mubr.bf16.mxu0 %v3433_v33  ;;  %v8823_v56 = vpop.f32.mrf.mxu1  ;;  %v1785_v4 = vpack.c.bf16 %v1661_v32, %v1657_v37  ;;  %v1328_v27 = vadd.f32 %v8573_v43, %v8722_v35  ;;  %v1523_v14 = vadd.f32 %v8594_v5, %v8776_v54  ;;  %v8841_v0 = vpop.f32.mrf.mxu0  ;;  %v9678_v43 = vld [vmem:[#allocation66_spill] sm:$0xff]  ;;  %v9684_v19 = vld [vmem:[#allocation61_spill] sm:$0xff] }
 0x413   :  { %v1787_v28 = vpack.c.bf16 %v1667_v7, %v1663_v30  ;;  %v1340_v46 = vadd.f32 %v8616_v34, %v8729_v9  ;;  %v1792_v53 = vpack.c.bf16 %v1676_v23, %v1672_v62  ;;  %v1790_v55 = vpack.c.bf16 %v1670_v21, %v1666_v45  ;;  %v9679_v34 = vld [vmem:[#allocation60_spill] sm:$0xff]  ;;  %v9686_v30 = vld [vmem:[#allocation43_spill] sm:$0xff] }
 0x414   :  { %v3434_v29 = vpack.c.bf16 %v3410_v6, %v3409_v11  ;;  %v1507_v58 = vadd.f32 %v8521_v26, %v8797_v51  ;;  %v1324_v49 = vadd.f32 %v8554_v17, %v8722_v35  ;;  %v8839_v33 = vpop.f32.mrf.mxu1  ;;  %v1519_v5 = vadd.f32 %v9678_v43, %v8776_v54  ;;  %v8849_v40 = vpop.f32.mrf.mxu0  ;;  %v9685_v7 = vld [vmem:[#allocation68_spill] sm:$0xff]  ;;  %v9687_v62 = vld [vmem:[#allocation59_spill] sm:$0xff] }
 0x415   :  { %v1336_v22 = vadd.f32 %v9679_v34, %v8729_v9  ;;  %v1669_v1 = vmax.f32 %v1511_v59, 0.0  ;;  %v1675_v18 = vmax.f32 %v1328_v27, 0.0  ;;  %v1678_v26 = vmax.f32 %v1523_v14, 0.0 }
 0x416   :  { %5571 = vmatmul.mubr.bf16.gmra.mxu0 %v3434_v29  ;;  %3957 = vmatmul.mubr.bf16.vlgmr.msra.gmra.mxu1 %v1783_v25  ;;  %v1684_v20 = vmax.f32 %v1340_v46, 0.0  ;;  %v1665_v11 = vmax.f32 %v1507_v58, 0.0  ;;  %v1671_v17 = vmax.f32 %v1324_v49, 0.0  ;;  %v8847_v6 = vpop.f32.mrf.mxu1  ;;  %v1674_v36 = vmax.f32 %v1519_v5, 0.0  ;;  %v9680_v29 = vld [vmem:[#allocation62_spill] sm:$0xff]  ;;  %v8865_v37 = vpop.f32.mrf.mxu0 }
 0x417   :  { %3964 = vmatprep.mubr.bf16.mxu1 %v1788_v38  ;;  %4117 = vmatprep.mubr.bf16.mxu0 %v1786_v42  ;;  %v1680_v25 = vmax.f32 %v1336_v22, 0.0  ;;  %v1521_v8 = vadd.f32 %v9680_v29, %v8797_v51  ;;  %v1338_v38 = vadd.f32 %v9681_v61, %v8722_v35  ;;  %v9682_v42 = vld [vmem:[#allocation55_spill] sm:$0xff]  ;;  %v1517_v32 = vadd.f32 %v9684_v19, %v8797_v51 }
 0x418   :  { %5591 = vmatpush3.bf16.msra.mxu1 %v5930_v63  ;;  %v1789_v47 = vpack.c.bf16 %v1669_v1, %v1665_v11  ;;  %v1791_v41 = vpack.c.bf16 %v1675_v18, %v1671_v17  ;;  %v1533_v10 = vadd.f32 %v9682_v42, %v8776_v54  ;;  %v1350_v63 = vadd.f32 %v9683_v16, %v8729_v9  ;;  %v8863_v23 = vpop.f32.mrf.mxu1  ;;  %v8873_v58 = vpop.f32.mrf.mxu0  ;;  %v9688_v22 = vld [vmem:[#allocation47_spill] sm:$0xff]  ;;  %v9691_v17 = vld [vmem:[#allocation36_spill] sm:$0xff] }
 0x419   :  { %5592 = vmatprep.subr.bf16.mxu1 %v5931_v57  ;;  %v1794_v60 = vpack.c.bf16 %v1678_v26, %v1674_v36  ;;  %v1334_v21 = vadd.f32 %v9685_v7, %v8722_v35  ;;  %v1529_v45 = vadd.f32 %v9686_v30, %v8776_v54  ;;  %v1683_v59 = vmax.f32 %v1338_v38, 0.0  ;;  %v9689_v18 = vld [vmem:[#allocation67_spill] sm:$0xff] }
 0x41a   :  { %v1686_v27 = vmax.f32 %v1533_v10, 0.0  ;;  %v1692_v14 = vmax.f32 %v1350_v63, 0.0  ;;  %v1673_v46 = vmax.f32 %v1517_v32, 0.0  ;;  %v1531_v1 = vadd.f32 %v9688_v22, %v8797_v51  ;;  %v8889_v42 = vpop.f32.mrf.mxu0  ;;  %v9694_v10 = vld [vmem:[#allocation71_spill] sm:$0xff]  ;;  %v9695_v63 = vld [vmem:[#allocation18_spill] sm:$0xff] }
 0x41b   :  { %v1682_v49 = vmax.f32 %v1529_v45, 0.0  ;;  %v1348_v26 = vadd.f32 %v9689_v18, %v8722_v35  ;;  %v1360_v36 = vadd.f32 %v9691_v17, %v8729_v9  ;;  %v1539_v16 = vadd.f32 %v9694_v10, %v8776_v54 }
 0x41c   :  { %5593 = vmatpush3.bf16.msra.mxu1 %v5931_v57  ;;  %v1796_v57 = vpack.c.bf16 %v1684_v20, %v1680_v25  ;;  %v9690_v20 = vld [vmem:[#allocation19_spill] sm:$0xff] }
 0x41d   :  { %v1543_v11 = vadd.f32 %v9690_v20, %v8776_v54  ;;  %v1691_v19 = vmax.f32 %v1348_v26, 0.0  ;;  %v1700_v7 = vmax.f32 %v1360_v36, 0.0  ;;  %v9700_v26 = vld [vmem:[#allocation65_spill] sm:$0xff] }
 0x41e   :  { %3965 = vmatmul.mubr.bf16.gmra.mxu1 %v1787_v28  ;;  %4118 = vmatmul.mubr.bf16.vlgmr.msra.gmra.mxu0 %v1785_v4  ;;  %v1346_v4 = vadd.f32 %v9687_v62, %v8729_v9  ;;  %v1677_v28 = vmax.f32 %v1521_v8, 0.0  ;;  %v9693_v8 = vld [vmem:[#allocation53_spill] sm:$0xff]  ;;  %v8897_v62 = vpop.f32.mrf.mxu0  ;;  %v1537_v20 = vadd.f32 %v9700_v26, %v8797_v51 }
 0x41f   :  { %3972 = vmatprep.mubr.bf16.mxu1 %v1792_v53  ;;  %4125 = vmatprep.mubr.bf16.mxu0 %v1790_v55  ;;  %v1679_v53 = vmax.f32 %v1334_v21, 0.0  ;;  %v8871_v55 = vpop.f32.mrf.mxu1  ;;  %v1344_v61 = vadd.f32 %v9693_v8, %v8722_v35  ;;  %v1694_v32 = vmax.f32 %v1543_v11, 0.0  ;;  %v9701_v11 = vld [vmem:[#allocation72_spill] sm:$0xff] }
 0x420   :  { %v1688_v43 = vmax.f32 %v1346_v4, 0.0  ;;  %v1793_v5 = vpack.c.bf16 %v1677_v28, %v1673_v46  ;;  %v1690_v4 = vmax.f32 %v1539_v16, 0.0  ;;  %v1354_v17 = vadd.f32 %v9701_v11, %v8722_v35  ;;  %v9709_v11 = vld [vmem:[#allocation48_spill] sm:$0xff] }
 0x421   :  { %v1795_v34 = vpack.c.bf16 %v1683_v59, %v1679_v53  ;;  %v8887_v38 = vpop.f32.mrf.mxu1  ;;  %v1687_v30 = vmax.f32 %v1344_v61, 0.0  ;;  %v9697_v53 = vld [vmem:[#allocation21_spill] sm:$0xff] }
 0x422   :  { %v1800_v25 = vpack.c.bf16 %v1692_v14, %v1688_v43  ;;  %v9696_v14 = vld [vmem:[#allocation57_spill] sm:$0xff]  ;;  %v9698_v43 = vld [vmem:[#allocation31_spill] sm:$0xff]  ;;  %v1802_v18 = vpack.c.bf16 %v1694_v32, %v1690_v4 }
 0x423   :  { %v8895_v45 = vpop.f32.mrf.mxu1  ;;  %v1541_v46 = vadd.f32 %v9696_v14, %v8797_v51 }
 0x425   :  { %v8911_v36 = vpop.f32.mrf.mxu1  ;;  %v1693_v61 = vmax.f32 %v1541_v46, 0.0  ;;  %v9706_v46 = vld [vmem:[#allocation24_spill] sm:$0xff] }
 0x426   :  { %3973 = vmatmul.mubr.bf16.gmra.mxu1 %v1791_v41  ;;  %4126 = vmatmul.mubr.bf16.gmra.mxu0 %v1789_v47  ;;  %v1798_v47 = vpack.c.bf16 %v1686_v27, %v1682_v49  ;;  %v9692_v41 = vld [vmem:[#allocation70_spill] sm:$0xff]  ;;  %v1799_v27 = vpack.c.bf16 %v1691_v19, %v1687_v30  ;;  %v1358_v49 = vadd.f32 %v9697_v53, %v8722_v35 }
 0x427   :  { %3980 = vmatprep.mubr.bf16.mxu1 %v1796_v57  ;;  %4133 = vmatprep.mubr.bf16.mxu0 %v1794_v60  ;;  %v1527_v29 = vadd.f32 %v9692_v41, %v8797_v51  ;;  %v1356_v57 = vadd.f32 %v9695_v63, %v8729_v9  ;;  %v1685_v60 = vmax.f32 %v1531_v1, 0.0  ;;  %v8919_v19 = vpop.f32.mrf.mxu1  ;;  %v1563_v53 = vadd.f32 %v9706_v46, %v8776_v54 }
 0x428   :  { %v1699_v10 = vmax.f32 %v1358_v49, 0.0  ;;  %v1380_v49 = vadd.f32 %v8704_v13, %v8729_v9 }
 0x429   :  { %v1681_v21 = vmax.f32 %v1527_v29, 0.0  ;;  %v1696_v28 = vmax.f32 %v1356_v57, 0.0  ;;  %v9703_v29 = vld [vmem:[#allocation23_spill] sm:$0xff]  ;;  %v1689_v57 = vmax.f32 %v1537_v20, 0.0  ;;  %v8935_v26 = vpop.f32.mrf.mxu1 }
 0x42a   :  { %v1366_v8 = vadd.f32 %v9703_v29, %v8729_v9 }
 0x42b   :  { %v1797_v59 = vpack.c.bf16 %v1685_v60, %v1681_v21  ;;  %v1804_v1 = vpack.c.bf16 %v1700_v7, %v1696_v28  ;;  %v1695_v60 = vmax.f32 %v1354_v17, 0.0  ;;  %v1801_v30 = vpack.c.bf16 %v1693_v61, %v1689_v57  ;;  %v9704_v28 = vld [vmem:[#allocation32_spill] sm:$0xff] }
 0x42c   :  { %v1704_v21 = vmax.f32 %v1366_v8, 0.0  ;;  %v1559_v17 = vadd.f32 %v9709_v11, %v8776_v54  ;;  %v1710_v8 = vmax.f32 %v1563_v53, 0.0  ;;  %v1716_v61 = vmax.f32 %v1380_v49, 0.0 }
 0x42d   :  { %v1803_v4 = vpack.c.bf16 %v1699_v10, %v1695_v60  ;;  %v1390_v53 = vadd.f32 %v8767_v44, %v8729_v9 }
 0x42e   :  { %3981 = vmatmul.mubr.bf16.gmra.mxu1 %v1795_v34  ;;  %4134 = vmatmul.mubr.bf16.gmra.mxu0 %v1793_v5  ;;  %v1553_v5 = vadd.f32 %v9698_v43, %v8776_v54  ;;  %v9699_v34 = vld [vmem:[#allocation69_spill] sm:$0xff]  ;;  %v1706_v60 = vmax.f32 %v1559_v17, 0.0  ;;  %v9716_v17 = vld [vmem:[#allocation63_spill] sm:$0xff] }
 0x42f   :  { %3988 = vmatprep.mubr.bf16.mxu1 %v1800_v25  ;;  %4141 = vmatprep.mubr.bf16.mxu0 %v1798_v47  ;;  %v1370_v22 = vadd.f32 %v9699_v34, %v8729_v9  ;;  %v8913_v25 = vpop.f32.mrf.mxu0  ;;  %v9702_v47 = vld [vmem:[#allocation52_spill] sm:$0xff] }
 0x430   :  { %v1549_v41 = vadd.f32 %v9702_v47, %v8776_v54  ;;  %v1702_v16 = vmax.f32 %v1553_v5, 0.0  ;;  %v9707_v34 = vld [vmem:[#allocation16_spill] sm:$0xff]  ;;  %v9710_v47 = vld [vmem:[#allocation27_spill] sm:$0xff] }
 0x431   :  { %v1708_v63 = vmax.f32 %v1370_v22, 0.0  ;;  %v8921_v32 = vpop.f32.mrf.mxu0  ;;  %v1547_v22 = vadd.f32 %v9707_v34, %v8797_v51  ;;  %v1376_v13 = vadd.f32 %v9710_v47, %v8729_v9  ;;  %v1569_v47 = vadd.f32 %v9716_v17, %v8776_v54 }
 0x432   :  { %v1698_v7 = vmax.f32 %v1549_v41, 0.0 }
 0x433   :  { %v1808_v43 = vpack.c.bf16 %v1708_v63, %v1704_v21  ;;  %v8937_v20 = vpop.f32.mrf.mxu0  ;;  %v1697_v10 = vmax.f32 %v1547_v22, 0.0  ;;  %v8943_v63 = vpop.f32.mrf.mxu1  ;;  %v9715_v22 = vld [vmem:[#allocation26_spill] sm:$0xff] }
 0x434   :  { %v1806_v5 = vpack.c.bf16 %v1702_v16, %v1698_v7  ;;  %v1712_v7 = vmax.f32 %v1376_v13, 0.0  ;;  %v9717_v13 = vld [vmem:[#allocation44_spill] sm:$0xff] }
 0x435   :  { %v8945_v57 = vpop.f32.mrf.mxu0  ;;  %v1386_v44 = vadd.f32 %v9717_v13, %v8729_v9 }
 0x436   :  { %3989 = vmatmul.mubr.bf16.gmra.mxu1 %v1799_v27  ;;  %4142 = vmatmul.mubr.bf16.gmra.mxu0 %v1797_v59  ;;  %v1551_v59 = vadd.f32 %v9704_v28, %v8797_v51  ;;  %v9705_v27 = vld [vmem:[#allocation39_spill] sm:$0xff]  ;;  %v1812_v49 = vpack.c.bf16 %v1716_v61, %v1712_v7  ;;  %v1724_v61 = vmax.f32 %v1390_v53, 0.0 }
 0x437   :  { %3996 = vmatprep.mubr.bf16.mxu1 %v1804_v1  ;;  %4149 = vmatprep.mubr.bf16.mxu0 %v1802_v18  ;;  %v1368_v14 = vadd.f32 %v9705_v27, %v8722_v35  ;;  %v9708_v1 = vld [vmem:[#allocation49_spill] sm:$0xff]  ;;  %v8961_v11 = vpop.f32.mrf.mxu0 }
 0x438   :  { %v1364_v18 = vadd.f32 %v9708_v1, %v8722_v35  ;;  %v1701_v41 = vmax.f32 %v1551_v59, 0.0  ;;  %v9712_v27 = vld [vmem:[#allocation17_spill] sm:$0xff]  ;;  %v9713_v59 = vld [vmem:[#allocation64_spill] sm:$0xff]  ;;  %v1374_v1 = vadd.f32 %v9715_v22, %v8722_v35 }
 0x439   :  { %v1707_v29 = vmax.f32 %v1368_v14, 0.0  ;;  %v1378_v46 = vadd.f32 %v9712_v27, %v8722_v35  ;;  %v1573_v14 = vadd.f32 %v9713_v59, %v8776_v54  ;;  %v8969_v7 = vpop.f32.mrf.mxu0  ;;  %v9718_v59 = vld [vmem:[#allocation50_spill] sm:$0xff]  ;;  %v9720_v22 = vld [vmem:[#allocation40_spill] sm:$0xff] }
 0x43a   :  { %v1703_v16 = vmax.f32 %v1364_v18, 0.0  ;;  %v1805_v21 = vpack.c.bf16 %v1701_v41, %v1697_v10  ;;  %v8959_v18 = vpop.f32.mrf.mxu1 }
 0x43e   :  { %3997 = vmatmul.mubr.bf16.gmra.mxu1 %v1803_v4  ;;  %4150 = vmatmul.mubr.bf16.gmra.mxu0 %v1801_v30  ;;  %v1807_v30 = vpack.c.bf16 %v1707_v29, %v1703_v16  ;;  %v9711_v4 = vld [vmem:[#allocation29_spill] sm:$0xff]  ;;  %v1715_v29 = vmax.f32 %v1378_v46, 0.0  ;;  %v1711_v16 = vmax.f32 %v1374_v1, 0.0  ;;  %v1400_v46 = vadd.f32 %v8825_v48, %v8729_v9 }
 0x43f   :  { %4004 = vmatprep.mubr.bf16.mxu1 %v1808_v43  ;;  %4157 = vmatprep.mubr.bf16.mxu0 %v1806_v5  ;;  %v1561_v28 = vadd.f32 %v9711_v4, %v8797_v51  ;;  %v1810_v43 = vpack.c.bf16 %v1710_v8, %v1706_v60  ;;  %v9714_v5 = vld [vmem:[#allocation42_spill] sm:$0xff]  ;;  %v1718_v8 = vmax.f32 %v1573_v14, 0.0  ;;  %v8967_v60 = vpop.f32.mrf.mxu1  ;;  %v1384_v1 = vadd.f32 %v9720_v22, %v8722_v35 }
 0x440   :  { %v1557_v34 = vadd.f32 %v9714_v5, %v8797_v51  ;;  %v1811_v27 = vpack.c.bf16 %v1715_v29, %v1711_v16  ;;  %v1571_v5 = vadd.f32 %v9718_v59, %v8797_v51  ;;  %v1396_v48 = vadd.f32 %v8801_v31, %v8729_v9 }
 0x441   :  { %v1709_v41 = vmax.f32 %v1561_v28, 0.0  ;;  %v1583_v28 = vadd.f32 %v8799_v3, %v8776_v54  ;;  %v8983_v17 = vpop.f32.mrf.mxu1  ;;  %v1579_v3 = vadd.f32 %v8765_v52, %v8776_v54  ;;  %v1732_v29 = vmax.f32 %v1400_v46, 0.0 }
 0x442   :  { %v1705_v10 = vmax.f32 %v1557_v34, 0.0  ;;  %v1717_v13 = vmax.f32 %v1571_v5, 0.0  ;;  %v1581_v31 = vadd.f32 %v8785_v2, %v8797_v51  ;;  %v1593_v59 = vadd.f32 %v8847_v6, %v8776_v54 }
 0x443   :  { %v1410_v5 = vadd.f32 %v8873_v58, %v8729_v9  ;;  %v1577_v46 = vadd.f32 %v8754_v24, %v8797_v51  ;;  %v1406_v6 = vadd.f32 %v8849_v40, %v8729_v9  ;;  %v1408_v40 = vadd.f32 %v8865_v37, %v8722_v35 }
 0x444   :  { %v1809_v4 = vpack.c.bf16 %v1709_v41, %v1705_v10  ;;  %v1726_v41 = vmax.f32 %v1583_v28, 0.0  ;;  %v8991_v10 = vpop.f32.mrf.mxu1  ;;  %v1725_v58 = vmax.f32 %v1581_v31, 0.0  ;;  %v1734_v24 = vmax.f32 %v1593_v59, 0.0 }
 0x445   :  { %v1721_v22 = vmax.f32 %v1577_v46, 0.0  ;;  %v1599_v37 = vadd.f32 %v8871_v55, %v8776_v54 }
 0x446   :  { %4005 = vmatmul.mubr.bf16.gmra.mxu1 %v1807_v30  ;;  %4158 = vmatmul.mubr.bf16.gmra.mxu0 %v1805_v21  ;;  %v1714_v30 = vmax.f32 %v1569_v47, 0.0  ;;  %v1720_v21 = vmax.f32 %v1386_v44, 0.0  ;;  %v8985_v47 = vpop.f32.mrf.mxu0 }
 0x447   :  { %4012 = vmatprep.mubr.bf16.mxu1 %v1812_v49  ;;  %4165 = vmatprep.mubr.bf16.mxu0 %v1810_v43  ;;  %v1388_v49 = vadd.f32 %v8756_v39, %v8722_v35  ;;  %v9719_v43 = vld [vmem:[#allocation58_spill] sm:$0xff]  ;;  %v5932_v39 = vld [vmem:[#allocation8 + $0x28] sm:$0xff]  }
 0x448   :  { %v1816_v14 = vpack.c.bf16 %v1724_v61, %v1720_v21  ;;  %v1814_v53 = vpack.c.bf16 %v1718_v8, %v1714_v30  ;;  %v1567_v34 = vadd.f32 %v9719_v43, %v8797_v51  ;;  %5594 = vmatprep.subr.bf16.mxu1 %v5932_v39  ;;  %v1719_v61 = vmax.f32 %v1384_v1, 0.0  ;;  %v8993_v16 = vpop.f32.mrf.mxu0 }
 0x449   :  { %v1723_v44 = vmax.f32 %v1388_v49, 0.0  ;;  %5595 = vmatpush3.bf16.msra.mxu1 %v5932_v39  ;;  %v1722_v30 = vmax.f32 %v1579_v3, 0.0  ;;  %v1728_v21 = vmax.f32 %v1396_v48, 0.0  ;;  %v1736_v48 = vmax.f32 %v1406_v6, 0.0 }
 0x44a   :  { %v1713_v8 = vmax.f32 %v1567_v34, 0.0  ;;  %v9009_v2 = vpop.f32.mrf.mxu0  ;;  %v1740_v34 = vmax.f32 %v1410_v5, 0.0  ;;  %v1613_v6 = vadd.f32 %v8943_v63, %v8776_v54  ;;  %v1426_v63 = vadd.f32 %v8945_v57, %v8729_v9 }
 0x44b   :  { %v1820_v49 = vpack.c.bf16 %v1732_v29, %v1728_v21  ;;  %v1818_v28 = vpack.c.bf16 %v1726_v41, %v1722_v30  ;;  %v1603_v41 = vadd.f32 %v8895_v45, %v8776_v54  ;;  %v1420_v29 = vadd.f32 %v8921_v32, %v8729_v9  ;;  %v5933_v32 = vld [vmem:[#allocation8 + $0x20] sm:$0xff]  }
 0x44c   :  { %v1813_v52 = vpack.c.bf16 %v1717_v13, %v1713_v8  ;;  %v9017_v39 = vpop.f32.mrf.mxu0  ;;  %v1817_v13 = vpack.c.bf16 %v1725_v58, %v1721_v22  ;;  %v1824_v8 = vpack.c.bf16 %v1740_v34, %v1736_v48  ;;  %v1587_v30 = vadd.f32 %v8815_v15, %v8797_v51  ;;  %5596 = vmatprep.subr.bf16.mxu1 %v5933_v32 }
 0x44d   :  { %v1404_v21 = vadd.f32 %v8841_v0, %v8722_v35  ;;  %v1416_v45 = vadd.f32 %v8897_v62, %v8729_v9  ;;  %v1739_v15 = vmax.f32 %v1408_v40, 0.0  ;;  %v1742_v31 = vmax.f32 %v1603_v41, 0.0  ;;  %5597 = vmatpush3.bf16.msra.mxu1 %v5933_v32 }
 0x44e   :  { %4013 = vmatmul.mubr.bf16.gmra.mxu1 %v1811_v27  ;;  %4166 = vmatmul.mubr.bf16.gmra.mxu0 %v1809_v4  ;;  %v1815_v4 = vpack.c.bf16 %v1723_v44, %v1719_v61  ;;  %v1398_v27 = vadd.f32 %v8817_v50, %v8722_v35  ;;  %v1589_v50 = vadd.f32 %v8823_v56, %v8776_v54  ;;  %v1729_v0 = vmax.f32 %v1587_v30, 0.0 }
 0x44f   :  { %4020 = vmatprep.mubr.bf16.mxu1 %v1816_v14  ;;  %4173 = vmatprep.mubr.bf16.mxu0 %v1814_v53  ;;  %v1394_v14 = vadd.f32 %v8787_v12, %v8722_v35  ;;  %v9007_v53 = vpop.f32.mrf.mxu1  ;;  %v1591_v56 = vadd.f32 %v8839_v33, %v8797_v51  ;;  %v9033_v33 = vpop.f32.mrf.mxu0  ;;  %v1735_v59 = vmax.f32 %v1404_v21, 0.0  ;;  %v1744_v55 = vmax.f32 %v1416_v45, 0.0 }
 0x450   :  { %v1731_v43 = vmax.f32 %v1398_v27, 0.0  ;;  %v1730_v3 = vmax.f32 %v1589_v50, 0.0  ;;  %v1748_v27 = vmax.f32 %v1420_v29, 0.0  ;;  %v1601_v62 = vadd.f32 %v8887_v38, %v8797_v51  ;;  %v5934_v29 = vld [vmem:[#allocation8 + $0x18] sm:$0xff]  }
 0x451   :  { %v1727_v12 = vmax.f32 %v1394_v14, 0.0  ;;  %v9015_v1 = vpop.f32.mrf.mxu1  ;;  %v1823_v14 = vpack.c.bf16 %v1739_v15, %v1735_v59  ;;  %v1418_v50 = vadd.f32 %v8913_v25, %v8722_v35  ;;  %v1430_v58 = vadd.f32 %v8969_v7, %v8729_v9  ;;  %5598 = vmatprep.subr.bf16.mxu1 %v5934_v29 }
 0x452   :  { %v1822_v61 = vpack.c.bf16 %v1734_v24, %v1730_v3  ;;  %v1597_v34 = vadd.f32 %v8863_v23, %v8797_v51  ;;  %v1414_v22 = vadd.f32 %v8889_v42, %v8722_v35  ;;  %v1609_v25 = vadd.f32 %v8919_v19, %v8776_v54  ;;  %5599 = vmatpush3.bf16.msra.mxu1 %v5934_v29 }
 0x453   :  { %v1819_v44 = vpack.c.bf16 %v1731_v43, %v1727_v12  ;;  %v1828_v43 = vpack.c.bf16 %v1748_v27, %v1744_v55  ;;  %v1741_v7 = vmax.f32 %v1601_v62, 0.0  ;;  %v1747_v3 = vmax.f32 %v1418_v50, 0.0 }
 0x454   :  { %v1750_v23 = vmax.f32 %v1613_v6, 0.0  ;;  %v1756_v48 = vmax.f32 %v1430_v58, 0.0  ;;  %v1743_v42 = vmax.f32 %v1414_v22, 0.0  ;;  %v1746_v40 = vmax.f32 %v1609_v25, 0.0 }
 0x455   :  { %v1752_v41 = vmax.f32 %v1426_v63, 0.0  ;;  %v1611_v19 = vadd.f32 %v8935_v26, %v8797_v51  ;;  %v1428_v57 = vadd.f32 %v8961_v11, %v8722_v35  ;;  %v1623_v30 = vadd.f32 %v8991_v10, %v8776_v54 }
 0x456   :  { %4021 = vmatmul.mubr.bf16.gmra.mxu1 %v1815_v4  ;;  %4174 = vmatmul.mubr.bf16.gmra.mxu0 %v1813_v52  ;;  %v9031_v52 = vpop.f32.mrf.mxu1  ;;  %v1733_v4 = vmax.f32 %v1591_v56, 0.0  ;;  %v1440_v21 = vadd.f32 %v9017_v39, %v8729_v9  ;;  %v1830_v45 = vpack.c.bf16 %v1750_v23, %v1746_v40  ;;  %v1607_v32 = vadd.f32 %v8911_v36, %v8797_v51  ;;  %v5935_v39 = vld [vmem:[#allocation8 + $0x10] sm:$0xff]  }
 0x457   :  { %4028 = vmatprep.mubr.bf16.mxu1 %v1820_v49  ;;  %4181 = vmatprep.mubr.bf16.mxu0 %v1818_v28  ;;  %v9041_v49 = vpop.f32.mrf.mxu0  ;;  %v1738_v28 = vmax.f32 %v1599_v37, 0.0  ;;  %v1832_v37 = vpack.c.bf16 %v1756_v48, %v1752_v41  ;;  %v1619_v11 = vadd.f32 %v8967_v60, %v8776_v54  ;;  %v1436_v10 = vadd.f32 %v8993_v16, %v8729_v9 }
 0x458   :  { %v9039_v5 = vpop.f32.mrf.mxu1  ;;  %v1821_v46 = vpack.c.bf16 %v1733_v4, %v1729_v0  ;;  %v1424_v4 = vadd.f32 %v8937_v20, %v8722_v35  ;;  %v1755_v36 = vmax.f32 %v1428_v57, 0.0  ;;  %v1758_v27 = vmax.f32 %v1623_v30, 0.0  ;;  %5600 = vmatprep.subr.bf16.mxu1 %v5935_v39 }
 0x459   :  { %v1826_v24 = vpack.c.bf16 %v1742_v31, %v1738_v28  ;;  %v9057_v38 = vpop.f32.mrf.mxu0  ;;  %v1749_v31 = vmax.f32 %v1611_v19, 0.0  ;;  %v1764_v20 = vmax.f32 %v1440_v21, 0.0  ;;  %v1745_v0 = vmax.f32 %v1607_v32, 0.0  ;;  %5601 = vmatpush3.bf16.msra.mxu1 %v5935_v39 }
 0x45a   :  { %v9055_v12 = vpop.f32.mrf.mxu1  ;;  %v1751_v59 = vmax.f32 %v1424_v4, 0.0  ;;  %v1621_v16 = vadd.f32 %v8983_v17, %v8797_v51  ;;  %v1438_v50 = vadd.f32 %v9009_v2, %v8722_v35  ;;  %v1633_v6 = vadd.f32 %v9039_v5, %v8776_v54 }
 0x45b   :  { %v1449_v56 = vpop.f32.mrf.mxu0  ;;  %v1829_v62 = vpack.c.bf16 %v1749_v31, %v1745_v0  ;;  %v1617_v22 = vadd.f32 %v8959_v18, %v8797_v51  ;;  %v1434_v25 = vadd.f32 %v8985_v47, %v8722_v35  ;;  %v1629_v2 = vadd.f32 %v9015_v1, %v8776_v54 }
 0x45c   :  { %v1831_v60 = vpack.c.bf16 %v1755_v36, %v1751_v59  ;;  %v1450_v58 = vadd.f32 %v1449_v56, %v8729_v9  ;;  %v1446_v5 = vadd.f32 %v9041_v49, %v8729_v9  ;;  %v1763_v23 = vmax.f32 %v1438_v50, 0.0 }
 0x45d   :  { %v9079_v26 = vpop.f32.mrf.mxu0  ;;  %v1766_v18 = vmax.f32 %v1633_v6, 0.0  ;;  %v1753_v47 = vmax.f32 %v1617_v22, 0.0  ;;  %v1762_v40 = vmax.f32 %v1629_v2, 0.0  ;;  %v1631_v49 = vadd.f32 %v9031_v52, %v8797_v51 }
 0x45e   :  { %4029 = vmatmul.mubr.bf16.gmra.mxu1 %v1819_v44  ;;  %4182 = vmatmul.mubr.bf16.gmra.mxu0 %v1817_v13  ;;  %v1737_v13 = vmax.f32 %v1597_v34, 0.0  ;;  %v9063_v44 = vpop.f32.mrf.mxu1  ;;  %v5936_v34 = vld [vmem:[#allocation8 + $0x8] sm:$0xff]   ;;  %v1772_v48 = vmax.f32 %v1450_v58, 0.0  ;;  %v1768_v41 = vmax.f32 %v1446_v5, 0.0  ;;  %v1627_v21 = vadd.f32 %v9007_v53, %v8797_v51 }
 0x45f   :  { %4036 = vmatprep.mubr.bf16.mxu1 %v1824_v8  ;;  %4189 = vmatprep.mubr.bf16.mxu0 %v1822_v61  ;;  %v1827_v61 = vpack.c.bf16 %v1747_v3, %v1743_v42  ;;  %v1455_v55 = vpop.f32.mrf.mxu0  ;;  %v1757_v3 = vmax.f32 %v1621_v16, 0.0  ;;  %v1838_v30 = vpack.c.bf16 %v1766_v18, %v1762_v40  ;;  %v1639_v52 = vadd.f32 %v9063_v44, %v8776_v54 }
 0x460   :  { %v1825_v8 = vpack.c.bf16 %v1741_v7, %v1737_v13  ;;  %v9077_v15 = vpop.f32.mrf.mxu1  ;;  %v5937_v7 = vld [vmem:[#allocation8] sm:$0xff]   ;;  %5602 = vmatprep.subr.bf16.mxu1 %v5936_v34  ;;  %v1759_v13 = vmax.f32 %v1434_v25, 0.0  ;;  %v1840_v57 = vpack.c.bf16 %v1772_v48, %v1768_v41  ;;  %v1765_v32 = vmax.f32 %v1631_v49, 0.0 }
 0x461   :  { %v1457_v17 = vpop.f32.mrf.mxu0  ;;  %5603 = vmatpush3.bf16.msra.mxu1 %v5936_v34  ;;  %v1833_v1 = vpack.c.bf16 %v1757_v3, %v1753_v47  ;;  %v1761_v39 = vmax.f32 %v1627_v21, 0.0  ;;  %v1770_v36 = vmax.f32 %v1639_v52, 0.0  ;;  %v1641_v0 = vadd.f32 %v9077_v15, %v8797_v51 }
 0x462   :  { %v1642_v28 = vpop.f32.mrf.mxu1  ;;  %5604 = vmatprep.subr.bf16.mxu1 %v5937_v7  ;;  %v1835_v29 = vpack.c.bf16 %v1763_v23, %v1759_v13  ;;  %v1458_v44 = vadd.f32 %v1457_v17, %v8722_v35 }
 0x463   :  { %v1459_v56 = vpop.f32.mrf.mxu0 }
 0x464   :  { %v9096_v63 = vpop.f32.mrf.mxu1  ;;  %v1460_v19 = vadd.f32 %v1459_v56, %v8729_v9  ;;  %v1779_v15 = vmax.f32 %v1458_v44, 0.0 }
 0x465   :  { %5605 = vmatpush3.bf16.msra.mxu1 %v5937_v7  ;;  %v5560_v2 = vpop.f32.mrf.mxu0 }
 0x466   :  { %4037 = vmatmul.mubr.bf16.gmra.mxu1 %v1823_v14  ;;  %4190 = vmatmul.mubr.bf16.gmra.mxu0 %v1821_v46  ;;  %v1754_v46 = vmax.f32 %v1619_v11, 0.0  ;;  %v1760_v14 = vmax.f32 %v1436_v10, 0.0  ;;  %v1648_v42 = vpop.f32.mrf.mxu1  ;;  %v1780_v10 = vmax.f32 %v1460_v19, 0.0 }
 0x467   :  { %4044 = vmatprep.mubr.bf16.mxu1 %v1828_v43  ;;  %4197 = vmatprep.mubr.bf16.mxu0 %v1826_v24  ;;  %v3605_v7 = vpop.f32.mrf.mxu0 }
 0x468   :  { %v1836_v43 = vpack.c.bf16 %v1764_v20, %v1760_v14  ;;  %v1834_v24 = vpack.c.bf16 %v1758_v27, %v1754_v46  ;;  %v1454_v46 = vadd.f32 %v9079_v26, %v8722_v35  ;;  %v1649_v14 = vadd.f32 %v1648_v42, %v8776_v54 }
 0x46a   :  { %v1775_v50 = vmax.f32 %v1454_v46, 0.0  ;;  %v1778_v6 = vmax.f32 %v1649_v14, 0.0 }
 0x46e   :  { %4045 = vmatmul.mubr.bf16.gmra.mxu1 %v1827_v61  ;;  %4198 = vmatmul.mubr.bf16.gmra.mxu0 %v1825_v8  ;;  %v1448_v8 = vadd.f32 %v9057_v38, %v8722_v35  ;;  %v1643_v61 = vadd.f32 %v1642_v28, %v8776_v54  ;;  %v1456_v38 = vadd.f32 %v1455_v55, %v8729_v9 }
 0x46f   :  { %4052 = vmatprep.mubr.bf16.mxu1 %v1832_v37  ;;  %4205 = vmatprep.mubr.bf16.mxu0 %v1830_v45  ;;  %v1444_v37 = vadd.f32 %v9033_v33, %v8722_v35  ;;  %v1650_v45 = vpop.f32.mrf.mxu1  ;;  %v1837_v33 = vpack.c.bf16 %v1765_v32, %v1761_v39  ;;  %v1637_v55 = vadd.f32 %v9055_v12, %v8797_v51 }
 0x470   :  { %v1771_v4 = vmax.f32 %v1448_v8, 0.0  ;;  %v1774_v11 = vmax.f32 %v1643_v61, 0.0  ;;  %v1776_v27 = vmax.f32 %v1456_v38, 0.0  ;;  %v1647_v35 = vadd.f32 %v9096_v63, %v8797_v51 }
 0x471   :  { %v1767_v31 = vmax.f32 %v1444_v37, 0.0  ;;  %v1652_v53 = vpop.f32.mrf.mxu1  ;;  %v1769_v16 = vmax.f32 %v1637_v55, 0.0  ;;  %v9188_v55 = vld [vmem:[%s9330_s2 + $0xb] ss:$0 sm:$0xff] }
 0x472   :  { %v1653_v9 = vadd.f32 %v1652_v53, %v8776_v54  ;;  %v1844_v59 = vpack.c.bf16 %v1780_v10, %v1776_v27  ;;  %v1842_v28 = vpack.c.bf16 %v1774_v11, %v1770_v36  ;;  %v1777_v26 = vmax.f32 %v1647_v35, 0.0 }
 0x473   :  { %v1839_v20 = vpack.c.bf16 %v1771_v4, %v1767_v31  ;;  %v9127_v22 = vpop.f32.mrf.mxu1 }
 0x475   :  { %v9129_v25 = vpop.f32.mrf.mxu1 }
 0x476   :  { %4053 = vmatmul.mubr.bf16.gmra.mxu1 %v1831_v60  ;;  %4206 = vmatmul.mubr.bf16.gmra.mxu0 %v1829_v62  ;;  %v1773_v62 = vmax.f32 %v1641_v0, 0.0  ;;  %v1782_v60 = vmax.f32 %v1653_v9, 0.0 }
 0x477   :  { %4060 = vmatprep.mubr.bf16.mxu1 %v1836_v43  ;;  %4213 = vmatprep.mubr.bf16.mxu0 %v1834_v24  ;;  %v1843_v43 = vpack.c.bf16 %v1779_v15, %v1775_v50  ;;  %v1651_v24 = vadd.f32 %v1650_v45, %v8797_v51  ;;  %v9131_v17 = vpop.f32.mrf.mxu1  ;;  %v9137_v51 = vpop.f32.mrf.mxu0 }
 0x478   :  { %v1841_v58 = vpack.c.bf16 %v1773_v62, %v1769_v16  ;;  %v1846_v12 = vpack.c.bf16 %v1782_v60, %v1778_v6 }
 0x479   :  { %v1781_v54 = vmax.f32 %v1651_v24, 0.0  ;;  %v9133_v5 = vpop.f32.mrf.mxu1  ;;  %v3608_v23 = vpop.f32.mrf.mxu0  ;;  %v5939_v24 = vld [vmem:[#allocation10 + $0x30] sm:$0xff]  }
 0x47b   :  { %v1845_v34 = vpack.c.bf16 %v1781_v54, %v1777_v26  ;;  %v9135_v3 = vpop.f32.mrf.mxu1  ;;  %v9143_v48 = vpop.f32.mrf.mxu0 }
 0x47d   :  { %v9139_v63 = vpop.f32.mrf.mxu1  ;;  %v9147_v13 = vpop.f32.mrf.mxu0 }
 0x47e   :  { %4061 = vmatmul.mubr.bf16.gmra.mxu1 %v1835_v29  ;;  %4214 = vmatmul.mubr.bf16.gmra.mxu0 %v1833_v1 }
 0x47f   :  { %4068 = vmatprep.mubr.bf16.mxu1 %v1840_v57  ;;  %4221 = vmatprep.mubr.bf16.mxu0 %v1838_v30  ;;  %v9141_v18 = vpop.f32.mrf.mxu1  ;;  %v9151_v56 = vpop.f32.mrf.mxu0 }
 0x481   :  { %v9145_v47 = vpop.f32.mrf.mxu1  ;;  %v9155_v41 = vpop.f32.mrf.mxu0 }
 0x483   :  { %v9149_v42 = vpop.f32.mrf.mxu1 }
 0x485   :  { %v9153_v40 = vpop.f32.mrf.mxu1 }
 0x486   :  { %4069 = vmatmul.mubr.bf16.gmra.mxu1 %v1839_v20  ;;  %4222 = vmatmul.mubr.bf16.gmra.mxu0 %v1837_v33 }
 0x487   :  { %4076 = vmatprep.mubr.bf16.mxu1 %v1844_v59  ;;  %4229 = vmatprep.mubr.bf16.mxu0 %v1842_v28  ;;  %v9157_v1 = vpop.f32.mrf.mxu1 }
 0x488   :  { %v9159_v29 = vpop.f32.mrf.mxu0 }
 0x489   :  { %v9161_v49 = vpop.f32.mrf.mxu1 }
 0x48a   :  { %v9163_v8 = vpop.f32.mrf.mxu0 }
 0x48c   :  { %v9167_v19 = vpop.f32.mrf.mxu0 }
 0x48e   :  { %4077 = vmatmul.mubr.bf16.gmra.mxu1 %v1843_v43  ;;  %4230 = vmatmul.mubr.bf16.gmra.mxu0 %v1841_v58  ;;  %v9173_v21 = vpop.f32.mrf.mxu0  ;;  %v5938_v43 = vld [vmem:[#allocation10 + $0x38] sm:$0xff]  }
 0x48f   :  { %4237 = vmatprep.mubr.bf16.mxu0 %v1846_v12  ;;  %5638 = vmatprep.subr.bf16.mxu0 %v5938_v43 }
 0x490   :  { %5639 = vmatpush3.bf16.msra.mxu0 %v5938_v43 }
 0x491   :  { %5640 = vmatprep.subr.bf16.mxu0 %v5939_v24 }
 0x494   :  { %5641 = vmatpush3.bf16.msra.mxu0 %v5939_v24  ;;  %v5942_v24 = vld [vmem:[#allocation10 + $0x18] sm:$0xff]  }
 0x496   :  { %4238 = vmatmul.mubr.bf16.gmra.mxu0 %v1845_v34 }
 0x4ce   :  { %v9165_v61 = vpop.f32.mrf.mxu1 }
 0x4d0   :  { %v9169_v57 = vpop.f32.mrf.mxu1 }
 0x4d2   :  { %v9171_v30 = vpop.f32.mrf.mxu1 }
 0x4d4   :  { %v9175_v37 = vpop.f32.mrf.mxu1 }
 0x4d6   :  { %v9177_v45 = vpop.f32.mrf.mxu0  ;;  %v5286_v52 = vpop.f32.mrf.mxu1 }
 0x4d8   :  { %v9179_v38 = vpop.f32.mrf.mxu0  ;;  %v5287_v32 = vpop.f32.mrf.mxu1 }
 0x4d9   :  { %v5288_v31 = vadd.f32 %v5287_v32, %v5286_v52 }
 0x4da   :  { %v9181_v4 = vpop.f32.mrf.mxu0  ;;  %v5289_v11 = vpop.f32.mrf.mxu1 }
 0x4db   :  { %v3959_v20 = vadd.f32 %v5288_v31, %v3605_v7  ;;  %v5940_v31 = vld [vmem:[#allocation10 + $0x28] sm:$0xff]  }
 0x4dc   :  { %v9183_v10 = vpop.f32.mrf.mxu0  ;;  %v5290_v39 = vpop.f32.mrf.mxu1  ;;  %5642 = vmatprep.subr.bf16.mxu0 %v5940_v31 }
 0x4dd   :  { %v5291_v0 = vadd.f32 %v5290_v39, %v5289_v11  ;;  %5643 = vmatpush3.bf16.msra.mxu0 %v5940_v31 }
 0x4de   :  { %v5292_v53 = vpop.f32.mrf.mxu1  ;;  %v5398_v36 = vpop.f32.mrf.mxu0 }
 0x4df   :  { %v3962_v62 = vadd.f32 %v5291_v0, %v3608_v23 }
 0x4e0   :  { %v5293_v27 = vpop.f32.mrf.mxu1  ;;  %v5399_v33 = vpop.f32.mrf.mxu0 }
 0x4e1   :  { %v5400_v44 = vadd.f32 %v5399_v33, %v5398_v36  ;;  %v5294_v15 = vadd.f32 %v5293_v27, %v5292_v53 }
 0x4e2   :  { %v5295_v9 = vpop.f32.mrf.mxu1  ;;  %v5401_v59 = vpop.f32.mrf.mxu0 }
 0x4e3   :  { %v4120_v28 = vadd.f32 %v5400_v44, %v3959_v20  ;;  %v3967_v54 = vadd.f32 %v5560_v2, %v5294_v15 }
 0x4e4   :  { %v5296_v46 = vpop.f32.mrf.mxu1  ;;  %v5402_v14 = vpop.f32.mrf.mxu0 }
 0x4e5   :  { %v5403_v60 = vadd.f32 %v5402_v14, %v5401_v59  ;;  %v4253_v6 = vadd.f32 %v9188_v55, %v4120_v28  ;;  %v5297_v26 = vadd.f32 %v5296_v46, %v5295_v9  ;;  %v5941_v28 = vld [vmem:[#allocation10 + $0x20] sm:$0xff]  }
 0x4e6   :  { %v5298_v16 = vpop.f32.mrf.mxu1  ;;  %v5404_v50 = vpop.f32.mrf.mxu0  ;;  %5644 = vmatprep.subr.bf16.mxu0 %v5941_v28 }
 0x4e7   :  { %v4123_v58 = vadd.f32 %v5403_v60, %v3962_v62  ;;  %v4285_v23 = vmax.f32 %v4253_v6, 0.0  ;;  %v3970_v27 = vadd.f32 %v9137_v51, %v5297_v26  ;;  %5645 = vmatpush3.bf16.msra.mxu0 %v5941_v28 }
 0x4e8   :  { %v5299_v12 = vpop.f32.mrf.mxu1  ;;  %v5405_v35 = vpop.f32.mrf.mxu0  ;;  %5646 = vmatprep.subr.bf16.mxu0 %v5942_v24 }
 0x4e9   :  { %v4254_v34 = vadd.f32 %v9188_v55, %v4123_v58  ;;  %v5406_v7 = vadd.f32 %v5405_v35, %v5404_v50  ;;  %v5300_v33 = vadd.f32 %v5299_v12, %v5298_v16 }
 0x4ea   :  { %v5301_v52 = vpop.f32.mrf.mxu1  ;;  %v5407_v32 = vpop.f32.mrf.mxu0 }
 0x4eb   :  { %v4286_v11 = vmax.f32 %v4254_v34, 0.0  ;;  %v4128_v39 = vadd.f32 %v5406_v7, %v3967_v54  ;;  %v3975_v62 = vadd.f32 %v5300_v33, %v9147_v13  ;;  %5647 = vmatpush3.bf16.msra.mxu0 %v5942_v24 }
 0x4ec   :  { %v5302_v53 = vpop.f32.mrf.mxu1  ;;  %v5408_v36 = vpop.f32.mrf.mxu0 }
 0x4ed   :  { %v5409_v20 = vadd.f32 %v5408_v36, %v5407_v32  ;;  %v4317_v2 = vpack.c.bf16 %v4286_v11, %v4285_v23  ;;  %v4255_v9 = vadd.f32 %v9188_v55, %v4128_v39  ;;  %v5303_v15 = vadd.f32 %v5302_v53, %v5301_v52 }
 0x4ee   :  { %v5304_v0 = vpop.f32.mrf.mxu1  ;;  %v5410_v44 = vpop.f32.mrf.mxu0 }
 0x4ef   :  { %v4131_v59 = vadd.f32 %v5409_v20, %v3970_v27  ;;  %5606 = vmatprep.mubr.bf16.mxu1 %v4317_v2  ;;  %v4287_v6 = vmax.f32 %v4255_v9, 0.0  ;;  %v3978_v54 = vadd.f32 %v5303_v15, %v9155_v41 }
 0x4f0   :  { %v5305_v46 = vpop.f32.mrf.mxu1  ;;  %v5411_v14 = vpop.f32.mrf.mxu0 }
 0x4f1   :  { %v4256_v60 = vadd.f32 %v9188_v55, %v4131_v59  ;;  %v5412_v51 = vadd.f32 %v5411_v14, %v5410_v44  ;;  %v5306_v34 = vadd.f32 %v5305_v46, %v5304_v0 }
 0x4f2   :  { %v5307_v16 = vpop.f32.mrf.mxu1  ;;  %v5413_v50 = vpop.f32.mrf.mxu0 }
 0x4f3   :  { %v4288_v58 = vmax.f32 %v4256_v60, 0.0  ;;  %v4136_v43 = vadd.f32 %v5412_v51, %v3975_v62  ;;  %v3983_v31 = vadd.f32 %v9143_v48, %v5306_v34 }
 0x4f4   :  { %v5308_v12 = vpop.f32.mrf.mxu1  ;;  %v5414_v35 = vpop.f32.mrf.mxu0 }
 0x4f5   :  { %v4318_v26 = vpack.c.bf16 %v4288_v58, %v4287_v6  ;;  %v5415_v7 = vadd.f32 %v5414_v35, %v5413_v50  ;;  %v4257_v32 = vadd.f32 %v9188_v55, %v4136_v43  ;;  %v5309_v53 = vadd.f32 %v5308_v12, %v5307_v16 }
 0x4f6   :  { %v5310_v13 = vpop.f32.mrf.mxu1  ;;  %v5416_v52 = vpop.f32.mrf.mxu0 }
 0x4f7   :  { %v4139_v23 = vadd.f32 %v5415_v7, %v3978_v54  ;;  %5607 = vmatmul.mubr.bf16.vlgmr.msra.gmra.mxu1 %v4318_v26  ;;  %v4289_v20 = vmax.f32 %v4257_v32, 0.0  ;;  %v3986_v59 = vadd.f32 %v9151_v56, %v5309_v53 }
 0x4f8   :  { %v5311_v11 = vpop.f32.mrf.mxu1  ;;  %v5417_v39 = vpop.f32.mrf.mxu0 }
 0x4f9   :  { %v4258_v36 = vadd.f32 %v9188_v55, %v4139_v23  ;;  %v5418_v27 = vadd.f32 %v5417_v39, %v5416_v52  ;;  %v5312_v28 = vadd.f32 %v5311_v11, %v5310_v13 }
 0x4fa   :  { %v5313_v41 = vpop.f32.mrf.mxu1  ;;  %v5419_v33 = vpop.f32.mrf.mxu0 }
 0x4fb   :  { %v4290_v2 = vmax.f32 %v4258_v36, 0.0  ;;  %v4144_v0 = vadd.f32 %v5418_v27, %v3983_v31  ;;  %v3991_v50 = vadd.f32 %v5312_v28, %v9163_v8 }
 0x4fc   :  { %v5314_v44 = vpop.f32.mrf.mxu1  ;;  %v5420_v9 = vpop.f32.mrf.mxu0 }
 0x4fd   :  { %v5421_v46 = vadd.f32 %v5420_v9, %v5419_v33  ;;  %v4319_v14 = vpack.c.bf16 %v4290_v2, %v4289_v20  ;;  %v4259_v48 = vadd.f32 %v9188_v55, %v4144_v0  ;;  %v5315_v6 = vadd.f32 %v5314_v44, %v5313_v41 }
 0x4fe   :  { %v5316_v62 = vpop.f32.mrf.mxu1  ;;  %v5422_v15 = vpop.f32.mrf.mxu0 }
 0x4ff   :  { %v4147_v60 = vadd.f32 %v5421_v46, %v3986_v59  ;;  %5610 = vmatprep.mubr.bf16.mxu1 %v4319_v14  ;;  %v4291_v56 = vmax.f32 %v4259_v48, 0.0  ;;  %v3994_v7 = vadd.f32 %v5315_v6, %v9173_v21 }
 0x500   :  { %v5317_v51 = vpop.f32.mrf.mxu1  ;;  %v5423_v16 = vpop.f32.mrf.mxu0 }
 0x501   :  { %v4260_v58 = vadd.f32 %v9188_v55, %v4147_v60  ;;  %v5424_v43 = vadd.f32 %v5423_v16, %v5422_v15  ;;  %v5318_v52 = vadd.f32 %v5317_v51, %v5316_v62 }
 0x502   :  { %v5319_v24 = vpop.f32.mrf.mxu1  ;;  %v5425_v12 = vpop.f32.mrf.mxu0 }
 0x503   :  { %v4292_v35 = vmax.f32 %v4260_v58, 0.0  ;;  %v4152_v54 = vadd.f32 %v5424_v43, %v3991_v50  ;;  %v3999_v36 = vadd.f32 %v9159_v29, %v5318_v52 }
 0x504   :  { %v5320_v26 = vpop.f32.mrf.mxu1  ;;  %v5426_v34 = vpop.f32.mrf.mxu0 }
 0x505   :  { %v4320_v13 = vpack.c.bf16 %v4292_v35, %v4291_v56  ;;  %v5427_v32 = vadd.f32 %v5426_v34, %v5425_v12  ;;  %v4261_v8 = vadd.f32 %v9188_v55, %v4152_v54  ;;  %v5321_v27 = vadd.f32 %v5320_v26, %v5319_v24 }
 0x506   :  { %v5322_v23 = vpop.f32.mrf.mxu1  ;;  %v5428_v11 = vpop.f32.mrf.mxu0 }
 0x507   :  { %v4155_v39 = vadd.f32 %v5427_v32, %v3994_v7  ;;  %5611 = vmatmul.mubr.bf16.gmra.mxu1 %v4320_v13  ;;  %v4293_v21 = vmax.f32 %v4261_v8, 0.0  ;;  %v4002_v28 = vadd.f32 %v9167_v19, %v5321_v27 }
 0x508   :  { %v5323_v31 = vpop.f32.mrf.mxu1  ;;  %v5429_v53 = vpop.f32.mrf.mxu0 }
 0x509   :  { %v4262_v41 = vadd.f32 %v9188_v55, %v4155_v39  ;;  %v5430_v33 = vadd.f32 %v5429_v53, %v5428_v11  ;;  %v5324_v46 = vadd.f32 %v5323_v31, %v5322_v23 }
 0x50a   :  { %v5325_v20 = vpop.f32.mrf.mxu1  ;;  %v5431_v2 = vpop.f32.mrf.mxu0 }
 0x50b   :  { %v4294_v0 = vmax.f32 %v4262_v41, 0.0  ;;  %v4160_v44 = vadd.f32 %v5430_v33, %v3999_v36  ;;  %v4007_v50 = vadd.f32 %v5324_v46, %v9179_v38 }
 0x50c   :  { %v5326_v9 = vpop.f32.mrf.mxu1  ;;  %v5432_v59 = vpop.f32.mrf.mxu0 }
 0x50d   :  { %v5433_v14 = vadd.f32 %v5432_v59, %v5431_v2  ;;  %v4321_v62 = vpack.c.bf16 %v4294_v0, %v4293_v21  ;;  %v4263_v29 = vadd.f32 %v9188_v55, %v4160_v44  ;;  %v5327_v6 = vadd.f32 %v5326_v9, %v5325_v20 }
 0x50e   :  { %v5328_v15 = vpop.f32.mrf.mxu1  ;;  %v5434_v48 = vpop.f32.mrf.mxu0 }
 0x50f   :  { %v4163_v60 = vadd.f32 %v5433_v14, %v4002_v28  ;;  %5614 = vmatprep.mubr.bf16.mxu1 %v4321_v62  ;;  %v4295_v19 = vmax.f32 %v4263_v29, 0.0  ;;  %v4010_v34 = vadd.f32 %v5327_v6, %v9183_v10 }
 0x510   :  { %v5329_v51 = vpop.f32.mrf.mxu1  ;;  %v5435_v16 = vpop.f32.mrf.mxu0 }
 0x511   :  { %v4264_v58 = vadd.f32 %v9188_v55, %v4163_v60  ;;  %v5436_v43 = vadd.f32 %v5435_v16, %v5434_v48  ;;  %v5330_v13 = vadd.f32 %v5329_v51, %v5328_v15 }
 0x512   :  { %v5331_v24 = vpop.f32.mrf.mxu1  ;;  %v5437_v12 = vpop.f32.mrf.mxu0 }
 0x513   :  { %v4296_v56 = vmax.f32 %v4264_v58, 0.0  ;;  %v4168_v35 = vadd.f32 %v5436_v43, %v4007_v50  ;;  %v4015_v31 = vadd.f32 %v9177_v45, %v5330_v13 }
 0x514   :  { %v5332_v54 = vpop.f32.mrf.mxu1  ;;  %v5438_v26 = vpop.f32.mrf.mxu0 }
 0x515   :  { %v4322_v7 = vpack.c.bf16 %v4296_v56, %v4295_v19  ;;  %v5439_v52 = vadd.f32 %v5438_v26, %v5437_v12  ;;  %v4265_v38 = vadd.f32 %v9188_v55, %v4168_v35  ;;  %v5333_v53 = vadd.f32 %v5332_v54, %v5331_v24 }
 0x516   :  { %v5334_v32 = vpop.f32.mrf.mxu1  ;;  %v5440_v23 = vpop.f32.mrf.mxu0 }
 0x517   :  { %v4171_v11 = vadd.f32 %v5439_v52, %v4010_v34  ;;  %5615 = vmatmul.mubr.bf16.gmra.mxu1 %v4322_v7  ;;  %v4297_v10 = vmax.f32 %v4265_v38, 0.0  ;;  %v4018_v44 = vadd.f32 %v9181_v4, %v5333_v53 }
 0x518   :  { %v5335_v8 = vpop.f32.mrf.mxu1  ;;  %v5441_v39 = vpop.f32.mrf.mxu0 }
 0x519   :  { %v4266_v36 = vadd.f32 %v9188_v55, %v4171_v11  ;;  %v5442_v27 = vadd.f32 %v5441_v39, %v5440_v23  ;;  %v5336_v9 = vadd.f32 %v5335_v8, %v5334_v32 }
 0x51a   :  { %v5337_v41 = vpop.f32.mrf.mxu1  ;;  %v5443_v33 = vpop.f32.mrf.mxu0 }
 0x51b   :  { %v4298_v20 = vmax.f32 %v4266_v36, 0.0  ;;  %v4176_v2 = vadd.f32 %v5442_v27, %v4015_v31  ;;  %v4023_v29 = vadd.f32 %v5336_v9, %v9129_v25 }
 0x51c   :  { %v5338_v21 = vpop.f32.mrf.mxu1  ;;  %v5444_v0 = vpop.f32.mrf.mxu0 }
 0x51d   :  { %v5445_v59 = vadd.f32 %v5444_v0, %v5443_v33  ;;  %v4323_v28 = vpack.c.bf16 %v4298_v20, %v4297_v10  ;;  %v4267_v45 = vadd.f32 %v9188_v55, %v4176_v2  ;;  %v5339_v60 = vadd.f32 %v5338_v21, %v5337_v41 }
 0x51e   :  { %v5340_v46 = vpop.f32.mrf.mxu1  ;;  %v5446_v14 = vpop.f32.mrf.mxu0 }
 0x51f   :  { %v4179_v62 = vadd.f32 %v5445_v59, %v4018_v44  ;;  %5618 = vmatprep.mubr.bf16.mxu1 %v4323_v28  ;;  %v4299_v4 = vmax.f32 %v4267_v45, 0.0  ;;  %v4026_v19 = vadd.f32 %v5339_v60, %v9133_v5 }
 0x520   :  { %v5341_v15 = vpop.f32.mrf.mxu1  ;;  %v5447_v48 = vpop.f32.mrf.mxu0 }
 0x521   :  { %v4268_v51 = vadd.f32 %v9188_v55, %v4179_v62  ;;  %v5448_v16 = vadd.f32 %v5447_v48, %v5446_v14  ;;  %v5342_v35 = vadd.f32 %v5341_v15, %v5340_v46 }
 0x522   :  { %v5343_v50 = vpop.f32.mrf.mxu1  ;;  %v5449_v6 = vpop.f32.mrf.mxu0 }
 0x523   :  { %v4300_v58 = vmax.f32 %v4268_v51, 0.0  ;;  %v4184_v43 = vadd.f32 %v5448_v16, %v4023_v29  ;;  %v4031_v32 = vadd.f32 %v9127_v22, %v5342_v35 }
 0x524   :  { %v5344_v24 = vpop.f32.mrf.mxu1  ;;  %v5450_v12 = vpop.f32.mrf.mxu0 }
 0x525   :  { %v4324_v56 = vpack.c.bf16 %v4300_v58, %v4299_v4  ;;  %v5451_v54 = vadd.f32 %v5450_v12, %v5449_v6  ;;  %v4269_v25 = vadd.f32 %v9188_v55, %v4184_v43  ;;  %v5345_v23 = vadd.f32 %v5344_v24, %v5343_v50 }
 0x526   :  { %v5346_v26 = vpop.f32.mrf.mxu1  ;;  %v5452_v34 = vpop.f32.mrf.mxu0 }
 0x527   :  { %v4187_v7 = vadd.f32 %v5451_v54, %v4026_v19  ;;  %5619 = vmatmul.mubr.bf16.gmra.mxu1 %v4324_v56  ;;  %v4301_v5 = vmax.f32 %v4269_v25, 0.0  ;;  %v4034_v41 = vadd.f32 %v9131_v17, %v5345_v23 }
 0x528   :  { %v5347_v13 = vpop.f32.mrf.mxu1  ;;  %v5453_v52 = vpop.f32.mrf.mxu0 }
 0x529   :  { %v4270_v38 = vadd.f32 %v9188_v55, %v4187_v7  ;;  %v5454_v11 = vadd.f32 %v5453_v52, %v5452_v34  ;;  %v5348_v33 = vadd.f32 %v5347_v13, %v5346_v26 }
 0x52a   :  { %v5349_v8 = vpop.f32.mrf.mxu1  ;;  %v5455_v39 = vpop.f32.mrf.mxu0 }
 0x52b   :  { %v4302_v31 = vmax.f32 %v4270_v38, 0.0  ;;  %v4192_v53 = vadd.f32 %v5454_v11, %v4031_v32  ;;  %v4039_v59 = vadd.f32 %v5348_v33, %v9139_v63  ;;  %v5943_v32 = vld [vmem:[#allocation10 + $0x10] sm:$0xff]  }
 0x52c   :  { %v5350_v36 = vpop.f32.mrf.mxu1  ;;  %v5456_v27 = vpop.f32.mrf.mxu0  ;;  %5648 = vmatprep.subr.bf16.mxu0 %v5943_v32 }
 0x52d   :  { %v5457_v10 = vadd.f32 %v5456_v27, %v5455_v39  ;;  %v4325_v20 = vpack.c.bf16 %v4302_v31, %v4301_v5  ;;  %v4271_v22 = vadd.f32 %v9188_v55, %v4192_v53  ;;  %v5351_v28 = vadd.f32 %v5350_v36, %v5349_v8  ;;  %5649 = vmatpush3.bf16.msra.mxu0 %v5943_v32 }
 0x52e   :  { %v5352_v2 = vpop.f32.mrf.mxu1  ;;  %v5458_v21 = vpop.f32.mrf.mxu0 }
 0x52f   :  { %v4195_v0 = vadd.f32 %v5457_v10, %v4034_v41  ;;  %5622 = vmatprep.mubr.bf16.mxu1 %v4325_v20  ;;  %v4303_v17 = vmax.f32 %v4271_v22, 0.0  ;;  %v4042_v51 = vadd.f32 %v5351_v28, %v9145_v47 }
 0x530   :  { %v5353_v44 = vpop.f32.mrf.mxu1  ;;  %v5459_v9 = vpop.f32.mrf.mxu0 }
 0x531   :  { %v4272_v46 = vadd.f32 %v9188_v55, %v4195_v0  ;;  %v5460_v14 = vadd.f32 %v5459_v9, %v5458_v21  ;;  %v5354_v50 = vadd.f32 %v5353_v44, %v5352_v2  ;;  %v5944_v2 = vld [vmem:[#allocation10 + $0x8] sm:$0xff]   ;;  %v5945_v21 = vld [vmem:[#allocation10] sm:$0xff]  }
 0x532   :  { %v5355_v45 = vpop.f32.mrf.mxu1  ;;  %v5461_v62 = vpop.f32.mrf.mxu0  ;;  %5650 = vmatprep.subr.bf16.mxu0 %v5944_v2 }
 0x533   :  { %v4304_v15 = vmax.f32 %v4272_v46, 0.0  ;;  %v4200_v48 = vadd.f32 %v5460_v14, %v4039_v59  ;;  %v4047_v19 = vadd.f32 %v9135_v3, %v5354_v50  ;;  %5651 = vmatpush3.bf16.msra.mxu0 %v5944_v2 }
 0x534   :  { %v5356_v29 = vpop.f32.mrf.mxu1  ;;  %v5462_v60 = vpop.f32.mrf.mxu0  ;;  %5652 = vmatprep.subr.bf16.mxu0 %v5945_v21 }
 0x535   :  { %v4326_v16 = vpack.c.bf16 %v4304_v15, %v4303_v17  ;;  %v5463_v6 = vadd.f32 %v5462_v60, %v5461_v62  ;;  %v4273_v63 = vadd.f32 %v9188_v55, %v4200_v48  ;;  %v5357_v56 = vadd.f32 %v5356_v29, %v5355_v45 }
 0x536   :  { %v5358_v4 = vpop.f32.mrf.mxu1  ;;  %v5464_v58 = vpop.f32.mrf.mxu0 }
 0x537   :  { %v4203_v43 = vadd.f32 %v5463_v6, %v4042_v51  ;;  %5623 = vmatmul.mubr.bf16.gmra.mxu1 %v4326_v16  ;;  %v4305_v47 = vmax.f32 %v4273_v63, 0.0  ;;  %v4050_v23 = vadd.f32 %v9141_v18, %v5357_v56  ;;  %5653 = vmatpush3.bf16.msra.mxu0 %v5945_v21 }
 0x538   :  { %v5359_v24 = vpop.f32.mrf.mxu1  ;;  %v5465_v12 = vpop.f32.mrf.mxu0 }
 0x539   :  { %v4274_v35 = vadd.f32 %v9188_v55, %v4203_v43  ;;  %v5466_v54 = vadd.f32 %v5465_v12, %v5464_v58  ;;  %v5360_v38 = vadd.f32 %v5359_v24, %v5358_v4 }
 0x53a   :  { %v5361_v26 = vpop.f32.mrf.mxu1  ;;  %v5467_v34 = vpop.f32.mrf.mxu0 }
 0x53b   :  { %v4306_v25 = vmax.f32 %v4274_v35, 0.0  ;;  %v4208_v7 = vadd.f32 %v5466_v54, %v4047_v19  ;;  %v4055_v27 = vadd.f32 %v5360_v38, %v9153_v40 }
 0x53c   :  { %v5362_v13 = vpop.f32.mrf.mxu1  ;;  %v5468_v52 = vpop.f32.mrf.mxu0 }
 0x53d   :  { %v5469_v11 = vadd.f32 %v5468_v52, %v5467_v34  ;;  %v4327_v8 = vpack.c.bf16 %v4306_v25, %v4305_v47  ;;  %v4275_v3 = vadd.f32 %v9188_v55, %v4208_v7  ;;  %v5363_v41 = vadd.f32 %v5362_v13, %v5361_v26 }
 0x53e   :  { %v5364_v39 = vpop.f32.mrf.mxu1  ;;  %v5470_v5 = vpop.f32.mrf.mxu0 }
 0x53f   :  { %v4211_v31 = vadd.f32 %v5469_v11, %v4050_v23  ;;  %5626 = vmatprep.mubr.bf16.mxu1 %v4327_v8  ;;  %v4307_v22 = vmax.f32 %v4275_v3, 0.0  ;;  %v4058_v28 = vadd.f32 %v5363_v41, %v9161_v49 }
 0x540   :  { %v5365_v53 = vpop.f32.mrf.mxu1  ;;  %v5471_v36 = vpop.f32.mrf.mxu0 }
 0x541   :  { %v4276_v33 = vadd.f32 %v9188_v55, %v4211_v31  ;;  %v5472_v10 = vadd.f32 %v5471_v36, %v5470_v5  ;;  %v5366_v14 = vadd.f32 %v5365_v53, %v5364_v39 }
 0x542   :  { %v5367_v18 = vpop.f32.mrf.mxu1  ;;  %v5473_v20 = vpop.f32.mrf.mxu0 }
 0x543   :  { %v4308_v0 = vmax.f32 %v4276_v33, 0.0  ;;  %v4216_v44 = vadd.f32 %v5472_v10, %v4055_v27  ;;  %v4063_v60 = vadd.f32 %v9149_v42, %v5366_v14 }
 0x544   :  { %v5368_v9 = vpop.f32.mrf.mxu1  ;;  %v5474_v59 = vpop.f32.mrf.mxu0 }
 0x545   :  { %v4328_v46 = vpack.c.bf16 %v4308_v0, %v4307_v22  ;;  %v5475_v45 = vadd.f32 %v5474_v59, %v5473_v20  ;;  %v4277_v17 = vadd.f32 %v9188_v55, %v4216_v44  ;;  %v5369_v51 = vadd.f32 %v5368_v9, %v5367_v18 }
 0x546   :  { %v5370_v40 = vpop.f32.mrf.mxu1  ;;  %v5476_v62 = vpop.f32.mrf.mxu0 }
 0x547   :  { %v4219_v15 = vadd.f32 %v5475_v45, %v4058_v28  ;;  %5627 = vmatmul.mubr.bf16.gmra.mxu1 %v4328_v46  ;;  %v4309_v4 = vmax.f32 %v4277_v17, 0.0  ;;  %v4066_v12 = vadd.f32 %v9157_v1, %v5369_v51 }
 0x548   :  { %v5371_v48 = vpop.f32.mrf.mxu1  ;;  %v5477_v29 = vpop.f32.mrf.mxu0 }
 0x549   :  { %v4278_v16 = vadd.f32 %v9188_v55, %v4219_v15  ;;  %v5478_v50 = vadd.f32 %v5477_v29, %v5476_v62  ;;  %v5372_v19 = vadd.f32 %v5371_v48, %v5370_v40  ;;  %v9254_v48 = vld [vmem:[%s9330_s2 + $0xc] ss:$0 sm:$0xff] }
 0x54a   :  { %v5373_v49 = vpop.f32.mrf.mxu1  ;;  %v5479_v6 = vpop.f32.mrf.mxu0 }
 0x54b   :  { %v4310_v58 = vmax.f32 %v4278_v16, 0.0  ;;  %v4224_v63 = vadd.f32 %v5478_v50, %v4063_v60  ;;  %v4071_v7 = vadd.f32 %v5372_v19, %v9169_v57 }
 0x54c   :  { %v5374_v43 = vpop.f32.mrf.mxu1  ;;  %v5480_v24 = vpop.f32.mrf.mxu0 }
 0x54d   :  { %v5481_v56 = vadd.f32 %v5480_v24, %v5479_v6  ;;  %v4329_v35 = vpack.c.bf16 %v4310_v58, %v4309_v4  ;;  %v4279_v42 = vadd.f32 %v9188_v55, %v4224_v63  ;;  %v5375_v13 = vadd.f32 %v5374_v43, %v5373_v49 }
 0x54e   :  { %v5376_v54 = vpop.f32.mrf.mxu1  ;;  %v5482_v26 = vpop.f32.mrf.mxu0 }
 0x54f   :  { %v4227_v34 = vadd.f32 %v5481_v56, %v4066_v12  ;;  %5630 = vmatprep.mubr.bf16.mxu1 %v4329_v35  ;;  %v4311_v1 = vmax.f32 %v4279_v42, 0.0  ;;  %v4074_v5 = vadd.f32 %v5375_v13, %v9175_v37 }
 0x550   :  { %v5377_v47 = vpop.f32.mrf.mxu1  ;;  %v5483_v25 = vpop.f32.mrf.mxu0 }
 0x551   :  { %v4280_v52 = vadd.f32 %v9188_v55, %v4227_v34  ;;  %v5484_v32 = vadd.f32 %v5483_v25, %v5482_v26  ;;  %v5378_v31 = vadd.f32 %v5377_v47, %v5376_v54 }
 0x552   :  { %v5379_v23 = vpop.f32.mrf.mxu1  ;;  %v5485_v38 = vpop.f32.mrf.mxu0 }
 0x553   :  { %v4312_v11 = vmax.f32 %v4280_v52, 0.0  ;;  %v4232_v8 = vadd.f32 %v5484_v32, %v4071_v7  ;;  %v4079_v10 = vadd.f32 %v9165_v61, %v5378_v31 }
 0x554   :  { %v5486_v39 = vpop.f32.mrf.mxu0  ;;  %v5380_v36 = vpop.f32.mrf.mxu1 }
 0x555   :  { %v4330_v3 = vpack.c.bf16 %v4312_v11, %v4311_v1  ;;  %v5487_v53 = vadd.f32 %v5486_v39, %v5485_v38  ;;  %v4281_v41 = vadd.f32 %v9188_v55, %v4232_v8  ;;  %v5381_v18 = vadd.f32 %v5380_v36, %v5379_v23 }
 0x556   :  { %v5488_v27 = vpop.f32.mrf.mxu0 }
 0x557   :  { %v4235_v57 = vadd.f32 %v5487_v53, %v4074_v5  ;;  %5631 = vmatmul.mubr.bf16.gmra.mxu1 %v4330_v3  ;;  %v4313_v22 = vmax.f32 %v4281_v41, 0.0  ;;  %v4082_v9 = vadd.f32 %v9171_v30, %v5381_v18 }
 0x558   :  { %v5489_v33 = vpop.f32.mrf.mxu0 }
 0x559   :  { %v4282_v20 = vadd.f32 %v9188_v55, %v4235_v57  ;;  %v5490_v2 = vadd.f32 %v5489_v33, %v5488_v27 }
 0x55a   :  { %v5491_v21 = vpop.f32.mrf.mxu0 }
 0x55b   :  { %v4314_v0 = vmax.f32 %v4282_v20, 0.0  ;;  %v4240_v37 = vadd.f32 %v5490_v2, %v4079_v10 }
 0x55c   :  { %v5492_v44 = vpop.f32.mrf.mxu0 }
 0x55d   :  { %v5493_v59 = vadd.f32 %v5492_v44, %v5491_v21  ;;  %v4331_v28 = vpack.c.bf16 %v4314_v0, %v4313_v22  ;;  %v4283_v46 = vadd.f32 %v9188_v55, %v4240_v37 }
 0x55f   :  { %v4243_v14 = vadd.f32 %v5493_v59, %v4082_v9  ;;  %5634 = vmatprep.mubr.bf16.mxu1 %v4331_v28  ;;  %v4315_v61 = vmax.f32 %v4283_v46, 0.0 }
 0x561   :  { %v4284_v45 = vadd.f32 %v9188_v55, %v4243_v14 }
 0x563   :  { %v4316_v40 = vmax.f32 %v4284_v45, 0.0 }
 0x565   :  { %v4332_v62 = vpack.c.bf16 %v4316_v40, %v4315_v61 }
 0x567   :  { %5635 = vmatmul.mubr.bf16.gmra.mxu1 %v4332_v62 }
 0x5b7   :  { %v5608_v17 = vpop.f32.mrf.mxu1 }
 0x5b8   :  { %v4447_v51 = vadd.f32 %v5608_v17, %v9254_v48 }
 0x5b9   :  { %v4438_v15 = vpop.f32.mrf.mxu1 }
 0x5ba   :  { %v4439_v29 = vadd.f32 %v9254_v48, %v4438_v15  ;;  %v4567_v4 = vmax.f32 %v4447_v51, 0.0 }
 0x5bb   :  { %v5609_v30 = vpop.f32.mrf.mxu1 }
 0x5bc   :  { %v4450_v60 = vadd.f32 %v5609_v30, %v9254_v48  ;;  %v4565_v49 = vmax.f32 %v4439_v29, 0.0 }
 0x5bd   :  { %v4441_v16 = vpop.f32.mrf.mxu1 }
 0x5be   :  { %v4442_v55 = vadd.f32 %v9254_v48, %v4441_v16  ;;  %v4568_v50 = vmax.f32 %v4450_v60, 0.0 }
 0x5c0   :  { %v4566_v6 = vmax.f32 %v4442_v55, 0.0  ;;  %v4598_v63 = vpack.c.bf16 %v4568_v50, %v4567_v4 }
 0x5c2   :  { %v4597_v58 = vpack.c.bf16 %v4566_v6, %v4565_v49 }
 0x5c4   :  { %5654 = vmatprep.mubr.bf16.mxu0 %v4597_v58 }
 0x5c5   :  { %5655 = vmatmul.mubr.bf16.vlgmr.msra.gmra.mxu0 %v4598_v63 }
 0x5c7   :  { %v5612_v43 = vpop.f32.mrf.mxu1 }
 0x5c8   :  { %v4463_v35 = vadd.f32 %v5612_v43, %v9254_v48 }
 0x5c9   :  { %v4454_v24 = vpop.f32.mrf.mxu1 }
 0x5ca   :  { %v4455_v19 = vadd.f32 %v9254_v48, %v4454_v24  ;;  %v4571_v25 = vmax.f32 %v4463_v35, 0.0 }
 0x5cb   :  { %v5613_v12 = vpop.f32.mrf.mxu1 }
 0x5cc   :  { %v4466_v56 = vadd.f32 %v5613_v12, %v9254_v48  ;;  %v4569_v34 = vmax.f32 %v4455_v19, 0.0 }
 0x5cd   :  { %v4457_v54 = vpop.f32.mrf.mxu1 }
 0x5ce   :  { %v4458_v26 = vadd.f32 %v9254_v48, %v4457_v54  ;;  %v4572_v42 = vmax.f32 %v4466_v56, 0.0 }
 0x5d0   :  { %v4570_v47 = vmax.f32 %v4458_v26, 0.0  ;;  %v4600_v13 = vpack.c.bf16 %v4572_v42, %v4571_v25 }
 0x5d2   :  { %v4599_v7 = vpack.c.bf16 %v4570_v47, %v4569_v34 }
 0x5d4   :  { %5658 = vmatprep.mubr.bf16.mxu0 %v4599_v7 }
 0x5d5   :  { %5659 = vmatmul.mubr.bf16.gmra.mxu0 %v4600_v13 }
 0x5d7   :  { %v5616_v52 = vpop.f32.mrf.mxu1 }
 0x5d8   :  { %v4479_v11 = vadd.f32 %v5616_v52, %v9254_v48 }
 0x5d9   :  { %v4470_v32 = vpop.f32.mrf.mxu1 }
 0x5da   :  { %v4471_v38 = vadd.f32 %v9254_v48, %v4470_v32  ;;  %v4575_v53 = vmax.f32 %v4479_v11, 0.0 }
 0x5db   :  { %v5617_v23 = vpop.f32.mrf.mxu1 }
 0x5dc   :  { %v4482_v1 = vadd.f32 %v5617_v23, %v9254_v48  ;;  %v4573_v3 = vmax.f32 %v4471_v38, 0.0 }
 0x5dd   :  { %v4473_v8 = vpop.f32.mrf.mxu1 }
 0x5de   :  { %v4474_v39 = vadd.f32 %v9254_v48, %v4473_v8  ;;  %v4576_v5 = vmax.f32 %v4482_v1, 0.0 }
 0x5e0   :  { %v4574_v31 = vmax.f32 %v4474_v39, 0.0  ;;  %v4602_v27 = vpack.c.bf16 %v4576_v5, %v4575_v53 }
 0x5e2   :  { %v4601_v36 = vpack.c.bf16 %v4574_v31, %v4573_v3 }
 0x5e4   :  { %5662 = vmatprep.mubr.bf16.mxu0 %v4601_v36 }
 0x5e5   :  { %5663 = vmatmul.mubr.bf16.gmra.mxu0 %v4602_v27 }
 0x5e7   :  { %v5620_v41 = vpop.f32.mrf.mxu1 }
 0x5e8   :  { %v4495_v20 = vadd.f32 %v5620_v41, %v9254_v48 }
 0x5e9   :  { %v4486_v57 = vpop.f32.mrf.mxu1 }
 0x5ea   :  { %v4487_v10 = vadd.f32 %v9254_v48, %v4486_v57  ;;  %v4579_v44 = vmax.f32 %v4495_v20, 0.0 }
 0x5eb   :  { %v5621_v33 = vpop.f32.mrf.mxu1 }
 0x5ec   :  { %v4498_v18 = vadd.f32 %v5621_v33, %v9254_v48  ;;  %v4577_v0 = vmax.f32 %v4487_v10, 0.0 }
 0x5ed   :  { %v4489_v2 = vpop.f32.mrf.mxu1 }
 0x5ee   :  { %v4490_v21 = vadd.f32 %v9254_v48, %v4489_v2  ;;  %v4580_v22 = vmax.f32 %v4498_v18, 0.0 }
 0x5f0   :  { %v4578_v37 = vmax.f32 %v4490_v21, 0.0  ;;  %v4604_v59 = vpack.c.bf16 %v4580_v22, %v4579_v44  ;;  %v9291_v21 = vld [vmem:[%s9330_s2 + $0xd] ss:$0 sm:$0xff]  ;;  %s6423_s2 = smov [#allocation11]  }
 0x5f1   :  { %s5074_s14 = sshll.u32 %s6423_s2, 4  ;;  %s5075_s14 = int_to_ptr.vmem [resolvable:$true] %s5074_s14 }
 0x5f2   :  { %v4603_v9 = vpack.c.bf16 %v4578_v37, %v4577_v0  ;;  %s6381_s15 = scalar_lea.vmem %s5075_s14, 4096  ;;  %p6386_p12 = scmp.lt.s32.totalorder %s5075_s14, %s5075_s14 }
 0x5f3   :  { %p6382_p11 = scmp.ne.s32.totalorder %s5075_s14, %s6381_s15  ;;  %p6387_p13 = scmp.lt.s32.totalorder %s6381_s15, %s6381_s15 }
 0x5f4   :  { %5666 = vmatprep.mubr.bf16.mxu0 %v4603_v9 }
 0x5f5   :  { %5667 = vmatmul.mubr.bf16.gmra.mxu0 %v4604_v59  ;;  %p6388_p0 = por %p6387_p13, %p6386_p12 }
 0x5f7   :  { %v5624_v28 = vpop.f32.mrf.mxu1  ;;  %p6389_p1 = pnand %p6388_p0, %p6382_p11 }
 0x5f8   :  { %v4511_v40 = vadd.f32 %v5624_v28, %v9254_v48 }
 0x5f9   :  { %v4502_v46 = vpop.f32.mrf.mxu1 }
 0x5fa   :  { %v4503_v45 = vadd.f32 %v9254_v48, %v4502_v46  ;;  %v4583_v60 = vmax.f32 %v4511_v40, 0.0 }
 0x5fb   :  { %v5625_v14 = vpop.f32.mrf.mxu1 }
 0x5fc   :  { %v4514_v61 = vadd.f32 %v5625_v14, %v9254_v48  ;;  %v4581_v30 = vmax.f32 %v4503_v45, 0.0 }
 0x5fd   :  { %v4505_v62 = vpop.f32.mrf.mxu1 }
 0x5fe   :  { %v4506_v17 = vadd.f32 %v9254_v48, %v4505_v62  ;;  %v4584_v15 = vmax.f32 %v4514_v61, 0.0 }
 0x600   :  { %v4582_v29 = vmax.f32 %v4506_v17, 0.0  ;;  %v4606_v16 = vpack.c.bf16 %v4584_v15, %v4583_v60 }
 0x602   :  { %v4605_v51 = vpack.c.bf16 %v4582_v29, %v4581_v30 }
 0x604   :  { %5670 = vmatprep.mubr.bf16.mxu0 %v4605_v51 }
 0x605   :  { %5671 = vmatmul.mubr.bf16.gmra.mxu0 %v4606_v16 }
 0x607   :  { %v5628_v55 = vpop.f32.mrf.mxu1 }
 0x608   :  { %v4527_v58 = vadd.f32 %v5628_v55, %v9254_v48 }
 0x609   :  { %v4518_v50 = vpop.f32.mrf.mxu1 }
 0x60a   :  { %v4519_v6 = vadd.f32 %v9254_v48, %v4518_v50  ;;  %v4587_v56 = vmax.f32 %v4527_v58, 0.0 }
 0x60b   :  { %v5629_v49 = vpop.f32.mrf.mxu1 }
 0x60c   :  { %v4530_v4 = vadd.f32 %v5629_v49, %v9254_v48  ;;  %v4585_v12 = vmax.f32 %v4519_v6, 0.0 }
 0x60d   :  { %v4521_v63 = vpop.f32.mrf.mxu1 }
 0x60e   :  { %v4522_v43 = vadd.f32 %v9254_v48, %v4521_v63  ;;  %v4588_v24 = vmax.f32 %v4530_v4, 0.0 }
 0x610   :  { %v4586_v19 = vmax.f32 %v4522_v43, 0.0  ;;  %v4608_v54 = vpack.c.bf16 %v4588_v24, %v4587_v56 }
 0x612   :  { %v4607_v35 = vpack.c.bf16 %v4586_v19, %v4585_v12 }
 0x614   :  { %5674 = vmatprep.mubr.bf16.mxu0 %v4607_v35 }
 0x615   :  { %5675 = vmatmul.mubr.bf16.gmra.mxu0 %v4608_v54 }
 0x617   :  { %v5632_v26 = vpop.f32.mrf.mxu1 }
 0x618   :  { %v4543_v7 = vadd.f32 %v5632_v26, %v9254_v48 }
 0x619   :  { %v4534_v42 = vpop.f32.mrf.mxu1 }
 0x61a   :  { %v4535_v47 = vadd.f32 %v9254_v48, %v4534_v42  ;;  %v4591_v1 = vmax.f32 %v4543_v7, 0.0 }
 0x61b   :  { %v5633_v34 = vpop.f32.mrf.mxu1 }
 0x61c   :  { %v4546_v25 = vadd.f32 %v5633_v34, %v9254_v48  ;;  %v4589_v23 = vmax.f32 %v4535_v47, 0.0 }
 0x61d   :  { %v4537_v13 = vpop.f32.mrf.mxu1 }
 0x61e   :  { %v4538_v52 = vadd.f32 %v9254_v48, %v4537_v13  ;;  %v4592_v32 = vmax.f32 %v4546_v25, 0.0 }
 0x620   :  { %v4590_v38 = vmax.f32 %v4538_v52, 0.0  ;;  %v4610_v8 = vpack.c.bf16 %v4592_v32, %v4591_v1 }
 0x622   :  { %v4609_v11 = vpack.c.bf16 %v4590_v38, %v4589_v23 }
 0x624   :  { %5678 = vmatprep.mubr.bf16.mxu0 %v4609_v11 }
 0x625   :  { %5679 = vmatmul.mubr.bf16.gmra.mxu0 %v4610_v8 }
 0x627   :  { %v5636_v39 = vpop.f32.mrf.mxu1 }
 0x628   :  { %v4559_v36 = vadd.f32 %v5636_v39, %v9254_v48 }
 0x629   :  { %v4550_v5 = vpop.f32.mrf.mxu1 }
 0x62a   :  { %v4551_v31 = vadd.f32 %v9254_v48, %v4550_v5  ;;  %v4595_v18 = vmax.f32 %v4559_v36, 0.0 }
 0x62b   :  { %v5637_v3 = vpop.f32.mrf.mxu1 }
 0x62c   :  { %v4562_v53 = vadd.f32 %v5637_v3, %v9254_v48  ;;  %v4593_v33 = vmax.f32 %v4551_v31, 0.0 }
 0x62d   :  { %v4553_v27 = vpop.f32.mrf.mxu1 }
 0x62e   :  { %v4554_v41 = vadd.f32 %v9254_v48, %v4553_v27  ;;  %v4596_v57 = vmax.f32 %v4562_v53, 0.0 }
 0x630   :  { %v4594_v10 = vmax.f32 %v4554_v41, 0.0  ;;  %v4612_v2 = vpack.c.bf16 %v4596_v57, %v4595_v18 }
 0x632   :  { %v4611_v20 = vpack.c.bf16 %v4594_v10, %v4593_v33 }
 0x634   :  { %5682 = vmatprep.mubr.bf16.mxu0 %v4611_v20 }
 0x635   :  { %5683 = vmatmul.mubr.bf16.gmra.mxu0 %v4612_v2 }
 0x685   :  { %v5656_v22 = vpop.f32.mrf.mxu0 }
 0x686   :  { %v4727_v0 = vadd.f32 %v5656_v22, %v9291_v21 }
 0x687   :  { %v4718_v37 = vpop.f32.mrf.mxu0 }
 0x688   :  { %v5216_v44 = vmul.f32 -1.442695, %v4727_v0  ;;  %v4719_v48 = vadd.f32 %v9291_v21, %v4718_v37 }
 0x689   :  { %v5657_v9 = vpop.f32.mrf.mxu0 }
 0x68a   :  { %6074 = vpow2.f32 %v5216_v44  ;;  %v5214_v59 = vmul.f32 -1.442695, %v4719_v48  ;;  %v4730_v28 = vadd.f32 %v5657_v9, %v9291_v21 }
 0x68b   :  { %v4721_v46 = vpop.f32.mrf.mxu0 }
 0x68c   :  { %6076 = vpow2.f32 %v5214_v59  ;;  %v5217_v14 = vmul.f32 -1.442695, %v4730_v28  ;;  %v4722_v45 = vadd.f32 %v9291_v21, %v4721_v46 }
 0x68e   :  { %6078 = vpow2.f32 %v5217_v14  ;;  %v5215_v61 = vmul.f32 -1.442695, %v4722_v45 }
 0x690   :  { %6080 = vpow2.f32 %v5215_v61 }
 0x695   :  { %v5660_v40 = vpop.f32.mrf.mxu0 }
 0x696   :  { %v4743_v62 = vadd.f32 %v5660_v40, %v9291_v21 }
 0x697   :  { %v6075_v17 = vpop.eup %6074  ;;  %v4734_v15 = vpop.f32.mrf.mxu0 }
 0x698   :  { %v4943_v30 = vadd.f32 1.0, %v6075_v17  ;;  %v5220_v29 = vmul.f32 -1.442695, %v4743_v62  ;;  %v4735_v60 = vadd.f32 %v9291_v21, %v4734_v15 }
 0x699   :  { %v6077_v51 = vpop.eup %6076  ;;  %v5661_v16 = vpop.f32.mrf.mxu0 }
 0x69a   :  { %6082 = vrcp.f32 %v4943_v30  ;;  %v4941_v55 = vadd.f32 1.0, %v6077_v51  ;;  %v5218_v50 = vmul.f32 -1.442695, %v4735_v60  ;;  %v4746_v49 = vadd.f32 %v5661_v16, %v9291_v21 }
 0x69b   :  { %v6079_v6 = vpop.eup %6078  ;;  %6084 = vpow2.f32 %v5220_v29  ;;  %v4737_v4 = vpop.f32.mrf.mxu0 }
 0x69c   :  { %6086 = vrcp.f32 %v4941_v55  ;;  %v4944_v58 = vadd.f32 1.0, %v6079_v6  ;;  %v5221_v63 = vmul.f32 -1.442695, %v4746_v49  ;;  %v4738_v43 = vadd.f32 %v9291_v21, %v4737_v4 }
 0x69d   :  { %v6081_v24 = vpop.eup %6080  ;;  %6088 = vpow2.f32 %v5218_v50 }
 0x69e   :  { %6090 = vrcp.f32 %v4944_v58  ;;  %v4942_v12 = vadd.f32 1.0, %v6081_v24  ;;  %v5219_v19 = vmul.f32 -1.442695, %v4738_v43 }
 0x69f   :  { %6092 = vpow2.f32 %v5221_v63 }
 0x6a0   :  { %6094 = vrcp.f32 %v4942_v12 }
 0x6a1   :  { %6096 = vpow2.f32 %v5219_v19 }
 0x6a5   :  { %v5664_v56 = vpop.f32.mrf.mxu0 }
 0x6a6   :  { %v4759_v35 = vadd.f32 %v5664_v56, %v9291_v21 }
 0x6a7   :  { %v6083_v54 = vpop.eup %6082  ;;  %v4750_v26 = vpop.f32.mrf.mxu0 }
 0x6a8   :  { %v6085_v42 = vpop.eup %6084  ;;  %5039 = vst [vmem:[#allocation11 + $0x10] sm:$0xff] %v6083_v54  ;;  %v5224_v34 = vmul.f32 -1.442695, %v4759_v35  ;;  %v4751_v47 = vadd.f32 %v9291_v21, %v4750_v26 }
 0x6a9   :  { %v6087_v25 = vpop.eup %6086  ;;  %v4947_v7 = vadd.f32 1.0, %v6085_v42  ;;  %v5665_v13 = vpop.f32.mrf.mxu0 }
 0x6aa   :  { %v6089_v52 = vpop.eup %6088  ;;  %5037 = vst [vmem:[#allocation11] sm:$0xff] %v6087_v25  ;;  %6098 = vpow2.f32 %v5224_v34  ;;  %v5222_v32 = vmul.f32 -1.442695, %v4751_v47  ;;  %v4762_v23 = vadd.f32 %v5665_v13, %v9291_v21 }
 0x6ab   :  { %v6091_v38 = vpop.eup %6090  ;;  %6100 = vrcp.f32 %v4947_v7  ;;  %v4945_v1 = vadd.f32 1.0, %v6089_v52  ;;  %v4753_v11 = vpop.f32.mrf.mxu0 }
 0x6ac   :  { %v6093_v8 = vpop.eup %6092  ;;  %5040 = vst [vmem:[#allocation11 + $0x18] sm:$0xff] %v6091_v38  ;;  %6102 = vpow2.f32 %v5222_v32  ;;  %v5225_v39 = vmul.f32 -1.442695, %v4762_v23  ;;  %v4754_v5 = vadd.f32 %v9291_v21, %v4753_v11 }
 0x6ad   :  { %v6095_v3 = vpop.eup %6094  ;;  %6104 = vrcp.f32 %v4945_v1  ;;  %v4948_v31 = vadd.f32 1.0, %v6093_v8 }
 0x6ae   :  { %v6097_v53 = vpop.eup %6096  ;;  %5038 = vst [vmem:[#allocation11 + $0x8] sm:$0xff] %v6095_v3  ;;  %6106 = vpow2.f32 %v5225_v39  ;;  %v5223_v36 = vmul.f32 -1.442695, %v4754_v5 }
 0x6af   :  { %6108 = vrcp.f32 %v4948_v31  ;;  %v4946_v27 = vadd.f32 1.0, %v6097_v53 }
 0x6b0   :  { %6110 = vpow2.f32 %v5223_v36 }
 0x6b1   :  { %6112 = vrcp.f32 %v4946_v27 }
 0x6b5   :  { %v5668_v41 = vpop.f32.mrf.mxu0 }
 0x6b6   :  { %v4775_v57 = vadd.f32 %v5668_v41, %v9291_v21 }
 0x6b7   :  { %v6099_v33 = vpop.eup %6098  ;;  %v4766_v10 = vpop.f32.mrf.mxu0 }
 0x6b8   :  { %v6101_v18 = vpop.eup %6100  ;;  %v4951_v20 = vadd.f32 1.0, %v6099_v33  ;;  %v5228_v2 = vmul.f32 -1.442695, %v4775_v57  ;;  %v4767_v22 = vadd.f32 %v9291_v21, %v4766_v10 }
 0x6b9   :  { %v6103_v0 = vpop.eup %6102  ;;  %5043 = vst [vmem:[#allocation11 + $0x30] sm:$0xff] %v6101_v18  ;;  %v5669_v37 = vpop.f32.mrf.mxu0 }
 0x6ba   :  { %v6105_v44 = vpop.eup %6104  ;;  %6114 = vrcp.f32 %v4951_v20  ;;  %v4949_v48 = vadd.f32 1.0, %v6103_v0  ;;  %v5226_v9 = vmul.f32 -1.442695, %v4767_v22  ;;  %v4778_v59 = vadd.f32 %v5669_v37, %v9291_v21 }
 0x6bb   :  { %v6107_v28 = vpop.eup %6106  ;;  %5041 = vst [vmem:[#allocation11 + $0x20] sm:$0xff] %v6105_v44  ;;  %6116 = vpow2.f32 %v5228_v2  ;;  %v4769_v46 = vpop.f32.mrf.mxu0 }
 0x6bc   :  { %v6109_v14 = vpop.eup %6108  ;;  %6118 = vrcp.f32 %v4949_v48  ;;  %v4952_v45 = vadd.f32 1.0, %v6107_v28  ;;  %v5229_v61 = vmul.f32 -1.442695, %v4778_v59  ;;  %v4770_v40 = vadd.f32 %v9291_v21, %v4769_v46 }
 0x6bd   :  { %v6111_v62 = vpop.eup %6110  ;;  %5044 = vst [vmem:[#allocation11 + $0x38] sm:$0xff] %v6109_v14  ;;  %6120 = vpow2.f32 %v5226_v9 }
 0x6be   :  { %v6113_v17 = vpop.eup %6112  ;;  %6122 = vrcp.f32 %v4952_v45  ;;  %v4950_v15 = vadd.f32 1.0, %v6111_v62  ;;  %v5227_v30 = vmul.f32 -1.442695, %v4770_v40 }
 0x6bf   :  { %5042 = vst [vmem:[#allocation11 + $0x28] sm:$0xff] %v6113_v17  ;;  %6124 = vpow2.f32 %v5229_v61 }
 0x6c0   :  { %6126 = vrcp.f32 %v4950_v15 }
 0x6c1   :  { %6128 = vpow2.f32 %v5227_v30 }
 0x6c5   :  { %v5672_v29 = vpop.f32.mrf.mxu0 }
 0x6c6   :  { %v4791_v60 = vadd.f32 %v5672_v29, %v9291_v21 }
 0x6c7   :  { %v6115_v51 = vpop.eup %6114  ;;  %v4782_v16 = vpop.f32.mrf.mxu0 }
 0x6c8   :  { %v6117_v55 = vpop.eup %6116  ;;  %5047 = vst [vmem:[#allocation11 + $0x50] sm:$0xff] %v6115_v51  ;;  %v5232_v50 = vmul.f32 -1.442695, %v4791_v60  ;;  %v4783_v49 = vadd.f32 %v9291_v21, %v4782_v16 }
 0x6c9   :  { %v6119_v6 = vpop.eup %6118  ;;  %v4955_v4 = vadd.f32 1.0, %v6117_v55  ;;  %v5673_v58 = vpop.f32.mrf.mxu0 }
 0x6ca   :  { %v6121_v63 = vpop.eup %6120  ;;  %5045 = vst [vmem:[#allocation11 + $0x40] sm:$0xff] %v6119_v6  ;;  %6130 = vpow2.f32 %v5232_v50  ;;  %v5230_v43 = vmul.f32 -1.442695, %v4783_v49  ;;  %v4794_v24 = vadd.f32 %v5673_v58, %v9291_v21 }
 0x6cb   :  { %v6123_v12 = vpop.eup %6122  ;;  %6132 = vrcp.f32 %v4955_v4  ;;  %v4953_v19 = vadd.f32 1.0, %v6121_v63  ;;  %v4785_v56 = vpop.f32.mrf.mxu0 }
 0x6cc   :  { %v6125_v35 = vpop.eup %6124  ;;  %5048 = vst [vmem:[#allocation11 + $0x58] sm:$0xff] %v6123_v12  ;;  %6134 = vpow2.f32 %v5230_v43  ;;  %v5233_v54 = vmul.f32 -1.442695, %v4794_v24  ;;  %v4786_v26 = vadd.f32 %v9291_v21, %v4785_v56 }
 0x6cd   :  { %v6127_v42 = vpop.eup %6126  ;;  %6136 = vrcp.f32 %v4953_v19  ;;  %v4956_v34 = vadd.f32 1.0, %v6125_v35 }
 0x6ce   :  { %v6129_v47 = vpop.eup %6128  ;;  %5046 = vst [vmem:[#allocation11 + $0x48] sm:$0xff] %v6127_v42  ;;  %6138 = vpow2.f32 %v5233_v54  ;;  %v5231_v25 = vmul.f32 -1.442695, %v4786_v26 }
 0x6cf   :  { %6140 = vrcp.f32 %v4956_v34  ;;  %v4954_v7 = vadd.f32 1.0, %v6129_v47 }
 0x6d0   :  { %6142 = vpow2.f32 %v5231_v25 }
 0x6d1   :  { %6144 = vrcp.f32 %v4954_v7 }
 0x6d5   :  { %v5676_v13 = vpop.f32.mrf.mxu0 }
 0x6d6   :  { %v4807_v52 = vadd.f32 %v5676_v13, %v9291_v21 }
 0x6d7   :  { %v6131_v32 = vpop.eup %6130  ;;  %v4798_v23 = vpop.f32.mrf.mxu0 }
 0x6d8   :  { %v6133_v38 = vpop.eup %6132  ;;  %v4959_v1 = vadd.f32 1.0, %v6131_v32  ;;  %v5236_v11 = vmul.f32 -1.442695, %v4807_v52  ;;  %v4799_v8 = vadd.f32 %v9291_v21, %v4798_v23 }
 0x6d9   :  { %v6135_v39 = vpop.eup %6134  ;;  %5051 = vst [vmem:[#allocation11 + $0x70] sm:$0xff] %v6133_v38  ;;  %v5677_v5 = vpop.f32.mrf.mxu0 }
 0x6da   :  { %v6137_v3 = vpop.eup %6136  ;;  %6146 = vrcp.f32 %v4959_v1  ;;  %v4957_v31 = vadd.f32 1.0, %v6135_v39  ;;  %v5234_v53 = vmul.f32 -1.442695, %v4799_v8  ;;  %v4810_v36 = vadd.f32 %v5677_v5, %v9291_v21 }
 0x6db   :  { %v6139_v27 = vpop.eup %6138  ;;  %5049 = vst [vmem:[#allocation11 + $0x60] sm:$0xff] %v6137_v3  ;;  %6148 = vpow2.f32 %v5236_v11  ;;  %v4801_v41 = vpop.f32.mrf.mxu0 }
 0x6dc   :  { %v6141_v57 = vpop.eup %6140  ;;  %6150 = vrcp.f32 %v4957_v31  ;;  %v4960_v33 = vadd.f32 1.0, %v6139_v27  ;;  %v5237_v10 = vmul.f32 -1.442695, %v4810_v36  ;;  %v4802_v18 = vadd.f32 %v9291_v21, %v4801_v41 }
 0x6dd   :  { %v6143_v20 = vpop.eup %6142  ;;  %5052 = vst [vmem:[#allocation11 + $0x78] sm:$0xff] %v6141_v57  ;;  %6152 = vpow2.f32 %v5234_v53 }
 0x6de   :  { %v6145_v2 = vpop.eup %6144  ;;  %6154 = vrcp.f32 %v4960_v33  ;;  %v4958_v22 = vadd.f32 1.0, %v6143_v20  ;;  %v5235_v0 = vmul.f32 -1.442695, %v4802_v18 }
 0x6df   :  { %5050 = vst [vmem:[#allocation11 + $0x68] sm:$0xff] %v6145_v2  ;;  %6156 = vpow2.f32 %v5237_v10 }
 0x6e0   :  { %6158 = vrcp.f32 %v4958_v22 }
 0x6e1   :  { %6160 = vpow2.f32 %v5235_v0 }
 0x6e5   :  { %v5680_v37 = vpop.f32.mrf.mxu0 }
 0x6e6   :  { %v4823_v44 = vadd.f32 %v5680_v37, %v9291_v21 }
 0x6e7   :  { %v6147_v48 = vpop.eup %6146  ;;  %v4814_v9 = vpop.f32.mrf.mxu0 }
 0x6e8   :  { %v6149_v59 = vpop.eup %6148  ;;  %5055 = vst [vmem:[#allocation11 + $0x90] sm:$0xff] %v6147_v48  ;;  %v5240_v28 = vmul.f32 -1.442695, %v4823_v44  ;;  %v4815_v46 = vadd.f32 %v9291_v21, %v4814_v9 }
 0x6e9   :  { %v6151_v14 = vpop.eup %6150  ;;  %v4963_v45 = vadd.f32 1.0, %v6149_v59  ;;  %v5681_v61 = vpop.f32.mrf.mxu0 }
 0x6ea   :  { %v6153_v40 = vpop.eup %6152  ;;  %5053 = vst [vmem:[#allocation11 + $0x80] sm:$0xff] %v6151_v14  ;;  %6162 = vpow2.f32 %v5240_v28  ;;  %v5238_v62 = vmul.f32 -1.442695, %v4815_v46  ;;  %v4826_v17 = vadd.f32 %v5681_v61, %v9291_v21 }
 0x6eb   :  { %v6155_v15 = vpop.eup %6154  ;;  %6164 = vrcp.f32 %v4963_v45  ;;  %v4961_v30 = vadd.f32 1.0, %v6153_v40  ;;  %v4817_v29 = vpop.f32.mrf.mxu0 }
 0x6ec   :  { %v6157_v60 = vpop.eup %6156  ;;  %5056 = vst [vmem:[#allocation11 + $0x98] sm:$0xff] %v6155_v15  ;;  %6166 = vpow2.f32 %v5238_v62  ;;  %v5241_v51 = vmul.f32 -1.442695, %v4826_v17  ;;  %v4818_v16 = vadd.f32 %v9291_v21, %v4817_v29 }
 0x6ed   :  { %v6159_v55 = vpop.eup %6158  ;;  %6168 = vrcp.f32 %v4961_v30  ;;  %v4964_v50 = vadd.f32 1.0, %v6157_v60 }
 0x6ee   :  { %v6161_v49 = vpop.eup %6160  ;;  %5054 = vst [vmem:[#allocation11 + $0x88] sm:$0xff] %v6159_v55  ;;  %6170 = vpow2.f32 %v5241_v51  ;;  %v5239_v6 = vmul.f32 -1.442695, %v4818_v16 }
 0x6ef   :  { %6172 = vrcp.f32 %v4964_v50  ;;  %v4962_v4 = vadd.f32 1.0, %v6161_v49 }
 0x6f0   :  { %6174 = vpow2.f32 %v5239_v6 }
 0x6f1   :  { %6176 = vrcp.f32 %v4962_v4 }
 0x6f5   :  { %v5684_v58 = vpop.f32.mrf.mxu0 }
 0x6f6   :  { %v4839_v63 = vadd.f32 %v5684_v58, %v9291_v21 }
 0x6f7   :  { %v6163_v43 = vpop.eup %6162  ;;  %v4830_v24 = vpop.f32.mrf.mxu0 }
 0x6f8   :  { %v6165_v12 = vpop.eup %6164  ;;  %v4967_v19 = vadd.f32 1.0, %v6163_v43  ;;  %v5244_v56 = vmul.f32 -1.442695, %v4839_v63  ;;  %v4831_v35 = vadd.f32 %v9291_v21, %v4830_v24 }
 0x6f9   :  { %v6167_v54 = vpop.eup %6166  ;;  %5059 = vst [vmem:[#allocation11 + $0xb0] sm:$0xff] %v6165_v12  ;;  %v5685_v26 = vpop.f32.mrf.mxu0 }
 0x6fa   :  { %v6169_v42 = vpop.eup %6168  ;;  %6178 = vrcp.f32 %v4967_v19  ;;  %v4965_v34 = vadd.f32 1.0, %v6167_v54  ;;  %v5242_v47 = vmul.f32 -1.442695, %v4831_v35  ;;  %v4842_v25 = vadd.f32 %v5685_v26, %v9291_v21 }
 0x6fb   :  { %v6171_v7 = vpop.eup %6170  ;;  %5057 = vst [vmem:[#allocation11 + $0xa0] sm:$0xff] %v6169_v42  ;;  %6180 = vpow2.f32 %v5244_v56  ;;  %v4833_v13 = vpop.f32.mrf.mxu0 }
 0x6fc   :  { %v6173_v52 = vpop.eup %6172  ;;  %6182 = vrcp.f32 %v4965_v34  ;;  %v4968_v32 = vadd.f32 1.0, %v6171_v7  ;;  %v5245_v23 = vmul.f32 -1.442695, %v4842_v25  ;;  %v4834_v38 = vadd.f32 %v9291_v21, %v4833_v13 }
 0x6fd   :  { %v6175_v1 = vpop.eup %6174  ;;  %5060 = vst [vmem:[#allocation11 + $0xb8] sm:$0xff] %v6173_v52  ;;  %6184 = vpow2.f32 %v5242_v47 }
 0x6fe   :  { %v6177_v11 = vpop.eup %6176  ;;  %6186 = vrcp.f32 %v4968_v32  ;;  %v4966_v8 = vadd.f32 1.0, %v6175_v1  ;;  %v5243_v39 = vmul.f32 -1.442695, %v4834_v38 }
 0x6ff   :  { %5058 = vst [vmem:[#allocation11 + $0xa8] sm:$0xff] %v6177_v11  ;;  %6188 = vpow2.f32 %v5245_v23 }
 0x700   :  { %6190 = vrcp.f32 %v4966_v8 }
 0x701   :  { %6192 = vpow2.f32 %v5243_v39 }
 0x707   :  { %v6179_v5 = vpop.eup %6178 }
 0x708   :  { %v6181_v3 = vpop.eup %6180  ;;  %5063 = vst [vmem:[#allocation11 + $0xd0] sm:$0xff] %v6179_v5 }
 0x709   :  { %v6183_v31 = vpop.eup %6182  ;;  %v4971_v53 = vadd.f32 1.0, %v6181_v3 }
 0x70a   :  { %v6185_v36 = vpop.eup %6184  ;;  %5061 = vst [vmem:[#allocation11 + $0xc0] sm:$0xff] %v6183_v31 }
 0x70b   :  { %v6187_v27 = vpop.eup %6186  ;;  %6194 = vrcp.f32 %v4971_v53  ;;  %v4969_v21 = vadd.f32 1.0, %v6185_v36 }
 0x70c   :  { %v6189_v41 = vpop.eup %6188  ;;  %5064 = vst [vmem:[#allocation11 + $0xd8] sm:$0xff] %v6187_v27 }
 0x70d   :  { %v6191_v57 = vpop.eup %6190  ;;  %6196 = vrcp.f32 %v4969_v21  ;;  %v4972_v33 = vadd.f32 1.0, %v6189_v41 }
 0x70e   :  { %v6193_v10 = vpop.eup %6192  ;;  %5062 = vst [vmem:[#allocation11 + $0xc8] sm:$0xff] %v6191_v57 }
 0x70f   :  { %6198 = vrcp.f32 %v4972_v33  ;;  %v4970_v18 = vadd.f32 1.0, %v6193_v10 }
 0x711   :  { %6200 = vrcp.f32 %v4970_v18 }
 0x718   :  { %v6195_v20 = vpop.eup %6194 }
 0x719   :  { %5067 = vst [vmem:[#allocation11 + $0xf0] sm:$0xff] %v6195_v20 }
 0x71a   :  { %v6197_v2 = vpop.eup %6196 }
 0x71b   :  { %5065 = vst [vmem:[#allocation11 + $0xe0] sm:$0xff] %v6197_v2 }
 0x71c   :  { %v6199_v22 = vpop.eup %6198 }
 0x71d   :  { %5068 = vst [vmem:[#allocation11 + $0xf8] sm:$0xff] %v6199_v22 }
 0x71e   :  { %v6201_v0 = vpop.eup %6200 }
 0x71f   :  { %5066 = vst [vmem:[#allocation11 + $0xe8] sm:$0xff] %v6201_v0 }
 0x720   :  { %6392 = shalt.err (!%p6389_p1)
}
 0x721   :  { %s6424_s16 = smov 128   ;;  %s6425_s17 = smov 8  }
 0x722   :  { %5080 = dma.vmem_to_hbm [thread:$0]  %s5075_s14, 4096, %s9337_s9, [#allocation4], %s6424_s16, %s6424_s16, %s6425_s17  }
 0x723   :  { %6407 = dma.done.wait [#allocation4], 4096  }
 0x724   :  { %6408 = vsyncadd [#allocation4], 4294963200 }
 0x725   :  { %5084 = vsyncpa [#allocation3], 1 }
 0x726   :  { %5085 = vsyncpa [#allocation6], 1 }
 0x727   :  { %5086 = vsyncpa [#allocation9], 1 }
 0x728   :  { %5087 = vsyncpa [#allocation4], 1 }

</bundles_post_ra>
